<compile_context>
chip_gen: v5e
topology: v5e:2x2
jax: 0.10.0
libtpu: 0.0.40
codegen_flags: <defaults>
</compile_context>

<pallas_src>
import functools
import math

import jax
import jax.numpy as jnp
from jax.experimental import pallas as pl
from jax.experimental.pallas import tpu as pltpu


# ----------------------------- fused Pallas kernel -----------------------------

def fused_transformer_kernel(x_ref, *refs, treedef, n_params, nhead, n_enc,
                             n_dec, eps=1e-5):
    param_refs = refs[:n_params]
    o_ref = refs[n_params]
    p = jax.tree_util.tree_unflatten(treedef, param_refs)

    S = x_ref.shape[1]
    D = p["w_in"].shape[1]
    hd = D // nhead
    scale = 1.0 / math.sqrt(hd)

    # Causal (square subsequent) mask, built once per kernel invocation.
    row = jax.lax.broadcasted_iota(jnp.int32, (S, S), 0)
    col = jax.lax.broadcasted_iota(jnp.int32, (S, S), 1)
    causal = jnp.where(col > row, jnp.float32(-1e30), jnp.float32(0.0))

    def layer_norm(z, g, b):
        mu = jnp.mean(z, axis=-1, keepdims=True)
        var = jnp.mean(jnp.square(z - mu), axis=-1, keepdims=True)
        return (z - mu) * jax.lax.rsqrt(var + eps) * g + b

    def softmax_rows(s):
        m = jnp.max(s, axis=-1, keepdims=True)
        e = jnp.exp(s - m)
        return e * pl.reciprocal(jnp.sum(e, axis=-1, keepdims=True), approx=True)

    def attention_out(q, k, v, wo, bo):
        # q, k, v: [S, D]; per-head attention with the output projection folded
        # into the head loop (sum_h o_h @ Wo[h*hd:(h+1)*hd, :]) -> no concat.
        out = jnp.zeros((S, D), jnp.float32)
        for h in range(nhead):
            sl = slice(h * hd, (h + 1) * hd)
            qh, kh, vh = q[:, sl], k[:, sl], v[:, sl]
            s = jax.lax.dot_general(
                qh, kh, (((1,), (1,)), ((), ())),
                preferred_element_type=jnp.float32) * scale
            prob = softmax_rows(s + causal)
            oh = jnp.dot(prob, vh, preferred_element_type=jnp.float32)
            out = out + jnp.dot(oh, wo[sl, :], preferred_element_type=jnp.float32)
        return out + bo

    def mha_self(x, wqkv, bqkv, wo, bo):
        qkv = jnp.dot(x, wqkv, preferred_element_type=jnp.float32) + bqkv
        return attention_out(qkv[:, :D], qkv[:, D:2 * D], qkv[:, 2 * D:], wo, bo)

    def mha_cross(xq, xkv, wq, bq, wkv, bkv, wo, bo):
        q = jnp.dot(xq, wq, preferred_element_type=jnp.float32) + bq
        kv = jnp.dot(xkv, wkv, preferred_element_type=jnp.float32) + bkv
        return attention_out(q, kv[:, :D], kv[:, D:], wo, bo)

    def ffn(x, w1, b1, w2, b2):
        h1 = jnp.maximum(jnp.dot(x, w1, preferred_element_type=jnp.float32) + b1,
                         0.0)
        return jnp.dot(h1, w2, preferred_element_type=jnp.float32) + b2

    # ----- input projection -----
    x = x_ref[0]                                          # [S, F_in]
    h = jnp.dot(x, p["w_in"][...],
                preferred_element_type=jnp.float32) + p["b_in"][...]   # [S, D]

    # ----- encoder (post-norm, relu FFN, causal src_mask) -----
    src = h
    for l in range(n_enc):
        sa = mha_self(src, p["enc_wqkv"][l], p["enc_bqkv"][l],
                      p["enc_wo"][l], p["enc_bo"][l])
        src = layer_norm(src + sa, p["enc_ln1_g"][l], p["enc_ln1_b"][l])
        ff = ffn(src, p["enc_w1"][l], p["enc_b1"][l],
                 p["enc_w2"][l], p["enc_b2"][l])
        src = layer_norm(src + ff, p["enc_ln2_g"][l], p["enc_ln2_b"][l])
    memory = layer_norm(src, p["enc_norm_g"][...], p["enc_norm_b"][...])

    # ----- decoder (tgt = h since transformer(x, x); causal tgt/memory masks) -----
    tgt = h
    for l in range(n_dec):
        sa = mha_self(tgt, p["dec_sa_wqkv"][l], p["dec_sa_bqkv"][l],
                      p["dec_sa_wo"][l], p["dec_sa_bo"][l])
        tgt = layer_norm(tgt + sa, p["dec_ln1_g"][l], p["dec_ln1_b"][l])
        ca = mha_cross(tgt, memory,
                       p["dec_ca_wq"][l], p["dec_ca_bq"][l],
                       p["dec_ca_wkv"][l], p["dec_ca_bkv"][l],
                       p["dec_ca_wo"][l], p["dec_ca_bo"][l])
        tgt = layer_norm(tgt + ca, p["dec_ln2_g"][l], p["dec_ln2_b"][l])
        ff = ffn(tgt, p["dec_w1"][l], p["dec_b1"][l],
                 p["dec_w2"][l], p["dec_b2"][l])
        tgt = layer_norm(tgt + ff, p["dec_ln3_g"][l], p["dec_ln3_b"][l])
    dec_out = layer_norm(tgt, p["dec_norm_g"][...], p["dec_norm_b"][...])

    # ----- output projection -----
    out = jnp.dot(dec_out, p["w_out"][...],
                  preferred_element_type=jnp.float32) + p["b_out"][...]
    o_ref[0] = out.astype(o_ref.dtype)


# ----------------------------- wrapper -----------------------------

def transformer_forecast_forward(params, x, *, nhead, n_enc, n_dec):
    # x: [B, S, in_features] -> out: [B, S, in_features]
    B, S, F = x.shape
    D = params["w_in"].shape[1]
    assert D % nhead == 0

    flat_params, treedef = jax.tree_util.tree_flatten(params)
    n_params = len(flat_params)

    def full_spec(a):
        nd = a.ndim
        return pl.BlockSpec(a.shape, lambda b, _nd=nd: (0,) * _nd)

    param_specs = [full_spec(a) for a in flat_params]

    kernel = functools.partial(
        fused_transformer_kernel, treedef=treedef, n_params=n_params,
        nhead=nhead, n_enc=n_enc, n_dec=n_dec)

    return pl.pallas_call(
        kernel,
        out_shape=jax.ShapeDtypeStruct((B, S, F), jnp.float32),
        grid=(B,),
        in_specs=[pl.BlockSpec((1, S, F), lambda b: (b, 0, 0))] + param_specs,
        out_specs=pl.BlockSpec((1, S, F), lambda b: (b, 0, 0)),
        compiler_params=pltpu.CompilerParams(
            dimension_semantics=("parallel",)),
    )(x, *flat_params)


# ----------------------------- params -----------------------------

def init_params(key, in_features, hidden, ffn, n_enc, n_dec):
    keys = iter(jax.random.split(key, 64))
    D, Ff = hidden, ffn

    def w(shape, scale=0.05):
        return jax.random.normal(next(keys), shape, jnp.float32) * scale

    def zeros(shape):
        return jnp.zeros(shape, jnp.float32)

    def ones(shape):
        return jnp.ones(shape, jnp.float32)

    params = {
        "w_in": w((in_features, D)), "b_in": zeros((1, D)),
        "w_out": w((D, in_features)), "b_out": zeros((1, in_features)),
        "enc_norm_g": ones((1, D)), "enc_norm_b": zeros((1, D)),
        "dec_norm_g": ones((1, D)), "dec_norm_b": zeros((1, D)),
        # encoder layers, stacked over the layer axis
        "enc_wqkv": w((n_enc, D, 3 * D)), "enc_bqkv": zeros((n_enc, 1, 3 * D)),
        "enc_wo": w((n_enc, D, D)), "enc_bo": zeros((n_enc, 1, D)),
        "enc_ln1_g": ones((n_enc, 1, D)), "enc_ln1_b": zeros((n_enc, 1, D)),
        "enc_ln2_g": ones((n_enc, 1, D)), "enc_ln2_b": zeros((n_enc, 1, D)),
        "enc_w1": w((n_enc, D, Ff)), "enc_b1": zeros((n_enc, 1, Ff)),
        "enc_w2": w((n_enc, Ff, D)), "enc_b2": zeros((n_enc, 1, D)),
        # decoder layers, stacked over the layer axis
        "dec_sa_wqkv": w((n_dec, D, 3 * D)), "dec_sa_bqkv": zeros((n_dec, 1, 3 * D)),
        "dec_sa_wo": w((n_dec, D, D)), "dec_sa_bo": zeros((n_dec, 1, D)),
        "dec_ca_wq": w((n_dec, D, D)), "dec_ca_bq": zeros((n_dec, 1, D)),
        "dec_ca_wkv": w((n_dec, D, 2 * D)), "dec_ca_bkv": zeros((n_dec, 1, 2 * D)),
        "dec_ca_wo": w((n_dec, D, D)), "dec_ca_bo": zeros((n_dec, 1, D)),
        "dec_ln1_g": ones((n_dec, 1, D)), "dec_ln1_b": zeros((n_dec, 1, D)),
        "dec_ln2_g": ones((n_dec, 1, D)), "dec_ln2_b": zeros((n_dec, 1, D)),
        "dec_ln3_g": ones((n_dec, 1, D)), "dec_ln3_b": zeros((n_dec, 1, D)),
        "dec_w1": w((n_dec, D, Ff)), "dec_b1": zeros((n_dec, 1, Ff)),
        "dec_w2": w((n_dec, Ff, D)), "dec_b2": zeros((n_dec, 1, D)),
    }
    return params


# ----------------------------- pure-JAX reference (for checking) -----------------------------

def _reference_forward(params, x, *, nhead, n_enc, n_dec, eps=1e-5):
    B, S, F = x.shape
    D = params["w_in"].shape[1]
    hd = D // nhead
    scale = 1.0 / math.sqrt(hd)
    mask = jnp.where(jnp.arange(S)[None, :] > jnp.arange(S)[:, None], -1e30, 0.0)

    def ln(z, g, b):
        mu = z.mean(-1, keepdims=True)
        var = ((z - mu) ** 2).mean(-1, keepdims=True)
        return (z - mu) / jnp.sqrt(var + eps) * g + b

    def attn(q, k, v, wo, bo):
        qh = q.reshape(B, S, nhead, hd).transpose(0, 2, 1, 3)
        kh = k.reshape(B, S, nhead, hd).transpose(0, 2, 1, 3)
        vh = v.reshape(B, S, nhead, hd).transpose(0, 2, 1, 3)
        s = jnp.einsum("bhqd,bhkd->bhqk", qh, kh) * scale + mask
        prob = jax.nn.softmax(s, axis=-1)
        o = jnp.einsum("bhqk,bhkd->bhqd", prob, vh)
        o = o.transpose(0, 2, 1, 3).reshape(B, S, D)
        return o @ wo + bo

    h = x @ params["w_in"] + params["b_in"]
    src = h
    for l in range(n_enc):
        qkv = src @ params["enc_wqkv"][l] + params["enc_bqkv"][l]
        sa = attn(qkv[..., :D], qkv[..., D:2 * D], qkv[..., 2 * D:],
                  params["enc_wo"][l], params["enc_bo"][l])
        src = ln(src + sa, params["enc_ln1_g"][l], params["enc_ln1_b"][l])
        ff = jnp.maximum(src @ params["enc_w1"][l] + params["enc_b1"][l], 0.0)
        ff = ff @ params["enc_w2"][l] + params["enc_b2"][l]
        src = ln(src + ff, params["enc_ln2_g"][l], params["enc_ln2_b"][l])
    memory = ln(src, params["enc_norm_g"], params["enc_norm_b"])

    tgt = h
    for l in range(n_dec):
        qkv = tgt @ params["dec_sa_wqkv"][l] + params["dec_sa_bqkv"][l]
        sa = attn(qkv[..., :D], qkv[..., D:2 * D], qkv[..., 2 * D:],
                  params["dec_sa_wo"][l], params["dec_sa_bo"][l])
        tgt = ln(tgt + sa, params["dec_ln1_g"][l], params["dec_ln1_b"][l])
        q = tgt @ params["dec_ca_wq"][l] + params["dec_ca_bq"][l]
        kv = memory @ params["dec_ca_wkv"][l] + params["dec_ca_bkv"][l]
        ca = attn(q, kv[..., :D], kv[..., D:],
                  params["dec_ca_wo"][l], params["dec_ca_bo"][l])
        tgt = ln(tgt + ca, params["dec_ln2_g"][l], params["dec_ln2_b"][l])
        ff = jnp.maximum(tgt @ params["dec_w1"][l] + params["dec_b1"][l], 0.0)
        ff = ff @ params["dec_w2"][l] + params["dec_b2"][l]
        tgt = ln(tgt + ff, params["dec_ln3_g"][l], params["dec_ln3_b"][l])
    dec_out = ln(tgt, params["dec_norm_g"], params["dec_norm_b"])
    return dec_out @ params["w_out"] + params["b_out"]


# ----------------------------- main -----------------------------

if __name__ == "__main__":
    # Small shapes consistent with the module: in_features=4, hidden_size=32,
    # nhead=4, 3 encoder + 3 decoder layers, dim_feedforward=64.
    B, S = 2, 8
    in_features, hidden, nhead, ffn = 4, 32, 4, 64
    n_enc, n_dec = 3, 3

    key = jax.random.PRNGKey(0)
    kp, kx, kt = jax.random.split(key, 3)
    params = init_params(kp, in_features, hidden, ffn, n_enc, n_dec)
    x = jax.random.normal(kx, (B, S, in_features), jnp.float32)
    target = jax.random.normal(kt, (B, S, in_features), jnp.float32)  # unused by forward

    fwd = jax.jit(functools.partial(transformer_forecast_forward,
                                    nhead=nhead, n_enc=n_enc, n_dec=n_dec))
    out = fwd(params, x)
    jax.block_until_ready(out)

    assert out.shape == (B, S, in_features)
    assert jnp.all(jnp.isfinite(out))

    # Tolerance is loose because the kernel uses the EUP approx reciprocal in
    # the softmax normalization (~1e-3 relative drift across 6 layers).
    ref = _reference_forward(params, x, nhead=nhead, n_enc=n_enc, n_dec=n_dec)
    assert jnp.allclose(out, ref, rtol=2e-2, atol=2e-3), \
        float(jnp.max(jnp.abs(out - ref)))

    print("KERNEL_OK")
</pallas_src>

<mosaic_0001>
module attributes {stable_mosaic.version = 11 : i64} {
  func.func @fused_transformer_kernel(%arg0: i32, %arg1: memref<1x8x4xf32, #tpu.memory_space<vmem>>, %arg2: memref<1x32xf32, #tpu.memory_space<vmem>>, %arg3: memref<1x4xf32, #tpu.memory_space<vmem>>, %arg4: memref<3x1x64xf32, #tpu.memory_space<vmem>>, %arg5: memref<3x1x32xf32, #tpu.memory_space<vmem>>, %arg6: memref<3x1x64xf32, #tpu.memory_space<vmem>>, %arg7: memref<3x1x32xf32, #tpu.memory_space<vmem>>, %arg8: memref<3x1x32xf32, #tpu.memory_space<vmem>>, %arg9: memref<3x32x64xf32, #tpu.memory_space<vmem>>, %arg10: memref<3x32x32xf32, #tpu.memory_space<vmem>>, %arg11: memref<3x32x32xf32, #tpu.memory_space<vmem>>, %arg12: memref<3x1x32xf32, #tpu.memory_space<vmem>>, %arg13: memref<3x1x32xf32, #tpu.memory_space<vmem>>, %arg14: memref<3x1x32xf32, #tpu.memory_space<vmem>>, %arg15: memref<3x1x32xf32, #tpu.memory_space<vmem>>, %arg16: memref<3x1x32xf32, #tpu.memory_space<vmem>>, %arg17: memref<3x1x32xf32, #tpu.memory_space<vmem>>, %arg18: memref<1x32xf32, #tpu.memory_space<vmem>>, %arg19: memref<1x32xf32, #tpu.memory_space<vmem>>, %arg20: memref<3x1x32xf32, #tpu.memory_space<vmem>>, %arg21: memref<3x1x96xf32, #tpu.memory_space<vmem>>, %arg22: memref<3x32x32xf32, #tpu.memory_space<vmem>>, %arg23: memref<3x32x96xf32, #tpu.memory_space<vmem>>, %arg24: memref<3x32x64xf32, #tpu.memory_space<vmem>>, %arg25: memref<3x64x32xf32, #tpu.memory_space<vmem>>, %arg26: memref<3x1x64xf32, #tpu.memory_space<vmem>>, %arg27: memref<3x1x32xf32, #tpu.memory_space<vmem>>, %arg28: memref<3x1x32xf32, #tpu.memory_space<vmem>>, %arg29: memref<3x1x96xf32, #tpu.memory_space<vmem>>, %arg30: memref<3x1x32xf32, #tpu.memory_space<vmem>>, %arg31: memref<3x1x32xf32, #tpu.memory_space<vmem>>, %arg32: memref<3x1x32xf32, #tpu.memory_space<vmem>>, %arg33: memref<3x1x32xf32, #tpu.memory_space<vmem>>, %arg34: memref<1x32xf32, #tpu.memory_space<vmem>>, %arg35: memref<1x32xf32, #tpu.memory_space<vmem>>, %arg36: memref<3x32x64xf32, #tpu.memory_space<vmem>>, %arg37: memref<3x64x32xf32, #tpu.memory_space<vmem>>, %arg38: memref<3x32x32xf32, #tpu.memory_space<vmem>>, %arg39: memref<3x32x96xf32, #tpu.memory_space<vmem>>, %arg40: memref<4x32xf32, #tpu.memory_space<vmem>>, %arg41: memref<32x4xf32, #tpu.memory_space<vmem>>, %arg42: memref<1x8x4xf32, #tpu.memory_space<vmem>>) attributes {dimension_semantics = [#tpu.dimension_semantics<parallel>], iteration_bounds = array<i64: 2>, scalar_prefetch = 0 : i64, scratch_operands = 0 : i64, tpu.core_type = #tpu.core_type<tc>, window_params = [{transform_indices = @transform_0, window_bounds = array<i64: 1, 8, 4>}, {pipeline_mode = #tpu.pipeline_mode<synchronous>, transform_indices = @transform_1, window_bounds = array<i64: 1, 32>}, {pipeline_mode = #tpu.pipeline_mode<synchronous>, transform_indices = @transform_2, window_bounds = array<i64: 1, 4>}, {pipeline_mode = #tpu.pipeline_mode<synchronous>, transform_indices = @transform_3, window_bounds = array<i64: 3, 1, 64>}, {pipeline_mode = #tpu.pipeline_mode<synchronous>, transform_indices = @transform_4, window_bounds = array<i64: 3, 1, 32>}, {pipeline_mode = #tpu.pipeline_mode<synchronous>, transform_indices = @transform_5, window_bounds = array<i64: 3, 1, 64>}, {pipeline_mode = #tpu.pipeline_mode<synchronous>, transform_indices = @transform_6, window_bounds = array<i64: 3, 1, 32>}, {pipeline_mode = #tpu.pipeline_mode<synchronous>, transform_indices = @transform_7, window_bounds = array<i64: 3, 1, 32>}, {pipeline_mode = #tpu.pipeline_mode<synchronous>, transform_indices = @transform_8, window_bounds = array<i64: 3, 32, 64>}, {pipeline_mode = #tpu.pipeline_mode<synchronous>, transform_indices = @transform_9, window_bounds = array<i64: 3, 32, 32>}, {pipeline_mode = #tpu.pipeline_mode<synchronous>, transform_indices = @transform_10, window_bounds = array<i64: 3, 32, 32>}, {pipeline_mode = #tpu.pipeline_mode<synchronous>, transform_indices = @transform_11, window_bounds = array<i64: 3, 1, 32>}, {pipeline_mode = #tpu.pipeline_mode<synchronous>, transform_indices = @transform_12, window_bounds = array<i64: 3, 1, 32>}, {pipeline_mode = #tpu.pipeline_mode<synchronous>, transform_indices = @transform_13, window_bounds = array<i64: 3, 1, 32>}, {pipeline_mode = #tpu.pipeline_mode<synchronous>, transform_indices = @transform_14, window_bounds = array<i64: 3, 1, 32>}, {pipeline_mode = #tpu.pipeline_mode<synchronous>, transform_indices = @transform_15, window_bounds = array<i64: 3, 1, 32>}, {pipeline_mode = #tpu.pipeline_mode<synchronous>, transform_indices = @transform_16, window_bounds = array<i64: 3, 1, 32>}, {pipeline_mode = #tpu.pipeline_mode<synchronous>, transform_indices = @transform_17, window_bounds = array<i64: 1, 32>}, {pipeline_mode = #tpu.pipeline_mode<synchronous>, transform_indices = @transform_18, window_bounds = array<i64: 1, 32>}, {pipeline_mode = #tpu.pipeline_mode<synchronous>, transform_indices = @transform_19, window_bounds = array<i64: 3, 1, 32>}, {pipeline_mode = #tpu.pipeline_mode<synchronous>, transform_indices = @transform_20, window_bounds = array<i64: 3, 1, 96>}, {pipeline_mode = #tpu.pipeline_mode<synchronous>, transform_indices = @transform_21, window_bounds = array<i64: 3, 32, 32>}, {pipeline_mode = #tpu.pipeline_mode<synchronous>, transform_indices = @transform_22, window_bounds = array<i64: 3, 32, 96>}, {pipeline_mode = #tpu.pipeline_mode<synchronous>, transform_indices = @transform_23, window_bounds = array<i64: 3, 32, 64>}, {pipeline_mode = #tpu.pipeline_mode<synchronous>, transform_indices = @transform_24, window_bounds = array<i64: 3, 64, 32>}, {pipeline_mode = #tpu.pipeline_mode<synchronous>, transform_indices = @transform_25, window_bounds = array<i64: 3, 1, 64>}, {pipeline_mode = #tpu.pipeline_mode<synchronous>, transform_indices = @transform_26, window_bounds = array<i64: 3, 1, 32>}, {pipeline_mode = #tpu.pipeline_mode<synchronous>, transform_indices = @transform_27, window_bounds = array<i64: 3, 1, 32>}, {pipeline_mode = #tpu.pipeline_mode<synchronous>, transform_indices = @transform_28, window_bounds = array<i64: 3, 1, 96>}, {pipeline_mode = #tpu.pipeline_mode<synchronous>, transform_indices = @transform_29, window_bounds = array<i64: 3, 1, 32>}, {pipeline_mode = #tpu.pipeline_mode<synchronous>, transform_indices = @transform_30, window_bounds = array<i64: 3, 1, 32>}, {pipeline_mode = #tpu.pipeline_mode<synchronous>, transform_indices = @transform_31, window_bounds = array<i64: 3, 1, 32>}, {pipeline_mode = #tpu.pipeline_mode<synchronous>, transform_indices = @transform_32, window_bounds = array<i64: 3, 1, 32>}, {pipeline_mode = #tpu.pipeline_mode<synchronous>, transform_indices = @transform_33, window_bounds = array<i64: 1, 32>}, {pipeline_mode = #tpu.pipeline_mode<synchronous>, transform_indices = @transform_34, window_bounds = array<i64: 1, 32>}, {pipeline_mode = #tpu.pipeline_mode<synchronous>, transform_indices = @transform_35, window_bounds = array<i64: 3, 32, 64>}, {pipeline_mode = #tpu.pipeline_mode<synchronous>, transform_indices = @transform_36, window_bounds = array<i64: 3, 64, 32>}, {pipeline_mode = #tpu.pipeline_mode<synchronous>, transform_indices = @transform_37, window_bounds = array<i64: 3, 32, 32>}, {pipeline_mode = #tpu.pipeline_mode<synchronous>, transform_indices = @transform_38, window_bounds = array<i64: 3, 32, 96>}, {pipeline_mode = #tpu.pipeline_mode<synchronous>, transform_indices = @transform_39, window_bounds = array<i64: 4, 32>}, {pipeline_mode = #tpu.pipeline_mode<synchronous>, transform_indices = @transform_40, window_bounds = array<i64: 32, 4>}, {transform_indices = @transform_41, window_bounds = array<i64: 1, 8, 4>}]} {
    %0 = tpu.iota {dimensions = array<i32: 0>} : vector<8x8xi32>
    %1 = tpu.iota {dimensions = array<i32: 1>} : vector<8x8xi32>
    %2 = arith.cmpi sgt, %1, %0 : vector<8x8xi32>
    %cst = arith.constant -1.000000e+30 : f32
    %cst_0 = arith.constant 0.000000e+00 : f32
    %3 = vector.broadcast %cst : f32 to vector<8x8xf32>
    %4 = vector.broadcast %cst_0 : f32 to vector<8x8xf32>
    %5 = arith.select %2, %3, %4 : vector<8x8xi1>, vector<8x8xf32>
    %c0 = arith.constant 0 : index
    %c0_1 = arith.constant 0 : index
    %c0_2 = arith.constant 0 : index
    %6 = vector.load %arg1[%c0, %c0_1, %c0_2] : memref<1x8x4xf32, #tpu.memory_space<vmem>>, vector<1x8x4xf32>
    %7 = vector.shape_cast %6 : vector<1x8x4xf32> to vector<8x4xf32>
    %c0_3 = arith.constant 0 : index
    %c0_4 = arith.constant 0 : index
    %8 = vector.load %arg40[%c0_3, %c0_4] : memref<4x32xf32, #tpu.memory_space<vmem>>, vector<4x32xf32>
    %cst_5 = arith.constant dense<0.000000e+00> : vector<8x32xf32>
    %9 = tpu.matmul %7, %8, %cst_5 {dimension_numbers = #tpu.dot_dimension_numbers<[1], [0], [0], [1], [0, 0, 1, 1], [], []>} : vector<8x4xf32>, vector<4x32xf32>, vector<8x32xf32> -> vector<8x32xf32>
    %c0_6 = arith.constant 0 : index
    %c0_7 = arith.constant 0 : index
    %10 = vector.load %arg2[%c0_6, %c0_7] : memref<1x32xf32, #tpu.memory_space<vmem>>, vector<1x32xf32>
    %11 = vector.broadcast %10 : vector<1x32xf32> to vector<8x32xf32>
    %12 = arith.addf %9, %11 : vector<8x32xf32>
    %c0_8 = arith.constant 0 : index
    %c0_9 = arith.constant 0 : index
    %c0_10 = arith.constant 0 : index
    %13 = vector.load %arg39[%c0_8, %c0_9, %c0_10] : memref<3x32x96xf32, #tpu.memory_space<vmem>>, vector<1x32x96xf32>
    %14 = vector.shape_cast %13 : vector<1x32x96xf32> to vector<32x96xf32>
    %c0_11 = arith.constant 0 : index
    %c0_12 = arith.constant 0 : index
    %c0_13 = arith.constant 0 : index
    %15 = vector.load %arg29[%c0_11, %c0_12, %c0_13] : memref<3x1x96xf32, #tpu.memory_space<vmem>>, vector<1x1x96xf32>
    %16 = vector.shape_cast %15 : vector<1x1x96xf32> to vector<1x96xf32>
    %c0_14 = arith.constant 0 : index
    %c0_15 = arith.constant 0 : index
    %c0_16 = arith.constant 0 : index
    %17 = vector.load %arg38[%c0_14, %c0_15, %c0_16] : memref<3x32x32xf32, #tpu.memory_space<vmem>>, vector<1x32x32xf32>
    %18 = vector.shape_cast %17 : vector<1x32x32xf32> to vector<32x32xf32>
    %c0_17 = arith.constant 0 : index
    %c0_18 = arith.constant 0 : index
    %c0_19 = arith.constant 0 : index
    %19 = vector.load %arg28[%c0_17, %c0_18, %c0_19] : memref<3x1x32xf32, #tpu.memory_space<vmem>>, vector<1x1x32xf32>
    %20 = vector.shape_cast %19 : vector<1x1x32xf32> to vector<1x32xf32>
    %cst_20 = arith.constant dense<0.000000e+00> : vector<8x96xf32>
    %21 = tpu.matmul %12, %14, %cst_20 {dimension_numbers = #tpu.dot_dimension_numbers<[1], [0], [0], [1], [0, 0, 1, 1], [], []>} : vector<8x32xf32>, vector<32x96xf32>, vector<8x96xf32> -> vector<8x96xf32>
    %22 = vector.broadcast %16 : vector<1x96xf32> to vector<8x96xf32>
    %23 = arith.addf %21, %22 : vector<8x96xf32>
    %24 = vector.extract_strided_slice %23 {offsets = [0, 0], sizes = [8, 32], strides = [1, 1]} : vector<8x96xf32> to vector<8x32xf32>
    %25 = vector.extract_strided_slice %23 {offsets = [0, 32], sizes = [8, 32], strides = [1, 1]} : vector<8x96xf32> to vector<8x32xf32>
    %26 = vector.extract_strided_slice %23 {offsets = [0, 64], sizes = [8, 32], strides = [1, 1]} : vector<8x96xf32> to vector<8x32xf32>
    %cst_21 = arith.constant 0.000000e+00 : f32
    %27 = vector.broadcast %cst_21 : f32 to vector<8x32xf32>
    %28 = vector.extract_strided_slice %24 {offsets = [0, 0], sizes = [8, 8], strides = [1, 1]} : vector<8x32xf32> to vector<8x8xf32>
    %29 = vector.extract_strided_slice %25 {offsets = [0, 0], sizes = [8, 8], strides = [1, 1]} : vector<8x32xf32> to vector<8x8xf32>
    %30 = vector.extract_strided_slice %26 {offsets = [0, 0], sizes = [8, 8], strides = [1, 1]} : vector<8x32xf32> to vector<8x8xf32>
    %cst_22 = arith.constant dense<0.000000e+00> : vector<8x8xf32>
    %31 = tpu.matmul %28, %29, %cst_22 {dimension_numbers = #tpu.dot_dimension_numbers<[1], [1], [0], [0], [0, 0, 1, 0], [], []>} : vector<8x8xf32>, vector<8x8xf32>, vector<8x8xf32> -> vector<8x8xf32>
    %cst_23 = arith.constant 0.353553385 : f32
    %32 = vector.broadcast %cst_23 : f32 to vector<8x8xf32>
    %33 = arith.mulf %31, %32 : vector<8x8xf32>
    %34 = arith.addf %33, %5 : vector<8x8xf32>
    %cst_24 = arith.constant dense<0xFF800000> : vector<8xf32>
    %35 = vector.multi_reduction <maximumf>, %34, %cst_24 [1] : vector<8x8xf32> to vector<8xf32>
    %36 = vector.shape_cast %35 : vector<8xf32> to vector<8x1xf32>
    %37 = vector.broadcast %36 : vector<8x1xf32> to vector<8x8xf32>
    %38 = arith.subf %34, %37 : vector<8x8xf32>
    %39 = math.exp %38 : vector<8x8xf32>
    %cst_25 = arith.constant dense<0.000000e+00> : vector<8xf32>
    %40 = vector.multi_reduction <add>, %39, %cst_25 [1] : vector<8x8xf32> to vector<8xf32>
    %41 = vector.shape_cast %40 : vector<8xf32> to vector<8x1xf32>
    %42 = tpu.reciprocal %41 {approx = true} : vector<8x1xf32> -> vector<8x1xf32>
    %43 = vector.broadcast %42 : vector<8x1xf32> to vector<8x8xf32>
    %44 = arith.mulf %39, %43 : vector<8x8xf32>
    %cst_26 = arith.constant dense<0.000000e+00> : vector<8x8xf32>
    %45 = tpu.matmul %44, %30, %cst_26 {dimension_numbers = #tpu.dot_dimension_numbers<[1], [0], [0], [1], [0, 0, 1, 1], [], []>} : vector<8x8xf32>, vector<8x8xf32>, vector<8x8xf32> -> vector<8x8xf32>
    %46 = vector.extract_strided_slice %18 {offsets = [0, 0], sizes = [8, 32], strides = [1, 1]} : vector<32x32xf32> to vector<8x32xf32>
    %cst_27 = arith.constant dense<0.000000e+00> : vector<8x32xf32>
    %47 = tpu.matmul %45, %46, %cst_27 {dimension_numbers = #tpu.dot_dimension_numbers<[1], [0], [0], [1], [0, 0, 1, 1], [], []>} : vector<8x8xf32>, vector<8x32xf32>, vector<8x32xf32> -> vector<8x32xf32>
    %48 = arith.addf %27, %47 : vector<8x32xf32>
    %49 = vector.extract_strided_slice %24 {offsets = [0, 8], sizes = [8, 8], strides = [1, 1]} : vector<8x32xf32> to vector<8x8xf32>
    %50 = vector.extract_strided_slice %25 {offsets = [0, 8], sizes = [8, 8], strides = [1, 1]} : vector<8x32xf32> to vector<8x8xf32>
    %51 = vector.extract_strided_slice %26 {offsets = [0, 8], sizes = [8, 8], strides = [1, 1]} : vector<8x32xf32> to vector<8x8xf32>
    %cst_28 = arith.constant dense<0.000000e+00> : vector<8x8xf32>
    %52 = tpu.matmul %49, %50, %cst_28 {dimension_numbers = #tpu.dot_dimension_numbers<[1], [1], [0], [0], [0, 0, 1, 0], [], []>} : vector<8x8xf32>, vector<8x8xf32>, vector<8x8xf32> -> vector<8x8xf32>
    %cst_29 = arith.constant 0.353553385 : f32
    %53 = vector.broadcast %cst_29 : f32 to vector<8x8xf32>
    %54 = arith.mulf %52, %53 : vector<8x8xf32>
    %55 = arith.addf %54, %5 : vector<8x8xf32>
    %cst_30 = arith.constant dense<0xFF800000> : vector<8xf32>
    %56 = vector.multi_reduction <maximumf>, %55, %cst_30 [1] : vector<8x8xf32> to vector<8xf32>
    %57 = vector.shape_cast %56 : vector<8xf32> to vector<8x1xf32>
    %58 = vector.broadcast %57 : vector<8x1xf32> to vector<8x8xf32>
    %59 = arith.subf %55, %58 : vector<8x8xf32>
    %60 = math.exp %59 : vector<8x8xf32>
    %cst_31 = arith.constant dense<0.000000e+00> : vector<8xf32>
    %61 = vector.multi_reduction <add>, %60, %cst_31 [1] : vector<8x8xf32> to vector<8xf32>
    %62 = vector.shape_cast %61 : vector<8xf32> to vector<8x1xf32>
    %63 = tpu.reciprocal %62 {approx = true} : vector<8x1xf32> -> vector<8x1xf32>
    %64 = vector.broadcast %63 : vector<8x1xf32> to vector<8x8xf32>
    %65 = arith.mulf %60, %64 : vector<8x8xf32>
    %cst_32 = arith.constant dense<0.000000e+00> : vector<8x8xf32>
    %66 = tpu.matmul %65, %51, %cst_32 {dimension_numbers = #tpu.dot_dimension_numbers<[1], [0], [0], [1], [0, 0, 1, 1], [], []>} : vector<8x8xf32>, vector<8x8xf32>, vector<8x8xf32> -> vector<8x8xf32>
    %67 = vector.extract_strided_slice %18 {offsets = [8, 0], sizes = [8, 32], strides = [1, 1]} : vector<32x32xf32> to vector<8x32xf32>
    %cst_33 = arith.constant dense<0.000000e+00> : vector<8x32xf32>
    %68 = tpu.matmul %66, %67, %cst_33 {dimension_numbers = #tpu.dot_dimension_numbers<[1], [0], [0], [1], [0, 0, 1, 1], [], []>} : vector<8x8xf32>, vector<8x32xf32>, vector<8x32xf32> -> vector<8x32xf32>
    %69 = arith.addf %48, %68 : vector<8x32xf32>
    %70 = vector.extract_strided_slice %24 {offsets = [0, 16], sizes = [8, 8], strides = [1, 1]} : vector<8x32xf32> to vector<8x8xf32>
    %71 = vector.extract_strided_slice %25 {offsets = [0, 16], sizes = [8, 8], strides = [1, 1]} : vector<8x32xf32> to vector<8x8xf32>
    %72 = vector.extract_strided_slice %26 {offsets = [0, 16], sizes = [8, 8], strides = [1, 1]} : vector<8x32xf32> to vector<8x8xf32>
    %cst_34 = arith.constant dense<0.000000e+00> : vector<8x8xf32>
    %73 = tpu.matmul %70, %71, %cst_34 {dimension_numbers = #tpu.dot_dimension_numbers<[1], [1], [0], [0], [0, 0, 1, 0], [], []>} : vector<8x8xf32>, vector<8x8xf32>, vector<8x8xf32> -> vector<8x8xf32>
    %cst_35 = arith.constant 0.353553385 : f32
    %74 = vector.broadcast %cst_35 : f32 to vector<8x8xf32>
    %75 = arith.mulf %73, %74 : vector<8x8xf32>
    %76 = arith.addf %75, %5 : vector<8x8xf32>
    %cst_36 = arith.constant dense<0xFF800000> : vector<8xf32>
    %77 = vector.multi_reduction <maximumf>, %76, %cst_36 [1] : vector<8x8xf32> to vector<8xf32>
    %78 = vector.shape_cast %77 : vector<8xf32> to vector<8x1xf32>
    %79 = vector.broadcast %78 : vector<8x1xf32> to vector<8x8xf32>
    %80 = arith.subf %76, %79 : vector<8x8xf32>
    %81 = math.exp %80 : vector<8x8xf32>
    %cst_37 = arith.constant dense<0.000000e+00> : vector<8xf32>
    %82 = vector.multi_reduction <add>, %81, %cst_37 [1] : vector<8x8xf32> to vector<8xf32>
    %83 = vector.shape_cast %82 : vector<8xf32> to vector<8x1xf32>
    %84 = tpu.reciprocal %83 {approx = true} : vector<8x1xf32> -> vector<8x1xf32>
    %85 = vector.broadcast %84 : vector<8x1xf32> to vector<8x8xf32>
    %86 = arith.mulf %81, %85 : vector<8x8xf32>
    %cst_38 = arith.constant dense<0.000000e+00> : vector<8x8xf32>
    %87 = tpu.matmul %86, %72, %cst_38 {dimension_numbers = #tpu.dot_dimension_numbers<[1], [0], [0], [1], [0, 0, 1, 1], [], []>} : vector<8x8xf32>, vector<8x8xf32>, vector<8x8xf32> -> vector<8x8xf32>
    %88 = vector.extract_strided_slice %18 {offsets = [16, 0], sizes = [8, 32], strides = [1, 1]} : vector<32x32xf32> to vector<8x32xf32>
    %cst_39 = arith.constant dense<0.000000e+00> : vector<8x32xf32>
    %89 = tpu.matmul %87, %88, %cst_39 {dimension_numbers = #tpu.dot_dimension_numbers<[1], [0], [0], [1], [0, 0, 1, 1], [], []>} : vector<8x8xf32>, vector<8x32xf32>, vector<8x32xf32> -> vector<8x32xf32>
    %90 = arith.addf %69, %89 : vector<8x32xf32>
    %91 = vector.extract_strided_slice %24 {offsets = [0, 24], sizes = [8, 8], strides = [1, 1]} : vector<8x32xf32> to vector<8x8xf32>
    %92 = vector.extract_strided_slice %25 {offsets = [0, 24], sizes = [8, 8], strides = [1, 1]} : vector<8x32xf32> to vector<8x8xf32>
    %93 = vector.extract_strided_slice %26 {offsets = [0, 24], sizes = [8, 8], strides = [1, 1]} : vector<8x32xf32> to vector<8x8xf32>
    %cst_40 = arith.constant dense<0.000000e+00> : vector<8x8xf32>
    %94 = tpu.matmul %91, %92, %cst_40 {dimension_numbers = #tpu.dot_dimension_numbers<[1], [1], [0], [0], [0, 0, 1, 0], [], []>} : vector<8x8xf32>, vector<8x8xf32>, vector<8x8xf32> -> vector<8x8xf32>
    %cst_41 = arith.constant 0.353553385 : f32
    %95 = vector.broadcast %cst_41 : f32 to vector<8x8xf32>
    %96 = arith.mulf %94, %95 : vector<8x8xf32>
    %97 = arith.addf %96, %5 : vector<8x8xf32>
    %cst_42 = arith.constant dense<0xFF800000> : vector<8xf32>
    %98 = vector.multi_reduction <maximumf>, %97, %cst_42 [1] : vector<8x8xf32> to vector<8xf32>
    %99 = vector.shape_cast %98 : vector<8xf32> to vector<8x1xf32>
    %100 = vector.broadcast %99 : vector<8x1xf32> to vector<8x8xf32>
    %101 = arith.subf %97, %100 : vector<8x8xf32>
    %102 = math.exp %101 : vector<8x8xf32>
    %cst_43 = arith.constant dense<0.000000e+00> : vector<8xf32>
    %103 = vector.multi_reduction <add>, %102, %cst_43 [1] : vector<8x8xf32> to vector<8xf32>
    %104 = vector.shape_cast %103 : vector<8xf32> to vector<8x1xf32>
    %105 = tpu.reciprocal %104 {approx = true} : vector<8x1xf32> -> vector<8x1xf32>
    %106 = vector.broadcast %105 : vector<8x1xf32> to vector<8x8xf32>
    %107 = arith.mulf %102, %106 : vector<8x8xf32>
    %cst_44 = arith.constant dense<0.000000e+00> : vector<8x8xf32>
    %108 = tpu.matmul %107, %93, %cst_44 {dimension_numbers = #tpu.dot_dimension_numbers<[1], [0], [0], [1], [0, 0, 1, 1], [], []>} : vector<8x8xf32>, vector<8x8xf32>, vector<8x8xf32> -> vector<8x8xf32>
    %109 = vector.extract_strided_slice %18 {offsets = [24, 0], sizes = [8, 32], strides = [1, 1]} : vector<32x32xf32> to vector<8x32xf32>
    %cst_45 = arith.constant dense<0.000000e+00> : vector<8x32xf32>
    %110 = tpu.matmul %108, %109, %cst_45 {dimension_numbers = #tpu.dot_dimension_numbers<[1], [0], [0], [1], [0, 0, 1, 1], [], []>} : vector<8x8xf32>, vector<8x32xf32>, vector<8x32xf32> -> vector<8x32xf32>
    %111 = arith.addf %90, %110 : vector<8x32xf32>
    %112 = vector.broadcast %20 : vector<1x32xf32> to vector<8x32xf32>
    %113 = arith.addf %111, %112 : vector<8x32xf32>
    %114 = arith.addf %12, %113 : vector<8x32xf32>
    %c0_46 = arith.constant 0 : index
    %c0_47 = arith.constant 0 : index
    %c0_48 = arith.constant 0 : index
    %115 = vector.load %arg31[%c0_46, %c0_47, %c0_48] : memref<3x1x32xf32, #tpu.memory_space<vmem>>, vector<1x1x32xf32>
    %116 = vector.shape_cast %115 : vector<1x1x32xf32> to vector<1x32xf32>
    %c0_49 = arith.constant 0 : index
    %c0_50 = arith.constant 0 : index
    %c0_51 = arith.constant 0 : index
    %117 = vector.load %arg30[%c0_49, %c0_50, %c0_51] : memref<3x1x32xf32, #tpu.memory_space<vmem>>, vector<1x1x32xf32>
    %118 = vector.shape_cast %117 : vector<1x1x32xf32> to vector<1x32xf32>
    %cst_52 = arith.constant dense<0.000000e+00> : vector<8xf32>
    %119 = vector.multi_reduction <add>, %114, %cst_52 [1] : vector<8x32xf32> to vector<8xf32>
    %120 = vector.shape_cast %119 : vector<8xf32> to vector<8x1xf32>
    %cst_53 = arith.constant 3.200000e+01 : f32
    %121 = vector.broadcast %cst_53 : f32 to vector<8x1xf32>
    %122 = arith.divf %120, %121 : vector<8x1xf32>
    %123 = vector.broadcast %122 : vector<8x1xf32> to vector<8x32xf32>
    %124 = arith.subf %114, %123 : vector<8x32xf32>
    %125 = arith.mulf %124, %124 : vector<8x32xf32>
    %cst_54 = arith.constant dense<0.000000e+00> : vector<8xf32>
    %126 = vector.multi_reduction <add>, %125, %cst_54 [1] : vector<8x32xf32> to vector<8xf32>
    %127 = vector.shape_cast %126 : vector<8xf32> to vector<8x1xf32>
    %cst_55 = arith.constant 3.200000e+01 : f32
    %128 = vector.broadcast %cst_55 : f32 to vector<8x1xf32>
    %129 = arith.divf %127, %128 : vector<8x1xf32>
    %130 = vector.broadcast %122 : vector<8x1xf32> to vector<8x32xf32>
    %131 = arith.subf %114, %130 : vector<8x32xf32>
    %cst_56 = arith.constant 9.99999974E-6 : f32
    %132 = vector.broadcast %cst_56 : f32 to vector<8x1xf32>
    %133 = arith.addf %129, %132 : vector<8x1xf32>
    %134 = math.rsqrt %133 : vector<8x1xf32>
    %135 = vector.broadcast %134 : vector<8x1xf32> to vector<8x32xf32>
    %136 = arith.mulf %131, %135 : vector<8x32xf32>
    %137 = vector.broadcast %116 : vector<1x32xf32> to vector<8x32xf32>
    %138 = arith.mulf %136, %137 : vector<8x32xf32>
    %139 = vector.broadcast %118 : vector<1x32xf32> to vector<8x32xf32>
    %140 = arith.addf %138, %139 : vector<8x32xf32>
    %c0_57 = arith.constant 0 : index
    %c0_58 = arith.constant 0 : index
    %c0_59 = arith.constant 0 : index
    %141 = vector.load %arg36[%c0_57, %c0_58, %c0_59] : memref<3x32x64xf32, #tpu.memory_space<vmem>>, vector<1x32x64xf32>
    %142 = vector.shape_cast %141 : vector<1x32x64xf32> to vector<32x64xf32>
    %c0_60 = arith.constant 0 : index
    %c0_61 = arith.constant 0 : index
    %c0_62 = arith.constant 0 : index
    %143 = vector.load %arg26[%c0_60, %c0_61, %c0_62] : memref<3x1x64xf32, #tpu.memory_space<vmem>>, vector<1x1x64xf32>
    %144 = vector.shape_cast %143 : vector<1x1x64xf32> to vector<1x64xf32>
    %c0_63 = arith.constant 0 : index
    %c0_64 = arith.constant 0 : index
    %c0_65 = arith.constant 0 : index
    %145 = vector.load %arg37[%c0_63, %c0_64, %c0_65] : memref<3x64x32xf32, #tpu.memory_space<vmem>>, vector<1x64x32xf32>
    %146 = vector.shape_cast %145 : vector<1x64x32xf32> to vector<64x32xf32>
    %c0_66 = arith.constant 0 : index
    %c0_67 = arith.constant 0 : index
    %c0_68 = arith.constant 0 : index
    %147 = vector.load %arg27[%c0_66, %c0_67, %c0_68] : memref<3x1x32xf32, #tpu.memory_space<vmem>>, vector<1x1x32xf32>
    %148 = vector.shape_cast %147 : vector<1x1x32xf32> to vector<1x32xf32>
    %cst_69 = arith.constant dense<0.000000e+00> : vector<8x64xf32>
    %149 = tpu.matmul %140, %142, %cst_69 {dimension_numbers = #tpu.dot_dimension_numbers<[1], [0], [0], [1], [0, 0, 1, 1], [], []>} : vector<8x32xf32>, vector<32x64xf32>, vector<8x64xf32> -> vector<8x64xf32>
    %150 = vector.broadcast %144 : vector<1x64xf32> to vector<8x64xf32>
    %151 = arith.addf %149, %150 : vector<8x64xf32>
    %cst_70 = arith.constant 0.000000e+00 : f32
    %152 = vector.broadcast %cst_70 : f32 to vector<8x64xf32>
    %153 = arith.maximumf %151, %152 : vector<8x64xf32>
    %cst_71 = arith.constant dense<0.000000e+00> : vector<8x32xf32>
    %154 = tpu.matmul %153, %146, %cst_71 {dimension_numbers = #tpu.dot_dimension_numbers<[1], [0], [0], [1], [0, 0, 1, 1], [], []>} : vector<8x64xf32>, vector<64x32xf32>, vector<8x32xf32> -> vector<8x32xf32>
    %155 = vector.broadcast %148 : vector<1x32xf32> to vector<8x32xf32>
    %156 = arith.addf %154, %155 : vector<8x32xf32>
    %157 = arith.addf %140, %156 : vector<8x32xf32>
    %c0_72 = arith.constant 0 : index
    %c0_73 = arith.constant 0 : index
    %c0_74 = arith.constant 0 : index
    %158 = vector.load %arg33[%c0_72, %c0_73, %c0_74] : memref<3x1x32xf32, #tpu.memory_space<vmem>>, vector<1x1x32xf32>
    %159 = vector.shape_cast %158 : vector<1x1x32xf32> to vector<1x32xf32>
    %c0_75 = arith.constant 0 : index
    %c0_76 = arith.constant 0 : index
    %c0_77 = arith.constant 0 : index
    %160 = vector.load %arg32[%c0_75, %c0_76, %c0_77] : memref<3x1x32xf32, #tpu.memory_space<vmem>>, vector<1x1x32xf32>
    %161 = vector.shape_cast %160 : vector<1x1x32xf32> to vector<1x32xf32>
    %cst_78 = arith.constant dense<0.000000e+00> : vector<8xf32>
    %162 = vector.multi_reduction <add>, %157, %cst_78 [1] : vector<8x32xf32> to vector<8xf32>
    %163 = vector.shape_cast %162 : vector<8xf32> to vector<8x1xf32>
    %cst_79 = arith.constant 3.200000e+01 : f32
    %164 = vector.broadcast %cst_79 : f32 to vector<8x1xf32>
    %165 = arith.divf %163, %164 : vector<8x1xf32>
    %166 = vector.broadcast %165 : vector<8x1xf32> to vector<8x32xf32>
    %167 = arith.subf %157, %166 : vector<8x32xf32>
    %168 = arith.mulf %167, %167 : vector<8x32xf32>
    %cst_80 = arith.constant dense<0.000000e+00> : vector<8xf32>
    %169 = vector.multi_reduction <add>, %168, %cst_80 [1] : vector<8x32xf32> to vector<8xf32>
    %170 = vector.shape_cast %169 : vector<8xf32> to vector<8x1xf32>
    %cst_81 = arith.constant 3.200000e+01 : f32
    %171 = vector.broadcast %cst_81 : f32 to vector<8x1xf32>
    %172 = arith.divf %170, %171 : vector<8x1xf32>
    %173 = vector.broadcast %165 : vector<8x1xf32> to vector<8x32xf32>
    %174 = arith.subf %157, %173 : vector<8x32xf32>
    %cst_82 = arith.constant 9.99999974E-6 : f32
    %175 = vector.broadcast %cst_82 : f32 to vector<8x1xf32>
    %176 = arith.addf %172, %175 : vector<8x1xf32>
    %177 = math.rsqrt %176 : vector<8x1xf32>
    %178 = vector.broadcast %177 : vector<8x1xf32> to vector<8x32xf32>
    %179 = arith.mulf %174, %178 : vector<8x32xf32>
    %180 = vector.broadcast %159 : vector<1x32xf32> to vector<8x32xf32>
    %181 = arith.mulf %179, %180 : vector<8x32xf32>
    %182 = vector.broadcast %161 : vector<1x32xf32> to vector<8x32xf32>
    %183 = arith.addf %181, %182 : vector<8x32xf32>
    %c1 = arith.constant 1 : index
    %c0_83 = arith.constant 0 : index
    %c0_84 = arith.constant 0 : index
    %184 = vector.load %arg39[%c1, %c0_83, %c0_84] : memref<3x32x96xf32, #tpu.memory_space<vmem>>, vector<1x32x96xf32>
    %185 = vector.shape_cast %184 : vector<1x32x96xf32> to vector<32x96xf32>
    %c1_85 = arith.constant 1 : index
    %c0_86 = arith.constant 0 : index
    %c0_87 = arith.constant 0 : index
    %186 = vector.load %arg29[%c1_85, %c0_86, %c0_87] : memref<3x1x96xf32, #tpu.memory_space<vmem>>, vector<1x1x96xf32>
    %187 = vector.shape_cast %186 : vector<1x1x96xf32> to vector<1x96xf32>
    %c1_88 = arith.constant 1 : index
    %c0_89 = arith.constant 0 : index
    %c0_90 = arith.constant 0 : index
    %188 = vector.load %arg38[%c1_88, %c0_89, %c0_90] : memref<3x32x32xf32, #tpu.memory_space<vmem>>, vector<1x32x32xf32>
    %189 = vector.shape_cast %188 : vector<1x32x32xf32> to vector<32x32xf32>
    %c1_91 = arith.constant 1 : index
    %c0_92 = arith.constant 0 : index
    %c0_93 = arith.constant 0 : index
    %190 = vector.load %arg28[%c1_91, %c0_92, %c0_93] : memref<3x1x32xf32, #tpu.memory_space<vmem>>, vector<1x1x32xf32>
    %191 = vector.shape_cast %190 : vector<1x1x32xf32> to vector<1x32xf32>
    %cst_94 = arith.constant dense<0.000000e+00> : vector<8x96xf32>
    %192 = tpu.matmul %183, %185, %cst_94 {dimension_numbers = #tpu.dot_dimension_numbers<[1], [0], [0], [1], [0, 0, 1, 1], [], []>} : vector<8x32xf32>, vector<32x96xf32>, vector<8x96xf32> -> vector<8x96xf32>
    %193 = vector.broadcast %187 : vector<1x96xf32> to vector<8x96xf32>
    %194 = arith.addf %192, %193 : vector<8x96xf32>
    %195 = vector.extract_strided_slice %194 {offsets = [0, 0], sizes = [8, 32], strides = [1, 1]} : vector<8x96xf32> to vector<8x32xf32>
    %196 = vector.extract_strided_slice %194 {offsets = [0, 32], sizes = [8, 32], strides = [1, 1]} : vector<8x96xf32> to vector<8x32xf32>
    %197 = vector.extract_strided_slice %194 {offsets = [0, 64], sizes = [8, 32], strides = [1, 1]} : vector<8x96xf32> to vector<8x32xf32>
    %cst_95 = arith.constant 0.000000e+00 : f32
    %198 = vector.broadcast %cst_95 : f32 to vector<8x32xf32>
    %199 = vector.extract_strided_slice %195 {offsets = [0, 0], sizes = [8, 8], strides = [1, 1]} : vector<8x32xf32> to vector<8x8xf32>
    %200 = vector.extract_strided_slice %196 {offsets = [0, 0], sizes = [8, 8], strides = [1, 1]} : vector<8x32xf32> to vector<8x8xf32>
    %201 = vector.extract_strided_slice %197 {offsets = [0, 0], sizes = [8, 8], strides = [1, 1]} : vector<8x32xf32> to vector<8x8xf32>
    %cst_96 = arith.constant dense<0.000000e+00> : vector<8x8xf32>
    %202 = tpu.matmul %199, %200, %cst_96 {dimension_numbers = #tpu.dot_dimension_numbers<[1], [1], [0], [0], [0, 0, 1, 0], [], []>} : vector<8x8xf32>, vector<8x8xf32>, vector<8x8xf32> -> vector<8x8xf32>
    %cst_97 = arith.constant 0.353553385 : f32
    %203 = vector.broadcast %cst_97 : f32 to vector<8x8xf32>
    %204 = arith.mulf %202, %203 : vector<8x8xf32>
    %205 = arith.addf %204, %5 : vector<8x8xf32>
    %cst_98 = arith.constant dense<0xFF800000> : vector<8xf32>
    %206 = vector.multi_reduction <maximumf>, %205, %cst_98 [1] : vector<8x8xf32> to vector<8xf32>
    %207 = vector.shape_cast %206 : vector<8xf32> to vector<8x1xf32>
    %208 = vector.broadcast %207 : vector<8x1xf32> to vector<8x8xf32>
    %209 = arith.subf %205, %208 : vector<8x8xf32>
    %210 = math.exp %209 : vector<8x8xf32>
    %cst_99 = arith.constant dense<0.000000e+00> : vector<8xf32>
    %211 = vector.multi_reduction <add>, %210, %cst_99 [1] : vector<8x8xf32> to vector<8xf32>
    %212 = vector.shape_cast %211 : vector<8xf32> to vector<8x1xf32>
    %213 = tpu.reciprocal %212 {approx = true} : vector<8x1xf32> -> vector<8x1xf32>
    %214 = vector.broadcast %213 : vector<8x1xf32> to vector<8x8xf32>
    %215 = arith.mulf %210, %214 : vector<8x8xf32>
    %cst_100 = arith.constant dense<0.000000e+00> : vector<8x8xf32>
    %216 = tpu.matmul %215, %201, %cst_100 {dimension_numbers = #tpu.dot_dimension_numbers<[1], [0], [0], [1], [0, 0, 1, 1], [], []>} : vector<8x8xf32>, vector<8x8xf32>, vector<8x8xf32> -> vector<8x8xf32>
    %217 = vector.extract_strided_slice %189 {offsets = [0, 0], sizes = [8, 32], strides = [1, 1]} : vector<32x32xf32> to vector<8x32xf32>
    %cst_101 = arith.constant dense<0.000000e+00> : vector<8x32xf32>
    %218 = tpu.matmul %216, %217, %cst_101 {dimension_numbers = #tpu.dot_dimension_numbers<[1], [0], [0], [1], [0, 0, 1, 1], [], []>} : vector<8x8xf32>, vector<8x32xf32>, vector<8x32xf32> -> vector<8x32xf32>
    %219 = arith.addf %198, %218 : vector<8x32xf32>
    %220 = vector.extract_strided_slice %195 {offsets = [0, 8], sizes = [8, 8], strides = [1, 1]} : vector<8x32xf32> to vector<8x8xf32>
    %221 = vector.extract_strided_slice %196 {offsets = [0, 8], sizes = [8, 8], strides = [1, 1]} : vector<8x32xf32> to vector<8x8xf32>
    %222 = vector.extract_strided_slice %197 {offsets = [0, 8], sizes = [8, 8], strides = [1, 1]} : vector<8x32xf32> to vector<8x8xf32>
    %cst_102 = arith.constant dense<0.000000e+00> : vector<8x8xf32>
    %223 = tpu.matmul %220, %221, %cst_102 {dimension_numbers = #tpu.dot_dimension_numbers<[1], [1], [0], [0], [0, 0, 1, 0], [], []>} : vector<8x8xf32>, vector<8x8xf32>, vector<8x8xf32> -> vector<8x8xf32>
    %cst_103 = arith.constant 0.353553385 : f32
    %224 = vector.broadcast %cst_103 : f32 to vector<8x8xf32>
    %225 = arith.mulf %223, %224 : vector<8x8xf32>
    %226 = arith.addf %225, %5 : vector<8x8xf32>
    %cst_104 = arith.constant dense<0xFF800000> : vector<8xf32>
    %227 = vector.multi_reduction <maximumf>, %226, %cst_104 [1] : vector<8x8xf32> to vector<8xf32>
    %228 = vector.shape_cast %227 : vector<8xf32> to vector<8x1xf32>
    %229 = vector.broadcast %228 : vector<8x1xf32> to vector<8x8xf32>
    %230 = arith.subf %226, %229 : vector<8x8xf32>
    %231 = math.exp %230 : vector<8x8xf32>
    %cst_105 = arith.constant dense<0.000000e+00> : vector<8xf32>
    %232 = vector.multi_reduction <add>, %231, %cst_105 [1] : vector<8x8xf32> to vector<8xf32>
    %233 = vector.shape_cast %232 : vector<8xf32> to vector<8x1xf32>
    %234 = tpu.reciprocal %233 {approx = true} : vector<8x1xf32> -> vector<8x1xf32>
    %235 = vector.broadcast %234 : vector<8x1xf32> to vector<8x8xf32>
    %236 = arith.mulf %231, %235 : vector<8x8xf32>
    %cst_106 = arith.constant dense<0.000000e+00> : vector<8x8xf32>
    %237 = tpu.matmul %236, %222, %cst_106 {dimension_numbers = #tpu.dot_dimension_numbers<[1], [0], [0], [1], [0, 0, 1, 1], [], []>} : vector<8x8xf32>, vector<8x8xf32>, vector<8x8xf32> -> vector<8x8xf32>
    %238 = vector.extract_strided_slice %189 {offsets = [8, 0], sizes = [8, 32], strides = [1, 1]} : vector<32x32xf32> to vector<8x32xf32>
    %cst_107 = arith.constant dense<0.000000e+00> : vector<8x32xf32>
    %239 = tpu.matmul %237, %238, %cst_107 {dimension_numbers = #tpu.dot_dimension_numbers<[1], [0], [0], [1], [0, 0, 1, 1], [], []>} : vector<8x8xf32>, vector<8x32xf32>, vector<8x32xf32> -> vector<8x32xf32>
    %240 = arith.addf %219, %239 : vector<8x32xf32>
    %241 = vector.extract_strided_slice %195 {offsets = [0, 16], sizes = [8, 8], strides = [1, 1]} : vector<8x32xf32> to vector<8x8xf32>
    %242 = vector.extract_strided_slice %196 {offsets = [0, 16], sizes = [8, 8], strides = [1, 1]} : vector<8x32xf32> to vector<8x8xf32>
    %243 = vector.extract_strided_slice %197 {offsets = [0, 16], sizes = [8, 8], strides = [1, 1]} : vector<8x32xf32> to vector<8x8xf32>
    %cst_108 = arith.constant dense<0.000000e+00> : vector<8x8xf32>
    %244 = tpu.matmul %241, %242, %cst_108 {dimension_numbers = #tpu.dot_dimension_numbers<[1], [1], [0], [0], [0, 0, 1, 0], [], []>} : vector<8x8xf32>, vector<8x8xf32>, vector<8x8xf32> -> vector<8x8xf32>
    %cst_109 = arith.constant 0.353553385 : f32
    %245 = vector.broadcast %cst_109 : f32 to vector<8x8xf32>
    %246 = arith.mulf %244, %245 : vector<8x8xf32>
    %247 = arith.addf %246, %5 : vector<8x8xf32>
    %cst_110 = arith.constant dense<0xFF800000> : vector<8xf32>
    %248 = vector.multi_reduction <maximumf>, %247, %cst_110 [1] : vector<8x8xf32> to vector<8xf32>
    %249 = vector.shape_cast %248 : vector<8xf32> to vector<8x1xf32>
    %250 = vector.broadcast %249 : vector<8x1xf32> to vector<8x8xf32>
    %251 = arith.subf %247, %250 : vector<8x8xf32>
    %252 = math.exp %251 : vector<8x8xf32>
    %cst_111 = arith.constant dense<0.000000e+00> : vector<8xf32>
    %253 = vector.multi_reduction <add>, %252, %cst_111 [1] : vector<8x8xf32> to vector<8xf32>
    %254 = vector.shape_cast %253 : vector<8xf32> to vector<8x1xf32>
    %255 = tpu.reciprocal %254 {approx = true} : vector<8x1xf32> -> vector<8x1xf32>
    %256 = vector.broadcast %255 : vector<8x1xf32> to vector<8x8xf32>
    %257 = arith.mulf %252, %256 : vector<8x8xf32>
    %cst_112 = arith.constant dense<0.000000e+00> : vector<8x8xf32>
    %258 = tpu.matmul %257, %243, %cst_112 {dimension_numbers = #tpu.dot_dimension_numbers<[1], [0], [0], [1], [0, 0, 1, 1], [], []>} : vector<8x8xf32>, vector<8x8xf32>, vector<8x8xf32> -> vector<8x8xf32>
    %259 = vector.extract_strided_slice %189 {offsets = [16, 0], sizes = [8, 32], strides = [1, 1]} : vector<32x32xf32> to vector<8x32xf32>
    %cst_113 = arith.constant dense<0.000000e+00> : vector<8x32xf32>
    %260 = tpu.matmul %258, %259, %cst_113 {dimension_numbers = #tpu.dot_dimension_numbers<[1], [0], [0], [1], [0, 0, 1, 1], [], []>} : vector<8x8xf32>, vector<8x32xf32>, vector<8x32xf32> -> vector<8x32xf32>
    %261 = arith.addf %240, %260 : vector<8x32xf32>
    %262 = vector.extract_strided_slice %195 {offsets = [0, 24], sizes = [8, 8], strides = [1, 1]} : vector<8x32xf32> to vector<8x8xf32>
    %263 = vector.extract_strided_slice %196 {offsets = [0, 24], sizes = [8, 8], strides = [1, 1]} : vector<8x32xf32> to vector<8x8xf32>
    %264 = vector.extract_strided_slice %197 {offsets = [0, 24], sizes = [8, 8], strides = [1, 1]} : vector<8x32xf32> to vector<8x8xf32>
    %cst_114 = arith.constant dense<0.000000e+00> : vector<8x8xf32>
    %265 = tpu.matmul %262, %263, %cst_114 {dimension_numbers = #tpu.dot_dimension_numbers<[1], [1], [0], [0], [0, 0, 1, 0], [], []>} : vector<8x8xf32>, vector<8x8xf32>, vector<8x8xf32> -> vector<8x8xf32>
    %cst_115 = arith.constant 0.353553385 : f32
    %266 = vector.broadcast %cst_115 : f32 to vector<8x8xf32>
    %267 = arith.mulf %265, %266 : vector<8x8xf32>
    %268 = arith.addf %267, %5 : vector<8x8xf32>
    %cst_116 = arith.constant dense<0xFF800000> : vector<8xf32>
    %269 = vector.multi_reduction <maximumf>, %268, %cst_116 [1] : vector<8x8xf32> to vector<8xf32>
    %270 = vector.shape_cast %269 : vector<8xf32> to vector<8x1xf32>
    %271 = vector.broadcast %270 : vector<8x1xf32> to vector<8x8xf32>
    %272 = arith.subf %268, %271 : vector<8x8xf32>
    %273 = math.exp %272 : vector<8x8xf32>
    %cst_117 = arith.constant dense<0.000000e+00> : vector<8xf32>
    %274 = vector.multi_reduction <add>, %273, %cst_117 [1] : vector<8x8xf32> to vector<8xf32>
    %275 = vector.shape_cast %274 : vector<8xf32> to vector<8x1xf32>
    %276 = tpu.reciprocal %275 {approx = true} : vector<8x1xf32> -> vector<8x1xf32>
    %277 = vector.broadcast %276 : vector<8x1xf32> to vector<8x8xf32>
    %278 = arith.mulf %273, %277 : vector<8x8xf32>
    %cst_118 = arith.constant dense<0.000000e+00> : vector<8x8xf32>
    %279 = tpu.matmul %278, %264, %cst_118 {dimension_numbers = #tpu.dot_dimension_numbers<[1], [0], [0], [1], [0, 0, 1, 1], [], []>} : vector<8x8xf32>, vector<8x8xf32>, vector<8x8xf32> -> vector<8x8xf32>
    %280 = vector.extract_strided_slice %189 {offsets = [24, 0], sizes = [8, 32], strides = [1, 1]} : vector<32x32xf32> to vector<8x32xf32>
    %cst_119 = arith.constant dense<0.000000e+00> : vector<8x32xf32>
    %281 = tpu.matmul %279, %280, %cst_119 {dimension_numbers = #tpu.dot_dimension_numbers<[1], [0], [0], [1], [0, 0, 1, 1], [], []>} : vector<8x8xf32>, vector<8x32xf32>, vector<8x32xf32> -> vector<8x32xf32>
    %282 = arith.addf %261, %281 : vector<8x32xf32>
    %283 = vector.broadcast %191 : vector<1x32xf32> to vector<8x32xf32>
    %284 = arith.addf %282, %283 : vector<8x32xf32>
    %285 = arith.addf %183, %284 : vector<8x32xf32>
    %c1_120 = arith.constant 1 : index
    %c0_121 = arith.constant 0 : index
    %c0_122 = arith.constant 0 : index
    %286 = vector.load %arg31[%c1_120, %c0_121, %c0_122] : memref<3x1x32xf32, #tpu.memory_space<vmem>>, vector<1x1x32xf32>
    %287 = vector.shape_cast %286 : vector<1x1x32xf32> to vector<1x32xf32>
    %c1_123 = arith.constant 1 : index
    %c0_124 = arith.constant 0 : index
    %c0_125 = arith.constant 0 : index
    %288 = vector.load %arg30[%c1_123, %c0_124, %c0_125] : memref<3x1x32xf32, #tpu.memory_space<vmem>>, vector<1x1x32xf32>
    %289 = vector.shape_cast %288 : vector<1x1x32xf32> to vector<1x32xf32>
    %cst_126 = arith.constant dense<0.000000e+00> : vector<8xf32>
    %290 = vector.multi_reduction <add>, %285, %cst_126 [1] : vector<8x32xf32> to vector<8xf32>
    %291 = vector.shape_cast %290 : vector<8xf32> to vector<8x1xf32>
    %cst_127 = arith.constant 3.200000e+01 : f32
    %292 = vector.broadcast %cst_127 : f32 to vector<8x1xf32>
    %293 = arith.divf %291, %292 : vector<8x1xf32>
    %294 = vector.broadcast %293 : vector<8x1xf32> to vector<8x32xf32>
    %295 = arith.subf %285, %294 : vector<8x32xf32>
    %296 = arith.mulf %295, %295 : vector<8x32xf32>
    %cst_128 = arith.constant dense<0.000000e+00> : vector<8xf32>
    %297 = vector.multi_reduction <add>, %296, %cst_128 [1] : vector<8x32xf32> to vector<8xf32>
    %298 = vector.shape_cast %297 : vector<8xf32> to vector<8x1xf32>
    %cst_129 = arith.constant 3.200000e+01 : f32
    %299 = vector.broadcast %cst_129 : f32 to vector<8x1xf32>
    %300 = arith.divf %298, %299 : vector<8x1xf32>
    %301 = vector.broadcast %293 : vector<8x1xf32> to vector<8x32xf32>
    %302 = arith.subf %285, %301 : vector<8x32xf32>
    %cst_130 = arith.constant 9.99999974E-6 : f32
    %303 = vector.broadcast %cst_130 : f32 to vector<8x1xf32>
    %304 = arith.addf %300, %303 : vector<8x1xf32>
    %305 = math.rsqrt %304 : vector<8x1xf32>
    %306 = vector.broadcast %305 : vector<8x1xf32> to vector<8x32xf32>
    %307 = arith.mulf %302, %306 : vector<8x32xf32>
    %308 = vector.broadcast %287 : vector<1x32xf32> to vector<8x32xf32>
    %309 = arith.mulf %307, %308 : vector<8x32xf32>
    %310 = vector.broadcast %289 : vector<1x32xf32> to vector<8x32xf32>
    %311 = arith.addf %309, %310 : vector<8x32xf32>
    %c1_131 = arith.constant 1 : index
    %c0_132 = arith.constant 0 : index
    %c0_133 = arith.constant 0 : index
    %312 = vector.load %arg36[%c1_131, %c0_132, %c0_133] : memref<3x32x64xf32, #tpu.memory_space<vmem>>, vector<1x32x64xf32>
    %313 = vector.shape_cast %312 : vector<1x32x64xf32> to vector<32x64xf32>
    %c1_134 = arith.constant 1 : index
    %c0_135 = arith.constant 0 : index
    %c0_136 = arith.constant 0 : index
    %314 = vector.load %arg26[%c1_134, %c0_135, %c0_136] : memref<3x1x64xf32, #tpu.memory_space<vmem>>, vector<1x1x64xf32>
    %315 = vector.shape_cast %314 : vector<1x1x64xf32> to vector<1x64xf32>
    %c1_137 = arith.constant 1 : index
    %c0_138 = arith.constant 0 : index
    %c0_139 = arith.constant 0 : index
    %316 = vector.load %arg37[%c1_137, %c0_138, %c0_139] : memref<3x64x32xf32, #tpu.memory_space<vmem>>, vector<1x64x32xf32>
    %317 = vector.shape_cast %316 : vector<1x64x32xf32> to vector<64x32xf32>
    %c1_140 = arith.constant 1 : index
    %c0_141 = arith.constant 0 : index
    %c0_142 = arith.constant 0 : index
    %318 = vector.load %arg27[%c1_140, %c0_141, %c0_142] : memref<3x1x32xf32, #tpu.memory_space<vmem>>, vector<1x1x32xf32>
    %319 = vector.shape_cast %318 : vector<1x1x32xf32> to vector<1x32xf32>
    %cst_143 = arith.constant dense<0.000000e+00> : vector<8x64xf32>
    %320 = tpu.matmul %311, %313, %cst_143 {dimension_numbers = #tpu.dot_dimension_numbers<[1], [0], [0], [1], [0, 0, 1, 1], [], []>} : vector<8x32xf32>, vector<32x64xf32>, vector<8x64xf32> -> vector<8x64xf32>
    %321 = vector.broadcast %315 : vector<1x64xf32> to vector<8x64xf32>
    %322 = arith.addf %320, %321 : vector<8x64xf32>
    %cst_144 = arith.constant 0.000000e+00 : f32
    %323 = vector.broadcast %cst_144 : f32 to vector<8x64xf32>
    %324 = arith.maximumf %322, %323 : vector<8x64xf32>
    %cst_145 = arith.constant dense<0.000000e+00> : vector<8x32xf32>
    %325 = tpu.matmul %324, %317, %cst_145 {dimension_numbers = #tpu.dot_dimension_numbers<[1], [0], [0], [1], [0, 0, 1, 1], [], []>} : vector<8x64xf32>, vector<64x32xf32>, vector<8x32xf32> -> vector<8x32xf32>
    %326 = vector.broadcast %319 : vector<1x32xf32> to vector<8x32xf32>
    %327 = arith.addf %325, %326 : vector<8x32xf32>
    %328 = arith.addf %311, %327 : vector<8x32xf32>
    %c1_146 = arith.constant 1 : index
    %c0_147 = arith.constant 0 : index
    %c0_148 = arith.constant 0 : index
    %329 = vector.load %arg33[%c1_146, %c0_147, %c0_148] : memref<3x1x32xf32, #tpu.memory_space<vmem>>, vector<1x1x32xf32>
    %330 = vector.shape_cast %329 : vector<1x1x32xf32> to vector<1x32xf32>
    %c1_149 = arith.constant 1 : index
    %c0_150 = arith.constant 0 : index
    %c0_151 = arith.constant 0 : index
    %331 = vector.load %arg32[%c1_149, %c0_150, %c0_151] : memref<3x1x32xf32, #tpu.memory_space<vmem>>, vector<1x1x32xf32>
    %332 = vector.shape_cast %331 : vector<1x1x32xf32> to vector<1x32xf32>
    %cst_152 = arith.constant dense<0.000000e+00> : vector<8xf32>
    %333 = vector.multi_reduction <add>, %328, %cst_152 [1] : vector<8x32xf32> to vector<8xf32>
    %334 = vector.shape_cast %333 : vector<8xf32> to vector<8x1xf32>
    %cst_153 = arith.constant 3.200000e+01 : f32
    %335 = vector.broadcast %cst_153 : f32 to vector<8x1xf32>
    %336 = arith.divf %334, %335 : vector<8x1xf32>
    %337 = vector.broadcast %336 : vector<8x1xf32> to vector<8x32xf32>
    %338 = arith.subf %328, %337 : vector<8x32xf32>
    %339 = arith.mulf %338, %338 : vector<8x32xf32>
    %cst_154 = arith.constant dense<0.000000e+00> : vector<8xf32>
    %340 = vector.multi_reduction <add>, %339, %cst_154 [1] : vector<8x32xf32> to vector<8xf32>
    %341 = vector.shape_cast %340 : vector<8xf32> to vector<8x1xf32>
    %cst_155 = arith.constant 3.200000e+01 : f32
    %342 = vector.broadcast %cst_155 : f32 to vector<8x1xf32>
    %343 = arith.divf %341, %342 : vector<8x1xf32>
    %344 = vector.broadcast %336 : vector<8x1xf32> to vector<8x32xf32>
    %345 = arith.subf %328, %344 : vector<8x32xf32>
    %cst_156 = arith.constant 9.99999974E-6 : f32
    %346 = vector.broadcast %cst_156 : f32 to vector<8x1xf32>
    %347 = arith.addf %343, %346 : vector<8x1xf32>
    %348 = math.rsqrt %347 : vector<8x1xf32>
    %349 = vector.broadcast %348 : vector<8x1xf32> to vector<8x32xf32>
    %350 = arith.mulf %345, %349 : vector<8x32xf32>
    %351 = vector.broadcast %330 : vector<1x32xf32> to vector<8x32xf32>
    %352 = arith.mulf %350, %351 : vector<8x32xf32>
    %353 = vector.broadcast %332 : vector<1x32xf32> to vector<8x32xf32>
    %354 = arith.addf %352, %353 : vector<8x32xf32>
    %c2 = arith.constant 2 : index
    %c0_157 = arith.constant 0 : index
    %c0_158 = arith.constant 0 : index
    %355 = vector.load %arg39[%c2, %c0_157, %c0_158] : memref<3x32x96xf32, #tpu.memory_space<vmem>>, vector<1x32x96xf32>
    %356 = vector.shape_cast %355 : vector<1x32x96xf32> to vector<32x96xf32>
    %c2_159 = arith.constant 2 : index
    %c0_160 = arith.constant 0 : index
    %c0_161 = arith.constant 0 : index
    %357 = vector.load %arg29[%c2_159, %c0_160, %c0_161] : memref<3x1x96xf32, #tpu.memory_space<vmem>>, vector<1x1x96xf32>
    %358 = vector.shape_cast %357 : vector<1x1x96xf32> to vector<1x96xf32>
    %c2_162 = arith.constant 2 : index
    %c0_163 = arith.constant 0 : index
    %c0_164 = arith.constant 0 : index
    %359 = vector.load %arg38[%c2_162, %c0_163, %c0_164] : memref<3x32x32xf32, #tpu.memory_space<vmem>>, vector<1x32x32xf32>
    %360 = vector.shape_cast %359 : vector<1x32x32xf32> to vector<32x32xf32>
    %c2_165 = arith.constant 2 : index
    %c0_166 = arith.constant 0 : index
    %c0_167 = arith.constant 0 : index
    %361 = vector.load %arg28[%c2_165, %c0_166, %c0_167] : memref<3x1x32xf32, #tpu.memory_space<vmem>>, vector<1x1x32xf32>
    %362 = vector.shape_cast %361 : vector<1x1x32xf32> to vector<1x32xf32>
    %cst_168 = arith.constant dense<0.000000e+00> : vector<8x96xf32>
    %363 = tpu.matmul %354, %356, %cst_168 {dimension_numbers = #tpu.dot_dimension_numbers<[1], [0], [0], [1], [0, 0, 1, 1], [], []>} : vector<8x32xf32>, vector<32x96xf32>, vector<8x96xf32> -> vector<8x96xf32>
    %364 = vector.broadcast %358 : vector<1x96xf32> to vector<8x96xf32>
    %365 = arith.addf %363, %364 : vector<8x96xf32>
    %366 = vector.extract_strided_slice %365 {offsets = [0, 0], sizes = [8, 32], strides = [1, 1]} : vector<8x96xf32> to vector<8x32xf32>
    %367 = vector.extract_strided_slice %365 {offsets = [0, 32], sizes = [8, 32], strides = [1, 1]} : vector<8x96xf32> to vector<8x32xf32>
    %368 = vector.extract_strided_slice %365 {offsets = [0, 64], sizes = [8, 32], strides = [1, 1]} : vector<8x96xf32> to vector<8x32xf32>
    %cst_169 = arith.constant 0.000000e+00 : f32
    %369 = vector.broadcast %cst_169 : f32 to vector<8x32xf32>
    %370 = vector.extract_strided_slice %366 {offsets = [0, 0], sizes = [8, 8], strides = [1, 1]} : vector<8x32xf32> to vector<8x8xf32>
    %371 = vector.extract_strided_slice %367 {offsets = [0, 0], sizes = [8, 8], strides = [1, 1]} : vector<8x32xf32> to vector<8x8xf32>
    %372 = vector.extract_strided_slice %368 {offsets = [0, 0], sizes = [8, 8], strides = [1, 1]} : vector<8x32xf32> to vector<8x8xf32>
    %cst_170 = arith.constant dense<0.000000e+00> : vector<8x8xf32>
    %373 = tpu.matmul %370, %371, %cst_170 {dimension_numbers = #tpu.dot_dimension_numbers<[1], [1], [0], [0], [0, 0, 1, 0], [], []>} : vector<8x8xf32>, vector<8x8xf32>, vector<8x8xf32> -> vector<8x8xf32>
    %cst_171 = arith.constant 0.353553385 : f32
    %374 = vector.broadcast %cst_171 : f32 to vector<8x8xf32>
    %375 = arith.mulf %373, %374 : vector<8x8xf32>
    %376 = arith.addf %375, %5 : vector<8x8xf32>
    %cst_172 = arith.constant dense<0xFF800000> : vector<8xf32>
    %377 = vector.multi_reduction <maximumf>, %376, %cst_172 [1] : vector<8x8xf32> to vector<8xf32>
    %378 = vector.shape_cast %377 : vector<8xf32> to vector<8x1xf32>
    %379 = vector.broadcast %378 : vector<8x1xf32> to vector<8x8xf32>
    %380 = arith.subf %376, %379 : vector<8x8xf32>
    %381 = math.exp %380 : vector<8x8xf32>
    %cst_173 = arith.constant dense<0.000000e+00> : vector<8xf32>
    %382 = vector.multi_reduction <add>, %381, %cst_173 [1] : vector<8x8xf32> to vector<8xf32>
    %383 = vector.shape_cast %382 : vector<8xf32> to vector<8x1xf32>
    %384 = tpu.reciprocal %383 {approx = true} : vector<8x1xf32> -> vector<8x1xf32>
    %385 = vector.broadcast %384 : vector<8x1xf32> to vector<8x8xf32>
    %386 = arith.mulf %381, %385 : vector<8x8xf32>
    %cst_174 = arith.constant dense<0.000000e+00> : vector<8x8xf32>
    %387 = tpu.matmul %386, %372, %cst_174 {dimension_numbers = #tpu.dot_dimension_numbers<[1], [0], [0], [1], [0, 0, 1, 1], [], []>} : vector<8x8xf32>, vector<8x8xf32>, vector<8x8xf32> -> vector<8x8xf32>
    %388 = vector.extract_strided_slice %360 {offsets = [0, 0], sizes = [8, 32], strides = [1, 1]} : vector<32x32xf32> to vector<8x32xf32>
    %cst_175 = arith.constant dense<0.000000e+00> : vector<8x32xf32>
    %389 = tpu.matmul %387, %388, %cst_175 {dimension_numbers = #tpu.dot_dimension_numbers<[1], [0], [0], [1], [0, 0, 1, 1], [], []>} : vector<8x8xf32>, vector<8x32xf32>, vector<8x32xf32> -> vector<8x32xf32>
    %390 = arith.addf %369, %389 : vector<8x32xf32>
    %391 = vector.extract_strided_slice %366 {offsets = [0, 8], sizes = [8, 8], strides = [1, 1]} : vector<8x32xf32> to vector<8x8xf32>
    %392 = vector.extract_strided_slice %367 {offsets = [0, 8], sizes = [8, 8], strides = [1, 1]} : vector<8x32xf32> to vector<8x8xf32>
    %393 = vector.extract_strided_slice %368 {offsets = [0, 8], sizes = [8, 8], strides = [1, 1]} : vector<8x32xf32> to vector<8x8xf32>
    %cst_176 = arith.constant dense<0.000000e+00> : vector<8x8xf32>
    %394 = tpu.matmul %391, %392, %cst_176 {dimension_numbers = #tpu.dot_dimension_numbers<[1], [1], [0], [0], [0, 0, 1, 0], [], []>} : vector<8x8xf32>, vector<8x8xf32>, vector<8x8xf32> -> vector<8x8xf32>
    %cst_177 = arith.constant 0.353553385 : f32
    %395 = vector.broadcast %cst_177 : f32 to vector<8x8xf32>
    %396 = arith.mulf %394, %395 : vector<8x8xf32>
    %397 = arith.addf %396, %5 : vector<8x8xf32>
    %cst_178 = arith.constant dense<0xFF800000> : vector<8xf32>
    %398 = vector.multi_reduction <maximumf>, %397, %cst_178 [1] : vector<8x8xf32> to vector<8xf32>
    %399 = vector.shape_cast %398 : vector<8xf32> to vector<8x1xf32>
    %400 = vector.broadcast %399 : vector<8x1xf32> to vector<8x8xf32>
    %401 = arith.subf %397, %400 : vector<8x8xf32>
    %402 = math.exp %401 : vector<8x8xf32>
    %cst_179 = arith.constant dense<0.000000e+00> : vector<8xf32>
    %403 = vector.multi_reduction <add>, %402, %cst_179 [1] : vector<8x8xf32> to vector<8xf32>
    %404 = vector.shape_cast %403 : vector<8xf32> to vector<8x1xf32>
    %405 = tpu.reciprocal %404 {approx = true} : vector<8x1xf32> -> vector<8x1xf32>
    %406 = vector.broadcast %405 : vector<8x1xf32> to vector<8x8xf32>
    %407 = arith.mulf %402, %406 : vector<8x8xf32>
    %cst_180 = arith.constant dense<0.000000e+00> : vector<8x8xf32>
    %408 = tpu.matmul %407, %393, %cst_180 {dimension_numbers = #tpu.dot_dimension_numbers<[1], [0], [0], [1], [0, 0, 1, 1], [], []>} : vector<8x8xf32>, vector<8x8xf32>, vector<8x8xf32> -> vector<8x8xf32>
    %409 = vector.extract_strided_slice %360 {offsets = [8, 0], sizes = [8, 32], strides = [1, 1]} : vector<32x32xf32> to vector<8x32xf32>
    %cst_181 = arith.constant dense<0.000000e+00> : vector<8x32xf32>
    %410 = tpu.matmul %408, %409, %cst_181 {dimension_numbers = #tpu.dot_dimension_numbers<[1], [0], [0], [1], [0, 0, 1, 1], [], []>} : vector<8x8xf32>, vector<8x32xf32>, vector<8x32xf32> -> vector<8x32xf32>
    %411 = arith.addf %390, %410 : vector<8x32xf32>
    %412 = vector.extract_strided_slice %366 {offsets = [0, 16], sizes = [8, 8], strides = [1, 1]} : vector<8x32xf32> to vector<8x8xf32>
    %413 = vector.extract_strided_slice %367 {offsets = [0, 16], sizes = [8, 8], strides = [1, 1]} : vector<8x32xf32> to vector<8x8xf32>
    %414 = vector.extract_strided_slice %368 {offsets = [0, 16], sizes = [8, 8], strides = [1, 1]} : vector<8x32xf32> to vector<8x8xf32>
    %cst_182 = arith.constant dense<0.000000e+00> : vector<8x8xf32>
    %415 = tpu.matmul %412, %413, %cst_182 {dimension_numbers = #tpu.dot_dimension_numbers<[1], [1], [0], [0], [0, 0, 1, 0], [], []>} : vector<8x8xf32>, vector<8x8xf32>, vector<8x8xf32> -> vector<8x8xf32>
    %cst_183 = arith.constant 0.353553385 : f32
    %416 = vector.broadcast %cst_183 : f32 to vector<8x8xf32>
    %417 = arith.mulf %415, %416 : vector<8x8xf32>
    %418 = arith.addf %417, %5 : vector<8x8xf32>
    %cst_184 = arith.constant dense<0xFF800000> : vector<8xf32>
    %419 = vector.multi_reduction <maximumf>, %418, %cst_184 [1] : vector<8x8xf32> to vector<8xf32>
    %420 = vector.shape_cast %419 : vector<8xf32> to vector<8x1xf32>
    %421 = vector.broadcast %420 : vector<8x1xf32> to vector<8x8xf32>
    %422 = arith.subf %418, %421 : vector<8x8xf32>
    %423 = math.exp %422 : vector<8x8xf32>
    %cst_185 = arith.constant dense<0.000000e+00> : vector<8xf32>
    %424 = vector.multi_reduction <add>, %423, %cst_185 [1] : vector<8x8xf32> to vector<8xf32>
    %425 = vector.shape_cast %424 : vector<8xf32> to vector<8x1xf32>
    %426 = tpu.reciprocal %425 {approx = true} : vector<8x1xf32> -> vector<8x1xf32>
    %427 = vector.broadcast %426 : vector<8x1xf32> to vector<8x8xf32>
    %428 = arith.mulf %423, %427 : vector<8x8xf32>
    %cst_186 = arith.constant dense<0.000000e+00> : vector<8x8xf32>
    %429 = tpu.matmul %428, %414, %cst_186 {dimension_numbers = #tpu.dot_dimension_numbers<[1], [0], [0], [1], [0, 0, 1, 1], [], []>} : vector<8x8xf32>, vector<8x8xf32>, vector<8x8xf32> -> vector<8x8xf32>
    %430 = vector.extract_strided_slice %360 {offsets = [16, 0], sizes = [8, 32], strides = [1, 1]} : vector<32x32xf32> to vector<8x32xf32>
    %cst_187 = arith.constant dense<0.000000e+00> : vector<8x32xf32>
    %431 = tpu.matmul %429, %430, %cst_187 {dimension_numbers = #tpu.dot_dimension_numbers<[1], [0], [0], [1], [0, 0, 1, 1], [], []>} : vector<8x8xf32>, vector<8x32xf32>, vector<8x32xf32> -> vector<8x32xf32>
    %432 = arith.addf %411, %431 : vector<8x32xf32>
    %433 = vector.extract_strided_slice %366 {offsets = [0, 24], sizes = [8, 8], strides = [1, 1]} : vector<8x32xf32> to vector<8x8xf32>
    %434 = vector.extract_strided_slice %367 {offsets = [0, 24], sizes = [8, 8], strides = [1, 1]} : vector<8x32xf32> to vector<8x8xf32>
    %435 = vector.extract_strided_slice %368 {offsets = [0, 24], sizes = [8, 8], strides = [1, 1]} : vector<8x32xf32> to vector<8x8xf32>
    %cst_188 = arith.constant dense<0.000000e+00> : vector<8x8xf32>
    %436 = tpu.matmul %433, %434, %cst_188 {dimension_numbers = #tpu.dot_dimension_numbers<[1], [1], [0], [0], [0, 0, 1, 0], [], []>} : vector<8x8xf32>, vector<8x8xf32>, vector<8x8xf32> -> vector<8x8xf32>
    %cst_189 = arith.constant 0.353553385 : f32
    %437 = vector.broadcast %cst_189 : f32 to vector<8x8xf32>
    %438 = arith.mulf %436, %437 : vector<8x8xf32>
    %439 = arith.addf %438, %5 : vector<8x8xf32>
    %cst_190 = arith.constant dense<0xFF800000> : vector<8xf32>
    %440 = vector.multi_reduction <maximumf>, %439, %cst_190 [1] : vector<8x8xf32> to vector<8xf32>
    %441 = vector.shape_cast %440 : vector<8xf32> to vector<8x1xf32>
    %442 = vector.broadcast %441 : vector<8x1xf32> to vector<8x8xf32>
    %443 = arith.subf %439, %442 : vector<8x8xf32>
    %444 = math.exp %443 : vector<8x8xf32>
    %cst_191 = arith.constant dense<0.000000e+00> : vector<8xf32>
    %445 = vector.multi_reduction <add>, %444, %cst_191 [1] : vector<8x8xf32> to vector<8xf32>
    %446 = vector.shape_cast %445 : vector<8xf32> to vector<8x1xf32>
    %447 = tpu.reciprocal %446 {approx = true} : vector<8x1xf32> -> vector<8x1xf32>
    %448 = vector.broadcast %447 : vector<8x1xf32> to vector<8x8xf32>
    %449 = arith.mulf %444, %448 : vector<8x8xf32>
    %cst_192 = arith.constant dense<0.000000e+00> : vector<8x8xf32>
    %450 = tpu.matmul %449, %435, %cst_192 {dimension_numbers = #tpu.dot_dimension_numbers<[1], [0], [0], [1], [0, 0, 1, 1], [], []>} : vector<8x8xf32>, vector<8x8xf32>, vector<8x8xf32> -> vector<8x8xf32>
    %451 = vector.extract_strided_slice %360 {offsets = [24, 0], sizes = [8, 32], strides = [1, 1]} : vector<32x32xf32> to vector<8x32xf32>
    %cst_193 = arith.constant dense<0.000000e+00> : vector<8x32xf32>
    %452 = tpu.matmul %450, %451, %cst_193 {dimension_numbers = #tpu.dot_dimension_numbers<[1], [0], [0], [1], [0, 0, 1, 1], [], []>} : vector<8x8xf32>, vector<8x32xf32>, vector<8x32xf32> -> vector<8x32xf32>
    %453 = arith.addf %432, %452 : vector<8x32xf32>
    %454 = vector.broadcast %362 : vector<1x32xf32> to vector<8x32xf32>
    %455 = arith.addf %453, %454 : vector<8x32xf32>
    %456 = arith.addf %354, %455 : vector<8x32xf32>
    %c2_194 = arith.constant 2 : index
    %c0_195 = arith.constant 0 : index
    %c0_196 = arith.constant 0 : index
    %457 = vector.load %arg31[%c2_194, %c0_195, %c0_196] : memref<3x1x32xf32, #tpu.memory_space<vmem>>, vector<1x1x32xf32>
    %458 = vector.shape_cast %457 : vector<1x1x32xf32> to vector<1x32xf32>
    %c2_197 = arith.constant 2 : index
    %c0_198 = arith.constant 0 : index
    %c0_199 = arith.constant 0 : index
    %459 = vector.load %arg30[%c2_197, %c0_198, %c0_199] : memref<3x1x32xf32, #tpu.memory_space<vmem>>, vector<1x1x32xf32>
    %460 = vector.shape_cast %459 : vector<1x1x32xf32> to vector<1x32xf32>
    %cst_200 = arith.constant dense<0.000000e+00> : vector<8xf32>
    %461 = vector.multi_reduction <add>, %456, %cst_200 [1] : vector<8x32xf32> to vector<8xf32>
    %462 = vector.shape_cast %461 : vector<8xf32> to vector<8x1xf32>
    %cst_201 = arith.constant 3.200000e+01 : f32
    %463 = vector.broadcast %cst_201 : f32 to vector<8x1xf32>
    %464 = arith.divf %462, %463 : vector<8x1xf32>
    %465 = vector.broadcast %464 : vector<8x1xf32> to vector<8x32xf32>
    %466 = arith.subf %456, %465 : vector<8x32xf32>
    %467 = arith.mulf %466, %466 : vector<8x32xf32>
    %cst_202 = arith.constant dense<0.000000e+00> : vector<8xf32>
    %468 = vector.multi_reduction <add>, %467, %cst_202 [1] : vector<8x32xf32> to vector<8xf32>
    %469 = vector.shape_cast %468 : vector<8xf32> to vector<8x1xf32>
    %cst_203 = arith.constant 3.200000e+01 : f32
    %470 = vector.broadcast %cst_203 : f32 to vector<8x1xf32>
    %471 = arith.divf %469, %470 : vector<8x1xf32>
    %472 = vector.broadcast %464 : vector<8x1xf32> to vector<8x32xf32>
    %473 = arith.subf %456, %472 : vector<8x32xf32>
    %cst_204 = arith.constant 9.99999974E-6 : f32
    %474 = vector.broadcast %cst_204 : f32 to vector<8x1xf32>
    %475 = arith.addf %471, %474 : vector<8x1xf32>
    %476 = math.rsqrt %475 : vector<8x1xf32>
    %477 = vector.broadcast %476 : vector<8x1xf32> to vector<8x32xf32>
    %478 = arith.mulf %473, %477 : vector<8x32xf32>
    %479 = vector.broadcast %458 : vector<1x32xf32> to vector<8x32xf32>
    %480 = arith.mulf %478, %479 : vector<8x32xf32>
    %481 = vector.broadcast %460 : vector<1x32xf32> to vector<8x32xf32>
    %482 = arith.addf %480, %481 : vector<8x32xf32>
    %c2_205 = arith.constant 2 : index
    %c0_206 = arith.constant 0 : index
    %c0_207 = arith.constant 0 : index
    %483 = vector.load %arg36[%c2_205, %c0_206, %c0_207] : memref<3x32x64xf32, #tpu.memory_space<vmem>>, vector<1x32x64xf32>
    %484 = vector.shape_cast %483 : vector<1x32x64xf32> to vector<32x64xf32>
    %c2_208 = arith.constant 2 : index
    %c0_209 = arith.constant 0 : index
    %c0_210 = arith.constant 0 : index
    %485 = vector.load %arg26[%c2_208, %c0_209, %c0_210] : memref<3x1x64xf32, #tpu.memory_space<vmem>>, vector<1x1x64xf32>
    %486 = vector.shape_cast %485 : vector<1x1x64xf32> to vector<1x64xf32>
    %c2_211 = arith.constant 2 : index
    %c0_212 = arith.constant 0 : index
    %c0_213 = arith.constant 0 : index
    %487 = vector.load %arg37[%c2_211, %c0_212, %c0_213] : memref<3x64x32xf32, #tpu.memory_space<vmem>>, vector<1x64x32xf32>
    %488 = vector.shape_cast %487 : vector<1x64x32xf32> to vector<64x32xf32>
    %c2_214 = arith.constant 2 : index
    %c0_215 = arith.constant 0 : index
    %c0_216 = arith.constant 0 : index
    %489 = vector.load %arg27[%c2_214, %c0_215, %c0_216] : memref<3x1x32xf32, #tpu.memory_space<vmem>>, vector<1x1x32xf32>
    %490 = vector.shape_cast %489 : vector<1x1x32xf32> to vector<1x32xf32>
    %cst_217 = arith.constant dense<0.000000e+00> : vector<8x64xf32>
    %491 = tpu.matmul %482, %484, %cst_217 {dimension_numbers = #tpu.dot_dimension_numbers<[1], [0], [0], [1], [0, 0, 1, 1], [], []>} : vector<8x32xf32>, vector<32x64xf32>, vector<8x64xf32> -> vector<8x64xf32>
    %492 = vector.broadcast %486 : vector<1x64xf32> to vector<8x64xf32>
    %493 = arith.addf %491, %492 : vector<8x64xf32>
    %cst_218 = arith.constant 0.000000e+00 : f32
    %494 = vector.broadcast %cst_218 : f32 to vector<8x64xf32>
    %495 = arith.maximumf %493, %494 : vector<8x64xf32>
    %cst_219 = arith.constant dense<0.000000e+00> : vector<8x32xf32>
    %496 = tpu.matmul %495, %488, %cst_219 {dimension_numbers = #tpu.dot_dimension_numbers<[1], [0], [0], [1], [0, 0, 1, 1], [], []>} : vector<8x64xf32>, vector<64x32xf32>, vector<8x32xf32> -> vector<8x32xf32>
    %497 = vector.broadcast %490 : vector<1x32xf32> to vector<8x32xf32>
    %498 = arith.addf %496, %497 : vector<8x32xf32>
    %499 = arith.addf %482, %498 : vector<8x32xf32>
    %c2_220 = arith.constant 2 : index
    %c0_221 = arith.constant 0 : index
    %c0_222 = arith.constant 0 : index
    %500 = vector.load %arg33[%c2_220, %c0_221, %c0_222] : memref<3x1x32xf32, #tpu.memory_space<vmem>>, vector<1x1x32xf32>
    %501 = vector.shape_cast %500 : vector<1x1x32xf32> to vector<1x32xf32>
    %c2_223 = arith.constant 2 : index
    %c0_224 = arith.constant 0 : index
    %c0_225 = arith.constant 0 : index
    %502 = vector.load %arg32[%c2_223, %c0_224, %c0_225] : memref<3x1x32xf32, #tpu.memory_space<vmem>>, vector<1x1x32xf32>
    %503 = vector.shape_cast %502 : vector<1x1x32xf32> to vector<1x32xf32>
    %cst_226 = arith.constant dense<0.000000e+00> : vector<8xf32>
    %504 = vector.multi_reduction <add>, %499, %cst_226 [1] : vector<8x32xf32> to vector<8xf32>
    %505 = vector.shape_cast %504 : vector<8xf32> to vector<8x1xf32>
    %cst_227 = arith.constant 3.200000e+01 : f32
    %506 = vector.broadcast %cst_227 : f32 to vector<8x1xf32>
    %507 = arith.divf %505, %506 : vector<8x1xf32>
    %508 = vector.broadcast %507 : vector<8x1xf32> to vector<8x32xf32>
    %509 = arith.subf %499, %508 : vector<8x32xf32>
    %510 = arith.mulf %509, %509 : vector<8x32xf32>
    %cst_228 = arith.constant dense<0.000000e+00> : vector<8xf32>
    %511 = vector.multi_reduction <add>, %510, %cst_228 [1] : vector<8x32xf32> to vector<8xf32>
    %512 = vector.shape_cast %511 : vector<8xf32> to vector<8x1xf32>
    %cst_229 = arith.constant 3.200000e+01 : f32
    %513 = vector.broadcast %cst_229 : f32 to vector<8x1xf32>
    %514 = arith.divf %512, %513 : vector<8x1xf32>
    %515 = vector.broadcast %507 : vector<8x1xf32> to vector<8x32xf32>
    %516 = arith.subf %499, %515 : vector<8x32xf32>
    %cst_230 = arith.constant 9.99999974E-6 : f32
    %517 = vector.broadcast %cst_230 : f32 to vector<8x1xf32>
    %518 = arith.addf %514, %517 : vector<8x1xf32>
    %519 = math.rsqrt %518 : vector<8x1xf32>
    %520 = vector.broadcast %519 : vector<8x1xf32> to vector<8x32xf32>
    %521 = arith.mulf %516, %520 : vector<8x32xf32>
    %522 = vector.broadcast %501 : vector<1x32xf32> to vector<8x32xf32>
    %523 = arith.mulf %521, %522 : vector<8x32xf32>
    %524 = vector.broadcast %503 : vector<1x32xf32> to vector<8x32xf32>
    %525 = arith.addf %523, %524 : vector<8x32xf32>
    %c0_231 = arith.constant 0 : index
    %c0_232 = arith.constant 0 : index
    %526 = vector.load %arg35[%c0_231, %c0_232] : memref<1x32xf32, #tpu.memory_space<vmem>>, vector<1x32xf32>
    %c0_233 = arith.constant 0 : index
    %c0_234 = arith.constant 0 : index
    %527 = vector.load %arg34[%c0_233, %c0_234] : memref<1x32xf32, #tpu.memory_space<vmem>>, vector<1x32xf32>
    %cst_235 = arith.constant dense<0.000000e+00> : vector<8xf32>
    %528 = vector.multi_reduction <add>, %525, %cst_235 [1] : vector<8x32xf32> to vector<8xf32>
    %529 = vector.shape_cast %528 : vector<8xf32> to vector<8x1xf32>
    %cst_236 = arith.constant 3.200000e+01 : f32
    %530 = vector.broadcast %cst_236 : f32 to vector<8x1xf32>
    %531 = arith.divf %529, %530 : vector<8x1xf32>
    %532 = vector.broadcast %531 : vector<8x1xf32> to vector<8x32xf32>
    %533 = arith.subf %525, %532 : vector<8x32xf32>
    %534 = arith.mulf %533, %533 : vector<8x32xf32>
    %cst_237 = arith.constant dense<0.000000e+00> : vector<8xf32>
    %535 = vector.multi_reduction <add>, %534, %cst_237 [1] : vector<8x32xf32> to vector<8xf32>
    %536 = vector.shape_cast %535 : vector<8xf32> to vector<8x1xf32>
    %cst_238 = arith.constant 3.200000e+01 : f32
    %537 = vector.broadcast %cst_238 : f32 to vector<8x1xf32>
    %538 = arith.divf %536, %537 : vector<8x1xf32>
    %539 = vector.broadcast %531 : vector<8x1xf32> to vector<8x32xf32>
    %540 = arith.subf %525, %539 : vector<8x32xf32>
    %cst_239 = arith.constant 9.99999974E-6 : f32
    %541 = vector.broadcast %cst_239 : f32 to vector<8x1xf32>
    %542 = arith.addf %538, %541 : vector<8x1xf32>
    %543 = math.rsqrt %542 : vector<8x1xf32>
    %544 = vector.broadcast %543 : vector<8x1xf32> to vector<8x32xf32>
    %545 = arith.mulf %540, %544 : vector<8x32xf32>
    %546 = vector.broadcast %526 : vector<1x32xf32> to vector<8x32xf32>
    %547 = arith.mulf %545, %546 : vector<8x32xf32>
    %548 = vector.broadcast %527 : vector<1x32xf32> to vector<8x32xf32>
    %549 = arith.addf %547, %548 : vector<8x32xf32>
    %c0_240 = arith.constant 0 : index
    %c0_241 = arith.constant 0 : index
    %c0_242 = arith.constant 0 : index
    %550 = vector.load %arg23[%c0_240, %c0_241, %c0_242] : memref<3x32x96xf32, #tpu.memory_space<vmem>>, vector<1x32x96xf32>
    %551 = vector.shape_cast %550 : vector<1x32x96xf32> to vector<32x96xf32>
    %c0_243 = arith.constant 0 : index
    %c0_244 = arith.constant 0 : index
    %c0_245 = arith.constant 0 : index
    %552 = vector.load %arg21[%c0_243, %c0_244, %c0_245] : memref<3x1x96xf32, #tpu.memory_space<vmem>>, vector<1x1x96xf32>
    %553 = vector.shape_cast %552 : vector<1x1x96xf32> to vector<1x96xf32>
    %c0_246 = arith.constant 0 : index
    %c0_247 = arith.constant 0 : index
    %c0_248 = arith.constant 0 : index
    %554 = vector.load %arg22[%c0_246, %c0_247, %c0_248] : memref<3x32x32xf32, #tpu.memory_space<vmem>>, vector<1x32x32xf32>
    %555 = vector.shape_cast %554 : vector<1x32x32xf32> to vector<32x32xf32>
    %c0_249 = arith.constant 0 : index
    %c0_250 = arith.constant 0 : index
    %c0_251 = arith.constant 0 : index
    %556 = vector.load %arg20[%c0_249, %c0_250, %c0_251] : memref<3x1x32xf32, #tpu.memory_space<vmem>>, vector<1x1x32xf32>
    %557 = vector.shape_cast %556 : vector<1x1x32xf32> to vector<1x32xf32>
    %cst_252 = arith.constant dense<0.000000e+00> : vector<8x96xf32>
    %558 = tpu.matmul %12, %551, %cst_252 {dimension_numbers = #tpu.dot_dimension_numbers<[1], [0], [0], [1], [0, 0, 1, 1], [], []>} : vector<8x32xf32>, vector<32x96xf32>, vector<8x96xf32> -> vector<8x96xf32>
    %559 = vector.broadcast %553 : vector<1x96xf32> to vector<8x96xf32>
    %560 = arith.addf %558, %559 : vector<8x96xf32>
    %561 = vector.extract_strided_slice %560 {offsets = [0, 0], sizes = [8, 32], strides = [1, 1]} : vector<8x96xf32> to vector<8x32xf32>
    %562 = vector.extract_strided_slice %560 {offsets = [0, 32], sizes = [8, 32], strides = [1, 1]} : vector<8x96xf32> to vector<8x32xf32>
    %563 = vector.extract_strided_slice %560 {offsets = [0, 64], sizes = [8, 32], strides = [1, 1]} : vector<8x96xf32> to vector<8x32xf32>
    %cst_253 = arith.constant 0.000000e+00 : f32
    %564 = vector.broadcast %cst_253 : f32 to vector<8x32xf32>
    %565 = vector.extract_strided_slice %561 {offsets = [0, 0], sizes = [8, 8], strides = [1, 1]} : vector<8x32xf32> to vector<8x8xf32>
    %566 = vector.extract_strided_slice %562 {offsets = [0, 0], sizes = [8, 8], strides = [1, 1]} : vector<8x32xf32> to vector<8x8xf32>
    %567 = vector.extract_strided_slice %563 {offsets = [0, 0], sizes = [8, 8], strides = [1, 1]} : vector<8x32xf32> to vector<8x8xf32>
    %cst_254 = arith.constant dense<0.000000e+00> : vector<8x8xf32>
    %568 = tpu.matmul %565, %566, %cst_254 {dimension_numbers = #tpu.dot_dimension_numbers<[1], [1], [0], [0], [0, 0, 1, 0], [], []>} : vector<8x8xf32>, vector<8x8xf32>, vector<8x8xf32> -> vector<8x8xf32>
    %cst_255 = arith.constant 0.353553385 : f32
    %569 = vector.broadcast %cst_255 : f32 to vector<8x8xf32>
    %570 = arith.mulf %568, %569 : vector<8x8xf32>
    %571 = arith.addf %570, %5 : vector<8x8xf32>
    %cst_256 = arith.constant dense<0xFF800000> : vector<8xf32>
    %572 = vector.multi_reduction <maximumf>, %571, %cst_256 [1] : vector<8x8xf32> to vector<8xf32>
    %573 = vector.shape_cast %572 : vector<8xf32> to vector<8x1xf32>
    %574 = vector.broadcast %573 : vector<8x1xf32> to vector<8x8xf32>
    %575 = arith.subf %571, %574 : vector<8x8xf32>
    %576 = math.exp %575 : vector<8x8xf32>
    %cst_257 = arith.constant dense<0.000000e+00> : vector<8xf32>
    %577 = vector.multi_reduction <add>, %576, %cst_257 [1] : vector<8x8xf32> to vector<8xf32>
    %578 = vector.shape_cast %577 : vector<8xf32> to vector<8x1xf32>
    %579 = tpu.reciprocal %578 {approx = true} : vector<8x1xf32> -> vector<8x1xf32>
    %580 = vector.broadcast %579 : vector<8x1xf32> to vector<8x8xf32>
    %581 = arith.mulf %576, %580 : vector<8x8xf32>
    %cst_258 = arith.constant dense<0.000000e+00> : vector<8x8xf32>
    %582 = tpu.matmul %581, %567, %cst_258 {dimension_numbers = #tpu.dot_dimension_numbers<[1], [0], [0], [1], [0, 0, 1, 1], [], []>} : vector<8x8xf32>, vector<8x8xf32>, vector<8x8xf32> -> vector<8x8xf32>
    %583 = vector.extract_strided_slice %555 {offsets = [0, 0], sizes = [8, 32], strides = [1, 1]} : vector<32x32xf32> to vector<8x32xf32>
    %cst_259 = arith.constant dense<0.000000e+00> : vector<8x32xf32>
    %584 = tpu.matmul %582, %583, %cst_259 {dimension_numbers = #tpu.dot_dimension_numbers<[1], [0], [0], [1], [0, 0, 1, 1], [], []>} : vector<8x8xf32>, vector<8x32xf32>, vector<8x32xf32> -> vector<8x32xf32>
    %585 = arith.addf %564, %584 : vector<8x32xf32>
    %586 = vector.extract_strided_slice %561 {offsets = [0, 8], sizes = [8, 8], strides = [1, 1]} : vector<8x32xf32> to vector<8x8xf32>
    %587 = vector.extract_strided_slice %562 {offsets = [0, 8], sizes = [8, 8], strides = [1, 1]} : vector<8x32xf32> to vector<8x8xf32>
    %588 = vector.extract_strided_slice %563 {offsets = [0, 8], sizes = [8, 8], strides = [1, 1]} : vector<8x32xf32> to vector<8x8xf32>
    %cst_260 = arith.constant dense<0.000000e+00> : vector<8x8xf32>
    %589 = tpu.matmul %586, %587, %cst_260 {dimension_numbers = #tpu.dot_dimension_numbers<[1], [1], [0], [0], [0, 0, 1, 0], [], []>} : vector<8x8xf32>, vector<8x8xf32>, vector<8x8xf32> -> vector<8x8xf32>
    %cst_261 = arith.constant 0.353553385 : f32
    %590 = vector.broadcast %cst_261 : f32 to vector<8x8xf32>
    %591 = arith.mulf %589, %590 : vector<8x8xf32>
    %592 = arith.addf %591, %5 : vector<8x8xf32>
    %cst_262 = arith.constant dense<0xFF800000> : vector<8xf32>
    %593 = vector.multi_reduction <maximumf>, %592, %cst_262 [1] : vector<8x8xf32> to vector<8xf32>
    %594 = vector.shape_cast %593 : vector<8xf32> to vector<8x1xf32>
    %595 = vector.broadcast %594 : vector<8x1xf32> to vector<8x8xf32>
    %596 = arith.subf %592, %595 : vector<8x8xf32>
    %597 = math.exp %596 : vector<8x8xf32>
    %cst_263 = arith.constant dense<0.000000e+00> : vector<8xf32>
    %598 = vector.multi_reduction <add>, %597, %cst_263 [1] : vector<8x8xf32> to vector<8xf32>
    %599 = vector.shape_cast %598 : vector<8xf32> to vector<8x1xf32>
    %600 = tpu.reciprocal %599 {approx = true} : vector<8x1xf32> -> vector<8x1xf32>
    %601 = vector.broadcast %600 : vector<8x1xf32> to vector<8x8xf32>
    %602 = arith.mulf %597, %601 : vector<8x8xf32>
    %cst_264 = arith.constant dense<0.000000e+00> : vector<8x8xf32>
    %603 = tpu.matmul %602, %588, %cst_264 {dimension_numbers = #tpu.dot_dimension_numbers<[1], [0], [0], [1], [0, 0, 1, 1], [], []>} : vector<8x8xf32>, vector<8x8xf32>, vector<8x8xf32> -> vector<8x8xf32>
    %604 = vector.extract_strided_slice %555 {offsets = [8, 0], sizes = [8, 32], strides = [1, 1]} : vector<32x32xf32> to vector<8x32xf32>
    %cst_265 = arith.constant dense<0.000000e+00> : vector<8x32xf32>
    %605 = tpu.matmul %603, %604, %cst_265 {dimension_numbers = #tpu.dot_dimension_numbers<[1], [0], [0], [1], [0, 0, 1, 1], [], []>} : vector<8x8xf32>, vector<8x32xf32>, vector<8x32xf32> -> vector<8x32xf32>
    %606 = arith.addf %585, %605 : vector<8x32xf32>
    %607 = vector.extract_strided_slice %561 {offsets = [0, 16], sizes = [8, 8], strides = [1, 1]} : vector<8x32xf32> to vector<8x8xf32>
    %608 = vector.extract_strided_slice %562 {offsets = [0, 16], sizes = [8, 8], strides = [1, 1]} : vector<8x32xf32> to vector<8x8xf32>
    %609 = vector.extract_strided_slice %563 {offsets = [0, 16], sizes = [8, 8], strides = [1, 1]} : vector<8x32xf32> to vector<8x8xf32>
    %cst_266 = arith.constant dense<0.000000e+00> : vector<8x8xf32>
    %610 = tpu.matmul %607, %608, %cst_266 {dimension_numbers = #tpu.dot_dimension_numbers<[1], [1], [0], [0], [0, 0, 1, 0], [], []>} : vector<8x8xf32>, vector<8x8xf32>, vector<8x8xf32> -> vector<8x8xf32>
    %cst_267 = arith.constant 0.353553385 : f32
    %611 = vector.broadcast %cst_267 : f32 to vector<8x8xf32>
    %612 = arith.mulf %610, %611 : vector<8x8xf32>
    %613 = arith.addf %612, %5 : vector<8x8xf32>
    %cst_268 = arith.constant dense<0xFF800000> : vector<8xf32>
    %614 = vector.multi_reduction <maximumf>, %613, %cst_268 [1] : vector<8x8xf32> to vector<8xf32>
    %615 = vector.shape_cast %614 : vector<8xf32> to vector<8x1xf32>
    %616 = vector.broadcast %615 : vector<8x1xf32> to vector<8x8xf32>
    %617 = arith.subf %613, %616 : vector<8x8xf32>
    %618 = math.exp %617 : vector<8x8xf32>
    %cst_269 = arith.constant dense<0.000000e+00> : vector<8xf32>
    %619 = vector.multi_reduction <add>, %618, %cst_269 [1] : vector<8x8xf32> to vector<8xf32>
    %620 = vector.shape_cast %619 : vector<8xf32> to vector<8x1xf32>
    %621 = tpu.reciprocal %620 {approx = true} : vector<8x1xf32> -> vector<8x1xf32>
    %622 = vector.broadcast %621 : vector<8x1xf32> to vector<8x8xf32>
    %623 = arith.mulf %618, %622 : vector<8x8xf32>
    %cst_270 = arith.constant dense<0.000000e+00> : vector<8x8xf32>
    %624 = tpu.matmul %623, %609, %cst_270 {dimension_numbers = #tpu.dot_dimension_numbers<[1], [0], [0], [1], [0, 0, 1, 1], [], []>} : vector<8x8xf32>, vector<8x8xf32>, vector<8x8xf32> -> vector<8x8xf32>
    %625 = vector.extract_strided_slice %555 {offsets = [16, 0], sizes = [8, 32], strides = [1, 1]} : vector<32x32xf32> to vector<8x32xf32>
    %cst_271 = arith.constant dense<0.000000e+00> : vector<8x32xf32>
    %626 = tpu.matmul %624, %625, %cst_271 {dimension_numbers = #tpu.dot_dimension_numbers<[1], [0], [0], [1], [0, 0, 1, 1], [], []>} : vector<8x8xf32>, vector<8x32xf32>, vector<8x32xf32> -> vector<8x32xf32>
    %627 = arith.addf %606, %626 : vector<8x32xf32>
    %628 = vector.extract_strided_slice %561 {offsets = [0, 24], sizes = [8, 8], strides = [1, 1]} : vector<8x32xf32> to vector<8x8xf32>
    %629 = vector.extract_strided_slice %562 {offsets = [0, 24], sizes = [8, 8], strides = [1, 1]} : vector<8x32xf32> to vector<8x8xf32>
    %630 = vector.extract_strided_slice %563 {offsets = [0, 24], sizes = [8, 8], strides = [1, 1]} : vector<8x32xf32> to vector<8x8xf32>
    %cst_272 = arith.constant dense<0.000000e+00> : vector<8x8xf32>
    %631 = tpu.matmul %628, %629, %cst_272 {dimension_numbers = #tpu.dot_dimension_numbers<[1], [1], [0], [0], [0, 0, 1, 0], [], []>} : vector<8x8xf32>, vector<8x8xf32>, vector<8x8xf32> -> vector<8x8xf32>
    %cst_273 = arith.constant 0.353553385 : f32
    %632 = vector.broadcast %cst_273 : f32 to vector<8x8xf32>
    %633 = arith.mulf %631, %632 : vector<8x8xf32>
    %634 = arith.addf %633, %5 : vector<8x8xf32>
    %cst_274 = arith.constant dense<0xFF800000> : vector<8xf32>
    %635 = vector.multi_reduction <maximumf>, %634, %cst_274 [1] : vector<8x8xf32> to vector<8xf32>
    %636 = vector.shape_cast %635 : vector<8xf32> to vector<8x1xf32>
    %637 = vector.broadcast %636 : vector<8x1xf32> to vector<8x8xf32>
    %638 = arith.subf %634, %637 : vector<8x8xf32>
    %639 = math.exp %638 : vector<8x8xf32>
    %cst_275 = arith.constant dense<0.000000e+00> : vector<8xf32>
    %640 = vector.multi_reduction <add>, %639, %cst_275 [1] : vector<8x8xf32> to vector<8xf32>
    %641 = vector.shape_cast %640 : vector<8xf32> to vector<8x1xf32>
    %642 = tpu.reciprocal %641 {approx = true} : vector<8x1xf32> -> vector<8x1xf32>
    %643 = vector.broadcast %642 : vector<8x1xf32> to vector<8x8xf32>
    %644 = arith.mulf %639, %643 : vector<8x8xf32>
    %cst_276 = arith.constant dense<0.000000e+00> : vector<8x8xf32>
    %645 = tpu.matmul %644, %630, %cst_276 {dimension_numbers = #tpu.dot_dimension_numbers<[1], [0], [0], [1], [0, 0, 1, 1], [], []>} : vector<8x8xf32>, vector<8x8xf32>, vector<8x8xf32> -> vector<8x8xf32>
    %646 = vector.extract_strided_slice %555 {offsets = [24, 0], sizes = [8, 32], strides = [1, 1]} : vector<32x32xf32> to vector<8x32xf32>
    %cst_277 = arith.constant dense<0.000000e+00> : vector<8x32xf32>
    %647 = tpu.matmul %645, %646, %cst_277 {dimension_numbers = #tpu.dot_dimension_numbers<[1], [0], [0], [1], [0, 0, 1, 1], [], []>} : vector<8x8xf32>, vector<8x32xf32>, vector<8x32xf32> -> vector<8x32xf32>
    %648 = arith.addf %627, %647 : vector<8x32xf32>
    %649 = vector.broadcast %557 : vector<1x32xf32> to vector<8x32xf32>
    %650 = arith.addf %648, %649 : vector<8x32xf32>
    %651 = arith.addf %12, %650 : vector<8x32xf32>
    %c0_278 = arith.constant 0 : index
    %c0_279 = arith.constant 0 : index
    %c0_280 = arith.constant 0 : index
    %652 = vector.load %arg13[%c0_278, %c0_279, %c0_280] : memref<3x1x32xf32, #tpu.memory_space<vmem>>, vector<1x1x32xf32>
    %653 = vector.shape_cast %652 : vector<1x1x32xf32> to vector<1x32xf32>
    %c0_281 = arith.constant 0 : index
    %c0_282 = arith.constant 0 : index
    %c0_283 = arith.constant 0 : index
    %654 = vector.load %arg12[%c0_281, %c0_282, %c0_283] : memref<3x1x32xf32, #tpu.memory_space<vmem>>, vector<1x1x32xf32>
    %655 = vector.shape_cast %654 : vector<1x1x32xf32> to vector<1x32xf32>
    %cst_284 = arith.constant dense<0.000000e+00> : vector<8xf32>
    %656 = vector.multi_reduction <add>, %651, %cst_284 [1] : vector<8x32xf32> to vector<8xf32>
    %657 = vector.shape_cast %656 : vector<8xf32> to vector<8x1xf32>
    %cst_285 = arith.constant 3.200000e+01 : f32
    %658 = vector.broadcast %cst_285 : f32 to vector<8x1xf32>
    %659 = arith.divf %657, %658 : vector<8x1xf32>
    %660 = vector.broadcast %659 : vector<8x1xf32> to vector<8x32xf32>
    %661 = arith.subf %651, %660 : vector<8x32xf32>
    %662 = arith.mulf %661, %661 : vector<8x32xf32>
    %cst_286 = arith.constant dense<0.000000e+00> : vector<8xf32>
    %663 = vector.multi_reduction <add>, %662, %cst_286 [1] : vector<8x32xf32> to vector<8xf32>
    %664 = vector.shape_cast %663 : vector<8xf32> to vector<8x1xf32>
    %cst_287 = arith.constant 3.200000e+01 : f32
    %665 = vector.broadcast %cst_287 : f32 to vector<8x1xf32>
    %666 = arith.divf %664, %665 : vector<8x1xf32>
    %667 = vector.broadcast %659 : vector<8x1xf32> to vector<8x32xf32>
    %668 = arith.subf %651, %667 : vector<8x32xf32>
    %cst_288 = arith.constant 9.99999974E-6 : f32
    %669 = vector.broadcast %cst_288 : f32 to vector<8x1xf32>
    %670 = arith.addf %666, %669 : vector<8x1xf32>
    %671 = math.rsqrt %670 : vector<8x1xf32>
    %672 = vector.broadcast %671 : vector<8x1xf32> to vector<8x32xf32>
    %673 = arith.mulf %668, %672 : vector<8x32xf32>
    %674 = vector.broadcast %653 : vector<1x32xf32> to vector<8x32xf32>
    %675 = arith.mulf %673, %674 : vector<8x32xf32>
    %676 = vector.broadcast %655 : vector<1x32xf32> to vector<8x32xf32>
    %677 = arith.addf %675, %676 : vector<8x32xf32>
    %c0_289 = arith.constant 0 : index
    %c0_290 = arith.constant 0 : index
    %c0_291 = arith.constant 0 : index
    %678 = vector.load %arg11[%c0_289, %c0_290, %c0_291] : memref<3x32x32xf32, #tpu.memory_space<vmem>>, vector<1x32x32xf32>
    %679 = vector.shape_cast %678 : vector<1x32x32xf32> to vector<32x32xf32>
    %c0_292 = arith.constant 0 : index
    %c0_293 = arith.constant 0 : index
    %c0_294 = arith.constant 0 : index
    %680 = vector.load %arg8[%c0_292, %c0_293, %c0_294] : memref<3x1x32xf32, #tpu.memory_space<vmem>>, vector<1x1x32xf32>
    %681 = vector.shape_cast %680 : vector<1x1x32xf32> to vector<1x32xf32>
    %c0_295 = arith.constant 0 : index
    %c0_296 = arith.constant 0 : index
    %c0_297 = arith.constant 0 : index
    %682 = vector.load %arg9[%c0_295, %c0_296, %c0_297] : memref<3x32x64xf32, #tpu.memory_space<vmem>>, vector<1x32x64xf32>
    %683 = vector.shape_cast %682 : vector<1x32x64xf32> to vector<32x64xf32>
    %c0_298 = arith.constant 0 : index
    %c0_299 = arith.constant 0 : index
    %c0_300 = arith.constant 0 : index
    %684 = vector.load %arg6[%c0_298, %c0_299, %c0_300] : memref<3x1x64xf32, #tpu.memory_space<vmem>>, vector<1x1x64xf32>
    %685 = vector.shape_cast %684 : vector<1x1x64xf32> to vector<1x64xf32>
    %c0_301 = arith.constant 0 : index
    %c0_302 = arith.constant 0 : index
    %c0_303 = arith.constant 0 : index
    %686 = vector.load %arg10[%c0_301, %c0_302, %c0_303] : memref<3x32x32xf32, #tpu.memory_space<vmem>>, vector<1x32x32xf32>
    %687 = vector.shape_cast %686 : vector<1x32x32xf32> to vector<32x32xf32>
    %c0_304 = arith.constant 0 : index
    %c0_305 = arith.constant 0 : index
    %c0_306 = arith.constant 0 : index
    %688 = vector.load %arg7[%c0_304, %c0_305, %c0_306] : memref<3x1x32xf32, #tpu.memory_space<vmem>>, vector<1x1x32xf32>
    %689 = vector.shape_cast %688 : vector<1x1x32xf32> to vector<1x32xf32>
    %cst_307 = arith.constant dense<0.000000e+00> : vector<8x32xf32>
    %690 = tpu.matmul %677, %679, %cst_307 {dimension_numbers = #tpu.dot_dimension_numbers<[1], [0], [0], [1], [0, 0, 1, 1], [], []>} : vector<8x32xf32>, vector<32x32xf32>, vector<8x32xf32> -> vector<8x32xf32>
    %691 = vector.broadcast %681 : vector<1x32xf32> to vector<8x32xf32>
    %692 = arith.addf %690, %691 : vector<8x32xf32>
    %cst_308 = arith.constant dense<0.000000e+00> : vector<8x64xf32>
    %693 = tpu.matmul %549, %683, %cst_308 {dimension_numbers = #tpu.dot_dimension_numbers<[1], [0], [0], [1], [0, 0, 1, 1], [], []>} : vector<8x32xf32>, vector<32x64xf32>, vector<8x64xf32> -> vector<8x64xf32>
    %694 = vector.broadcast %685 : vector<1x64xf32> to vector<8x64xf32>
    %695 = arith.addf %693, %694 : vector<8x64xf32>
    %696 = vector.extract_strided_slice %695 {offsets = [0, 0], sizes = [8, 32], strides = [1, 1]} : vector<8x64xf32> to vector<8x32xf32>
    %697 = vector.extract_strided_slice %695 {offsets = [0, 32], sizes = [8, 32], strides = [1, 1]} : vector<8x64xf32> to vector<8x32xf32>
    %cst_309 = arith.constant 0.000000e+00 : f32
    %698 = vector.broadcast %cst_309 : f32 to vector<8x32xf32>
    %699 = vector.extract_strided_slice %692 {offsets = [0, 0], sizes = [8, 8], strides = [1, 1]} : vector<8x32xf32> to vector<8x8xf32>
    %700 = vector.extract_strided_slice %696 {offsets = [0, 0], sizes = [8, 8], strides = [1, 1]} : vector<8x32xf32> to vector<8x8xf32>
    %701 = vector.extract_strided_slice %697 {offsets = [0, 0], sizes = [8, 8], strides = [1, 1]} : vector<8x32xf32> to vector<8x8xf32>
    %cst_310 = arith.constant dense<0.000000e+00> : vector<8x8xf32>
    %702 = tpu.matmul %699, %700, %cst_310 {dimension_numbers = #tpu.dot_dimension_numbers<[1], [1], [0], [0], [0, 0, 1, 0], [], []>} : vector<8x8xf32>, vector<8x8xf32>, vector<8x8xf32> -> vector<8x8xf32>
    %cst_311 = arith.constant 0.353553385 : f32
    %703 = vector.broadcast %cst_311 : f32 to vector<8x8xf32>
    %704 = arith.mulf %702, %703 : vector<8x8xf32>
    %705 = arith.addf %704, %5 : vector<8x8xf32>
    %cst_312 = arith.constant dense<0xFF800000> : vector<8xf32>
    %706 = vector.multi_reduction <maximumf>, %705, %cst_312 [1] : vector<8x8xf32> to vector<8xf32>
    %707 = vector.shape_cast %706 : vector<8xf32> to vector<8x1xf32>
    %708 = vector.broadcast %707 : vector<8x1xf32> to vector<8x8xf32>
    %709 = arith.subf %705, %708 : vector<8x8xf32>
    %710 = math.exp %709 : vector<8x8xf32>
    %cst_313 = arith.constant dense<0.000000e+00> : vector<8xf32>
    %711 = vector.multi_reduction <add>, %710, %cst_313 [1] : vector<8x8xf32> to vector<8xf32>
    %712 = vector.shape_cast %711 : vector<8xf32> to vector<8x1xf32>
    %713 = tpu.reciprocal %712 {approx = true} : vector<8x1xf32> -> vector<8x1xf32>
    %714 = vector.broadcast %713 : vector<8x1xf32> to vector<8x8xf32>
    %715 = arith.mulf %710, %714 : vector<8x8xf32>
    %cst_314 = arith.constant dense<0.000000e+00> : vector<8x8xf32>
    %716 = tpu.matmul %715, %701, %cst_314 {dimension_numbers = #tpu.dot_dimension_numbers<[1], [0], [0], [1], [0, 0, 1, 1], [], []>} : vector<8x8xf32>, vector<8x8xf32>, vector<8x8xf32> -> vector<8x8xf32>
    %717 = vector.extract_strided_slice %687 {offsets = [0, 0], sizes = [8, 32], strides = [1, 1]} : vector<32x32xf32> to vector<8x32xf32>
    %cst_315 = arith.constant dense<0.000000e+00> : vector<8x32xf32>
    %718 = tpu.matmul %716, %717, %cst_315 {dimension_numbers = #tpu.dot_dimension_numbers<[1], [0], [0], [1], [0, 0, 1, 1], [], []>} : vector<8x8xf32>, vector<8x32xf32>, vector<8x32xf32> -> vector<8x32xf32>
    %719 = arith.addf %698, %718 : vector<8x32xf32>
    %720 = vector.extract_strided_slice %692 {offsets = [0, 8], sizes = [8, 8], strides = [1, 1]} : vector<8x32xf32> to vector<8x8xf32>
    %721 = vector.extract_strided_slice %696 {offsets = [0, 8], sizes = [8, 8], strides = [1, 1]} : vector<8x32xf32> to vector<8x8xf32>
    %722 = vector.extract_strided_slice %697 {offsets = [0, 8], sizes = [8, 8], strides = [1, 1]} : vector<8x32xf32> to vector<8x8xf32>
    %cst_316 = arith.constant dense<0.000000e+00> : vector<8x8xf32>
    %723 = tpu.matmul %720, %721, %cst_316 {dimension_numbers = #tpu.dot_dimension_numbers<[1], [1], [0], [0], [0, 0, 1, 0], [], []>} : vector<8x8xf32>, vector<8x8xf32>, vector<8x8xf32> -> vector<8x8xf32>
    %cst_317 = arith.constant 0.353553385 : f32
    %724 = vector.broadcast %cst_317 : f32 to vector<8x8xf32>
    %725 = arith.mulf %723, %724 : vector<8x8xf32>
    %726 = arith.addf %725, %5 : vector<8x8xf32>
    %cst_318 = arith.constant dense<0xFF800000> : vector<8xf32>
    %727 = vector.multi_reduction <maximumf>, %726, %cst_318 [1] : vector<8x8xf32> to vector<8xf32>
    %728 = vector.shape_cast %727 : vector<8xf32> to vector<8x1xf32>
    %729 = vector.broadcast %728 : vector<8x1xf32> to vector<8x8xf32>
    %730 = arith.subf %726, %729 : vector<8x8xf32>
    %731 = math.exp %730 : vector<8x8xf32>
    %cst_319 = arith.constant dense<0.000000e+00> : vector<8xf32>
    %732 = vector.multi_reduction <add>, %731, %cst_319 [1] : vector<8x8xf32> to vector<8xf32>
    %733 = vector.shape_cast %732 : vector<8xf32> to vector<8x1xf32>
    %734 = tpu.reciprocal %733 {approx = true} : vector<8x1xf32> -> vector<8x1xf32>
    %735 = vector.broadcast %734 : vector<8x1xf32> to vector<8x8xf32>
    %736 = arith.mulf %731, %735 : vector<8x8xf32>
    %cst_320 = arith.constant dense<0.000000e+00> : vector<8x8xf32>
    %737 = tpu.matmul %736, %722, %cst_320 {dimension_numbers = #tpu.dot_dimension_numbers<[1], [0], [0], [1], [0, 0, 1, 1], [], []>} : vector<8x8xf32>, vector<8x8xf32>, vector<8x8xf32> -> vector<8x8xf32>
    %738 = vector.extract_strided_slice %687 {offsets = [8, 0], sizes = [8, 32], strides = [1, 1]} : vector<32x32xf32> to vector<8x32xf32>
    %cst_321 = arith.constant dense<0.000000e+00> : vector<8x32xf32>
    %739 = tpu.matmul %737, %738, %cst_321 {dimension_numbers = #tpu.dot_dimension_numbers<[1], [0], [0], [1], [0, 0, 1, 1], [], []>} : vector<8x8xf32>, vector<8x32xf32>, vector<8x32xf32> -> vector<8x32xf32>
    %740 = arith.addf %719, %739 : vector<8x32xf32>
    %741 = vector.extract_strided_slice %692 {offsets = [0, 16], sizes = [8, 8], strides = [1, 1]} : vector<8x32xf32> to vector<8x8xf32>
    %742 = vector.extract_strided_slice %696 {offsets = [0, 16], sizes = [8, 8], strides = [1, 1]} : vector<8x32xf32> to vector<8x8xf32>
    %743 = vector.extract_strided_slice %697 {offsets = [0, 16], sizes = [8, 8], strides = [1, 1]} : vector<8x32xf32> to vector<8x8xf32>
    %cst_322 = arith.constant dense<0.000000e+00> : vector<8x8xf32>
    %744 = tpu.matmul %741, %742, %cst_322 {dimension_numbers = #tpu.dot_dimension_numbers<[1], [1], [0], [0], [0, 0, 1, 0], [], []>} : vector<8x8xf32>, vector<8x8xf32>, vector<8x8xf32> -> vector<8x8xf32>
    %cst_323 = arith.constant 0.353553385 : f32
    %745 = vector.broadcast %cst_323 : f32 to vector<8x8xf32>
    %746 = arith.mulf %744, %745 : vector<8x8xf32>
    %747 = arith.addf %746, %5 : vector<8x8xf32>
    %cst_324 = arith.constant dense<0xFF800000> : vector<8xf32>
    %748 = vector.multi_reduction <maximumf>, %747, %cst_324 [1] : vector<8x8xf32> to vector<8xf32>
    %749 = vector.shape_cast %748 : vector<8xf32> to vector<8x1xf32>
    %750 = vector.broadcast %749 : vector<8x1xf32> to vector<8x8xf32>
    %751 = arith.subf %747, %750 : vector<8x8xf32>
    %752 = math.exp %751 : vector<8x8xf32>
    %cst_325 = arith.constant dense<0.000000e+00> : vector<8xf32>
    %753 = vector.multi_reduction <add>, %752, %cst_325 [1] : vector<8x8xf32> to vector<8xf32>
    %754 = vector.shape_cast %753 : vector<8xf32> to vector<8x1xf32>
    %755 = tpu.reciprocal %754 {approx = true} : vector<8x1xf32> -> vector<8x1xf32>
    %756 = vector.broadcast %755 : vector<8x1xf32> to vector<8x8xf32>
    %757 = arith.mulf %752, %756 : vector<8x8xf32>
    %cst_326 = arith.constant dense<0.000000e+00> : vector<8x8xf32>
    %758 = tpu.matmul %757, %743, %cst_326 {dimension_numbers = #tpu.dot_dimension_numbers<[1], [0], [0], [1], [0, 0, 1, 1], [], []>} : vector<8x8xf32>, vector<8x8xf32>, vector<8x8xf32> -> vector<8x8xf32>
    %759 = vector.extract_strided_slice %687 {offsets = [16, 0], sizes = [8, 32], strides = [1, 1]} : vector<32x32xf32> to vector<8x32xf32>
    %cst_327 = arith.constant dense<0.000000e+00> : vector<8x32xf32>
    %760 = tpu.matmul %758, %759, %cst_327 {dimension_numbers = #tpu.dot_dimension_numbers<[1], [0], [0], [1], [0, 0, 1, 1], [], []>} : vector<8x8xf32>, vector<8x32xf32>, vector<8x32xf32> -> vector<8x32xf32>
    %761 = arith.addf %740, %760 : vector<8x32xf32>
    %762 = vector.extract_strided_slice %692 {offsets = [0, 24], sizes = [8, 8], strides = [1, 1]} : vector<8x32xf32> to vector<8x8xf32>
    %763 = vector.extract_strided_slice %696 {offsets = [0, 24], sizes = [8, 8], strides = [1, 1]} : vector<8x32xf32> to vector<8x8xf32>
    %764 = vector.extract_strided_slice %697 {offsets = [0, 24], sizes = [8, 8], strides = [1, 1]} : vector<8x32xf32> to vector<8x8xf32>
    %cst_328 = arith.constant dense<0.000000e+00> : vector<8x8xf32>
    %765 = tpu.matmul %762, %763, %cst_328 {dimension_numbers = #tpu.dot_dimension_numbers<[1], [1], [0], [0], [0, 0, 1, 0], [], []>} : vector<8x8xf32>, vector<8x8xf32>, vector<8x8xf32> -> vector<8x8xf32>
    %cst_329 = arith.constant 0.353553385 : f32
    %766 = vector.broadcast %cst_329 : f32 to vector<8x8xf32>
    %767 = arith.mulf %765, %766 : vector<8x8xf32>
    %768 = arith.addf %767, %5 : vector<8x8xf32>
    %cst_330 = arith.constant dense<0xFF800000> : vector<8xf32>
    %769 = vector.multi_reduction <maximumf>, %768, %cst_330 [1] : vector<8x8xf32> to vector<8xf32>
    %770 = vector.shape_cast %769 : vector<8xf32> to vector<8x1xf32>
    %771 = vector.broadcast %770 : vector<8x1xf32> to vector<8x8xf32>
    %772 = arith.subf %768, %771 : vector<8x8xf32>
    %773 = math.exp %772 : vector<8x8xf32>
    %cst_331 = arith.constant dense<0.000000e+00> : vector<8xf32>
    %774 = vector.multi_reduction <add>, %773, %cst_331 [1] : vector<8x8xf32> to vector<8xf32>
    %775 = vector.shape_cast %774 : vector<8xf32> to vector<8x1xf32>
    %776 = tpu.reciprocal %775 {approx = true} : vector<8x1xf32> -> vector<8x1xf32>
    %777 = vector.broadcast %776 : vector<8x1xf32> to vector<8x8xf32>
    %778 = arith.mulf %773, %777 : vector<8x8xf32>
    %cst_332 = arith.constant dense<0.000000e+00> : vector<8x8xf32>
    %779 = tpu.matmul %778, %764, %cst_332 {dimension_numbers = #tpu.dot_dimension_numbers<[1], [0], [0], [1], [0, 0, 1, 1], [], []>} : vector<8x8xf32>, vector<8x8xf32>, vector<8x8xf32> -> vector<8x8xf32>
    %780 = vector.extract_strided_slice %687 {offsets = [24, 0], sizes = [8, 32], strides = [1, 1]} : vector<32x32xf32> to vector<8x32xf32>
    %cst_333 = arith.constant dense<0.000000e+00> : vector<8x32xf32>
    %781 = tpu.matmul %779, %780, %cst_333 {dimension_numbers = #tpu.dot_dimension_numbers<[1], [0], [0], [1], [0, 0, 1, 1], [], []>} : vector<8x8xf32>, vector<8x32xf32>, vector<8x32xf32> -> vector<8x32xf32>
    %782 = arith.addf %761, %781 : vector<8x32xf32>
    %783 = vector.broadcast %689 : vector<1x32xf32> to vector<8x32xf32>
    %784 = arith.addf %782, %783 : vector<8x32xf32>
    %785 = arith.addf %677, %784 : vector<8x32xf32>
    %c0_334 = arith.constant 0 : index
    %c0_335 = arith.constant 0 : index
    %c0_336 = arith.constant 0 : index
    %786 = vector.load %arg15[%c0_334, %c0_335, %c0_336] : memref<3x1x32xf32, #tpu.memory_space<vmem>>, vector<1x1x32xf32>
    %787 = vector.shape_cast %786 : vector<1x1x32xf32> to vector<1x32xf32>
    %c0_337 = arith.constant 0 : index
    %c0_338 = arith.constant 0 : index
    %c0_339 = arith.constant 0 : index
    %788 = vector.load %arg14[%c0_337, %c0_338, %c0_339] : memref<3x1x32xf32, #tpu.memory_space<vmem>>, vector<1x1x32xf32>
    %789 = vector.shape_cast %788 : vector<1x1x32xf32> to vector<1x32xf32>
    %cst_340 = arith.constant dense<0.000000e+00> : vector<8xf32>
    %790 = vector.multi_reduction <add>, %785, %cst_340 [1] : vector<8x32xf32> to vector<8xf32>
    %791 = vector.shape_cast %790 : vector<8xf32> to vector<8x1xf32>
    %cst_341 = arith.constant 3.200000e+01 : f32
    %792 = vector.broadcast %cst_341 : f32 to vector<8x1xf32>
    %793 = arith.divf %791, %792 : vector<8x1xf32>
    %794 = vector.broadcast %793 : vector<8x1xf32> to vector<8x32xf32>
    %795 = arith.subf %785, %794 : vector<8x32xf32>
    %796 = arith.mulf %795, %795 : vector<8x32xf32>
    %cst_342 = arith.constant dense<0.000000e+00> : vector<8xf32>
    %797 = vector.multi_reduction <add>, %796, %cst_342 [1] : vector<8x32xf32> to vector<8xf32>
    %798 = vector.shape_cast %797 : vector<8xf32> to vector<8x1xf32>
    %cst_343 = arith.constant 3.200000e+01 : f32
    %799 = vector.broadcast %cst_343 : f32 to vector<8x1xf32>
    %800 = arith.divf %798, %799 : vector<8x1xf32>
    %801 = vector.broadcast %793 : vector<8x1xf32> to vector<8x32xf32>
    %802 = arith.subf %785, %801 : vector<8x32xf32>
    %cst_344 = arith.constant 9.99999974E-6 : f32
    %803 = vector.broadcast %cst_344 : f32 to vector<8x1xf32>
    %804 = arith.addf %800, %803 : vector<8x1xf32>
    %805 = math.rsqrt %804 : vector<8x1xf32>
    %806 = vector.broadcast %805 : vector<8x1xf32> to vector<8x32xf32>
    %807 = arith.mulf %802, %806 : vector<8x32xf32>
    %808 = vector.broadcast %787 : vector<1x32xf32> to vector<8x32xf32>
    %809 = arith.mulf %807, %808 : vector<8x32xf32>
    %810 = vector.broadcast %789 : vector<1x32xf32> to vector<8x32xf32>
    %811 = arith.addf %809, %810 : vector<8x32xf32>
    %c0_345 = arith.constant 0 : index
    %c0_346 = arith.constant 0 : index
    %c0_347 = arith.constant 0 : index
    %812 = vector.load %arg24[%c0_345, %c0_346, %c0_347] : memref<3x32x64xf32, #tpu.memory_space<vmem>>, vector<1x32x64xf32>
    %813 = vector.shape_cast %812 : vector<1x32x64xf32> to vector<32x64xf32>
    %c0_348 = arith.constant 0 : index
    %c0_349 = arith.constant 0 : index
    %c0_350 = arith.constant 0 : index
    %814 = vector.load %arg4[%c0_348, %c0_349, %c0_350] : memref<3x1x64xf32, #tpu.memory_space<vmem>>, vector<1x1x64xf32>
    %815 = vector.shape_cast %814 : vector<1x1x64xf32> to vector<1x64xf32>
    %c0_351 = arith.constant 0 : index
    %c0_352 = arith.constant 0 : index
    %c0_353 = arith.constant 0 : index
    %816 = vector.load %arg25[%c0_351, %c0_352, %c0_353] : memref<3x64x32xf32, #tpu.memory_space<vmem>>, vector<1x64x32xf32>
    %817 = vector.shape_cast %816 : vector<1x64x32xf32> to vector<64x32xf32>
    %c0_354 = arith.constant 0 : index
    %c0_355 = arith.constant 0 : index
    %c0_356 = arith.constant 0 : index
    %818 = vector.load %arg5[%c0_354, %c0_355, %c0_356] : memref<3x1x32xf32, #tpu.memory_space<vmem>>, vector<1x1x32xf32>
    %819 = vector.shape_cast %818 : vector<1x1x32xf32> to vector<1x32xf32>
    %cst_357 = arith.constant dense<0.000000e+00> : vector<8x64xf32>
    %820 = tpu.matmul %811, %813, %cst_357 {dimension_numbers = #tpu.dot_dimension_numbers<[1], [0], [0], [1], [0, 0, 1, 1], [], []>} : vector<8x32xf32>, vector<32x64xf32>, vector<8x64xf32> -> vector<8x64xf32>
    %821 = vector.broadcast %815 : vector<1x64xf32> to vector<8x64xf32>
    %822 = arith.addf %820, %821 : vector<8x64xf32>
    %cst_358 = arith.constant 0.000000e+00 : f32
    %823 = vector.broadcast %cst_358 : f32 to vector<8x64xf32>
    %824 = arith.maximumf %822, %823 : vector<8x64xf32>
    %cst_359 = arith.constant dense<0.000000e+00> : vector<8x32xf32>
    %825 = tpu.matmul %824, %817, %cst_359 {dimension_numbers = #tpu.dot_dimension_numbers<[1], [0], [0], [1], [0, 0, 1, 1], [], []>} : vector<8x64xf32>, vector<64x32xf32>, vector<8x32xf32> -> vector<8x32xf32>
    %826 = vector.broadcast %819 : vector<1x32xf32> to vector<8x32xf32>
    %827 = arith.addf %825, %826 : vector<8x32xf32>
    %828 = arith.addf %811, %827 : vector<8x32xf32>
    %c0_360 = arith.constant 0 : index
    %c0_361 = arith.constant 0 : index
    %c0_362 = arith.constant 0 : index
    %829 = vector.load %arg17[%c0_360, %c0_361, %c0_362] : memref<3x1x32xf32, #tpu.memory_space<vmem>>, vector<1x1x32xf32>
    %830 = vector.shape_cast %829 : vector<1x1x32xf32> to vector<1x32xf32>
    %c0_363 = arith.constant 0 : index
    %c0_364 = arith.constant 0 : index
    %c0_365 = arith.constant 0 : index
    %831 = vector.load %arg16[%c0_363, %c0_364, %c0_365] : memref<3x1x32xf32, #tpu.memory_space<vmem>>, vector<1x1x32xf32>
    %832 = vector.shape_cast %831 : vector<1x1x32xf32> to vector<1x32xf32>
    %cst_366 = arith.constant dense<0.000000e+00> : vector<8xf32>
    %833 = vector.multi_reduction <add>, %828, %cst_366 [1] : vector<8x32xf32> to vector<8xf32>
    %834 = vector.shape_cast %833 : vector<8xf32> to vector<8x1xf32>
    %cst_367 = arith.constant 3.200000e+01 : f32
    %835 = vector.broadcast %cst_367 : f32 to vector<8x1xf32>
    %836 = arith.divf %834, %835 : vector<8x1xf32>
    %837 = vector.broadcast %836 : vector<8x1xf32> to vector<8x32xf32>
    %838 = arith.subf %828, %837 : vector<8x32xf32>
    %839 = arith.mulf %838, %838 : vector<8x32xf32>
    %cst_368 = arith.constant dense<0.000000e+00> : vector<8xf32>
    %840 = vector.multi_reduction <add>, %839, %cst_368 [1] : vector<8x32xf32> to vector<8xf32>
    %841 = vector.shape_cast %840 : vector<8xf32> to vector<8x1xf32>
    %cst_369 = arith.constant 3.200000e+01 : f32
    %842 = vector.broadcast %cst_369 : f32 to vector<8x1xf32>
    %843 = arith.divf %841, %842 : vector<8x1xf32>
    %844 = vector.broadcast %836 : vector<8x1xf32> to vector<8x32xf32>
    %845 = arith.subf %828, %844 : vector<8x32xf32>
    %cst_370 = arith.constant 9.99999974E-6 : f32
    %846 = vector.broadcast %cst_370 : f32 to vector<8x1xf32>
    %847 = arith.addf %843, %846 : vector<8x1xf32>
    %848 = math.rsqrt %847 : vector<8x1xf32>
    %849 = vector.broadcast %848 : vector<8x1xf32> to vector<8x32xf32>
    %850 = arith.mulf %845, %849 : vector<8x32xf32>
    %851 = vector.broadcast %830 : vector<1x32xf32> to vector<8x32xf32>
    %852 = arith.mulf %850, %851 : vector<8x32xf32>
    %853 = vector.broadcast %832 : vector<1x32xf32> to vector<8x32xf32>
    %854 = arith.addf %852, %853 : vector<8x32xf32>
    %c1_371 = arith.constant 1 : index
    %c0_372 = arith.constant 0 : index
    %c0_373 = arith.constant 0 : index
    %855 = vector.load %arg23[%c1_371, %c0_372, %c0_373] : memref<3x32x96xf32, #tpu.memory_space<vmem>>, vector<1x32x96xf32>
    %856 = vector.shape_cast %855 : vector<1x32x96xf32> to vector<32x96xf32>
    %c1_374 = arith.constant 1 : index
    %c0_375 = arith.constant 0 : index
    %c0_376 = arith.constant 0 : index
    %857 = vector.load %arg21[%c1_374, %c0_375, %c0_376] : memref<3x1x96xf32, #tpu.memory_space<vmem>>, vector<1x1x96xf32>
    %858 = vector.shape_cast %857 : vector<1x1x96xf32> to vector<1x96xf32>
    %c1_377 = arith.constant 1 : index
    %c0_378 = arith.constant 0 : index
    %c0_379 = arith.constant 0 : index
    %859 = vector.load %arg22[%c1_377, %c0_378, %c0_379] : memref<3x32x32xf32, #tpu.memory_space<vmem>>, vector<1x32x32xf32>
    %860 = vector.shape_cast %859 : vector<1x32x32xf32> to vector<32x32xf32>
    %c1_380 = arith.constant 1 : index
    %c0_381 = arith.constant 0 : index
    %c0_382 = arith.constant 0 : index
    %861 = vector.load %arg20[%c1_380, %c0_381, %c0_382] : memref<3x1x32xf32, #tpu.memory_space<vmem>>, vector<1x1x32xf32>
    %862 = vector.shape_cast %861 : vector<1x1x32xf32> to vector<1x32xf32>
    %cst_383 = arith.constant dense<0.000000e+00> : vector<8x96xf32>
    %863 = tpu.matmul %854, %856, %cst_383 {dimension_numbers = #tpu.dot_dimension_numbers<[1], [0], [0], [1], [0, 0, 1, 1], [], []>} : vector<8x32xf32>, vector<32x96xf32>, vector<8x96xf32> -> vector<8x96xf32>
    %864 = vector.broadcast %858 : vector<1x96xf32> to vector<8x96xf32>
    %865 = arith.addf %863, %864 : vector<8x96xf32>
    %866 = vector.extract_strided_slice %865 {offsets = [0, 0], sizes = [8, 32], strides = [1, 1]} : vector<8x96xf32> to vector<8x32xf32>
    %867 = vector.extract_strided_slice %865 {offsets = [0, 32], sizes = [8, 32], strides = [1, 1]} : vector<8x96xf32> to vector<8x32xf32>
    %868 = vector.extract_strided_slice %865 {offsets = [0, 64], sizes = [8, 32], strides = [1, 1]} : vector<8x96xf32> to vector<8x32xf32>
    %cst_384 = arith.constant 0.000000e+00 : f32
    %869 = vector.broadcast %cst_384 : f32 to vector<8x32xf32>
    %870 = vector.extract_strided_slice %866 {offsets = [0, 0], sizes = [8, 8], strides = [1, 1]} : vector<8x32xf32> to vector<8x8xf32>
    %871 = vector.extract_strided_slice %867 {offsets = [0, 0], sizes = [8, 8], strides = [1, 1]} : vector<8x32xf32> to vector<8x8xf32>
    %872 = vector.extract_strided_slice %868 {offsets = [0, 0], sizes = [8, 8], strides = [1, 1]} : vector<8x32xf32> to vector<8x8xf32>
    %cst_385 = arith.constant dense<0.000000e+00> : vector<8x8xf32>
    %873 = tpu.matmul %870, %871, %cst_385 {dimension_numbers = #tpu.dot_dimension_numbers<[1], [1], [0], [0], [0, 0, 1, 0], [], []>} : vector<8x8xf32>, vector<8x8xf32>, vector<8x8xf32> -> vector<8x8xf32>
    %cst_386 = arith.constant 0.353553385 : f32
    %874 = vector.broadcast %cst_386 : f32 to vector<8x8xf32>
    %875 = arith.mulf %873, %874 : vector<8x8xf32>
    %876 = arith.addf %875, %5 : vector<8x8xf32>
    %cst_387 = arith.constant dense<0xFF800000> : vector<8xf32>
    %877 = vector.multi_reduction <maximumf>, %876, %cst_387 [1] : vector<8x8xf32> to vector<8xf32>
    %878 = vector.shape_cast %877 : vector<8xf32> to vector<8x1xf32>
    %879 = vector.broadcast %878 : vector<8x1xf32> to vector<8x8xf32>
    %880 = arith.subf %876, %879 : vector<8x8xf32>
    %881 = math.exp %880 : vector<8x8xf32>
    %cst_388 = arith.constant dense<0.000000e+00> : vector<8xf32>
    %882 = vector.multi_reduction <add>, %881, %cst_388 [1] : vector<8x8xf32> to vector<8xf32>
    %883 = vector.shape_cast %882 : vector<8xf32> to vector<8x1xf32>
    %884 = tpu.reciprocal %883 {approx = true} : vector<8x1xf32> -> vector<8x1xf32>
    %885 = vector.broadcast %884 : vector<8x1xf32> to vector<8x8xf32>
    %886 = arith.mulf %881, %885 : vector<8x8xf32>
    %cst_389 = arith.constant dense<0.000000e+00> : vector<8x8xf32>
    %887 = tpu.matmul %886, %872, %cst_389 {dimension_numbers = #tpu.dot_dimension_numbers<[1], [0], [0], [1], [0, 0, 1, 1], [], []>} : vector<8x8xf32>, vector<8x8xf32>, vector<8x8xf32> -> vector<8x8xf32>
    %888 = vector.extract_strided_slice %860 {offsets = [0, 0], sizes = [8, 32], strides = [1, 1]} : vector<32x32xf32> to vector<8x32xf32>
    %cst_390 = arith.constant dense<0.000000e+00> : vector<8x32xf32>
    %889 = tpu.matmul %887, %888, %cst_390 {dimension_numbers = #tpu.dot_dimension_numbers<[1], [0], [0], [1], [0, 0, 1, 1], [], []>} : vector<8x8xf32>, vector<8x32xf32>, vector<8x32xf32> -> vector<8x32xf32>
    %890 = arith.addf %869, %889 : vector<8x32xf32>
    %891 = vector.extract_strided_slice %866 {offsets = [0, 8], sizes = [8, 8], strides = [1, 1]} : vector<8x32xf32> to vector<8x8xf32>
    %892 = vector.extract_strided_slice %867 {offsets = [0, 8], sizes = [8, 8], strides = [1, 1]} : vector<8x32xf32> to vector<8x8xf32>
    %893 = vector.extract_strided_slice %868 {offsets = [0, 8], sizes = [8, 8], strides = [1, 1]} : vector<8x32xf32> to vector<8x8xf32>
    %cst_391 = arith.constant dense<0.000000e+00> : vector<8x8xf32>
    %894 = tpu.matmul %891, %892, %cst_391 {dimension_numbers = #tpu.dot_dimension_numbers<[1], [1], [0], [0], [0, 0, 1, 0], [], []>} : vector<8x8xf32>, vector<8x8xf32>, vector<8x8xf32> -> vector<8x8xf32>
    %cst_392 = arith.constant 0.353553385 : f32
    %895 = vector.broadcast %cst_392 : f32 to vector<8x8xf32>
    %896 = arith.mulf %894, %895 : vector<8x8xf32>
    %897 = arith.addf %896, %5 : vector<8x8xf32>
    %cst_393 = arith.constant dense<0xFF800000> : vector<8xf32>
    %898 = vector.multi_reduction <maximumf>, %897, %cst_393 [1] : vector<8x8xf32> to vector<8xf32>
    %899 = vector.shape_cast %898 : vector<8xf32> to vector<8x1xf32>
    %900 = vector.broadcast %899 : vector<8x1xf32> to vector<8x8xf32>
    %901 = arith.subf %897, %900 : vector<8x8xf32>
    %902 = math.exp %901 : vector<8x8xf32>
    %cst_394 = arith.constant dense<0.000000e+00> : vector<8xf32>
    %903 = vector.multi_reduction <add>, %902, %cst_394 [1] : vector<8x8xf32> to vector<8xf32>
    %904 = vector.shape_cast %903 : vector<8xf32> to vector<8x1xf32>
    %905 = tpu.reciprocal %904 {approx = true} : vector<8x1xf32> -> vector<8x1xf32>
    %906 = vector.broadcast %905 : vector<8x1xf32> to vector<8x8xf32>
    %907 = arith.mulf %902, %906 : vector<8x8xf32>
    %cst_395 = arith.constant dense<0.000000e+00> : vector<8x8xf32>
    %908 = tpu.matmul %907, %893, %cst_395 {dimension_numbers = #tpu.dot_dimension_numbers<[1], [0], [0], [1], [0, 0, 1, 1], [], []>} : vector<8x8xf32>, vector<8x8xf32>, vector<8x8xf32> -> vector<8x8xf32>
    %909 = vector.extract_strided_slice %860 {offsets = [8, 0], sizes = [8, 32], strides = [1, 1]} : vector<32x32xf32> to vector<8x32xf32>
    %cst_396 = arith.constant dense<0.000000e+00> : vector<8x32xf32>
    %910 = tpu.matmul %908, %909, %cst_396 {dimension_numbers = #tpu.dot_dimension_numbers<[1], [0], [0], [1], [0, 0, 1, 1], [], []>} : vector<8x8xf32>, vector<8x32xf32>, vector<8x32xf32> -> vector<8x32xf32>
    %911 = arith.addf %890, %910 : vector<8x32xf32>
    %912 = vector.extract_strided_slice %866 {offsets = [0, 16], sizes = [8, 8], strides = [1, 1]} : vector<8x32xf32> to vector<8x8xf32>
    %913 = vector.extract_strided_slice %867 {offsets = [0, 16], sizes = [8, 8], strides = [1, 1]} : vector<8x32xf32> to vector<8x8xf32>
    %914 = vector.extract_strided_slice %868 {offsets = [0, 16], sizes = [8, 8], strides = [1, 1]} : vector<8x32xf32> to vector<8x8xf32>
    %cst_397 = arith.constant dense<0.000000e+00> : vector<8x8xf32>
    %915 = tpu.matmul %912, %913, %cst_397 {dimension_numbers = #tpu.dot_dimension_numbers<[1], [1], [0], [0], [0, 0, 1, 0], [], []>} : vector<8x8xf32>, vector<8x8xf32>, vector<8x8xf32> -> vector<8x8xf32>
    %cst_398 = arith.constant 0.353553385 : f32
    %916 = vector.broadcast %cst_398 : f32 to vector<8x8xf32>
    %917 = arith.mulf %915, %916 : vector<8x8xf32>
    %918 = arith.addf %917, %5 : vector<8x8xf32>
    %cst_399 = arith.constant dense<0xFF800000> : vector<8xf32>
    %919 = vector.multi_reduction <maximumf>, %918, %cst_399 [1] : vector<8x8xf32> to vector<8xf32>
    %920 = vector.shape_cast %919 : vector<8xf32> to vector<8x1xf32>
    %921 = vector.broadcast %920 : vector<8x1xf32> to vector<8x8xf32>
    %922 = arith.subf %918, %921 : vector<8x8xf32>
    %923 = math.exp %922 : vector<8x8xf32>
    %cst_400 = arith.constant dense<0.000000e+00> : vector<8xf32>
    %924 = vector.multi_reduction <add>, %923, %cst_400 [1] : vector<8x8xf32> to vector<8xf32>
    %925 = vector.shape_cast %924 : vector<8xf32> to vector<8x1xf32>
    %926 = tpu.reciprocal %925 {approx = true} : vector<8x1xf32> -> vector<8x1xf32>
    %927 = vector.broadcast %926 : vector<8x1xf32> to vector<8x8xf32>
    %928 = arith.mulf %923, %927 : vector<8x8xf32>
    %cst_401 = arith.constant dense<0.000000e+00> : vector<8x8xf32>
    %929 = tpu.matmul %928, %914, %cst_401 {dimension_numbers = #tpu.dot_dimension_numbers<[1], [0], [0], [1], [0, 0, 1, 1], [], []>} : vector<8x8xf32>, vector<8x8xf32>, vector<8x8xf32> -> vector<8x8xf32>
    %930 = vector.extract_strided_slice %860 {offsets = [16, 0], sizes = [8, 32], strides = [1, 1]} : vector<32x32xf32> to vector<8x32xf32>
    %cst_402 = arith.constant dense<0.000000e+00> : vector<8x32xf32>
    %931 = tpu.matmul %929, %930, %cst_402 {dimension_numbers = #tpu.dot_dimension_numbers<[1], [0], [0], [1], [0, 0, 1, 1], [], []>} : vector<8x8xf32>, vector<8x32xf32>, vector<8x32xf32> -> vector<8x32xf32>
    %932 = arith.addf %911, %931 : vector<8x32xf32>
    %933 = vector.extract_strided_slice %866 {offsets = [0, 24], sizes = [8, 8], strides = [1, 1]} : vector<8x32xf32> to vector<8x8xf32>
    %934 = vector.extract_strided_slice %867 {offsets = [0, 24], sizes = [8, 8], strides = [1, 1]} : vector<8x32xf32> to vector<8x8xf32>
    %935 = vector.extract_strided_slice %868 {offsets = [0, 24], sizes = [8, 8], strides = [1, 1]} : vector<8x32xf32> to vector<8x8xf32>
    %cst_403 = arith.constant dense<0.000000e+00> : vector<8x8xf32>
    %936 = tpu.matmul %933, %934, %cst_403 {dimension_numbers = #tpu.dot_dimension_numbers<[1], [1], [0], [0], [0, 0, 1, 0], [], []>} : vector<8x8xf32>, vector<8x8xf32>, vector<8x8xf32> -> vector<8x8xf32>
    %cst_404 = arith.constant 0.353553385 : f32
    %937 = vector.broadcast %cst_404 : f32 to vector<8x8xf32>
    %938 = arith.mulf %936, %937 : vector<8x8xf32>
    %939 = arith.addf %938, %5 : vector<8x8xf32>
    %cst_405 = arith.constant dense<0xFF800000> : vector<8xf32>
    %940 = vector.multi_reduction <maximumf>, %939, %cst_405 [1] : vector<8x8xf32> to vector<8xf32>
    %941 = vector.shape_cast %940 : vector<8xf32> to vector<8x1xf32>
    %942 = vector.broadcast %941 : vector<8x1xf32> to vector<8x8xf32>
    %943 = arith.subf %939, %942 : vector<8x8xf32>
    %944 = math.exp %943 : vector<8x8xf32>
    %cst_406 = arith.constant dense<0.000000e+00> : vector<8xf32>
    %945 = vector.multi_reduction <add>, %944, %cst_406 [1] : vector<8x8xf32> to vector<8xf32>
    %946 = vector.shape_cast %945 : vector<8xf32> to vector<8x1xf32>
    %947 = tpu.reciprocal %946 {approx = true} : vector<8x1xf32> -> vector<8x1xf32>
    %948 = vector.broadcast %947 : vector<8x1xf32> to vector<8x8xf32>
    %949 = arith.mulf %944, %948 : vector<8x8xf32>
    %cst_407 = arith.constant dense<0.000000e+00> : vector<8x8xf32>
    %950 = tpu.matmul %949, %935, %cst_407 {dimension_numbers = #tpu.dot_dimension_numbers<[1], [0], [0], [1], [0, 0, 1, 1], [], []>} : vector<8x8xf32>, vector<8x8xf32>, vector<8x8xf32> -> vector<8x8xf32>
    %951 = vector.extract_strided_slice %860 {offsets = [24, 0], sizes = [8, 32], strides = [1, 1]} : vector<32x32xf32> to vector<8x32xf32>
    %cst_408 = arith.constant dense<0.000000e+00> : vector<8x32xf32>
    %952 = tpu.matmul %950, %951, %cst_408 {dimension_numbers = #tpu.dot_dimension_numbers<[1], [0], [0], [1], [0, 0, 1, 1], [], []>} : vector<8x8xf32>, vector<8x32xf32>, vector<8x32xf32> -> vector<8x32xf32>
    %953 = arith.addf %932, %952 : vector<8x32xf32>
    %954 = vector.broadcast %862 : vector<1x32xf32> to vector<8x32xf32>
    %955 = arith.addf %953, %954 : vector<8x32xf32>
    %956 = arith.addf %854, %955 : vector<8x32xf32>
    %c1_409 = arith.constant 1 : index
    %c0_410 = arith.constant 0 : index
    %c0_411 = arith.constant 0 : index
    %957 = vector.load %arg13[%c1_409, %c0_410, %c0_411] : memref<3x1x32xf32, #tpu.memory_space<vmem>>, vector<1x1x32xf32>
    %958 = vector.shape_cast %957 : vector<1x1x32xf32> to vector<1x32xf32>
    %c1_412 = arith.constant 1 : index
    %c0_413 = arith.constant 0 : index
    %c0_414 = arith.constant 0 : index
    %959 = vector.load %arg12[%c1_412, %c0_413, %c0_414] : memref<3x1x32xf32, #tpu.memory_space<vmem>>, vector<1x1x32xf32>
    %960 = vector.shape_cast %959 : vector<1x1x32xf32> to vector<1x32xf32>
    %cst_415 = arith.constant dense<0.000000e+00> : vector<8xf32>
    %961 = vector.multi_reduction <add>, %956, %cst_415 [1] : vector<8x32xf32> to vector<8xf32>
    %962 = vector.shape_cast %961 : vector<8xf32> to vector<8x1xf32>
    %cst_416 = arith.constant 3.200000e+01 : f32
    %963 = vector.broadcast %cst_416 : f32 to vector<8x1xf32>
    %964 = arith.divf %962, %963 : vector<8x1xf32>
    %965 = vector.broadcast %964 : vector<8x1xf32> to vector<8x32xf32>
    %966 = arith.subf %956, %965 : vector<8x32xf32>
    %967 = arith.mulf %966, %966 : vector<8x32xf32>
    %cst_417 = arith.constant dense<0.000000e+00> : vector<8xf32>
    %968 = vector.multi_reduction <add>, %967, %cst_417 [1] : vector<8x32xf32> to vector<8xf32>
    %969 = vector.shape_cast %968 : vector<8xf32> to vector<8x1xf32>
    %cst_418 = arith.constant 3.200000e+01 : f32
    %970 = vector.broadcast %cst_418 : f32 to vector<8x1xf32>
    %971 = arith.divf %969, %970 : vector<8x1xf32>
    %972 = vector.broadcast %964 : vector<8x1xf32> to vector<8x32xf32>
    %973 = arith.subf %956, %972 : vector<8x32xf32>
    %cst_419 = arith.constant 9.99999974E-6 : f32
    %974 = vector.broadcast %cst_419 : f32 to vector<8x1xf32>
    %975 = arith.addf %971, %974 : vector<8x1xf32>
    %976 = math.rsqrt %975 : vector<8x1xf32>
    %977 = vector.broadcast %976 : vector<8x1xf32> to vector<8x32xf32>
    %978 = arith.mulf %973, %977 : vector<8x32xf32>
    %979 = vector.broadcast %958 : vector<1x32xf32> to vector<8x32xf32>
    %980 = arith.mulf %978, %979 : vector<8x32xf32>
    %981 = vector.broadcast %960 : vector<1x32xf32> to vector<8x32xf32>
    %982 = arith.addf %980, %981 : vector<8x32xf32>
    %c1_420 = arith.constant 1 : index
    %c0_421 = arith.constant 0 : index
    %c0_422 = arith.constant 0 : index
    %983 = vector.load %arg11[%c1_420, %c0_421, %c0_422] : memref<3x32x32xf32, #tpu.memory_space<vmem>>, vector<1x32x32xf32>
    %984 = vector.shape_cast %983 : vector<1x32x32xf32> to vector<32x32xf32>
    %c1_423 = arith.constant 1 : index
    %c0_424 = arith.constant 0 : index
    %c0_425 = arith.constant 0 : index
    %985 = vector.load %arg8[%c1_423, %c0_424, %c0_425] : memref<3x1x32xf32, #tpu.memory_space<vmem>>, vector<1x1x32xf32>
    %986 = vector.shape_cast %985 : vector<1x1x32xf32> to vector<1x32xf32>
    %c1_426 = arith.constant 1 : index
    %c0_427 = arith.constant 0 : index
    %c0_428 = arith.constant 0 : index
    %987 = vector.load %arg9[%c1_426, %c0_427, %c0_428] : memref<3x32x64xf32, #tpu.memory_space<vmem>>, vector<1x32x64xf32>
    %988 = vector.shape_cast %987 : vector<1x32x64xf32> to vector<32x64xf32>
    %c1_429 = arith.constant 1 : index
    %c0_430 = arith.constant 0 : index
    %c0_431 = arith.constant 0 : index
    %989 = vector.load %arg6[%c1_429, %c0_430, %c0_431] : memref<3x1x64xf32, #tpu.memory_space<vmem>>, vector<1x1x64xf32>
    %990 = vector.shape_cast %989 : vector<1x1x64xf32> to vector<1x64xf32>
    %c1_432 = arith.constant 1 : index
    %c0_433 = arith.constant 0 : index
    %c0_434 = arith.constant 0 : index
    %991 = vector.load %arg10[%c1_432, %c0_433, %c0_434] : memref<3x32x32xf32, #tpu.memory_space<vmem>>, vector<1x32x32xf32>
    %992 = vector.shape_cast %991 : vector<1x32x32xf32> to vector<32x32xf32>
    %c1_435 = arith.constant 1 : index
    %c0_436 = arith.constant 0 : index
    %c0_437 = arith.constant 0 : index
    %993 = vector.load %arg7[%c1_435, %c0_436, %c0_437] : memref<3x1x32xf32, #tpu.memory_space<vmem>>, vector<1x1x32xf32>
    %994 = vector.shape_cast %993 : vector<1x1x32xf32> to vector<1x32xf32>
    %cst_438 = arith.constant dense<0.000000e+00> : vector<8x32xf32>
    %995 = tpu.matmul %982, %984, %cst_438 {dimension_numbers = #tpu.dot_dimension_numbers<[1], [0], [0], [1], [0, 0, 1, 1], [], []>} : vector<8x32xf32>, vector<32x32xf32>, vector<8x32xf32> -> vector<8x32xf32>
    %996 = vector.broadcast %986 : vector<1x32xf32> to vector<8x32xf32>
    %997 = arith.addf %995, %996 : vector<8x32xf32>
    %cst_439 = arith.constant dense<0.000000e+00> : vector<8x64xf32>
    %998 = tpu.matmul %549, %988, %cst_439 {dimension_numbers = #tpu.dot_dimension_numbers<[1], [0], [0], [1], [0, 0, 1, 1], [], []>} : vector<8x32xf32>, vector<32x64xf32>, vector<8x64xf32> -> vector<8x64xf32>
    %999 = vector.broadcast %990 : vector<1x64xf32> to vector<8x64xf32>
    %1000 = arith.addf %998, %999 : vector<8x64xf32>
    %1001 = vector.extract_strided_slice %1000 {offsets = [0, 0], sizes = [8, 32], strides = [1, 1]} : vector<8x64xf32> to vector<8x32xf32>
    %1002 = vector.extract_strided_slice %1000 {offsets = [0, 32], sizes = [8, 32], strides = [1, 1]} : vector<8x64xf32> to vector<8x32xf32>
    %cst_440 = arith.constant 0.000000e+00 : f32
    %1003 = vector.broadcast %cst_440 : f32 to vector<8x32xf32>
    %1004 = vector.extract_strided_slice %997 {offsets = [0, 0], sizes = [8, 8], strides = [1, 1]} : vector<8x32xf32> to vector<8x8xf32>
    %1005 = vector.extract_strided_slice %1001 {offsets = [0, 0], sizes = [8, 8], strides = [1, 1]} : vector<8x32xf32> to vector<8x8xf32>
    %1006 = vector.extract_strided_slice %1002 {offsets = [0, 0], sizes = [8, 8], strides = [1, 1]} : vector<8x32xf32> to vector<8x8xf32>
    %cst_441 = arith.constant dense<0.000000e+00> : vector<8x8xf32>
    %1007 = tpu.matmul %1004, %1005, %cst_441 {dimension_numbers = #tpu.dot_dimension_numbers<[1], [1], [0], [0], [0, 0, 1, 0], [], []>} : vector<8x8xf32>, vector<8x8xf32>, vector<8x8xf32> -> vector<8x8xf32>
    %cst_442 = arith.constant 0.353553385 : f32
    %1008 = vector.broadcast %cst_442 : f32 to vector<8x8xf32>
    %1009 = arith.mulf %1007, %1008 : vector<8x8xf32>
    %1010 = arith.addf %1009, %5 : vector<8x8xf32>
    %cst_443 = arith.constant dense<0xFF800000> : vector<8xf32>
    %1011 = vector.multi_reduction <maximumf>, %1010, %cst_443 [1] : vector<8x8xf32> to vector<8xf32>
    %1012 = vector.shape_cast %1011 : vector<8xf32> to vector<8x1xf32>
    %1013 = vector.broadcast %1012 : vector<8x1xf32> to vector<8x8xf32>
    %1014 = arith.subf %1010, %1013 : vector<8x8xf32>
    %1015 = math.exp %1014 : vector<8x8xf32>
    %cst_444 = arith.constant dense<0.000000e+00> : vector<8xf32>
    %1016 = vector.multi_reduction <add>, %1015, %cst_444 [1] : vector<8x8xf32> to vector<8xf32>
    %1017 = vector.shape_cast %1016 : vector<8xf32> to vector<8x1xf32>
    %1018 = tpu.reciprocal %1017 {approx = true} : vector<8x1xf32> -> vector<8x1xf32>
    %1019 = vector.broadcast %1018 : vector<8x1xf32> to vector<8x8xf32>
    %1020 = arith.mulf %1015, %1019 : vector<8x8xf32>
    %cst_445 = arith.constant dense<0.000000e+00> : vector<8x8xf32>
    %1021 = tpu.matmul %1020, %1006, %cst_445 {dimension_numbers = #tpu.dot_dimension_numbers<[1], [0], [0], [1], [0, 0, 1, 1], [], []>} : vector<8x8xf32>, vector<8x8xf32>, vector<8x8xf32> -> vector<8x8xf32>
    %1022 = vector.extract_strided_slice %992 {offsets = [0, 0], sizes = [8, 32], strides = [1, 1]} : vector<32x32xf32> to vector<8x32xf32>
    %cst_446 = arith.constant dense<0.000000e+00> : vector<8x32xf32>
    %1023 = tpu.matmul %1021, %1022, %cst_446 {dimension_numbers = #tpu.dot_dimension_numbers<[1], [0], [0], [1], [0, 0, 1, 1], [], []>} : vector<8x8xf32>, vector<8x32xf32>, vector<8x32xf32> -> vector<8x32xf32>
    %1024 = arith.addf %1003, %1023 : vector<8x32xf32>
    %1025 = vector.extract_strided_slice %997 {offsets = [0, 8], sizes = [8, 8], strides = [1, 1]} : vector<8x32xf32> to vector<8x8xf32>
    %1026 = vector.extract_strided_slice %1001 {offsets = [0, 8], sizes = [8, 8], strides = [1, 1]} : vector<8x32xf32> to vector<8x8xf32>
    %1027 = vector.extract_strided_slice %1002 {offsets = [0, 8], sizes = [8, 8], strides = [1, 1]} : vector<8x32xf32> to vector<8x8xf32>
    %cst_447 = arith.constant dense<0.000000e+00> : vector<8x8xf32>
    %1028 = tpu.matmul %1025, %1026, %cst_447 {dimension_numbers = #tpu.dot_dimension_numbers<[1], [1], [0], [0], [0, 0, 1, 0], [], []>} : vector<8x8xf32>, vector<8x8xf32>, vector<8x8xf32> -> vector<8x8xf32>
    %cst_448 = arith.constant 0.353553385 : f32
    %1029 = vector.broadcast %cst_448 : f32 to vector<8x8xf32>
    %1030 = arith.mulf %1028, %1029 : vector<8x8xf32>
    %1031 = arith.addf %1030, %5 : vector<8x8xf32>
    %cst_449 = arith.constant dense<0xFF800000> : vector<8xf32>
    %1032 = vector.multi_reduction <maximumf>, %1031, %cst_449 [1] : vector<8x8xf32> to vector<8xf32>
    %1033 = vector.shape_cast %1032 : vector<8xf32> to vector<8x1xf32>
    %1034 = vector.broadcast %1033 : vector<8x1xf32> to vector<8x8xf32>
    %1035 = arith.subf %1031, %1034 : vector<8x8xf32>
    %1036 = math.exp %1035 : vector<8x8xf32>
    %cst_450 = arith.constant dense<0.000000e+00> : vector<8xf32>
    %1037 = vector.multi_reduction <add>, %1036, %cst_450 [1] : vector<8x8xf32> to vector<8xf32>
    %1038 = vector.shape_cast %1037 : vector<8xf32> to vector<8x1xf32>
    %1039 = tpu.reciprocal %1038 {approx = true} : vector<8x1xf32> -> vector<8x1xf32>
    %1040 = vector.broadcast %1039 : vector<8x1xf32> to vector<8x8xf32>
    %1041 = arith.mulf %1036, %1040 : vector<8x8xf32>
    %cst_451 = arith.constant dense<0.000000e+00> : vector<8x8xf32>
    %1042 = tpu.matmul %1041, %1027, %cst_451 {dimension_numbers = #tpu.dot_dimension_numbers<[1], [0], [0], [1], [0, 0, 1, 1], [], []>} : vector<8x8xf32>, vector<8x8xf32>, vector<8x8xf32> -> vector<8x8xf32>
    %1043 = vector.extract_strided_slice %992 {offsets = [8, 0], sizes = [8, 32], strides = [1, 1]} : vector<32x32xf32> to vector<8x32xf32>
    %cst_452 = arith.constant dense<0.000000e+00> : vector<8x32xf32>
    %1044 = tpu.matmul %1042, %1043, %cst_452 {dimension_numbers = #tpu.dot_dimension_numbers<[1], [0], [0], [1], [0, 0, 1, 1], [], []>} : vector<8x8xf32>, vector<8x32xf32>, vector<8x32xf32> -> vector<8x32xf32>
    %1045 = arith.addf %1024, %1044 : vector<8x32xf32>
    %1046 = vector.extract_strided_slice %997 {offsets = [0, 16], sizes = [8, 8], strides = [1, 1]} : vector<8x32xf32> to vector<8x8xf32>
    %1047 = vector.extract_strided_slice %1001 {offsets = [0, 16], sizes = [8, 8], strides = [1, 1]} : vector<8x32xf32> to vector<8x8xf32>
    %1048 = vector.extract_strided_slice %1002 {offsets = [0, 16], sizes = [8, 8], strides = [1, 1]} : vector<8x32xf32> to vector<8x8xf32>
    %cst_453 = arith.constant dense<0.000000e+00> : vector<8x8xf32>
    %1049 = tpu.matmul %1046, %1047, %cst_453 {dimension_numbers = #tpu.dot_dimension_numbers<[1], [1], [0], [0], [0, 0, 1, 0], [], []>} : vector<8x8xf32>, vector<8x8xf32>, vector<8x8xf32> -> vector<8x8xf32>
    %cst_454 = arith.constant 0.353553385 : f32
    %1050 = vector.broadcast %cst_454 : f32 to vector<8x8xf32>
    %1051 = arith.mulf %1049, %1050 : vector<8x8xf32>
    %1052 = arith.addf %1051, %5 : vector<8x8xf32>
    %cst_455 = arith.constant dense<0xFF800000> : vector<8xf32>
    %1053 = vector.multi_reduction <maximumf>, %1052, %cst_455 [1] : vector<8x8xf32> to vector<8xf32>
    %1054 = vector.shape_cast %1053 : vector<8xf32> to vector<8x1xf32>
    %1055 = vector.broadcast %1054 : vector<8x1xf32> to vector<8x8xf32>
    %1056 = arith.subf %1052, %1055 : vector<8x8xf32>
    %1057 = math.exp %1056 : vector<8x8xf32>
    %cst_456 = arith.constant dense<0.000000e+00> : vector<8xf32>
    %1058 = vector.multi_reduction <add>, %1057, %cst_456 [1] : vector<8x8xf32> to vector<8xf32>
    %1059 = vector.shape_cast %1058 : vector<8xf32> to vector<8x1xf32>
    %1060 = tpu.reciprocal %1059 {approx = true} : vector<8x1xf32> -> vector<8x1xf32>
    %1061 = vector.broadcast %1060 : vector<8x1xf32> to vector<8x8xf32>
    %1062 = arith.mulf %1057, %1061 : vector<8x8xf32>
    %cst_457 = arith.constant dense<0.000000e+00> : vector<8x8xf32>
    %1063 = tpu.matmul %1062, %1048, %cst_457 {dimension_numbers = #tpu.dot_dimension_numbers<[1], [0], [0], [1], [0, 0, 1, 1], [], []>} : vector<8x8xf32>, vector<8x8xf32>, vector<8x8xf32> -> vector<8x8xf32>
    %1064 = vector.extract_strided_slice %992 {offsets = [16, 0], sizes = [8, 32], strides = [1, 1]} : vector<32x32xf32> to vector<8x32xf32>
    %cst_458 = arith.constant dense<0.000000e+00> : vector<8x32xf32>
    %1065 = tpu.matmul %1063, %1064, %cst_458 {dimension_numbers = #tpu.dot_dimension_numbers<[1], [0], [0], [1], [0, 0, 1, 1], [], []>} : vector<8x8xf32>, vector<8x32xf32>, vector<8x32xf32> -> vector<8x32xf32>
    %1066 = arith.addf %1045, %1065 : vector<8x32xf32>
    %1067 = vector.extract_strided_slice %997 {offsets = [0, 24], sizes = [8, 8], strides = [1, 1]} : vector<8x32xf32> to vector<8x8xf32>
    %1068 = vector.extract_strided_slice %1001 {offsets = [0, 24], sizes = [8, 8], strides = [1, 1]} : vector<8x32xf32> to vector<8x8xf32>
    %1069 = vector.extract_strided_slice %1002 {offsets = [0, 24], sizes = [8, 8], strides = [1, 1]} : vector<8x32xf32> to vector<8x8xf32>
    %cst_459 = arith.constant dense<0.000000e+00> : vector<8x8xf32>
    %1070 = tpu.matmul %1067, %1068, %cst_459 {dimension_numbers = #tpu.dot_dimension_numbers<[1], [1], [0], [0], [0, 0, 1, 0], [], []>} : vector<8x8xf32>, vector<8x8xf32>, vector<8x8xf32> -> vector<8x8xf32>
    %cst_460 = arith.constant 0.353553385 : f32
    %1071 = vector.broadcast %cst_460 : f32 to vector<8x8xf32>
    %1072 = arith.mulf %1070, %1071 : vector<8x8xf32>
    %1073 = arith.addf %1072, %5 : vector<8x8xf32>
    %cst_461 = arith.constant dense<0xFF800000> : vector<8xf32>
    %1074 = vector.multi_reduction <maximumf>, %1073, %cst_461 [1] : vector<8x8xf32> to vector<8xf32>
    %1075 = vector.shape_cast %1074 : vector<8xf32> to vector<8x1xf32>
    %1076 = vector.broadcast %1075 : vector<8x1xf32> to vector<8x8xf32>
    %1077 = arith.subf %1073, %1076 : vector<8x8xf32>
    %1078 = math.exp %1077 : vector<8x8xf32>
    %cst_462 = arith.constant dense<0.000000e+00> : vector<8xf32>
    %1079 = vector.multi_reduction <add>, %1078, %cst_462 [1] : vector<8x8xf32> to vector<8xf32>
    %1080 = vector.shape_cast %1079 : vector<8xf32> to vector<8x1xf32>
    %1081 = tpu.reciprocal %1080 {approx = true} : vector<8x1xf32> -> vector<8x1xf32>
    %1082 = vector.broadcast %1081 : vector<8x1xf32> to vector<8x8xf32>
    %1083 = arith.mulf %1078, %1082 : vector<8x8xf32>
    %cst_463 = arith.constant dense<0.000000e+00> : vector<8x8xf32>
    %1084 = tpu.matmul %1083, %1069, %cst_463 {dimension_numbers = #tpu.dot_dimension_numbers<[1], [0], [0], [1], [0, 0, 1, 1], [], []>} : vector<8x8xf32>, vector<8x8xf32>, vector<8x8xf32> -> vector<8x8xf32>
    %1085 = vector.extract_strided_slice %992 {offsets = [24, 0], sizes = [8, 32], strides = [1, 1]} : vector<32x32xf32> to vector<8x32xf32>
    %cst_464 = arith.constant dense<0.000000e+00> : vector<8x32xf32>
    %1086 = tpu.matmul %1084, %1085, %cst_464 {dimension_numbers = #tpu.dot_dimension_numbers<[1], [0], [0], [1], [0, 0, 1, 1], [], []>} : vector<8x8xf32>, vector<8x32xf32>, vector<8x32xf32> -> vector<8x32xf32>
    %1087 = arith.addf %1066, %1086 : vector<8x32xf32>
    %1088 = vector.broadcast %994 : vector<1x32xf32> to vector<8x32xf32>
    %1089 = arith.addf %1087, %1088 : vector<8x32xf32>
    %1090 = arith.addf %982, %1089 : vector<8x32xf32>
    %c1_465 = arith.constant 1 : index
    %c0_466 = arith.constant 0 : index
    %c0_467 = arith.constant 0 : index
    %1091 = vector.load %arg15[%c1_465, %c0_466, %c0_467] : memref<3x1x32xf32, #tpu.memory_space<vmem>>, vector<1x1x32xf32>
    %1092 = vector.shape_cast %1091 : vector<1x1x32xf32> to vector<1x32xf32>
    %c1_468 = arith.constant 1 : index
    %c0_469 = arith.constant 0 : index
    %c0_470 = arith.constant 0 : index
    %1093 = vector.load %arg14[%c1_468, %c0_469, %c0_470] : memref<3x1x32xf32, #tpu.memory_space<vmem>>, vector<1x1x32xf32>
    %1094 = vector.shape_cast %1093 : vector<1x1x32xf32> to vector<1x32xf32>
    %cst_471 = arith.constant dense<0.000000e+00> : vector<8xf32>
    %1095 = vector.multi_reduction <add>, %1090, %cst_471 [1] : vector<8x32xf32> to vector<8xf32>
    %1096 = vector.shape_cast %1095 : vector<8xf32> to vector<8x1xf32>
    %cst_472 = arith.constant 3.200000e+01 : f32
    %1097 = vector.broadcast %cst_472 : f32 to vector<8x1xf32>
    %1098 = arith.divf %1096, %1097 : vector<8x1xf32>
    %1099 = vector.broadcast %1098 : vector<8x1xf32> to vector<8x32xf32>
    %1100 = arith.subf %1090, %1099 : vector<8x32xf32>
    %1101 = arith.mulf %1100, %1100 : vector<8x32xf32>
    %cst_473 = arith.constant dense<0.000000e+00> : vector<8xf32>
    %1102 = vector.multi_reduction <add>, %1101, %cst_473 [1] : vector<8x32xf32> to vector<8xf32>
    %1103 = vector.shape_cast %1102 : vector<8xf32> to vector<8x1xf32>
    %cst_474 = arith.constant 3.200000e+01 : f32
    %1104 = vector.broadcast %cst_474 : f32 to vector<8x1xf32>
    %1105 = arith.divf %1103, %1104 : vector<8x1xf32>
    %1106 = vector.broadcast %1098 : vector<8x1xf32> to vector<8x32xf32>
    %1107 = arith.subf %1090, %1106 : vector<8x32xf32>
    %cst_475 = arith.constant 9.99999974E-6 : f32
    %1108 = vector.broadcast %cst_475 : f32 to vector<8x1xf32>
    %1109 = arith.addf %1105, %1108 : vector<8x1xf32>
    %1110 = math.rsqrt %1109 : vector<8x1xf32>
    %1111 = vector.broadcast %1110 : vector<8x1xf32> to vector<8x32xf32>
    %1112 = arith.mulf %1107, %1111 : vector<8x32xf32>
    %1113 = vector.broadcast %1092 : vector<1x32xf32> to vector<8x32xf32>
    %1114 = arith.mulf %1112, %1113 : vector<8x32xf32>
    %1115 = vector.broadcast %1094 : vector<1x32xf32> to vector<8x32xf32>
    %1116 = arith.addf %1114, %1115 : vector<8x32xf32>
    %c1_476 = arith.constant 1 : index
    %c0_477 = arith.constant 0 : index
    %c0_478 = arith.constant 0 : index
    %1117 = vector.load %arg24[%c1_476, %c0_477, %c0_478] : memref<3x32x64xf32, #tpu.memory_space<vmem>>, vector<1x32x64xf32>
    %1118 = vector.shape_cast %1117 : vector<1x32x64xf32> to vector<32x64xf32>
    %c1_479 = arith.constant 1 : index
    %c0_480 = arith.constant 0 : index
    %c0_481 = arith.constant 0 : index
    %1119 = vector.load %arg4[%c1_479, %c0_480, %c0_481] : memref<3x1x64xf32, #tpu.memory_space<vmem>>, vector<1x1x64xf32>
    %1120 = vector.shape_cast %1119 : vector<1x1x64xf32> to vector<1x64xf32>
    %c1_482 = arith.constant 1 : index
    %c0_483 = arith.constant 0 : index
    %c0_484 = arith.constant 0 : index
    %1121 = vector.load %arg25[%c1_482, %c0_483, %c0_484] : memref<3x64x32xf32, #tpu.memory_space<vmem>>, vector<1x64x32xf32>
    %1122 = vector.shape_cast %1121 : vector<1x64x32xf32> to vector<64x32xf32>
    %c1_485 = arith.constant 1 : index
    %c0_486 = arith.constant 0 : index
    %c0_487 = arith.constant 0 : index
    %1123 = vector.load %arg5[%c1_485, %c0_486, %c0_487] : memref<3x1x32xf32, #tpu.memory_space<vmem>>, vector<1x1x32xf32>
    %1124 = vector.shape_cast %1123 : vector<1x1x32xf32> to vector<1x32xf32>
    %cst_488 = arith.constant dense<0.000000e+00> : vector<8x64xf32>
    %1125 = tpu.matmul %1116, %1118, %cst_488 {dimension_numbers = #tpu.dot_dimension_numbers<[1], [0], [0], [1], [0, 0, 1, 1], [], []>} : vector<8x32xf32>, vector<32x64xf32>, vector<8x64xf32> -> vector<8x64xf32>
    %1126 = vector.broadcast %1120 : vector<1x64xf32> to vector<8x64xf32>
    %1127 = arith.addf %1125, %1126 : vector<8x64xf32>
    %cst_489 = arith.constant 0.000000e+00 : f32
    %1128 = vector.broadcast %cst_489 : f32 to vector<8x64xf32>
    %1129 = arith.maximumf %1127, %1128 : vector<8x64xf32>
    %cst_490 = arith.constant dense<0.000000e+00> : vector<8x32xf32>
    %1130 = tpu.matmul %1129, %1122, %cst_490 {dimension_numbers = #tpu.dot_dimension_numbers<[1], [0], [0], [1], [0, 0, 1, 1], [], []>} : vector<8x64xf32>, vector<64x32xf32>, vector<8x32xf32> -> vector<8x32xf32>
    %1131 = vector.broadcast %1124 : vector<1x32xf32> to vector<8x32xf32>
    %1132 = arith.addf %1130, %1131 : vector<8x32xf32>
    %1133 = arith.addf %1116, %1132 : vector<8x32xf32>
    %c1_491 = arith.constant 1 : index
    %c0_492 = arith.constant 0 : index
    %c0_493 = arith.constant 0 : index
    %1134 = vector.load %arg17[%c1_491, %c0_492, %c0_493] : memref<3x1x32xf32, #tpu.memory_space<vmem>>, vector<1x1x32xf32>
    %1135 = vector.shape_cast %1134 : vector<1x1x32xf32> to vector<1x32xf32>
    %c1_494 = arith.constant 1 : index
    %c0_495 = arith.constant 0 : index
    %c0_496 = arith.constant 0 : index
    %1136 = vector.load %arg16[%c1_494, %c0_495, %c0_496] : memref<3x1x32xf32, #tpu.memory_space<vmem>>, vector<1x1x32xf32>
    %1137 = vector.shape_cast %1136 : vector<1x1x32xf32> to vector<1x32xf32>
    %cst_497 = arith.constant dense<0.000000e+00> : vector<8xf32>
    %1138 = vector.multi_reduction <add>, %1133, %cst_497 [1] : vector<8x32xf32> to vector<8xf32>
    %1139 = vector.shape_cast %1138 : vector<8xf32> to vector<8x1xf32>
    %cst_498 = arith.constant 3.200000e+01 : f32
    %1140 = vector.broadcast %cst_498 : f32 to vector<8x1xf32>
    %1141 = arith.divf %1139, %1140 : vector<8x1xf32>
    %1142 = vector.broadcast %1141 : vector<8x1xf32> to vector<8x32xf32>
    %1143 = arith.subf %1133, %1142 : vector<8x32xf32>
    %1144 = arith.mulf %1143, %1143 : vector<8x32xf32>
    %cst_499 = arith.constant dense<0.000000e+00> : vector<8xf32>
    %1145 = vector.multi_reduction <add>, %1144, %cst_499 [1] : vector<8x32xf32> to vector<8xf32>
    %1146 = vector.shape_cast %1145 : vector<8xf32> to vector<8x1xf32>
    %cst_500 = arith.constant 3.200000e+01 : f32
    %1147 = vector.broadcast %cst_500 : f32 to vector<8x1xf32>
    %1148 = arith.divf %1146, %1147 : vector<8x1xf32>
    %1149 = vector.broadcast %1141 : vector<8x1xf32> to vector<8x32xf32>
    %1150 = arith.subf %1133, %1149 : vector<8x32xf32>
    %cst_501 = arith.constant 9.99999974E-6 : f32
    %1151 = vector.broadcast %cst_501 : f32 to vector<8x1xf32>
    %1152 = arith.addf %1148, %1151 : vector<8x1xf32>
    %1153 = math.rsqrt %1152 : vector<8x1xf32>
    %1154 = vector.broadcast %1153 : vector<8x1xf32> to vector<8x32xf32>
    %1155 = arith.mulf %1150, %1154 : vector<8x32xf32>
    %1156 = vector.broadcast %1135 : vector<1x32xf32> to vector<8x32xf32>
    %1157 = arith.mulf %1155, %1156 : vector<8x32xf32>
    %1158 = vector.broadcast %1137 : vector<1x32xf32> to vector<8x32xf32>
    %1159 = arith.addf %1157, %1158 : vector<8x32xf32>
    %c2_502 = arith.constant 2 : index
    %c0_503 = arith.constant 0 : index
    %c0_504 = arith.constant 0 : index
    %1160 = vector.load %arg23[%c2_502, %c0_503, %c0_504] : memref<3x32x96xf32, #tpu.memory_space<vmem>>, vector<1x32x96xf32>
    %1161 = vector.shape_cast %1160 : vector<1x32x96xf32> to vector<32x96xf32>
    %c2_505 = arith.constant 2 : index
    %c0_506 = arith.constant 0 : index
    %c0_507 = arith.constant 0 : index
    %1162 = vector.load %arg21[%c2_505, %c0_506, %c0_507] : memref<3x1x96xf32, #tpu.memory_space<vmem>>, vector<1x1x96xf32>
    %1163 = vector.shape_cast %1162 : vector<1x1x96xf32> to vector<1x96xf32>
    %c2_508 = arith.constant 2 : index
    %c0_509 = arith.constant 0 : index
    %c0_510 = arith.constant 0 : index
    %1164 = vector.load %arg22[%c2_508, %c0_509, %c0_510] : memref<3x32x32xf32, #tpu.memory_space<vmem>>, vector<1x32x32xf32>
    %1165 = vector.shape_cast %1164 : vector<1x32x32xf32> to vector<32x32xf32>
    %c2_511 = arith.constant 2 : index
    %c0_512 = arith.constant 0 : index
    %c0_513 = arith.constant 0 : index
    %1166 = vector.load %arg20[%c2_511, %c0_512, %c0_513] : memref<3x1x32xf32, #tpu.memory_space<vmem>>, vector<1x1x32xf32>
    %1167 = vector.shape_cast %1166 : vector<1x1x32xf32> to vector<1x32xf32>
    %cst_514 = arith.constant dense<0.000000e+00> : vector<8x96xf32>
    %1168 = tpu.matmul %1159, %1161, %cst_514 {dimension_numbers = #tpu.dot_dimension_numbers<[1], [0], [0], [1], [0, 0, 1, 1], [], []>} : vector<8x32xf32>, vector<32x96xf32>, vector<8x96xf32> -> vector<8x96xf32>
    %1169 = vector.broadcast %1163 : vector<1x96xf32> to vector<8x96xf32>
    %1170 = arith.addf %1168, %1169 : vector<8x96xf32>
    %1171 = vector.extract_strided_slice %1170 {offsets = [0, 0], sizes = [8, 32], strides = [1, 1]} : vector<8x96xf32> to vector<8x32xf32>
    %1172 = vector.extract_strided_slice %1170 {offsets = [0, 32], sizes = [8, 32], strides = [1, 1]} : vector<8x96xf32> to vector<8x32xf32>
    %1173 = vector.extract_strided_slice %1170 {offsets = [0, 64], sizes = [8, 32], strides = [1, 1]} : vector<8x96xf32> to vector<8x32xf32>
    %cst_515 = arith.constant 0.000000e+00 : f32
    %1174 = vector.broadcast %cst_515 : f32 to vector<8x32xf32>
    %1175 = vector.extract_strided_slice %1171 {offsets = [0, 0], sizes = [8, 8], strides = [1, 1]} : vector<8x32xf32> to vector<8x8xf32>
    %1176 = vector.extract_strided_slice %1172 {offsets = [0, 0], sizes = [8, 8], strides = [1, 1]} : vector<8x32xf32> to vector<8x8xf32>
    %1177 = vector.extract_strided_slice %1173 {offsets = [0, 0], sizes = [8, 8], strides = [1, 1]} : vector<8x32xf32> to vector<8x8xf32>
    %cst_516 = arith.constant dense<0.000000e+00> : vector<8x8xf32>
    %1178 = tpu.matmul %1175, %1176, %cst_516 {dimension_numbers = #tpu.dot_dimension_numbers<[1], [1], [0], [0], [0, 0, 1, 0], [], []>} : vector<8x8xf32>, vector<8x8xf32>, vector<8x8xf32> -> vector<8x8xf32>
    %cst_517 = arith.constant 0.353553385 : f32
    %1179 = vector.broadcast %cst_517 : f32 to vector<8x8xf32>
    %1180 = arith.mulf %1178, %1179 : vector<8x8xf32>
    %1181 = arith.addf %1180, %5 : vector<8x8xf32>
    %cst_518 = arith.constant dense<0xFF800000> : vector<8xf32>
    %1182 = vector.multi_reduction <maximumf>, %1181, %cst_518 [1] : vector<8x8xf32> to vector<8xf32>
    %1183 = vector.shape_cast %1182 : vector<8xf32> to vector<8x1xf32>
    %1184 = vector.broadcast %1183 : vector<8x1xf32> to vector<8x8xf32>
    %1185 = arith.subf %1181, %1184 : vector<8x8xf32>
    %1186 = math.exp %1185 : vector<8x8xf32>
    %cst_519 = arith.constant dense<0.000000e+00> : vector<8xf32>
    %1187 = vector.multi_reduction <add>, %1186, %cst_519 [1] : vector<8x8xf32> to vector<8xf32>
    %1188 = vector.shape_cast %1187 : vector<8xf32> to vector<8x1xf32>
    %1189 = tpu.reciprocal %1188 {approx = true} : vector<8x1xf32> -> vector<8x1xf32>
    %1190 = vector.broadcast %1189 : vector<8x1xf32> to vector<8x8xf32>
    %1191 = arith.mulf %1186, %1190 : vector<8x8xf32>
    %cst_520 = arith.constant dense<0.000000e+00> : vector<8x8xf32>
    %1192 = tpu.matmul %1191, %1177, %cst_520 {dimension_numbers = #tpu.dot_dimension_numbers<[1], [0], [0], [1], [0, 0, 1, 1], [], []>} : vector<8x8xf32>, vector<8x8xf32>, vector<8x8xf32> -> vector<8x8xf32>
    %1193 = vector.extract_strided_slice %1165 {offsets = [0, 0], sizes = [8, 32], strides = [1, 1]} : vector<32x32xf32> to vector<8x32xf32>
    %cst_521 = arith.constant dense<0.000000e+00> : vector<8x32xf32>
    %1194 = tpu.matmul %1192, %1193, %cst_521 {dimension_numbers = #tpu.dot_dimension_numbers<[1], [0], [0], [1], [0, 0, 1, 1], [], []>} : vector<8x8xf32>, vector<8x32xf32>, vector<8x32xf32> -> vector<8x32xf32>
    %1195 = arith.addf %1174, %1194 : vector<8x32xf32>
    %1196 = vector.extract_strided_slice %1171 {offsets = [0, 8], sizes = [8, 8], strides = [1, 1]} : vector<8x32xf32> to vector<8x8xf32>
    %1197 = vector.extract_strided_slice %1172 {offsets = [0, 8], sizes = [8, 8], strides = [1, 1]} : vector<8x32xf32> to vector<8x8xf32>
    %1198 = vector.extract_strided_slice %1173 {offsets = [0, 8], sizes = [8, 8], strides = [1, 1]} : vector<8x32xf32> to vector<8x8xf32>
    %cst_522 = arith.constant dense<0.000000e+00> : vector<8x8xf32>
    %1199 = tpu.matmul %1196, %1197, %cst_522 {dimension_numbers = #tpu.dot_dimension_numbers<[1], [1], [0], [0], [0, 0, 1, 0], [], []>} : vector<8x8xf32>, vector<8x8xf32>, vector<8x8xf32> -> vector<8x8xf32>
    %cst_523 = arith.constant 0.353553385 : f32
    %1200 = vector.broadcast %cst_523 : f32 to vector<8x8xf32>
    %1201 = arith.mulf %1199, %1200 : vector<8x8xf32>
    %1202 = arith.addf %1201, %5 : vector<8x8xf32>
    %cst_524 = arith.constant dense<0xFF800000> : vector<8xf32>
    %1203 = vector.multi_reduction <maximumf>, %1202, %cst_524 [1] : vector<8x8xf32> to vector<8xf32>
    %1204 = vector.shape_cast %1203 : vector<8xf32> to vector<8x1xf32>
    %1205 = vector.broadcast %1204 : vector<8x1xf32> to vector<8x8xf32>
    %1206 = arith.subf %1202, %1205 : vector<8x8xf32>
    %1207 = math.exp %1206 : vector<8x8xf32>
    %cst_525 = arith.constant dense<0.000000e+00> : vector<8xf32>
    %1208 = vector.multi_reduction <add>, %1207, %cst_525 [1] : vector<8x8xf32> to vector<8xf32>
    %1209 = vector.shape_cast %1208 : vector<8xf32> to vector<8x1xf32>
    %1210 = tpu.reciprocal %1209 {approx = true} : vector<8x1xf32> -> vector<8x1xf32>
    %1211 = vector.broadcast %1210 : vector<8x1xf32> to vector<8x8xf32>
    %1212 = arith.mulf %1207, %1211 : vector<8x8xf32>
    %cst_526 = arith.constant dense<0.000000e+00> : vector<8x8xf32>
    %1213 = tpu.matmul %1212, %1198, %cst_526 {dimension_numbers = #tpu.dot_dimension_numbers<[1], [0], [0], [1], [0, 0, 1, 1], [], []>} : vector<8x8xf32>, vector<8x8xf32>, vector<8x8xf32> -> vector<8x8xf32>
    %1214 = vector.extract_strided_slice %1165 {offsets = [8, 0], sizes = [8, 32], strides = [1, 1]} : vector<32x32xf32> to vector<8x32xf32>
    %cst_527 = arith.constant dense<0.000000e+00> : vector<8x32xf32>
    %1215 = tpu.matmul %1213, %1214, %cst_527 {dimension_numbers = #tpu.dot_dimension_numbers<[1], [0], [0], [1], [0, 0, 1, 1], [], []>} : vector<8x8xf32>, vector<8x32xf32>, vector<8x32xf32> -> vector<8x32xf32>
    %1216 = arith.addf %1195, %1215 : vector<8x32xf32>
    %1217 = vector.extract_strided_slice %1171 {offsets = [0, 16], sizes = [8, 8], strides = [1, 1]} : vector<8x32xf32> to vector<8x8xf32>
    %1218 = vector.extract_strided_slice %1172 {offsets = [0, 16], sizes = [8, 8], strides = [1, 1]} : vector<8x32xf32> to vector<8x8xf32>
    %1219 = vector.extract_strided_slice %1173 {offsets = [0, 16], sizes = [8, 8], strides = [1, 1]} : vector<8x32xf32> to vector<8x8xf32>
    %cst_528 = arith.constant dense<0.000000e+00> : vector<8x8xf32>
    %1220 = tpu.matmul %1217, %1218, %cst_528 {dimension_numbers = #tpu.dot_dimension_numbers<[1], [1], [0], [0], [0, 0, 1, 0], [], []>} : vector<8x8xf32>, vector<8x8xf32>, vector<8x8xf32> -> vector<8x8xf32>
    %cst_529 = arith.constant 0.353553385 : f32
    %1221 = vector.broadcast %cst_529 : f32 to vector<8x8xf32>
    %1222 = arith.mulf %1220, %1221 : vector<8x8xf32>
    %1223 = arith.addf %1222, %5 : vector<8x8xf32>
    %cst_530 = arith.constant dense<0xFF800000> : vector<8xf32>
    %1224 = vector.multi_reduction <maximumf>, %1223, %cst_530 [1] : vector<8x8xf32> to vector<8xf32>
    %1225 = vector.shape_cast %1224 : vector<8xf32> to vector<8x1xf32>
    %1226 = vector.broadcast %1225 : vector<8x1xf32> to vector<8x8xf32>
    %1227 = arith.subf %1223, %1226 : vector<8x8xf32>
    %1228 = math.exp %1227 : vector<8x8xf32>
    %cst_531 = arith.constant dense<0.000000e+00> : vector<8xf32>
    %1229 = vector.multi_reduction <add>, %1228, %cst_531 [1] : vector<8x8xf32> to vector<8xf32>
    %1230 = vector.shape_cast %1229 : vector<8xf32> to vector<8x1xf32>
    %1231 = tpu.reciprocal %1230 {approx = true} : vector<8x1xf32> -> vector<8x1xf32>
    %1232 = vector.broadcast %1231 : vector<8x1xf32> to vector<8x8xf32>
    %1233 = arith.mulf %1228, %1232 : vector<8x8xf32>
    %cst_532 = arith.constant dense<0.000000e+00> : vector<8x8xf32>
    %1234 = tpu.matmul %1233, %1219, %cst_532 {dimension_numbers = #tpu.dot_dimension_numbers<[1], [0], [0], [1], [0, 0, 1, 1], [], []>} : vector<8x8xf32>, vector<8x8xf32>, vector<8x8xf32> -> vector<8x8xf32>
    %1235 = vector.extract_strided_slice %1165 {offsets = [16, 0], sizes = [8, 32], strides = [1, 1]} : vector<32x32xf32> to vector<8x32xf32>
    %cst_533 = arith.constant dense<0.000000e+00> : vector<8x32xf32>
    %1236 = tpu.matmul %1234, %1235, %cst_533 {dimension_numbers = #tpu.dot_dimension_numbers<[1], [0], [0], [1], [0, 0, 1, 1], [], []>} : vector<8x8xf32>, vector<8x32xf32>, vector<8x32xf32> -> vector<8x32xf32>
    %1237 = arith.addf %1216, %1236 : vector<8x32xf32>
    %1238 = vector.extract_strided_slice %1171 {offsets = [0, 24], sizes = [8, 8], strides = [1, 1]} : vector<8x32xf32> to vector<8x8xf32>
    %1239 = vector.extract_strided_slice %1172 {offsets = [0, 24], sizes = [8, 8], strides = [1, 1]} : vector<8x32xf32> to vector<8x8xf32>
    %1240 = vector.extract_strided_slice %1173 {offsets = [0, 24], sizes = [8, 8], strides = [1, 1]} : vector<8x32xf32> to vector<8x8xf32>
    %cst_534 = arith.constant dense<0.000000e+00> : vector<8x8xf32>
    %1241 = tpu.matmul %1238, %1239, %cst_534 {dimension_numbers = #tpu.dot_dimension_numbers<[1], [1], [0], [0], [0, 0, 1, 0], [], []>} : vector<8x8xf32>, vector<8x8xf32>, vector<8x8xf32> -> vector<8x8xf32>
    %cst_535 = arith.constant 0.353553385 : f32
    %1242 = vector.broadcast %cst_535 : f32 to vector<8x8xf32>
    %1243 = arith.mulf %1241, %1242 : vector<8x8xf32>
    %1244 = arith.addf %1243, %5 : vector<8x8xf32>
    %cst_536 = arith.constant dense<0xFF800000> : vector<8xf32>
    %1245 = vector.multi_reduction <maximumf>, %1244, %cst_536 [1] : vector<8x8xf32> to vector<8xf32>
    %1246 = vector.shape_cast %1245 : vector<8xf32> to vector<8x1xf32>
    %1247 = vector.broadcast %1246 : vector<8x1xf32> to vector<8x8xf32>
    %1248 = arith.subf %1244, %1247 : vector<8x8xf32>
    %1249 = math.exp %1248 : vector<8x8xf32>
    %cst_537 = arith.constant dense<0.000000e+00> : vector<8xf32>
    %1250 = vector.multi_reduction <add>, %1249, %cst_537 [1] : vector<8x8xf32> to vector<8xf32>
    %1251 = vector.shape_cast %1250 : vector<8xf32> to vector<8x1xf32>
    %1252 = tpu.reciprocal %1251 {approx = true} : vector<8x1xf32> -> vector<8x1xf32>
    %1253 = vector.broadcast %1252 : vector<8x1xf32> to vector<8x8xf32>
    %1254 = arith.mulf %1249, %1253 : vector<8x8xf32>
    %cst_538 = arith.constant dense<0.000000e+00> : vector<8x8xf32>
    %1255 = tpu.matmul %1254, %1240, %cst_538 {dimension_numbers = #tpu.dot_dimension_numbers<[1], [0], [0], [1], [0, 0, 1, 1], [], []>} : vector<8x8xf32>, vector<8x8xf32>, vector<8x8xf32> -> vector<8x8xf32>
    %1256 = vector.extract_strided_slice %1165 {offsets = [24, 0], sizes = [8, 32], strides = [1, 1]} : vector<32x32xf32> to vector<8x32xf32>
    %cst_539 = arith.constant dense<0.000000e+00> : vector<8x32xf32>
    %1257 = tpu.matmul %1255, %1256, %cst_539 {dimension_numbers = #tpu.dot_dimension_numbers<[1], [0], [0], [1], [0, 0, 1, 1], [], []>} : vector<8x8xf32>, vector<8x32xf32>, vector<8x32xf32> -> vector<8x32xf32>
    %1258 = arith.addf %1237, %1257 : vector<8x32xf32>
    %1259 = vector.broadcast %1167 : vector<1x32xf32> to vector<8x32xf32>
    %1260 = arith.addf %1258, %1259 : vector<8x32xf32>
    %1261 = arith.addf %1159, %1260 : vector<8x32xf32>
    %c2_540 = arith.constant 2 : index
    %c0_541 = arith.constant 0 : index
    %c0_542 = arith.constant 0 : index
    %1262 = vector.load %arg13[%c2_540, %c0_541, %c0_542] : memref<3x1x32xf32, #tpu.memory_space<vmem>>, vector<1x1x32xf32>
    %1263 = vector.shape_cast %1262 : vector<1x1x32xf32> to vector<1x32xf32>
    %c2_543 = arith.constant 2 : index
    %c0_544 = arith.constant 0 : index
    %c0_545 = arith.constant 0 : index
    %1264 = vector.load %arg12[%c2_543, %c0_544, %c0_545] : memref<3x1x32xf32, #tpu.memory_space<vmem>>, vector<1x1x32xf32>
    %1265 = vector.shape_cast %1264 : vector<1x1x32xf32> to vector<1x32xf32>
    %cst_546 = arith.constant dense<0.000000e+00> : vector<8xf32>
    %1266 = vector.multi_reduction <add>, %1261, %cst_546 [1] : vector<8x32xf32> to vector<8xf32>
    %1267 = vector.shape_cast %1266 : vector<8xf32> to vector<8x1xf32>
    %cst_547 = arith.constant 3.200000e+01 : f32
    %1268 = vector.broadcast %cst_547 : f32 to vector<8x1xf32>
    %1269 = arith.divf %1267, %1268 : vector<8x1xf32>
    %1270 = vector.broadcast %1269 : vector<8x1xf32> to vector<8x32xf32>
    %1271 = arith.subf %1261, %1270 : vector<8x32xf32>
    %1272 = arith.mulf %1271, %1271 : vector<8x32xf32>
    %cst_548 = arith.constant dense<0.000000e+00> : vector<8xf32>
    %1273 = vector.multi_reduction <add>, %1272, %cst_548 [1] : vector<8x32xf32> to vector<8xf32>
    %1274 = vector.shape_cast %1273 : vector<8xf32> to vector<8x1xf32>
    %cst_549 = arith.constant 3.200000e+01 : f32
    %1275 = vector.broadcast %cst_549 : f32 to vector<8x1xf32>
    %1276 = arith.divf %1274, %1275 : vector<8x1xf32>
    %1277 = vector.broadcast %1269 : vector<8x1xf32> to vector<8x32xf32>
    %1278 = arith.subf %1261, %1277 : vector<8x32xf32>
    %cst_550 = arith.constant 9.99999974E-6 : f32
    %1279 = vector.broadcast %cst_550 : f32 to vector<8x1xf32>
    %1280 = arith.addf %1276, %1279 : vector<8x1xf32>
    %1281 = math.rsqrt %1280 : vector<8x1xf32>
    %1282 = vector.broadcast %1281 : vector<8x1xf32> to vector<8x32xf32>
    %1283 = arith.mulf %1278, %1282 : vector<8x32xf32>
    %1284 = vector.broadcast %1263 : vector<1x32xf32> to vector<8x32xf32>
    %1285 = arith.mulf %1283, %1284 : vector<8x32xf32>
    %1286 = vector.broadcast %1265 : vector<1x32xf32> to vector<8x32xf32>
    %1287 = arith.addf %1285, %1286 : vector<8x32xf32>
    %c2_551 = arith.constant 2 : index
    %c0_552 = arith.constant 0 : index
    %c0_553 = arith.constant 0 : index
    %1288 = vector.load %arg11[%c2_551, %c0_552, %c0_553] : memref<3x32x32xf32, #tpu.memory_space<vmem>>, vector<1x32x32xf32>
    %1289 = vector.shape_cast %1288 : vector<1x32x32xf32> to vector<32x32xf32>
    %c2_554 = arith.constant 2 : index
    %c0_555 = arith.constant 0 : index
    %c0_556 = arith.constant 0 : index
    %1290 = vector.load %arg8[%c2_554, %c0_555, %c0_556] : memref<3x1x32xf32, #tpu.memory_space<vmem>>, vector<1x1x32xf32>
    %1291 = vector.shape_cast %1290 : vector<1x1x32xf32> to vector<1x32xf32>
    %c2_557 = arith.constant 2 : index
    %c0_558 = arith.constant 0 : index
    %c0_559 = arith.constant 0 : index
    %1292 = vector.load %arg9[%c2_557, %c0_558, %c0_559] : memref<3x32x64xf32, #tpu.memory_space<vmem>>, vector<1x32x64xf32>
    %1293 = vector.shape_cast %1292 : vector<1x32x64xf32> to vector<32x64xf32>
    %c2_560 = arith.constant 2 : index
    %c0_561 = arith.constant 0 : index
    %c0_562 = arith.constant 0 : index
    %1294 = vector.load %arg6[%c2_560, %c0_561, %c0_562] : memref<3x1x64xf32, #tpu.memory_space<vmem>>, vector<1x1x64xf32>
    %1295 = vector.shape_cast %1294 : vector<1x1x64xf32> to vector<1x64xf32>
    %c2_563 = arith.constant 2 : index
    %c0_564 = arith.constant 0 : index
    %c0_565 = arith.constant 0 : index
    %1296 = vector.load %arg10[%c2_563, %c0_564, %c0_565] : memref<3x32x32xf32, #tpu.memory_space<vmem>>, vector<1x32x32xf32>
    %1297 = vector.shape_cast %1296 : vector<1x32x32xf32> to vector<32x32xf32>
    %c2_566 = arith.constant 2 : index
    %c0_567 = arith.constant 0 : index
    %c0_568 = arith.constant 0 : index
    %1298 = vector.load %arg7[%c2_566, %c0_567, %c0_568] : memref<3x1x32xf32, #tpu.memory_space<vmem>>, vector<1x1x32xf32>
    %1299 = vector.shape_cast %1298 : vector<1x1x32xf32> to vector<1x32xf32>
    %cst_569 = arith.constant dense<0.000000e+00> : vector<8x32xf32>
    %1300 = tpu.matmul %1287, %1289, %cst_569 {dimension_numbers = #tpu.dot_dimension_numbers<[1], [0], [0], [1], [0, 0, 1, 1], [], []>} : vector<8x32xf32>, vector<32x32xf32>, vector<8x32xf32> -> vector<8x32xf32>
    %1301 = vector.broadcast %1291 : vector<1x32xf32> to vector<8x32xf32>
    %1302 = arith.addf %1300, %1301 : vector<8x32xf32>
    %cst_570 = arith.constant dense<0.000000e+00> : vector<8x64xf32>
    %1303 = tpu.matmul %549, %1293, %cst_570 {dimension_numbers = #tpu.dot_dimension_numbers<[1], [0], [0], [1], [0, 0, 1, 1], [], []>} : vector<8x32xf32>, vector<32x64xf32>, vector<8x64xf32> -> vector<8x64xf32>
    %1304 = vector.broadcast %1295 : vector<1x64xf32> to vector<8x64xf32>
    %1305 = arith.addf %1303, %1304 : vector<8x64xf32>
    %1306 = vector.extract_strided_slice %1305 {offsets = [0, 0], sizes = [8, 32], strides = [1, 1]} : vector<8x64xf32> to vector<8x32xf32>
    %1307 = vector.extract_strided_slice %1305 {offsets = [0, 32], sizes = [8, 32], strides = [1, 1]} : vector<8x64xf32> to vector<8x32xf32>
    %cst_571 = arith.constant 0.000000e+00 : f32
    %1308 = vector.broadcast %cst_571 : f32 to vector<8x32xf32>
    %1309 = vector.extract_strided_slice %1302 {offsets = [0, 0], sizes = [8, 8], strides = [1, 1]} : vector<8x32xf32> to vector<8x8xf32>
    %1310 = vector.extract_strided_slice %1306 {offsets = [0, 0], sizes = [8, 8], strides = [1, 1]} : vector<8x32xf32> to vector<8x8xf32>
    %1311 = vector.extract_strided_slice %1307 {offsets = [0, 0], sizes = [8, 8], strides = [1, 1]} : vector<8x32xf32> to vector<8x8xf32>
    %cst_572 = arith.constant dense<0.000000e+00> : vector<8x8xf32>
    %1312 = tpu.matmul %1309, %1310, %cst_572 {dimension_numbers = #tpu.dot_dimension_numbers<[1], [1], [0], [0], [0, 0, 1, 0], [], []>} : vector<8x8xf32>, vector<8x8xf32>, vector<8x8xf32> -> vector<8x8xf32>
    %cst_573 = arith.constant 0.353553385 : f32
    %1313 = vector.broadcast %cst_573 : f32 to vector<8x8xf32>
    %1314 = arith.mulf %1312, %1313 : vector<8x8xf32>
    %1315 = arith.addf %1314, %5 : vector<8x8xf32>
    %cst_574 = arith.constant dense<0xFF800000> : vector<8xf32>
    %1316 = vector.multi_reduction <maximumf>, %1315, %cst_574 [1] : vector<8x8xf32> to vector<8xf32>
    %1317 = vector.shape_cast %1316 : vector<8xf32> to vector<8x1xf32>
    %1318 = vector.broadcast %1317 : vector<8x1xf32> to vector<8x8xf32>
    %1319 = arith.subf %1315, %1318 : vector<8x8xf32>
    %1320 = math.exp %1319 : vector<8x8xf32>
    %cst_575 = arith.constant dense<0.000000e+00> : vector<8xf32>
    %1321 = vector.multi_reduction <add>, %1320, %cst_575 [1] : vector<8x8xf32> to vector<8xf32>
    %1322 = vector.shape_cast %1321 : vector<8xf32> to vector<8x1xf32>
    %1323 = tpu.reciprocal %1322 {approx = true} : vector<8x1xf32> -> vector<8x1xf32>
    %1324 = vector.broadcast %1323 : vector<8x1xf32> to vector<8x8xf32>
    %1325 = arith.mulf %1320, %1324 : vector<8x8xf32>
    %cst_576 = arith.constant dense<0.000000e+00> : vector<8x8xf32>
    %1326 = tpu.matmul %1325, %1311, %cst_576 {dimension_numbers = #tpu.dot_dimension_numbers<[1], [0], [0], [1], [0, 0, 1, 1], [], []>} : vector<8x8xf32>, vector<8x8xf32>, vector<8x8xf32> -> vector<8x8xf32>
    %1327 = vector.extract_strided_slice %1297 {offsets = [0, 0], sizes = [8, 32], strides = [1, 1]} : vector<32x32xf32> to vector<8x32xf32>
    %cst_577 = arith.constant dense<0.000000e+00> : vector<8x32xf32>
    %1328 = tpu.matmul %1326, %1327, %cst_577 {dimension_numbers = #tpu.dot_dimension_numbers<[1], [0], [0], [1], [0, 0, 1, 1], [], []>} : vector<8x8xf32>, vector<8x32xf32>, vector<8x32xf32> -> vector<8x32xf32>
    %1329 = arith.addf %1308, %1328 : vector<8x32xf32>
    %1330 = vector.extract_strided_slice %1302 {offsets = [0, 8], sizes = [8, 8], strides = [1, 1]} : vector<8x32xf32> to vector<8x8xf32>
    %1331 = vector.extract_strided_slice %1306 {offsets = [0, 8], sizes = [8, 8], strides = [1, 1]} : vector<8x32xf32> to vector<8x8xf32>
    %1332 = vector.extract_strided_slice %1307 {offsets = [0, 8], sizes = [8, 8], strides = [1, 1]} : vector<8x32xf32> to vector<8x8xf32>
    %cst_578 = arith.constant dense<0.000000e+00> : vector<8x8xf32>
    %1333 = tpu.matmul %1330, %1331, %cst_578 {dimension_numbers = #tpu.dot_dimension_numbers<[1], [1], [0], [0], [0, 0, 1, 0], [], []>} : vector<8x8xf32>, vector<8x8xf32>, vector<8x8xf32> -> vector<8x8xf32>
    %cst_579 = arith.constant 0.353553385 : f32
    %1334 = vector.broadcast %cst_579 : f32 to vector<8x8xf32>
    %1335 = arith.mulf %1333, %1334 : vector<8x8xf32>
    %1336 = arith.addf %1335, %5 : vector<8x8xf32>
    %cst_580 = arith.constant dense<0xFF800000> : vector<8xf32>
    %1337 = vector.multi_reduction <maximumf>, %1336, %cst_580 [1] : vector<8x8xf32> to vector<8xf32>
    %1338 = vector.shape_cast %1337 : vector<8xf32> to vector<8x1xf32>
    %1339 = vector.broadcast %1338 : vector<8x1xf32> to vector<8x8xf32>
    %1340 = arith.subf %1336, %1339 : vector<8x8xf32>
    %1341 = math.exp %1340 : vector<8x8xf32>
    %cst_581 = arith.constant dense<0.000000e+00> : vector<8xf32>
    %1342 = vector.multi_reduction <add>, %1341, %cst_581 [1] : vector<8x8xf32> to vector<8xf32>
    %1343 = vector.shape_cast %1342 : vector<8xf32> to vector<8x1xf32>
    %1344 = tpu.reciprocal %1343 {approx = true} : vector<8x1xf32> -> vector<8x1xf32>
    %1345 = vector.broadcast %1344 : vector<8x1xf32> to vector<8x8xf32>
    %1346 = arith.mulf %1341, %1345 : vector<8x8xf32>
    %cst_582 = arith.constant dense<0.000000e+00> : vector<8x8xf32>
    %1347 = tpu.matmul %1346, %1332, %cst_582 {dimension_numbers = #tpu.dot_dimension_numbers<[1], [0], [0], [1], [0, 0, 1, 1], [], []>} : vector<8x8xf32>, vector<8x8xf32>, vector<8x8xf32> -> vector<8x8xf32>
    %1348 = vector.extract_strided_slice %1297 {offsets = [8, 0], sizes = [8, 32], strides = [1, 1]} : vector<32x32xf32> to vector<8x32xf32>
    %cst_583 = arith.constant dense<0.000000e+00> : vector<8x32xf32>
    %1349 = tpu.matmul %1347, %1348, %cst_583 {dimension_numbers = #tpu.dot_dimension_numbers<[1], [0], [0], [1], [0, 0, 1, 1], [], []>} : vector<8x8xf32>, vector<8x32xf32>, vector<8x32xf32> -> vector<8x32xf32>
    %1350 = arith.addf %1329, %1349 : vector<8x32xf32>
    %1351 = vector.extract_strided_slice %1302 {offsets = [0, 16], sizes = [8, 8], strides = [1, 1]} : vector<8x32xf32> to vector<8x8xf32>
    %1352 = vector.extract_strided_slice %1306 {offsets = [0, 16], sizes = [8, 8], strides = [1, 1]} : vector<8x32xf32> to vector<8x8xf32>
    %1353 = vector.extract_strided_slice %1307 {offsets = [0, 16], sizes = [8, 8], strides = [1, 1]} : vector<8x32xf32> to vector<8x8xf32>
    %cst_584 = arith.constant dense<0.000000e+00> : vector<8x8xf32>
    %1354 = tpu.matmul %1351, %1352, %cst_584 {dimension_numbers = #tpu.dot_dimension_numbers<[1], [1], [0], [0], [0, 0, 1, 0], [], []>} : vector<8x8xf32>, vector<8x8xf32>, vector<8x8xf32> -> vector<8x8xf32>
    %cst_585 = arith.constant 0.353553385 : f32
    %1355 = vector.broadcast %cst_585 : f32 to vector<8x8xf32>
    %1356 = arith.mulf %1354, %1355 : vector<8x8xf32>
    %1357 = arith.addf %1356, %5 : vector<8x8xf32>
    %cst_586 = arith.constant dense<0xFF800000> : vector<8xf32>
    %1358 = vector.multi_reduction <maximumf>, %1357, %cst_586 [1] : vector<8x8xf32> to vector<8xf32>
    %1359 = vector.shape_cast %1358 : vector<8xf32> to vector<8x1xf32>
    %1360 = vector.broadcast %1359 : vector<8x1xf32> to vector<8x8xf32>
    %1361 = arith.subf %1357, %1360 : vector<8x8xf32>
    %1362 = math.exp %1361 : vector<8x8xf32>
    %cst_587 = arith.constant dense<0.000000e+00> : vector<8xf32>
    %1363 = vector.multi_reduction <add>, %1362, %cst_587 [1] : vector<8x8xf32> to vector<8xf32>
    %1364 = vector.shape_cast %1363 : vector<8xf32> to vector<8x1xf32>
    %1365 = tpu.reciprocal %1364 {approx = true} : vector<8x1xf32> -> vector<8x1xf32>
    %1366 = vector.broadcast %1365 : vector<8x1xf32> to vector<8x8xf32>
    %1367 = arith.mulf %1362, %1366 : vector<8x8xf32>
    %cst_588 = arith.constant dense<0.000000e+00> : vector<8x8xf32>
    %1368 = tpu.matmul %1367, %1353, %cst_588 {dimension_numbers = #tpu.dot_dimension_numbers<[1], [0], [0], [1], [0, 0, 1, 1], [], []>} : vector<8x8xf32>, vector<8x8xf32>, vector<8x8xf32> -> vector<8x8xf32>
    %1369 = vector.extract_strided_slice %1297 {offsets = [16, 0], sizes = [8, 32], strides = [1, 1]} : vector<32x32xf32> to vector<8x32xf32>
    %cst_589 = arith.constant dense<0.000000e+00> : vector<8x32xf32>
    %1370 = tpu.matmul %1368, %1369, %cst_589 {dimension_numbers = #tpu.dot_dimension_numbers<[1], [0], [0], [1], [0, 0, 1, 1], [], []>} : vector<8x8xf32>, vector<8x32xf32>, vector<8x32xf32> -> vector<8x32xf32>
    %1371 = arith.addf %1350, %1370 : vector<8x32xf32>
    %1372 = vector.extract_strided_slice %1302 {offsets = [0, 24], sizes = [8, 8], strides = [1, 1]} : vector<8x32xf32> to vector<8x8xf32>
    %1373 = vector.extract_strided_slice %1306 {offsets = [0, 24], sizes = [8, 8], strides = [1, 1]} : vector<8x32xf32> to vector<8x8xf32>
    %1374 = vector.extract_strided_slice %1307 {offsets = [0, 24], sizes = [8, 8], strides = [1, 1]} : vector<8x32xf32> to vector<8x8xf32>
    %cst_590 = arith.constant dense<0.000000e+00> : vector<8x8xf32>
    %1375 = tpu.matmul %1372, %1373, %cst_590 {dimension_numbers = #tpu.dot_dimension_numbers<[1], [1], [0], [0], [0, 0, 1, 0], [], []>} : vector<8x8xf32>, vector<8x8xf32>, vector<8x8xf32> -> vector<8x8xf32>
    %cst_591 = arith.constant 0.353553385 : f32
    %1376 = vector.broadcast %cst_591 : f32 to vector<8x8xf32>
    %1377 = arith.mulf %1375, %1376 : vector<8x8xf32>
    %1378 = arith.addf %1377, %5 : vector<8x8xf32>
    %cst_592 = arith.constant dense<0xFF800000> : vector<8xf32>
    %1379 = vector.multi_reduction <maximumf>, %1378, %cst_592 [1] : vector<8x8xf32> to vector<8xf32>
    %1380 = vector.shape_cast %1379 : vector<8xf32> to vector<8x1xf32>
    %1381 = vector.broadcast %1380 : vector<8x1xf32> to vector<8x8xf32>
    %1382 = arith.subf %1378, %1381 : vector<8x8xf32>
    %1383 = math.exp %1382 : vector<8x8xf32>
    %cst_593 = arith.constant dense<0.000000e+00> : vector<8xf32>
    %1384 = vector.multi_reduction <add>, %1383, %cst_593 [1] : vector<8x8xf32> to vector<8xf32>
    %1385 = vector.shape_cast %1384 : vector<8xf32> to vector<8x1xf32>
    %1386 = tpu.reciprocal %1385 {approx = true} : vector<8x1xf32> -> vector<8x1xf32>
    %1387 = vector.broadcast %1386 : vector<8x1xf32> to vector<8x8xf32>
    %1388 = arith.mulf %1383, %1387 : vector<8x8xf32>
    %cst_594 = arith.constant dense<0.000000e+00> : vector<8x8xf32>
    %1389 = tpu.matmul %1388, %1374, %cst_594 {dimension_numbers = #tpu.dot_dimension_numbers<[1], [0], [0], [1], [0, 0, 1, 1], [], []>} : vector<8x8xf32>, vector<8x8xf32>, vector<8x8xf32> -> vector<8x8xf32>
    %1390 = vector.extract_strided_slice %1297 {offsets = [24, 0], sizes = [8, 32], strides = [1, 1]} : vector<32x32xf32> to vector<8x32xf32>
    %cst_595 = arith.constant dense<0.000000e+00> : vector<8x32xf32>
    %1391 = tpu.matmul %1389, %1390, %cst_595 {dimension_numbers = #tpu.dot_dimension_numbers<[1], [0], [0], [1], [0, 0, 1, 1], [], []>} : vector<8x8xf32>, vector<8x32xf32>, vector<8x32xf32> -> vector<8x32xf32>
    %1392 = arith.addf %1371, %1391 : vector<8x32xf32>
    %1393 = vector.broadcast %1299 : vector<1x32xf32> to vector<8x32xf32>
    %1394 = arith.addf %1392, %1393 : vector<8x32xf32>
    %1395 = arith.addf %1287, %1394 : vector<8x32xf32>
    %c2_596 = arith.constant 2 : index
    %c0_597 = arith.constant 0 : index
    %c0_598 = arith.constant 0 : index
    %1396 = vector.load %arg15[%c2_596, %c0_597, %c0_598] : memref<3x1x32xf32, #tpu.memory_space<vmem>>, vector<1x1x32xf32>
    %1397 = vector.shape_cast %1396 : vector<1x1x32xf32> to vector<1x32xf32>
    %c2_599 = arith.constant 2 : index
    %c0_600 = arith.constant 0 : index
    %c0_601 = arith.constant 0 : index
    %1398 = vector.load %arg14[%c2_599, %c0_600, %c0_601] : memref<3x1x32xf32, #tpu.memory_space<vmem>>, vector<1x1x32xf32>
    %1399 = vector.shape_cast %1398 : vector<1x1x32xf32> to vector<1x32xf32>
    %cst_602 = arith.constant dense<0.000000e+00> : vector<8xf32>
    %1400 = vector.multi_reduction <add>, %1395, %cst_602 [1] : vector<8x32xf32> to vector<8xf32>
    %1401 = vector.shape_cast %1400 : vector<8xf32> to vector<8x1xf32>
    %cst_603 = arith.constant 3.200000e+01 : f32
    %1402 = vector.broadcast %cst_603 : f32 to vector<8x1xf32>
    %1403 = arith.divf %1401, %1402 : vector<8x1xf32>
    %1404 = vector.broadcast %1403 : vector<8x1xf32> to vector<8x32xf32>
    %1405 = arith.subf %1395, %1404 : vector<8x32xf32>
    %1406 = arith.mulf %1405, %1405 : vector<8x32xf32>
    %cst_604 = arith.constant dense<0.000000e+00> : vector<8xf32>
    %1407 = vector.multi_reduction <add>, %1406, %cst_604 [1] : vector<8x32xf32> to vector<8xf32>
    %1408 = vector.shape_cast %1407 : vector<8xf32> to vector<8x1xf32>
    %cst_605 = arith.constant 3.200000e+01 : f32
    %1409 = vector.broadcast %cst_605 : f32 to vector<8x1xf32>
    %1410 = arith.divf %1408, %1409 : vector<8x1xf32>
    %1411 = vector.broadcast %1403 : vector<8x1xf32> to vector<8x32xf32>
    %1412 = arith.subf %1395, %1411 : vector<8x32xf32>
    %cst_606 = arith.constant 9.99999974E-6 : f32
    %1413 = vector.broadcast %cst_606 : f32 to vector<8x1xf32>
    %1414 = arith.addf %1410, %1413 : vector<8x1xf32>
    %1415 = math.rsqrt %1414 : vector<8x1xf32>
    %1416 = vector.broadcast %1415 : vector<8x1xf32> to vector<8x32xf32>
    %1417 = arith.mulf %1412, %1416 : vector<8x32xf32>
    %1418 = vector.broadcast %1397 : vector<1x32xf32> to vector<8x32xf32>
    %1419 = arith.mulf %1417, %1418 : vector<8x32xf32>
    %1420 = vector.broadcast %1399 : vector<1x32xf32> to vector<8x32xf32>
    %1421 = arith.addf %1419, %1420 : vector<8x32xf32>
    %c2_607 = arith.constant 2 : index
    %c0_608 = arith.constant 0 : index
    %c0_609 = arith.constant 0 : index
    %1422 = vector.load %arg24[%c2_607, %c0_608, %c0_609] : memref<3x32x64xf32, #tpu.memory_space<vmem>>, vector<1x32x64xf32>
    %1423 = vector.shape_cast %1422 : vector<1x32x64xf32> to vector<32x64xf32>
    %c2_610 = arith.constant 2 : index
    %c0_611 = arith.constant 0 : index
    %c0_612 = arith.constant 0 : index
    %1424 = vector.load %arg4[%c2_610, %c0_611, %c0_612] : memref<3x1x64xf32, #tpu.memory_space<vmem>>, vector<1x1x64xf32>
    %1425 = vector.shape_cast %1424 : vector<1x1x64xf32> to vector<1x64xf32>
    %c2_613 = arith.constant 2 : index
    %c0_614 = arith.constant 0 : index
    %c0_615 = arith.constant 0 : index
    %1426 = vector.load %arg25[%c2_613, %c0_614, %c0_615] : memref<3x64x32xf32, #tpu.memory_space<vmem>>, vector<1x64x32xf32>
    %1427 = vector.shape_cast %1426 : vector<1x64x32xf32> to vector<64x32xf32>
    %c2_616 = arith.constant 2 : index
    %c0_617 = arith.constant 0 : index
    %c0_618 = arith.constant 0 : index
    %1428 = vector.load %arg5[%c2_616, %c0_617, %c0_618] : memref<3x1x32xf32, #tpu.memory_space<vmem>>, vector<1x1x32xf32>
    %1429 = vector.shape_cast %1428 : vector<1x1x32xf32> to vector<1x32xf32>
    %cst_619 = arith.constant dense<0.000000e+00> : vector<8x64xf32>
    %1430 = tpu.matmul %1421, %1423, %cst_619 {dimension_numbers = #tpu.dot_dimension_numbers<[1], [0], [0], [1], [0, 0, 1, 1], [], []>} : vector<8x32xf32>, vector<32x64xf32>, vector<8x64xf32> -> vector<8x64xf32>
    %1431 = vector.broadcast %1425 : vector<1x64xf32> to vector<8x64xf32>
    %1432 = arith.addf %1430, %1431 : vector<8x64xf32>
    %cst_620 = arith.constant 0.000000e+00 : f32
    %1433 = vector.broadcast %cst_620 : f32 to vector<8x64xf32>
    %1434 = arith.maximumf %1432, %1433 : vector<8x64xf32>
    %cst_621 = arith.constant dense<0.000000e+00> : vector<8x32xf32>
    %1435 = tpu.matmul %1434, %1427, %cst_621 {dimension_numbers = #tpu.dot_dimension_numbers<[1], [0], [0], [1], [0, 0, 1, 1], [], []>} : vector<8x64xf32>, vector<64x32xf32>, vector<8x32xf32> -> vector<8x32xf32>
    %1436 = vector.broadcast %1429 : vector<1x32xf32> to vector<8x32xf32>
    %1437 = arith.addf %1435, %1436 : vector<8x32xf32>
    %1438 = arith.addf %1421, %1437 : vector<8x32xf32>
    %c2_622 = arith.constant 2 : index
    %c0_623 = arith.constant 0 : index
    %c0_624 = arith.constant 0 : index
    %1439 = vector.load %arg17[%c2_622, %c0_623, %c0_624] : memref<3x1x32xf32, #tpu.memory_space<vmem>>, vector<1x1x32xf32>
    %1440 = vector.shape_cast %1439 : vector<1x1x32xf32> to vector<1x32xf32>
    %c2_625 = arith.constant 2 : index
    %c0_626 = arith.constant 0 : index
    %c0_627 = arith.constant 0 : index
    %1441 = vector.load %arg16[%c2_625, %c0_626, %c0_627] : memref<3x1x32xf32, #tpu.memory_space<vmem>>, vector<1x1x32xf32>
    %1442 = vector.shape_cast %1441 : vector<1x1x32xf32> to vector<1x32xf32>
    %cst_628 = arith.constant dense<0.000000e+00> : vector<8xf32>
    %1443 = vector.multi_reduction <add>, %1438, %cst_628 [1] : vector<8x32xf32> to vector<8xf32>
    %1444 = vector.shape_cast %1443 : vector<8xf32> to vector<8x1xf32>
    %cst_629 = arith.constant 3.200000e+01 : f32
    %1445 = vector.broadcast %cst_629 : f32 to vector<8x1xf32>
    %1446 = arith.divf %1444, %1445 : vector<8x1xf32>
    %1447 = vector.broadcast %1446 : vector<8x1xf32> to vector<8x32xf32>
    %1448 = arith.subf %1438, %1447 : vector<8x32xf32>
    %1449 = arith.mulf %1448, %1448 : vector<8x32xf32>
    %cst_630 = arith.constant dense<0.000000e+00> : vector<8xf32>
    %1450 = vector.multi_reduction <add>, %1449, %cst_630 [1] : vector<8x32xf32> to vector<8xf32>
    %1451 = vector.shape_cast %1450 : vector<8xf32> to vector<8x1xf32>
    %cst_631 = arith.constant 3.200000e+01 : f32
    %1452 = vector.broadcast %cst_631 : f32 to vector<8x1xf32>
    %1453 = arith.divf %1451, %1452 : vector<8x1xf32>
    %1454 = vector.broadcast %1446 : vector<8x1xf32> to vector<8x32xf32>
    %1455 = arith.subf %1438, %1454 : vector<8x32xf32>
    %cst_632 = arith.constant 9.99999974E-6 : f32
    %1456 = vector.broadcast %cst_632 : f32 to vector<8x1xf32>
    %1457 = arith.addf %1453, %1456 : vector<8x1xf32>
    %1458 = math.rsqrt %1457 : vector<8x1xf32>
    %1459 = vector.broadcast %1458 : vector<8x1xf32> to vector<8x32xf32>
    %1460 = arith.mulf %1455, %1459 : vector<8x32xf32>
    %1461 = vector.broadcast %1440 : vector<1x32xf32> to vector<8x32xf32>
    %1462 = arith.mulf %1460, %1461 : vector<8x32xf32>
    %1463 = vector.broadcast %1442 : vector<1x32xf32> to vector<8x32xf32>
    %1464 = arith.addf %1462, %1463 : vector<8x32xf32>
    %c0_633 = arith.constant 0 : index
    %c0_634 = arith.constant 0 : index
    %1465 = vector.load %arg19[%c0_633, %c0_634] : memref<1x32xf32, #tpu.memory_space<vmem>>, vector<1x32xf32>
    %c0_635 = arith.constant 0 : index
    %c0_636 = arith.constant 0 : index
    %1466 = vector.load %arg18[%c0_635, %c0_636] : memref<1x32xf32, #tpu.memory_space<vmem>>, vector<1x32xf32>
    %cst_637 = arith.constant dense<0.000000e+00> : vector<8xf32>
    %1467 = vector.multi_reduction <add>, %1464, %cst_637 [1] : vector<8x32xf32> to vector<8xf32>
    %1468 = vector.shape_cast %1467 : vector<8xf32> to vector<8x1xf32>
    %cst_638 = arith.constant 3.200000e+01 : f32
    %1469 = vector.broadcast %cst_638 : f32 to vector<8x1xf32>
    %1470 = arith.divf %1468, %1469 : vector<8x1xf32>
    %1471 = vector.broadcast %1470 : vector<8x1xf32> to vector<8x32xf32>
    %1472 = arith.subf %1464, %1471 : vector<8x32xf32>
    %1473 = arith.mulf %1472, %1472 : vector<8x32xf32>
    %cst_639 = arith.constant dense<0.000000e+00> : vector<8xf32>
    %1474 = vector.multi_reduction <add>, %1473, %cst_639 [1] : vector<8x32xf32> to vector<8xf32>
    %1475 = vector.shape_cast %1474 : vector<8xf32> to vector<8x1xf32>
    %cst_640 = arith.constant 3.200000e+01 : f32
    %1476 = vector.broadcast %cst_640 : f32 to vector<8x1xf32>
    %1477 = arith.divf %1475, %1476 : vector<8x1xf32>
    %1478 = vector.broadcast %1470 : vector<8x1xf32> to vector<8x32xf32>
    %1479 = arith.subf %1464, %1478 : vector<8x32xf32>
    %cst_641 = arith.constant 9.99999974E-6 : f32
    %1480 = vector.broadcast %cst_641 : f32 to vector<8x1xf32>
    %1481 = arith.addf %1477, %1480 : vector<8x1xf32>
    %1482 = math.rsqrt %1481 : vector<8x1xf32>
    %1483 = vector.broadcast %1482 : vector<8x1xf32> to vector<8x32xf32>
    %1484 = arith.mulf %1479, %1483 : vector<8x32xf32>
    %1485 = vector.broadcast %1465 : vector<1x32xf32> to vector<8x32xf32>
    %1486 = arith.mulf %1484, %1485 : vector<8x32xf32>
    %1487 = vector.broadcast %1466 : vector<1x32xf32> to vector<8x32xf32>
    %1488 = arith.addf %1486, %1487 : vector<8x32xf32>
    %c0_642 = arith.constant 0 : index
    %c0_643 = arith.constant 0 : index
    %1489 = vector.load %arg41[%c0_642, %c0_643] : memref<32x4xf32, #tpu.memory_space<vmem>>, vector<32x4xf32>
    %cst_644 = arith.constant dense<0.000000e+00> : vector<8x4xf32>
    %1490 = tpu.matmul %1488, %1489, %cst_644 {dimension_numbers = #tpu.dot_dimension_numbers<[1], [0], [0], [1], [0, 0, 1, 1], [], []>} : vector<8x32xf32>, vector<32x4xf32>, vector<8x4xf32> -> vector<8x4xf32>
    %c0_645 = arith.constant 0 : index
    %c0_646 = arith.constant 0 : index
    %1491 = vector.load %arg3[%c0_645, %c0_646] : memref<1x4xf32, #tpu.memory_space<vmem>>, vector<1x4xf32>
    %1492 = vector.broadcast %1491 : vector<1x4xf32> to vector<8x4xf32>
    %1493 = arith.addf %1490, %1492 : vector<8x4xf32>
    %c0_647 = arith.constant 0 : index
    %c0_648 = arith.constant 0 : index
    %c0_649 = arith.constant 0 : index
    %1494 = vector.load %arg42[%c0_647, %c0_648, %c0_649] : memref<1x8x4xf32, #tpu.memory_space<vmem>>, vector<1x8x4xf32>
    %1495 = vector.shape_cast %1494 : vector<1x8x4xf32> to vector<8x4xf32>
    %1496 = vector.shape_cast %1493 : vector<8x4xf32> to vector<1x8x4xf32>
    tpu.vector_store %arg42[%c0_647, %c0_648, %c0_649], %1496 {strides = array<i32>} : memref<1x8x4xf32, #tpu.memory_space<vmem>>, vector<1x8x4xf32>,
    return
  }
  func.func @transform_0(%arg0: i32) -> (i32, i32, i32) {
    %c0_i32 = arith.constant 0 : i32
    %c0_i32_0 = arith.constant 0 : i32
    %c0_i32_1 = arith.constant 0 : i32
    return %arg0, %c0_i32, %c0_i32_0 : i32, i32, i32
  }
  func.func @transform_1(%arg0: i32) -> (i32, i32) {
    %c0_i32 = arith.constant 0 : i32
    %c0_i32_0 = arith.constant 0 : i32
    %c0_i32_1 = arith.constant 0 : i32
    return %c0_i32, %c0_i32_0 : i32, i32
  }
  func.func @transform_2(%arg0: i32) -> (i32, i32) {
    %c0_i32 = arith.constant 0 : i32
    %c0_i32_0 = arith.constant 0 : i32
    %c0_i32_1 = arith.constant 0 : i32
    return %c0_i32, %c0_i32_0 : i32, i32
  }
  func.func @transform_3(%arg0: i32) -> (i32, i32, i32) {
    %c0_i32 = arith.constant 0 : i32
    %c0_i32_0 = arith.constant 0 : i32
    %c0_i32_1 = arith.constant 0 : i32
    %c0_i32_2 = arith.constant 0 : i32
    return %c0_i32, %c0_i32_0, %c0_i32_1 : i32, i32, i32
  }
  func.func @transform_4(%arg0: i32) -> (i32, i32, i32) {
    %c0_i32 = arith.constant 0 : i32
    %c0_i32_0 = arith.constant 0 : i32
    %c0_i32_1 = arith.constant 0 : i32
    %c0_i32_2 = arith.constant 0 : i32
    return %c0_i32, %c0_i32_0, %c0_i32_1 : i32, i32, i32
  }
  func.func @transform_5(%arg0: i32) -> (i32, i32, i32) {
    %c0_i32 = arith.constant 0 : i32
    %c0_i32_0 = arith.constant 0 : i32
    %c0_i32_1 = arith.constant 0 : i32
    %c0_i32_2 = arith.constant 0 : i32
    return %c0_i32, %c0_i32_0, %c0_i32_1 : i32, i32, i32
  }
  func.func @transform_6(%arg0: i32) -> (i32, i32, i32) {
    %c0_i32 = arith.constant 0 : i32
    %c0_i32_0 = arith.constant 0 : i32
    %c0_i32_1 = arith.constant 0 : i32
    %c0_i32_2 = arith.constant 0 : i32
    return %c0_i32, %c0_i32_0, %c0_i32_1 : i32, i32, i32
  }
  func.func @transform_7(%arg0: i32) -> (i32, i32, i32) {
    %c0_i32 = arith.constant 0 : i32
    %c0_i32_0 = arith.constant 0 : i32
    %c0_i32_1 = arith.constant 0 : i32
    %c0_i32_2 = arith.constant 0 : i32
    return %c0_i32, %c0_i32_0, %c0_i32_1 : i32, i32, i32
  }
  func.func @transform_8(%arg0: i32) -> (i32, i32, i32) {
    %c0_i32 = arith.constant 0 : i32
    %c0_i32_0 = arith.constant 0 : i32
    %c0_i32_1 = arith.constant 0 : i32
    %c0_i32_2 = arith.constant 0 : i32
    return %c0_i32, %c0_i32_0, %c0_i32_1 : i32, i32, i32
  }
  func.func @transform_9(%arg0: i32) -> (i32, i32, i32) {
    %c0_i32 = arith.constant 0 : i32
    %c0_i32_0 = arith.constant 0 : i32
    %c0_i32_1 = arith.constant 0 : i32
    %c0_i32_2 = arith.constant 0 : i32
    return %c0_i32, %c0_i32_0, %c0_i32_1 : i32, i32, i32
  }
  func.func @transform_10(%arg0: i32) -> (i32, i32, i32) {
    %c0_i32 = arith.constant 0 : i32
    %c0_i32_0 = arith.constant 0 : i32
    %c0_i32_1 = arith.constant 0 : i32
    %c0_i32_2 = arith.constant 0 : i32
    return %c0_i32, %c0_i32_0, %c0_i32_1 : i32, i32, i32
  }
  func.func @transform_11(%arg0: i32) -> (i32, i32, i32) {
    %c0_i32 = arith.constant 0 : i32
    %c0_i32_0 = arith.constant 0 : i32
    %c0_i32_1 = arith.constant 0 : i32
    %c0_i32_2 = arith.constant 0 : i32
    return %c0_i32, %c0_i32_0, %c0_i32_1 : i32, i32, i32
  }
  func.func @transform_12(%arg0: i32) -> (i32, i32, i32) {
    %c0_i32 = arith.constant 0 : i32
    %c0_i32_0 = arith.constant 0 : i32
    %c0_i32_1 = arith.constant 0 : i32
    %c0_i32_2 = arith.constant 0 : i32
    return %c0_i32, %c0_i32_0, %c0_i32_1 : i32, i32, i32
  }
  func.func @transform_13(%arg0: i32) -> (i32, i32, i32) {
    %c0_i32 = arith.constant 0 : i32
    %c0_i32_0 = arith.constant 0 : i32
    %c0_i32_1 = arith.constant 0 : i32
    %c0_i32_2 = arith.constant 0 : i32
    return %c0_i32, %c0_i32_0, %c0_i32_1 : i32, i32, i32
  }
  func.func @transform_14(%arg0: i32) -> (i32, i32, i32) {
    %c0_i32 = arith.constant 0 : i32
    %c0_i32_0 = arith.constant 0 : i32
    %c0_i32_1 = arith.constant 0 : i32
    %c0_i32_2 = arith.constant 0 : i32
    return %c0_i32, %c0_i32_0, %c0_i32_1 : i32, i32, i32
  }
  func.func @transform_15(%arg0: i32) -> (i32, i32, i32) {
    %c0_i32 = arith.constant 0 : i32
    %c0_i32_0 = arith.constant 0 : i32
    %c0_i32_1 = arith.constant 0 : i32
    %c0_i32_2 = arith.constant 0 : i32
    return %c0_i32, %c0_i32_0, %c0_i32_1 : i32, i32, i32
  }
  func.func @transform_16(%arg0: i32) -> (i32, i32, i32) {
    %c0_i32 = arith.constant 0 : i32
    %c0_i32_0 = arith.constant 0 : i32
    %c0_i32_1 = arith.constant 0 : i32
    %c0_i32_2 = arith.constant 0 : i32
    return %c0_i32, %c0_i32_0, %c0_i32_1 : i32, i32, i32
  }
  func.func @transform_17(%arg0: i32) -> (i32, i32) {
    %c0_i32 = arith.constant 0 : i32
    %c0_i32_0 = arith.constant 0 : i32
    %c0_i32_1 = arith.constant 0 : i32
    return %c0_i32, %c0_i32_0 : i32, i32
  }
  func.func @transform_18(%arg0: i32) -> (i32, i32) {
    %c0_i32 = arith.constant 0 : i32
    %c0_i32_0 = arith.constant 0 : i32
    %c0_i32_1 = arith.constant 0 : i32
    return %c0_i32, %c0_i32_0 : i32, i32
  }
  func.func @transform_19(%arg0: i32) -> (i32, i32, i32) {
    %c0_i32 = arith.constant 0 : i32
    %c0_i32_0 = arith.constant 0 : i32
    %c0_i32_1 = arith.constant 0 : i32
    %c0_i32_2 = arith.constant 0 : i32
    return %c0_i32, %c0_i32_0, %c0_i32_1 : i32, i32, i32
  }
  func.func @transform_20(%arg0: i32) -> (i32, i32, i32) {
    %c0_i32 = arith.constant 0 : i32
    %c0_i32_0 = arith.constant 0 : i32
    %c0_i32_1 = arith.constant 0 : i32
    %c0_i32_2 = arith.constant 0 : i32
    return %c0_i32, %c0_i32_0, %c0_i32_1 : i32, i32, i32
  }
  func.func @transform_21(%arg0: i32) -> (i32, i32, i32) {
    %c0_i32 = arith.constant 0 : i32
    %c0_i32_0 = arith.constant 0 : i32
    %c0_i32_1 = arith.constant 0 : i32
    %c0_i32_2 = arith.constant 0 : i32
    return %c0_i32, %c0_i32_0, %c0_i32_1 : i32, i32, i32
  }
  func.func @transform_22(%arg0: i32) -> (i32, i32, i32) {
    %c0_i32 = arith.constant 0 : i32
    %c0_i32_0 = arith.constant 0 : i32
    %c0_i32_1 = arith.constant 0 : i32
    %c0_i32_2 = arith.constant 0 : i32
    return %c0_i32, %c0_i32_0, %c0_i32_1 : i32, i32, i32
  }
  func.func @transform_23(%arg0: i32) -> (i32, i32, i32) {
    %c0_i32 = arith.constant 0 : i32
    %c0_i32_0 = arith.constant 0 : i32
    %c0_i32_1 = arith.constant 0 : i32
    %c0_i32_2 = arith.constant 0 : i32
    return %c0_i32, %c0_i32_0, %c0_i32_1 : i32, i32, i32
  }
  func.func @transform_24(%arg0: i32) -> (i32, i32, i32) {
    %c0_i32 = arith.constant 0 : i32
    %c0_i32_0 = arith.constant 0 : i32
    %c0_i32_1 = arith.constant 0 : i32
    %c0_i32_2 = arith.constant 0 : i32
    return %c0_i32, %c0_i32_0, %c0_i32_1 : i32, i32, i32
  }
  func.func @transform_25(%arg0: i32) -> (i32, i32, i32) {
    %c0_i32 = arith.constant 0 : i32
    %c0_i32_0 = arith.constant 0 : i32
    %c0_i32_1 = arith.constant 0 : i32
    %c0_i32_2 = arith.constant 0 : i32
    return %c0_i32, %c0_i32_0, %c0_i32_1 : i32, i32, i32
  }
  func.func @transform_26(%arg0: i32) -> (i32, i32, i32) {
    %c0_i32 = arith.constant 0 : i32
    %c0_i32_0 = arith.constant 0 : i32
    %c0_i32_1 = arith.constant 0 : i32
    %c0_i32_2 = arith.constant 0 : i32
    return %c0_i32, %c0_i32_0, %c0_i32_1 : i32, i32, i32
  }
  func.func @transform_27(%arg0: i32) -> (i32, i32, i32) {
    %c0_i32 = arith.constant 0 : i32
    %c0_i32_0 = arith.constant 0 : i32
    %c0_i32_1 = arith.constant 0 : i32
    %c0_i32_2 = arith.constant 0 : i32
    return %c0_i32, %c0_i32_0, %c0_i32_1 : i32, i32, i32
  }
  func.func @transform_28(%arg0: i32) -> (i32, i32, i32) {
    %c0_i32 = arith.constant 0 : i32
    %c0_i32_0 = arith.constant 0 : i32
    %c0_i32_1 = arith.constant 0 : i32
    %c0_i32_2 = arith.constant 0 : i32
    return %c0_i32, %c0_i32_0, %c0_i32_1 : i32, i32, i32
  }
  func.func @transform_29(%arg0: i32) -> (i32, i32, i32) {
    %c0_i32 = arith.constant 0 : i32
    %c0_i32_0 = arith.constant 0 : i32
    %c0_i32_1 = arith.constant 0 : i32
    %c0_i32_2 = arith.constant 0 : i32
    return %c0_i32, %c0_i32_0, %c0_i32_1 : i32, i32, i32
  }
  func.func @transform_30(%arg0: i32) -> (i32, i32, i32) {
    %c0_i32 = arith.constant 0 : i32
    %c0_i32_0 = arith.constant 0 : i32
    %c0_i32_1 = arith.constant 0 : i32
    %c0_i32_2 = arith.constant 0 : i32
    return %c0_i32, %c0_i32_0, %c0_i32_1 : i32, i32, i32
  }
  func.func @transform_31(%arg0: i32) -> (i32, i32, i32) {
    %c0_i32 = arith.constant 0 : i32
    %c0_i32_0 = arith.constant 0 : i32
    %c0_i32_1 = arith.constant 0 : i32
    %c0_i32_2 = arith.constant 0 : i32
    return %c0_i32, %c0_i32_0, %c0_i32_1 : i32, i32, i32
  }
  func.func @transform_32(%arg0: i32) -> (i32, i32, i32) {
    %c0_i32 = arith.constant 0 : i32
    %c0_i32_0 = arith.constant 0 : i32
    %c0_i32_1 = arith.constant 0 : i32
    %c0_i32_2 = arith.constant 0 : i32
    return %c0_i32, %c0_i32_0, %c0_i32_1 : i32, i32, i32
  }
  func.func @transform_33(%arg0: i32) -> (i32, i32) {
    %c0_i32 = arith.constant 0 : i32
    %c0_i32_0 = arith.constant 0 : i32
    %c0_i32_1 = arith.constant 0 : i32
    return %c0_i32, %c0_i32_0 : i32, i32
  }
  func.func @transform_34(%arg0: i32) -> (i32, i32) {
    %c0_i32 = arith.constant 0 : i32
    %c0_i32_0 = arith.constant 0 : i32
    %c0_i32_1 = arith.constant 0 : i32
    return %c0_i32, %c0_i32_0 : i32, i32
  }
  func.func @transform_35(%arg0: i32) -> (i32, i32, i32) {
    %c0_i32 = arith.constant 0 : i32
    %c0_i32_0 = arith.constant 0 : i32
    %c0_i32_1 = arith.constant 0 : i32
    %c0_i32_2 = arith.constant 0 : i32
    return %c0_i32, %c0_i32_0, %c0_i32_1 : i32, i32, i32
  }
  func.func @transform_36(%arg0: i32) -> (i32, i32, i32) {
    %c0_i32 = arith.constant 0 : i32
    %c0_i32_0 = arith.constant 0 : i32
    %c0_i32_1 = arith.constant 0 : i32
    %c0_i32_2 = arith.constant 0 : i32
    return %c0_i32, %c0_i32_0, %c0_i32_1 : i32, i32, i32
  }
  func.func @transform_37(%arg0: i32) -> (i32, i32, i32) {
    %c0_i32 = arith.constant 0 : i32
    %c0_i32_0 = arith.constant 0 : i32
    %c0_i32_1 = arith.constant 0 : i32
    %c0_i32_2 = arith.constant 0 : i32
    return %c0_i32, %c0_i32_0, %c0_i32_1 : i32, i32, i32
  }
  func.func @transform_38(%arg0: i32) -> (i32, i32, i32) {
    %c0_i32 = arith.constant 0 : i32
    %c0_i32_0 = arith.constant 0 : i32
    %c0_i32_1 = arith.constant 0 : i32
    %c0_i32_2 = arith.constant 0 : i32
    return %c0_i32, %c0_i32_0, %c0_i32_1 : i32, i32, i32
  }
  func.func @transform_39(%arg0: i32) -> (i32, i32) {
    %c0_i32 = arith.constant 0 : i32
    %c0_i32_0 = arith.constant 0 : i32
    %c0_i32_1 = arith.constant 0 : i32
    return %c0_i32, %c0_i32_0 : i32, i32
  }
  func.func @transform_40(%arg0: i32) -> (i32, i32) {
    %c0_i32 = arith.constant 0 : i32
    %c0_i32_0 = arith.constant 0 : i32
    %c0_i32_1 = arith.constant 0 : i32
    return %c0_i32, %c0_i32_0 : i32, i32
  }
  func.func @transform_41(%arg0: i32) -> (i32, i32, i32) {
    %c0_i32 = arith.constant 0 : i32
    %c0_i32_0 = arith.constant 0 : i32
    %c0_i32_1 = arith.constant 0 : i32
    return %arg0, %c0_i32, %c0_i32_0 : i32, i32, i32
  }
}

</mosaic_0001>

<bundles_post_ra>
// kernel: transformer_forecast_forward.1
= control target key start
LH: loop header
LB: loop body
LE: loop exit
PB: predicated region body
PF: predicated region fallthrough
CT: control target
= control target key end

     0   :  { %s7301_s6 = smov 1   ;;  %s7302_s10 = smov 2   ;;  %s8541_s0 = inlined_call_operand.smem [shape: u32[42], index: -1, kind: input, shape index: {}] }
   0x1   :  { %s7373_s5 = sld [smem:[%s8541_s0]]   ;;  %s7303_s14 = smov 3  }
   0x2   :  { %s7378_s9 = sld [smem:[%s8541_s0 + %s7301_s6]]   ;;  %s7304_s18 = smov 4  }
   0x3   :  { %s7383_s13 = sld [smem:[%s8541_s0 + %s7302_s10]]   ;;  %s7305_s22 = smov 5  }
   0x4   :  { %s7388_s17 = sld [smem:[%s8541_s0 + %s7303_s14]]   ;;  %s7306_s26 = smov 6  }
   0x5   :  { %s7393_s21 = sld [smem:[%s8541_s0 + %s7304_s18]]   ;;  %s7307_s30 = smov 7  }
   0x6   :  { %s7398_s25 = sld [smem:[%s8541_s0 + %s7305_s22]]   ;;  %s7308_s4 = smov 8  }
   0x7   :  { %8606 = sst [smem:[#allocation20_spill]] %s7373_s5  ;;  %s7309_s10 = smov 9  }
   0x8   :  { %8607 = sst [smem:[#allocation21_spill]] %s7378_s9  ;;  %s7310_s15 = smov 10  }
   0x9   :  { %8608 = sst [smem:[#allocation22_spill]] %s7383_s13  ;;  %s7311_s20 = smov 11  }
   0xa   :  { %8609 = sst [smem:[#allocation23_spill]] %s7388_s17  ;;  %s7313_s1 = smov 13  }
   0xb   :  { %8610 = sst [smem:[#allocation24_spill]] %s7393_s21  ;;  %s7314_s7 = smov 14  }
   0xc   :  { %8611 = sst [smem:[#allocation25_spill]] %s7398_s25  ;;  %s7316_s22 = smov 16  }
   0xd   :  { %s7403_s29 = sld [smem:[%s8541_s0 + %s7306_s26]]   ;;  %s7312_s26 = smov 12  }
   0xe   :  { %s7408_s3 = sld [smem:[%s8541_s0 + %s7307_s30]]   ;;  %s7317_s28 = smov 17  }
   0xf   :  { %s7413_s8 = sld [smem:[%s8541_s0 + %s7308_s4]]  }
  0x10   :  { %s7418_s14 = sld [smem:[%s8541_s0 + %s7309_s10]]  }
  0x11   :  { %s7423_s19 = sld [smem:[%s8541_s0 + %s7310_s15]]   ;;  %s7315_s15 = smov 15  }
  0x12   :  { %s7428_s24 = sld [smem:[%s8541_s0 + %s7311_s20]]  }
  0x13   :  { %8612 = sst [smem:[#allocation26_spill]] %s7403_s29 }
  0x14   :  { %8613 = sst [smem:[#allocation27_spill]] %s7408_s3 }
  0x15   :  { %8614 = sst [smem:[#allocation28_spill]] %s7413_s8 }
  0x16   :  { %8615 = sst [smem:[#allocation29_spill]] %s7418_s14 }
  0x17   :  { %8616 = sst [smem:[#allocation30_spill]] %s7423_s19 }
  0x18   :  { %8617 = sst [smem:[#allocation31_spill]] %s7428_s24 }
  0x19   :  { %s7433_s30 = sld [smem:[%s8541_s0 + %s7312_s26]]  }
  0x1a   :  { %s7438_s6 = sld [smem:[%s8541_s0 + %s7313_s1]]  }
  0x1b   :  { %s7443_s12 = sld [smem:[%s8541_s0 + %s7314_s7]]   ;;  %s7318_s7 = smov 18  }
  0x1c   :  { %s7448_s20 = sld [smem:[%s8541_s0 + %s7315_s15]]   ;;  %s7319_s15 = smov 19  }
  0x1d   :  { %s7453_s27 = sld [smem:[%s8541_s0 + %s7316_s22]]   ;;  %s7320_s22 = smov 20  }
  0x1e   :  { %s7458_s4 = sld [smem:[%s8541_s0 + %s7317_s28]]   ;;  %s7321_s28 = smov 21  }
  0x1f   :  { %8618 = sst [smem:[#allocation32_spill]] %s7433_s30 }
  0x20   :  { %8619 = sst [smem:[#allocation33_spill]] %s7438_s6 }
  0x21   :  { %8620 = sst [smem:[#allocation34_spill]] %s7443_s12 }
  0x22   :  { %8621 = sst [smem:[#allocation35_spill]] %s7448_s20 }
  0x23   :  { %8622 = sst [smem:[#allocation36_spill]] %s7453_s27 }
  0x24   :  { %8623 = sst [smem:[#allocation37_spill]] %s7458_s4 }
  0x25   :  { %s7463_s21 = sld [smem:[%s8541_s0 + %s7318_s7]]   ;;  %s7322_s7 = smov 22  }
  0x26   :  { %s7468_s20 = sld [smem:[%s8541_s0 + %s7319_s15]]   ;;  %s7323_s15 = smov 23  }
  0x27   :  { %s7473_s27 = sld [smem:[%s8541_s0 + %s7320_s22]]   ;;  %s7324_s22 = smov 24  }
  0x28   :  { %s7478_s17 = sld [smem:[%s8541_s0 + %s7321_s28]]   ;;  %s7325_s28 = smov 25  }
  0x29   :  { %s7483_s6 = sld [smem:[%s8541_s0 + %s7322_s7]]   ;;  %s7326_s7 = smov 26  }
  0x2a   :  { %s7488_s12 = sld [smem:[%s8541_s0 + %s7323_s15]]   ;;  %s7327_s15 = smov 27  }
  0x2b   :  { %8624 = sst [smem:[#allocation38_spill]] %s7463_s21 }
  0x2c   :  { %8625 = sst [smem:[#allocation39_spill]] %s7468_s20 }
  0x2d   :  { %8626 = sst [smem:[#allocation40_spill]] %s7473_s27 }
  0x2e   :  { %8627 = sst [smem:[#allocation41_spill]] %s7478_s17 }
  0x2f   :  { %8628 = sst [smem:[#allocation42_spill]] %s7483_s6 }
  0x30   :  { %8629 = sst [smem:[#allocation43_spill]] %s7488_s12 }
  0x31   :  { %s7493_s29 = sld [smem:[%s8541_s0 + %s7324_s22]]   ;;  %s7328_s22 = smov 28  }
  0x32   :  { %s7498_s14 = sld [smem:[%s8541_s0 + %s7325_s28]]   ;;  %s7329_s28 = smov 29  }
  0x33   :  { %s7503_s3 = sld [smem:[%s8541_s0 + %s7326_s7]]   ;;  %s7330_s7 = smov 30  }
  0x34   :  { %s7508_s25 = sld [smem:[%s8541_s0 + %s7327_s15]]   ;;  %s7331_s15 = smov 31  }
  0x35   :  { %s7518_s24 = sld [smem:[%s8541_s0 + %s7329_s28]]   ;;  %s7333_s28 = smov 33  }
  0x36   :  { %s7523_s30 = sld [smem:[%s8541_s0 + %s7330_s7]]   ;;  %s7334_s7 = smov 34  }
  0x37   :  { %8630 = sst [smem:[#allocation44_spill]] %s7493_s29 }
  0x38   :  { %8631 = sst [smem:[#allocation45_spill]] %s7498_s14 }
  0x39   :  { %8632 = sst [smem:[#allocation46_spill]] %s7503_s3 }
  0x3a   :  { %8633 = sst [smem:[#allocation47_spill]] %s7508_s25 }
  0x3b   :  { %s7513_s29 = sld [smem:[%s8541_s0 + %s7328_s22]]   ;;  %s7332_s22 = smov 32  }
  0x3c   :  { %8635 = sst [smem:[#allocation49_spill]] %s7518_s24 }
  0x3d   :  { %8636 = sst [smem:[#allocation50_spill]] %s7523_s30 }
  0x3e   :  { %s7528_s19 = sld [smem:[%s8541_s0 + %s7331_s15]]   ;;  %s7335_s15 = smov 35  }
  0x3f   :  { %s7533_s8 = sld [smem:[%s8541_s0 + %s7332_s22]]   ;;  %s7336_s22 = smov 36  }
  0x40   :  { %s7538_s20 = sld [smem:[%s8541_s0 + %s7333_s28]]   ;;  %s7337_s28 = smov 37  }
  0x41   :  { %8634 = sst [smem:[#allocation48_spill]] %s7513_s29 }
  0x42   :  { %s7543_s17 = sld [smem:[%s8541_s0 + %s7334_s7]]   ;;  %s7338_s7 = smov 38  }
  0x43   :  { %s7548_s27 = sld [smem:[%s8541_s0 + %s7335_s15]]   ;;  %s7339_s15 = smov 39  }
  0x44   :  { %8637 = sst [smem:[#allocation51_spill]] %s7528_s19 }
  0x45   :  { %8638 = sst [smem:[#allocation52_spill]] %s7533_s8 }
  0x46   :  { %8639 = sst [smem:[#allocation53_spill]] %s7538_s20 }
  0x47   :  { %s7553_s6 = sld [smem:[%s8541_s0 + %s7336_s22]]   ;;  %s7340_s22 = smov 40  }
  0x48   :  { %8640 = sst [smem:[#allocation54_spill]] %s7543_s17 }
  0x49   :  { %8641 = sst [smem:[#allocation55_spill]] %s7548_s27 }
  0x4a   :  { %s7558_s20 = sld [smem:[%s8541_s0 + %s7337_s28]]   ;;  %s7341_s28 = smov 41  }
  0x4b   :  { %s7563_s17 = sld [smem:[%s8541_s0 + %s7338_s7]]  }
  0x4c   :  { %s7568_s19 = sld [smem:[%s8541_s0 + %s7339_s15]]  }
  0x4d   :  { %8642 = sst [smem:[#allocation56_spill]] %s7553_s6 }
  0x4e   :  { %s7573_s8 = sld [smem:[%s8541_s0 + %s7340_s22]]  }
  0x4f   :  { %s7578_s3 = sld [smem:[%s8541_s0 + %s7341_s28]]  }
  0x50   :  { %8643 = sst [smem:[#allocation57_spill]] %s7558_s20 }
  0x51   :  { %8644 = sst [smem:[#allocation58_spill]] %s7563_s17 }
  0x52   :  { %8645 = sst [smem:[#allocation59_spill]] %s7568_s19 }
  0x55   :  { %8646 = sst [smem:[#allocation60_spill]] %s7578_s3 }
  0x56   :  { %88 = vsyncpa [#allocation3], 0 }
  0x57   :  { %89 = vsyncpa [#allocation5], 0 }
  0x58   :  { %90 = vsyncpa [#allocation8], 0 }
  0x59   :  { %91 = vsyncpa [#allocation11], 0 }
  0x5a   :  { %92 = vsyncpa [#allocation14], 0  ;;  %s7580_s7 = smov 0  }
  0x5b LB: > { %s8647_s30 = sld [smem:[#allocation50_spill]]  ;;  %s7589_s0 = sadd.s32 4294967295, %s7299_s7   ;;  %s7299_s7 = sphi %s7580_s7, %s98_s7  }
  0x5c   : > { %s8648_s29 = sld [smem:[#allocation48_spill]]  ;;  %p6331_p0 = scmp.ge.s32.totalorder %s7299_s7, 1 }
  0x5d   : > { %s8649_s27 = sld [smem:[#allocation55_spill]]  ;;  %p995_p1 = scmp.lt.s32.totalorder %s7299_s7, 3 }
  0x5e   : > { %s8650_s25 = sld [smem:[#allocation47_spill]]  ;;  %p6696_p2 = scmp.eq.s32.totalorder %s7589_s0, 0 }
  0x5f   : > { %s8651_s24 = sld [smem:[#allocation49_spill]]  ;;  %p7594_p3 = pnand %p6331_p0, %p995_p1 }
  0x60   : > { %s8652_s21 = sld [smem:[#allocation38_spill]]  ;;  %s7342_s15 = smov [#allocation4]  }
  0x61   : > { %s8653_s20 = sld [smem:[#allocation57_spill]]  ;;  %s1021_s16 = sshll.u32 %s7342_s15, 4  ;;  %s1022_s16 = int_to_ptr.vmem [resolvable:$true] %s1021_s16 }
  0x62   : > { %s8654_s17 = sld [smem:[#allocation58_spill]]  ;;  %p6671_p4 = pneg %p7594_p3 }
  0x63   : > { %s8655_s14 = sld [smem:[#allocation45_spill]]  ;;  %s7343_s23 = smov [#allocation7]  }
  0x64   : > { %s8656_s12 = sld [smem:[#allocation43_spill]]  ;;  %p7605_p5 = pnand %p6696_p2, %p6671_p4 }
  0x65   : > { %s8657_s9 = sld [smem:[#allocation21_spill]]  ;;  %s7609_s26 = sshll.u32 %s7343_s23, 4  ;;  %s1088_s26 = int_to_ptr.vmem [resolvable:$true] %s7609_s26 }
  0x66   : > { %s8658_s6 = sld [smem:[#allocation56_spill]]  ;;  %s1085_s18 = sshll.u32 %s8652_s21, 4  ;;  %s7601_s18 = int_to_ptr.hbm [resolvable:$true] %s1085_s18 }
  0x67   : > { %s8659_s4 = sld [smem:[#allocation37_spill]]  ;;  %s1155_s28 = sshll.u32 %s8649_s27, 4  ;;  %s1156_s28 = int_to_ptr.hbm [resolvable:$true] %s1155_s28 }
  0x68   : > { %s8660_s13 = sld [smem:[#allocation22_spill]]  ;;  %p7616_p7 = pneg %p7605_p5 }
  0x69   : > { %8661 = sst [smem:[#allocation61_spill]] %s7299_s7 }
  0x6e   : > { %s1019_s10 = sshll.u32 %s8660_s13, 4  ;;  %s7040_s7 = scalar_lea.hbm %s8660_s13, 1  ;;  %s7586_s10 = int_to_ptr.hbm [resolvable:$true] %s1019_s10 }
  0x6f   : > { %s7033_s1 = sshra.s32 %s7586_s10, 4  ;;  %s7034_s1 = int_to_ptr.hbm [resolvable:$true] %s7033_s1 }
  0x70   : > { %s7035_s2 = scalar_lea.hbm %s7034_s1, 1  ;;  %p7041_p10 = scmp.lt.s32.totalorder %s7034_s1, %s8660_s13 }
  0x71   : > { %p7036_p6 = scmp.ne.s32.totalorder %s7034_s1, %s7035_s2  ;;  %p7042_p11 = scmp.lt.s32.totalorder %s7040_s7, %s7035_s2 }
  0x73   : > { %p7038_p8 = pnand %p7616_p7, %p7036_p6  ;;  %p7043_p12 = por %p7042_p11, %p7041_p10 }
  0x75   : > { %p7039_p9 = pneg %p7038_p8 }
  0x77   : > { %p7044_p13 = pnand %p7043_p12, %p7039_p9 }
  0x79   : > { %7047 = shalt.err (!%p7044_p13)
}
  0x7a   : > { %6677 = dma.hbm_to_vmem [thread:$0]  (!%p7605_p5), %s7586_s10, 16, %s1022_s16, [#allocation5]  }
  0x7b   : > { %s7063_s23 = sshra.s32 %s7601_s18, 4  ;;  %s7070_s1 = scalar_lea.hbm %s8652_s21, 1  ;;  %s7064_s23 = int_to_ptr.hbm [resolvable:$true] %s7063_s23 }
  0x7c   : > { %s7065_s3 = scalar_lea.hbm %s7064_s23, 1  ;;  %p7071_p6 = scmp.lt.s32.totalorder %s7064_s23, %s8652_s21 }
  0x7d   : > { %p7066_p0 = scmp.ne.s32.totalorder %s7064_s23, %s7065_s3  ;;  %p7072_p8 = scmp.lt.s32.totalorder %s7070_s1, %s7065_s3 }
  0x7f   : > { %p7068_p1 = pnand %p7066_p0, %p7616_p7  ;;  %p7073_p9 = por %p7072_p8, %p7071_p6 }
  0x81   : > { %p7069_p4 = pneg %p7068_p1 }
  0x83   : > { %p7074_p10 = pnand %p7073_p9, %p7069_p4 }
  0x85   : > { %7077 = shalt.err (!%p7074_p10)
}
  0x86   : > { %6683 = dma.hbm_to_vmem [thread:$0]  (!%p7605_p5), %s7601_s18, 16, %s1088_s26, [#allocation8]  }
  0x87   : > { %s7344_s7 = smov [#allocation10]   ;;  %s1007_s16 = sshll.u32 %s8657_s9, 4  ;;  %s7636_s16 = int_to_ptr.hbm [resolvable:$true] %s1007_s16 }
  0x88   : > { %s1157_s10 = sshll.u32 %s7344_s7, 4  ;;  %s7093_s2 = sshra.s32 %s1156_s28, 4  ;;  %s1158_s10 = int_to_ptr.vmem [resolvable:$true] %s1157_s10  ;;  %s7094_s2 = int_to_ptr.hbm [resolvable:$true] %s7093_s2 }
  0x89   : > { %s7095_s3 = scalar_lea.hbm %s7094_s2, 96  ;;  %s7100_s23 = scalar_lea.hbm %s8649_s27, 96 }
  0x8a   : > { %p7096_p11 = scmp.ne.s32.totalorder %s7094_s2, %s7095_s3  ;;  %p7101_p0 = scmp.lt.s32.totalorder %s7094_s2, %s8649_s27 }
  0x8b   : > { %p7102_p1 = scmp.lt.s32.totalorder %s7100_s23, %s7095_s3 }
  0x8c   : > { %p7098_p12 = pnand %p7096_p11, %p7616_p7 }
  0x8d   : > { %p7103_p4 = por %p7102_p1, %p7101_p0 }
  0x8e   : > { %p7099_p13 = pneg %p7098_p12 }
  0x90   : > { %p7104_p6 = pnand %p7103_p4, %p7099_p13 }
  0x92   : > { %7107 = shalt.err (!%p7104_p6)
}
  0x93   : > { %s7345_s18 = smov 128   ;;  %s7346_s26 = smov 8  }
  0x94   : > { %6689 = dma.hbm_to_vmem [thread:$0]  (!%p7605_p5), %s1156_s28, 1536, %s1158_s10, [#allocation11], %s7345_s18, %s7345_s18, %s7346_s26  }
  0x95   : > { %s1073_s1 = sshll.u32 %s8659_s4, 4  ;;  %s7347_s7 = smov [#allocation2]   ;;  %s7648_s1 = int_to_ptr.hbm [resolvable:$true] %s1073_s1 }
  0x96   : > { %s1009_s2 = sshll.u32 %s7347_s7, 4  ;;  %s7123_s3 = sshra.s32 %s7636_s16, 4  ;;  %s1010_s2 = int_to_ptr.vmem [resolvable:$true] %s1009_s2  ;;  %s7124_s3 = int_to_ptr.hbm [resolvable:$true] %s7123_s3 }
  0x97   : > { %s7125_s23 = scalar_lea.hbm %s7124_s3, 1  ;;  %s7130_s13 = scalar_lea.hbm %s8657_s9, 1 }
  0x98   : > { %p7126_p8 = scmp.ne.s32.totalorder %s7124_s3, %s7125_s23  ;;  %p7131_p11 = scmp.lt.s32.totalorder %s7124_s3, %s8657_s9 }
  0x99   : > { %p7132_p12 = scmp.lt.s32.totalorder %s7130_s13, %s7125_s23 }
  0x9a   : > { %p7128_p9 = pnand %p7126_p8, %p7616_p7 }
  0x9b   : > { %p7133_p13 = por %p7132_p12, %p7131_p11 }
  0x9c   : > { %p7129_p10 = pneg %p7128_p9 }
  0x9e   : > { %p7134_p0 = pnand %p7133_p13, %p7129_p10 }
  0xa0   : > { %7137 = shalt.err (!%p7134_p0)
}
  0xa1   : > { %6674 = dma.hbm_to_vmem [thread:$0]  (!%p7605_p5), %s7636_s16, 16, %s1010_s2, [#allocation3]  }
  0xa2   : > { %s7348_s28 = smov [#allocation6]   ;;  %s1108_s7 = sshll.u32 %s8656_s12, 4  ;;  %s7659_s7 = int_to_ptr.hbm [resolvable:$true] %s1108_s7 }
  0xa3   : > { %s1075_s10 = sshll.u32 %s7348_s28, 4  ;;  %s7153_s3 = sshra.s32 %s7648_s1, 4  ;;  %s1076_s10 = int_to_ptr.vmem [resolvable:$true] %s1075_s10  ;;  %s7154_s3 = int_to_ptr.hbm [resolvable:$true] %s7153_s3 }
  0xa4   : > { %s7155_s13 = scalar_lea.hbm %s7154_s3, 1  ;;  %s7160_s23 = scalar_lea.hbm %s8659_s4, 1 }
  0xa5   : > { %p7156_p1 = scmp.ne.s32.totalorder %s7154_s3, %s7155_s13  ;;  %p7161_p8 = scmp.lt.s32.totalorder %s7154_s3, %s8659_s4 }
  0xa6   : > { %p7162_p9 = scmp.lt.s32.totalorder %s7160_s23, %s7155_s13 }
  0xa7   : > { %p7158_p4 = pnand %p7156_p1, %p7616_p7 }
  0xa8   : > { %p7163_p10 = por %p7162_p9, %p7161_p8 }
  0xa9   : > { %p7159_p6 = pneg %p7158_p4 }
  0xab   : > { %p7164_p11 = pnand %p7163_p10, %p7159_p6 }
  0xad   : > { %7167 = shalt.err (!%p7164_p11)
}
  0xae   : > { %6680 = dma.hbm_to_vmem [thread:$0]  (!%p7605_p5), %s7648_s1, 16, %s1076_s10, [#allocation5]  }
  0xaf   : > { %s1172_s16 = sshll.u32 %s8653_s20, 4  ;;  %s7349_s2 = smov [#allocation9]   ;;  %s7670_s16 = int_to_ptr.hbm [resolvable:$true] %s1172_s16 }
  0xb0   : > { %s1110_s28 = sshll.u32 %s7349_s2, 4  ;;  %s7183_s3 = sshra.s32 %s7659_s7, 4  ;;  %s1111_s28 = int_to_ptr.vmem [resolvable:$true] %s1110_s28  ;;  %s7184_s3 = int_to_ptr.hbm [resolvable:$true] %s7183_s3 }
  0xb1   : > { %s7185_s13 = scalar_lea.hbm %s7184_s3, 96  ;;  %s7190_s23 = scalar_lea.hbm %s8656_s12, 96 }
  0xb2   : > { %p7186_p12 = scmp.ne.s32.totalorder %s7184_s3, %s7185_s13  ;;  %p7191_p1 = scmp.lt.s32.totalorder %s7184_s3, %s8656_s12 }
  0xb3   : > { %p7192_p4 = scmp.lt.s32.totalorder %s7190_s23, %s7185_s13 }
  0xb4   : > { %p7188_p13 = pnand %p7186_p12, %p7616_p7 }
  0xb5   : > { %p7193_p6 = por %p7192_p4, %p7191_p1 }
  0xb6   : > { %p7189_p0 = pneg %p7188_p13 }
  0xb8   : > { %p7194_p8 = pnand %p7193_p6, %p7189_p0 }
  0xba   : > { %7197 = shalt.err (!%p7194_p8)
}
  0xbb   : > { %6686 = dma.hbm_to_vmem [thread:$0]  (!%p7605_p5), %s7659_s7, 1536, %s1111_s28, [#allocation8], %s7345_s18, %s7345_s18, %s7346_s26  }
  0xbc   : > { %s7350_s1 = smov [#allocation12]   ;;  %s1186_s2 = sshll.u32 %s8654_s17, 4  ;;  %s1187_s2 = int_to_ptr.hbm [resolvable:$true] %s1186_s2 }
  0xbd   : > { %s1174_s10 = sshll.u32 %s7350_s1, 4  ;;  %s7213_s3 = sshra.s32 %s7670_s16, 4  ;;  %s1175_s10 = int_to_ptr.vmem [resolvable:$true] %s1174_s10  ;;  %s7214_s3 = int_to_ptr.hbm [resolvable:$true] %s7213_s3 }
  0xbe   : > { %s7215_s13 = scalar_lea.hbm %s7214_s3, 96  ;;  %s7220_s23 = scalar_lea.hbm %s8653_s20, 96 }
  0xbf   : > { %p7216_p9 = scmp.ne.s32.totalorder %s7214_s3, %s7215_s13  ;;  %p7221_p12 = scmp.lt.s32.totalorder %s7214_s3, %s8653_s20 }
  0xc0   : > { %p7222_p13 = scmp.lt.s32.totalorder %s7220_s23, %s7215_s13 }
  0xc1   : > { %p7218_p10 = pnand %p7216_p9, %p7616_p7 }
  0xc2   : > { %p7223_p0 = por %p7222_p13, %p7221_p12 }
  0xc3   : > { %p7219_p11 = pneg %p7218_p10 }
  0xc5   : > { %p7224_p1 = pnand %p7223_p0, %p7219_p11 }
  0xc7   : > { %7227 = shalt.err (!%p7224_p1)
}
  0xc8   : > { %6692 = dma.hbm_to_vmem [thread:$0]  (!%p7605_p5), %s7670_s16, 1536, %s1175_s10, [#allocation11], %s7345_s18, %s7345_s18, %s7346_s26  }
  0xc9   : > { %s7351_s7 = smov [#allocation13]   ;;  %s7243_s1 = sshra.s32 %s1187_s2, 4  ;;  %s7244_s1 = int_to_ptr.hbm [resolvable:$true] %s7243_s1 }
  0xca   : > { %s1188_s28 = sshll.u32 %s7351_s7, 4  ;;  %s7245_s3 = scalar_lea.hbm %s7244_s1, 96  ;;  %s1189_s28 = int_to_ptr.vmem [resolvable:$true] %s1188_s28 }
  0xcb   : > { %p7246_p4 = scmp.ne.s32.totalorder %s7244_s1, %s7245_s3  ;;  %s7250_s13 = scalar_lea.hbm %s8654_s17, 96 }
  0xcc   : > { %p7251_p9 = scmp.lt.s32.totalorder %s7244_s1, %s8654_s17  ;;  %p7252_p10 = scmp.lt.s32.totalorder %s7250_s13, %s7245_s3 }
  0xcd   : > { %p7248_p6 = pnand %p7246_p4, %p7616_p7 }
  0xce   : > { %p7253_p11 = por %p7252_p10, %p7251_p9 }
  0xcf   : > { %p7249_p8 = pneg %p7248_p6 }
  0xd1   : > { %p7254_p12 = pnand %p7253_p11, %p7249_p8 }
  0xd3   : > { %7257 = shalt.err (!%p7254_p12)
}
  0xd4   : > { %6695 = dma.hbm_to_vmem [thread:$0]  (!%p7605_p5), %s1187_s2, 1536, %s1189_s28, [#allocation14], %s7345_s18, %s7345_s18, %s7346_s26  }
  0xd5   : > { %1217 = sbr.rel (%p7594_p3) target bundleno = 17871 (0x45cf), region = 184 }
  0xda   : > { %7278 = dma.done.wait (%p6696_p2), [#allocation3], 16  }
  0xdb   : > { %7280 = vsyncadd (%p6696_p2), [#allocation3], 4294967280 }
  0xdc   : > { %7282 = dma.done.wait (%p6696_p2), [#allocation5], 32  }
  0xdd   : > { %7284 = vsyncadd (%p6696_p2), [#allocation5], 4294967264 }
  0xde   : > { %7286 = dma.done.wait (%p6696_p2), [#allocation8], 1552  }
  0xdf   : > { %7288 = vsyncadd (%p6696_p2), [#allocation8], 4294965744 }
  0xe0   : > { %7290 = dma.done.wait (%p6696_p2), [#allocation11], 3072  }
  0xe1   : > { %7292 = vsyncadd (%p6696_p2), [#allocation11], 4294964224 }
  0xe2   : > { %7294 = dma.done.wait (%p6696_p2), [#allocation14], 1536  }
  0xe3   : > { %7296 = vsyncadd (%p6696_p2), [#allocation14], 4294965760  ;;  %s8665_s5 = sld [smem:[#allocation20_spill]]  ;;  %p1351_p3 = scmp.lt.s32.totalorder %s7589_s0, 1  ;;  %vm1375_vm0 = vcmask 1043456   ;;  %vm1371_vm1 = vcmask 31744   ;;  %v1359_v17 = vlaneseq }
  0xe4   : > { %s8666_s19 = sld [smem:[#allocation59_spill]]  ;;  %v1402_v2 = vld [vmem:[#allocation13 + $0x18] sm:$0xff]  ;;  %v1401_v3 = vld [vmem:[#allocation13 + $0x10] sm:$0xff]  ;;  %v1400_v4 = vld [vmem:[#allocation13 + $0x8] sm:$0xff]  ;;  %vm1412_vm2 = vcmask 261120   ;;  %s8577_s15 = smov 88  }
  0xe5   : > { %s8710_s0 = smov (!%p1351_p3, %s7589_s0), 1  ;;  %1428 = vmatpush.msra.mxu1 %v1402_v2  ;;  %v1399_v5 = vld [vmem:[#allocation13] sm:$0xff]  ;;  %v6784_v6 = vld [vmem:[#allocation2] ss:$0 sm:$0xff]  ;;  %s8587_s18 = smov 96   ;;  %vm1439_vm3 = vcmask 64512  }
  0xe6   : > { %8667 = sst [smem:[#allocation62_spill]] %s8710_s0  ;;  %s8566_s11 = sshll.u32 %s8710_s0, 3  ;;  %v6785_v9 = vld [vmem:[%s8648_s29] ss:$0 sm:$0xff]  ;;  %v1360_v18 = vshrl.u32 %v1359_v17, 7  ;;  %v1362_v19 = vand.u32 127, %v1359_v17 }
  0xe7   : > { %1429 = vmatpush.msra.mxu1 %v1401_v3  ;;  %s8583_s26 = smov 120   ;;  %s8579_s16 = smov 80   ;;  %v7358_v21 = vmov 0.0   ;;  %v1404_v49 = vld [vmem:[#allocation12] sm:$0xff]  ;;  %vm1886_vm9 = vcmask 523264  }
  0xe8   : > { %s8581_s10 = smov 112   ;;  %s8573_s2 = smov 72   ;;  %vm1363_vm4 = vcmp.gt.s32.totalorder %v1362_v19, %v1360_v18  ;;  %v1406_v18 = vld [vmem:[#allocation12 + $0x10] sm:$0xff] }
  0xe9   : > { %s1354_s22 = scalar_lea.vmem %s8665_s5, %s8566_s11  ;;  %1430 = vmatpush.msra.mxu1 %v1400_v4  ;;  %v7762_v22 = vsel %vm1363_vm4, -1e+30, %v7358_v21  ;;  %s8571_s23 = smov 64  }
  0xea   : > { %v1366_v0 = vld [vmem:[%s8666_s19] sm:$0xf]  ;;  %s8585_s7 = smov 104   ;;  %s8575_s28 = smov 48  }
  0xeb   : > { %v1365_v1 = vld [vmem:[%s1354_s22] sm:$0xff]  ;;  %6352 = vmatpush.msk.msra.mxu0 %vm1375_vm0, %v1366_v0  ;;  %1431 = vmatpush.msra.mxu1 %v1399_v5  ;;  %s8569_s1 = smov 56   ;;  %s8567_s3 = smov 40  }
  0xec   : > { %6353 = vmatmul.msk.f32.vlgmr.msra.gmra.mxu0 %vm1371_vm1, %v1365_v1  ;;  %s8668_s13 = sld [smem:[#allocation46_spill]]  ;;  %s8688_s9 = smov 104  }
  0xed   : > { %s8669_s22 = sld [smem:[#allocation52_spill]]  ;;  %s8690_s12 = smov 120  }
  0xee   : > { %s8670_s11 = sld [smem:[#allocation51_spill]]  ;;  %s8694_s17 = smov 72  }
  0xef   : > { %s8682_s4 = sld [smem:[#allocation32_spill]]  ;;  %s8704_s0 = smov 48  }
  0xf0   : > { %s8695_s19 = sld [smem:[#allocation26_spill]] }
  0xf1   : > { %s8696_s20 = sld [smem:[#allocation44_spill]] }
  0xf2   : > { %s8697_s21 = sld [smem:[#allocation34_spill]] }
  0xf3   : > { %s8701_s27 = sld [smem:[#allocation36_spill]] }
 0x169   : > { %v1396_v7 = vpop.f32.mrf.mxu0 }
 0x16a   : > { %v7736_v8 = vadd.f32 %v6784_v6, %v1396_v7 }
 0x16c   : > { %6354 = vmatmul.msk.f32.vlgmr.msra.gmra.mxu1 %vm1412_vm2, %v7736_v8 }
 0x1e9   : > { %v1433_v10 = vpop.f32.mrf.mxu1 }
 0x1ea   : > { %v7741_v11 = vadd.f32 %v6785_v9, %v1433_v10 }
 0x1ec   : > { %1505 = vrot.lane.b32.xlu2 %v7741_v11, %s8577_s15  ;;  %1437 = vrot.lane.b32.xlu0 %v7741_v11, %s8587_s18 }
 0x1f4   : > { %1503 = vrot.lane.b32.xlu2 %v7741_v11, %s8583_s26 }
 0x1fc   : > { %1618 = vrot.lane.b32.xlu2 %v7741_v11, %s8579_s16 }
 0x204   : > { %1616 = vrot.lane.b32.xlu2 %v7741_v11, %s8581_s10 }
 0x20c   : > { %1709 = vrot.lane.b32.xlu2 %v7741_v11, %s8573_s2 }
 0x246   : > { %v1506_v12 = vpop.permute.xlu2 %1505 }
 0x247   : > { %6358 = vmatpush.xpose.msk.msrb.mxu0 %vm1439_vm3, %v1506_v12 }
 0x24e   : > { %v1504_v13 = vpop.permute.xlu2 %1503 }
 0x24f   : > { %6359 = vmatmul.msk.f32.vlgmr.msrb.gmra.mxu0 %vm1439_vm3, %v1504_v13 }
 0x256   : > { %v1619_v14 = vpop.permute.xlu2 %1618 }
 0x257   : > { %6363 = vmatpush.xpose.msk.msra.mxu0 %vm1439_vm3, %v1619_v14  ;;  %v1405_v14 = vld [vmem:[#allocation12 + $0x8] sm:$0xff] }
 0x25e   : > { %v1617_v15 = vpop.permute.xlu2 %1616  ;;  %v1438_v16 = vpop.permute.xlu0 %1437 }
 0x25f   : > { %6355 = vmatpush.xpose.msk.msra.mxu2 %vm1439_vm3, %v1438_v16  ;;  %6364 = vmatmul.msk.f32.vlgmr.msra.gmra.mxu0 %vm1439_vm3, %v1617_v15 }
 0x262   : > { %6356 = vmatmul.msk.f32.vlgmr.msra.gmra.mxu2 %vm1439_vm3, %v7741_v11 }
 0x263   : > { %1588 = vmatpush.msrb.mxu2 %v1405_v14  ;;  %v6790_v14 = vld [vmem:[%s8668_s13] ss:$0 sm:$0xff] }
 0x265   : > { %1701 = vmatpush.msra.mxu2 %v1406_v18 }
 0x266   : > { %v1710_v30 = vpop.permute.xlu2 %1709 }
 0x2cc   : > { %v1528_v20 = vpop.f32.mrf.mxu0 }
 0x2cd   : > { %v1531_v23 = vmul.f32 0.35355338, %v1528_v20 }
 0x2cf   : > { %v1532_v24 = vadd.f32 %v1531_v23, %v7762_v22 }
 0x2d1   : > { %v1533_v25 = vsel %vm1439_vm3, %v1532_v24, -inf }
 0x2d2   : > { %1534 = vmax.xlane.f32.xlu2 %v1533_v25 }
 0x2dc   : > { %v1641_v41 = vpop.f32.mrf.mxu0 }
 0x2dd   : > { %v1644_v42 = vmul.f32 0.35355338, %v1641_v41 }
 0x2df   : > { %v1645_v43 = vadd.f32 %v1644_v42, %v7762_v22 }
 0x2e1   : > { %v1646_v44 = vsel %vm1439_vm3, %v1645_v43, -inf }
 0x2e5   : > { %v1461_v26 = vpop.f32.mrf.mxu2 }
 0x2e6   : > { %v1464_v27 = vmul.f32 0.35355338, %v1461_v26 }
 0x2e8   : > { %v1465_v28 = vadd.f32 %v1464_v27, %v7762_v22  ;;  %v6786_v27 = vld [vmem:[%s8650_s25] ss:$0 sm:$0xff] }
 0x2ea   : > { %v1466_v29 = vsel %vm1439_vm3, %v1465_v28, -inf }
 0x2eb   : > { %1467 = vmax.xlane.f32.xlu0 %v1466_v29 }
 0x345   : > { %v1535_v31 = vpop.xlane.xlu2 %1534 }
 0x346   : > { %v1536_v32 = vsub.f32 %v1532_v24, %v1535_v31 }
 0x348   : > { %v1537_v33 = vmul.f32 1.442695, %v1536_v32 }
 0x34a   : > { %6853 = vpow2.f32 %v1537_v33  ;;  %v7364_v33 = vmov 32.0  }
 0x350   : > { %v7768_v34 = vpop.eup %6853 }
 0x351   : > { %v1539_v35 = vsel %vm1439_vm3, %v7768_v34, 0.0 }
 0x352   : > { %1540 = vadd.xlane.f32.xlu0 %v1539_v35 }
 0x35e   : > { %v1468_v36 = vpop.xlane.xlu0 %1467 }
 0x35f   : > { %v1469_v37 = vsub.f32 %v1465_v28, %v1468_v36 }
 0x361   : > { %v1470_v38 = vmul.f32 1.442695, %v1469_v37 }
 0x363   : > { %6855 = vpow2.f32 %v1470_v38 }
 0x369   : > { %v6856_v39 = vpop.eup %6855 }
 0x36a   : > { %v1472_v40 = vsel %vm1439_vm3, %v6856_v39, 0.0 }
 0x36b   : > { %1473 = vadd.xlane.f32.xlu1 %v1472_v40 }
 0x384   : > { %1477 = vrot.lane.b32.xlu1 %v7741_v11, %s8571_s23 }
 0x38c   : > { %1707 = vrot.lane.b32.xlu1 %v7741_v11, %s8585_s7 }
 0x3b6   : > { %1647 = vmax.xlane.f32.xlu1 %v1646_v44 }
 0x3c5   : > { %v1541_v62 = vpop.xlane.xlu0 %1540 }
 0x3cf   : > { %1657 = vrot.lane.b32.xlu1 %v7741_v11, %s8575_s28 }
 0x3de   : > { %v1474_v45 = vpop.xlane.xlu1 %1473 }
 0x3df   : > { %6857 = vrcp.f32 %v1474_v45  ;;  %v1845_v45 = vld [vmem:[#allocation10 + $0x18] sm:$0xff] }
 0x3e5   : > { %v6858_v46 = vpop.eup %6857 }
 0x3e6   : > { %v1476_v48 = vmul.f32 %v6858_v46, %v6856_v39  ;;  %v1844_v46 = vld [vmem:[#allocation10 + $0x10] sm:$0xff] }
 0x3f6   : > { %v1478_v47 = vpop.permute.xlu1 %1477 }
 0x3f7   : > { %1498 = vmatpush.msrb.mxu1 %v1478_v47  ;;  %v1843_v47 = vld [vmem:[#allocation10 + $0x8] sm:$0xff] }
 0x3f8   : > { %6357 = vmatmul.msk.f32.vlgmr.msrb.gmra.mxu1 %vm1439_vm3, %v1476_v48  ;;  %v1842_v48 = vld [vmem:[#allocation10] sm:$0xff] }
 0x3f9   : > { %1611 = vmatpush.msra.mxu1 %v1404_v49  ;;  %v1854_v49 = vld [vmem:[%s8658_s6 + $0x38] sm:$0xff] }
 0x3fb   : > { %6367 = vmatpush.xpose.msk.msrb.mxu1 %vm1439_vm3, %v1710_v30 }
 0x3fe   : > { %v1708_v51 = vpop.permute.xlu1 %1707 }
 0x429   : > { %v1648_v53 = vpop.xlane.xlu1 %1647 }
 0x42a   : > { %v1649_v54 = vsub.f32 %v1645_v43, %v1648_v53 }
 0x42c   : > { %v1650_v55 = vmul.f32 1.442695, %v1649_v54  ;;  %v1851_v54 = vld [vmem:[%s8658_s6 + $0x20] sm:$0xff] }
 0x42e   : > { %6859 = vpow2.f32 %v1650_v55 }
 0x434   : > { %v6860_v60 = vpop.eup %6859 }
 0x435   : > { %v1652_v61 = vsel %vm1439_vm3, %v6860_v60, 0.0 }
 0x441   : > { %v1658_v9 = vpop.permute.xlu1 %1657 }
 0x475   : > { %v1500_v50 = vpop.f32.mrf.mxu1 }
 0x476   : > { %6362 = vmatmul.msk.f32.vlgmr.msra.gmra.mxu1 %vm1439_vm3, %v1500_v50  ;;  %v1853_v50 = vld [vmem:[%s8658_s6 + $0x30] sm:$0xff] }
 0x477   : > { %1898 = vmatpush.msra.mxu1 %v1854_v49 }
 0x479   : > { %1899 = vmatpush.msra.mxu1 %v1853_v50 }
 0x47e   : > { %6368 = vmatmul.msk.f32.vlgmr.msrb.gmra.mxu1 %vm1439_vm3, %v1708_v51  ;;  %v1852_v51 = vld [vmem:[%s8658_s6 + $0x28] sm:$0xff] }
 0x47f   : > { %1900 = vmatpush.msra.mxu1 %v1852_v51 }
 0x481   : > { %1901 = vmatpush.msra.mxu1 %v1851_v54 }
 0x4f3   : > { %v1613_v52 = vpop.f32.mrf.mxu1 }
 0x4fb   : > { %v1732_v56 = vpop.f32.mrf.mxu1 }
 0x4fc   : > { %v1735_v57 = vmul.f32 0.35355338, %v1732_v56  ;;  %v1850_v56 = vld [vmem:[%s8658_s6 + $0x18] sm:$0xff] }
 0x4fd   : > { %1902 = vmatpush.msra.mxu1 %v1850_v56 }
 0x4fe   : > { %v1736_v58 = vadd.f32 %v1735_v57, %v7762_v22 }
 0x500   : > { %v1737_v59 = vsel %vm1439_vm3, %v1736_v58, -inf }
 0x501   : > { %1738 = vmax.xlane.f32.xlu0 %v1737_v59 }
 0x509   : > { %1653 = vadd.xlane.f32.xlu0 %v1652_v61 }
 0x51d   : > { %1544 = vrot.lane.b32.xlu0 %v7741_v11, %s8569_s1 }
 0x574   : > { %v1739_v63 = vpop.xlane.xlu0 %1738 }
 0x575   : > { %v1740_v0 = vsub.f32 %v1736_v58, %v1739_v63  ;;  %v6787_v63 = vld [vmem:[%s8647_s30] ss:$0 sm:$0xff] }
 0x577   : > { %v1741_v1 = vmul.f32 1.442695, %v1740_v0 }
 0x579   : > { %6861 = vpow2.f32 %v1741_v1 }
 0x57a   : > { %6863 = vrcp.f32 %v1541_v62 }
 0x57c   : > { %v1654_v4 = vpop.xlane.xlu0 %1653 }
 0x57d   : > { %6865 = vrcp.f32 %v1654_v4 }
 0x57f   : > { %v6862_v2 = vpop.eup %6861 }
 0x580   : > { %v1743_v3 = vsel %vm1439_vm3, %v6862_v2, 0.0  ;;  %v6864_v5 = vpop.eup %6863 }
 0x581   : > { %1744 = vadd.xlane.f32.xlu2 %v1743_v3  ;;  %v1543_v7 = vmul.f32 %v6864_v5, %v7768_v34  ;;  %v1849_v5 = vld [vmem:[%s8658_s6 + $0x10] sm:$0xff] }
 0x582   : > { %1903 = vmatpush.msra.mxu1 %v1849_v5 }
 0x583   : > { %v6866_v10 = vpop.eup %6865 }
 0x584   : > { %v1656_v12 = vmul.f32 %v6866_v10, %v6860_v60 }
 0x58f   : > { %v1545_v6 = vpop.permute.xlu0 %1544 }
 0x590   : > { %1565 = vmatpush.msra.mxu3 %v1545_v6  ;;  %v1848_v6 = vld [vmem:[%s8658_s6 + $0x8] sm:$0xff] }
 0x591   : > { %6360 = vmatmul.msk.f32.vlgmr.msra.gmra.mxu3 %vm1439_vm3, %v1543_v7  ;;  %1904 = vmatpush.msra.mxu1 %v1848_v6  ;;  %v1847_v7 = vld [vmem:[%s8658_s6] sm:$0xff] }
 0x592   : > { %1678 = vmatpush.msrb.mxu3 %v1658_v9  ;;  %v6789_v9 = vld [vmem:[%s8655_s14] ss:$0 sm:$0xff] }
 0x593   : > { %1905 = vmatpush.msra.mxu1 %v1847_v7 }
 0x599   : > { %1748 = vrot.lane.b32.xlu2 %v7741_v11, %s8567_s3  ;;  %6365 = vmatmul.msk.f32.vlgmr.msrb.gmra.mxu3 %vm1439_vm3, %v1656_v12  ;;  %v1407_v11 = vld [vmem:[#allocation12 + $0x18] sm:$0xff] }
 0x59a   : > { %1792 = vmatpush.msra.mxu3 %v1407_v11 }
 0x5f4   : > { %v1745_v13 = vpop.xlane.xlu2 %1744 }
 0x5f5   : > { %6867 = vrcp.f32 %v1745_v13 }
 0x5f6   : > { %6869 = vrcp.f32 %v7364_v33 }
 0x5fb   : > { %v6868_v15 = vpop.eup %6867 }
 0x5fc   : > { %v1747_v16 = vmul.f32 %v6868_v15, %v6862_v2  ;;  %v1749_v17 = vpop.permute.xlu2 %1748  ;;  %v6870_v34 = vpop.eup %6869  ;;  %v6788_v2 = vld [vmem:[%s8651_s24] ss:$0 sm:$0xff] }
 0x5fd   : > { %1769 = vmatpush.msrb.mxu0 %v1749_v17  ;;  %v1809_v35 = vmul.f32 32.0, %v6870_v34  ;;  %vm1813_vm5 = vweird.f32 %v6870_v34 }
 0x5fe   : > { %6369 = vmatmul.msk.f32.vlgmr.msrb.gmra.mxu0 %vm1439_vm3, %v1747_v16 }
 0x5ff   : > { %v1810_v36 = vsub.f32 1.0, %v1809_v35 }
 0x601   : > { %v1811_v37 = vmul.f32 %v6870_v34, %v1810_v36 }
 0x603   : > { %v1812_v38 = vadd.f32 %v6870_v34, %v1811_v37  ;;  %v6791_v37 = vld [vmem:[%s8669_s22] ss:$0 sm:$0xff] }
 0x605   : > { %v7803_v39 = vsel %vm1813_vm5, %v6870_v34, %v1812_v38 }
 0x614   : > { %v1567_v19 = vpop.f32.mrf.mxu3 }
 0x615   : > { %6361 = vmatmul.msk.f32.vlgmr.msrb.gmra.mxu2 %vm1439_vm3, %v1567_v19 }
 0x616   : > { %1874 = vmatpush.msrb.mxu2 %v1845_v45 }
 0x618   : > { %1875 = vmatpush.msrb.mxu2 %v1844_v46 }
 0x61a   : > { %1876 = vmatpush.msrb.mxu2 %v1843_v47 }
 0x61c   : > { %v1680_v20 = vpop.f32.mrf.mxu3  ;;  %1877 = vmatpush.msrb.mxu2 %v1842_v48 }
 0x61d   : > { %6366 = vmatmul.msk.f32.vlgmr.msra.gmra.mxu2 %vm1439_vm3, %v1680_v20 }
 0x67b   : > { %v1771_v21 = vpop.f32.mrf.mxu0 }
 0x67c   : > { %6370 = vmatmul.msk.f32.vlgmr.msra.gmra.mxu3 %vm1439_vm3, %v1771_v21 }
 0x698   : > { %v1590_v23 = vpop.f32.mrf.mxu2 }
 0x699   : > { %v1614_v25 = vadd.f32 %v1613_v52, %v1590_v23 }
 0x6a0   : > { %v1703_v24 = vpop.f32.mrf.mxu2 }
 0x6a1   : > { %v1706_v26 = vadd.f32 %v1703_v24, %v1614_v25  ;;  %v1947_v24 = vld [vmem:[#allocation13 + $0x38] sm:$0xff]  ;;  %v1946_v25 = vld [vmem:[#allocation13 + $0x30] sm:$0xff] }
 0x6a2   : > { %1975 = vmatpush.msra.mxu0 %v1947_v24 }
 0x6a4   : > { %1976 = vmatpush.msra.mxu0 %v1946_v25 }
 0x6ff   : > { %v1794_v28 = vpop.f32.mrf.mxu3 }
 0x700   : > { %v1797_v29 = vadd.f32 %v1794_v28, %v1706_v26  ;;  %v1945_v26 = vld [vmem:[#allocation13 + $0x28] sm:$0xff] }
 0x701   : > { %1977 = vmatpush.msra.mxu0 %v1945_v26 }
 0x702   : > { %v1801_v30 = vadd.f32 %v6786_v27, %v1797_v29  ;;  %v1944_v27 = vld [vmem:[#allocation13 + $0x20] sm:$0xff] }
 0x703   : > { %1978 = vmatpush.msra.mxu0 %v1944_v27 }
 0x704   : > { %v1802_v31 = vadd.f32 %v1801_v30, %v7736_v8 }
 0x706   : > { %v1805_v32 = vsel %vm1412_vm2, %v1802_v31, 0.0 }
 0x707   : > { %1806 = vadd.xlane.f32.xlu0 %v1805_v32 }
 0x77a   : > { %v1807_v40 = vpop.xlane.xlu0 %1806 }
 0x77b   : > { %v1815_v41 = vmul.f32 %v7803_v39, %v1807_v40 }
 0x77d   : > { %v1816_v42 = vsub.f32 %v1802_v31, %v1815_v41  ;;  %v6792_v41 = vld [vmem:[%s8670_s11] ss:$0 sm:$0xff] }
 0x77f   : > { %v1817_v43 = vmul.f32 %v1816_v42, %v1816_v42 }
 0x781   : > { %v1818_v44 = vsel %vm1412_vm2, %v1817_v43, 0.0 }
 0x782   : > { %1819 = vadd.xlane.f32.xlu1 %v1818_v44  ;;  %v6793_v44 = vld [vmem:[%s8648_s29 + $0x1] ss:$0 sm:$0xff] }
 0x7f5   : > { %v1820_v52 = vpop.xlane.xlu1 %1819 }
 0x7f6   : > { %v1821_v53 = vmul.f32 %v1820_v52, %v7803_v39  ;;  %v1951_v52 = vld [vmem:[#allocation12 + $0x20] sm:$0xff] }
 0x7f7   : > { %2157 = vmatpush.msrb.mxu1 %v1951_v52 }
 0x7f8   : > { %v1822_v55 = vadd.f32 1e-05, %v1821_v53 }
 0x7fa   : > { %6871 = vrsqrt.f32 %v1822_v55  ;;  %vm1829_vm7 = vweird.f32 %v1822_v55 }
 0x800   : > { %v6872_v57 = vpop.eup %6871 }
 0x801   : > { %v1824_v58 = vmul.f32 %v6872_v57, %v1822_v55  ;;  %vm1830_vm6 = vweird.f32 %v6872_v57 }
 0x802   : > { %vm1831_vm8 = vmor %vm1829_vm7, %vm1830_vm6 }
 0x803   : > { %v1825_v59 = vmul.f32 %v6872_v57, %v1824_v58 }
 0x805   : > { %v1826_v60 = vmul.f32 0.5, %v1825_v59 }
 0x807   : > { %v1827_v61 = vsub.f32 1.5, %v1826_v60 }
 0x809   : > { %v1828_v62 = vmul.f32 %v6872_v57, %v1827_v61 }
 0x80b   : > { %v1832_v0 = vsel %vm1831_vm8, %v6872_v57, %v1828_v62 }
 0x80c   : > { %v1833_v1 = vmul.f32 %v1832_v0, %v1816_v42 }
 0x80e   : > { %v1837_v3 = vmul.f32 %v6787_v63, %v1833_v1 }
 0x810   : > { %v1841_v4 = vadd.f32 %v6788_v2, %v1837_v3 }
 0x812   : > { %6371 = vmatmul.msk.f32.vlgmr.msrb.gmra.mxu2 %vm1412_vm2, %v1841_v4 }
 0x895   : > { %v1879_v10 = vpop.f32.mrf.mxu2 }
 0x896   : > { %v1880_v12 = vadd.f32 %v6789_v9, %v1879_v10 }
 0x898   : > { %v1882_v13 = vmax.f32 %v1880_v12, 0.0 }
 0x89a   : > { %6372 = vmatmul.msk.f32.vlgmr.msra.gmra.mxu1 %vm1886_vm9, %v1882_v13 }
 0x917   : > { %v1907_v15 = vpop.f32.mrf.mxu1 }
 0x918   : > { %v1908_v16 = vadd.f32 %v6790_v14, %v1907_v15 }
 0x91a   : > { %v1910_v17 = vadd.f32 %v1908_v16, %v1841_v4 }
 0x91c   : > { %v1913_v18 = vsel %vm1412_vm2, %v1910_v17, 0.0 }
 0x91d   : > { %1914 = vadd.xlane.f32.xlu2 %v1913_v18 }
 0x990   : > { %v1915_v19 = vpop.xlane.xlu2 %1914 }
 0x991   : > { %v1916_v20 = vmul.f32 %v1915_v19, %v7803_v39 }
 0x993   : > { %v1917_v11 = vsub.f32 %v1910_v17, %v1916_v20 }
 0x995   : > { %v1918_v21 = vmul.f32 %v1917_v11, %v1917_v11 }
 0x997   : > { %v1919_v23 = vsel %vm1412_vm2, %v1918_v21, 0.0 }
 0x998   : > { %1920 = vadd.xlane.f32.xlu0 %v1919_v23 }
 0xa0b   : > { %v1921_v28 = vpop.xlane.xlu0 %1920 }
 0xa0c   : > { %v1922_v29 = vmul.f32 %v1921_v28, %v7803_v39 }
 0xa0e   : > { %v1923_v30 = vadd.f32 1e-05, %v1922_v29 }
 0xa10   : > { %6873 = vrsqrt.f32 %v1923_v30  ;;  %vm1930_vm11 = vweird.f32 %v1923_v30 }
 0xa16   : > { %v6874_v31 = vpop.eup %6873 }
 0xa17   : > { %v1925_v32 = vmul.f32 %v6874_v31, %v1923_v30  ;;  %vm1931_vm10 = vweird.f32 %v6874_v31 }
 0xa18   : > { %vm1932_vm12 = vmor %vm1930_vm11, %vm1931_vm10 }
 0xa19   : > { %v1926_v33 = vmul.f32 %v6874_v31, %v1925_v32 }
 0xa1b   : > { %v1927_v34 = vmul.f32 0.5, %v1926_v33 }
 0xa1d   : > { %v1928_v35 = vsub.f32 1.5, %v1927_v34 }
 0xa1f   : > { %v1929_v36 = vmul.f32 %v6874_v31, %v1928_v35 }
 0xa21   : > { %v1933_v38 = vsel %vm1932_vm12, %v6874_v31, %v1929_v36 }
 0xa22   : > { %v1934_v40 = vmul.f32 %v1933_v38, %v1917_v11 }
 0xa24   : > { %v1938_v42 = vmul.f32 %v6791_v37, %v1934_v40 }
 0xa26   : > { %v7828_v43 = vadd.f32 %v6792_v41, %v1938_v42 }
 0xa28   : > { %6375 = vmatmul.msk.f32.vlgmr.msra.gmra.mxu0 %vm1412_vm2, %v7828_v43 }
 0xaa5   : > { %v1980_v45 = vpop.f32.mrf.mxu0 }
 0xaa6   : > { %v7833_v46 = vadd.f32 %v6793_v44, %v1980_v45  ;;  %v1952_v45 = vld [vmem:[#allocation12 + $0x28] sm:$0xff] }
 0xaa8   : > { %1984 = vrot.lane.b32.xlu0 %v7833_v46, %s8587_s18 }
 0xab0   : > { %2049 = vrot.lane.b32.xlu0 %v7833_v46, %s8583_s26 }
 0xab8   : > { %2164 = vrot.lane.b32.xlu0 %v7833_v46, %s8579_s16 }
 0xac0   : > { %2162 = vrot.lane.b32.xlu0 %v7833_v46, %s8581_s10 }
 0xb1a   : > { %v1985_v47 = vpop.permute.xlu0 %1984 }
 0xb1b   : > { %6376 = vmatpush.xpose.msk.msrb.mxu3 %vm1439_vm3, %v1985_v47  ;;  %v1953_v47 = vld [vmem:[#allocation12 + $0x30] sm:$0xff] }
 0xb1e   : > { %6377 = vmatmul.msk.f32.vlgmr.msrb.gmra.mxu3 %vm1439_vm3, %v7833_v46 }
 0xb22   : > { %v2050_v60 = vpop.permute.xlu0 %2049 }
 0xb2a   : > { %v2165_v1 = vpop.permute.xlu0 %2164 }
 0xb32   : > { %v2163_v2 = vpop.permute.xlu0 %2162 }
 0xba1   : > { %v2007_v48 = vpop.f32.mrf.mxu3 }
 0xba2   : > { %v2010_v49 = vmul.f32 0.35355338, %v2007_v48 }
 0xba4   : > { %v2011_v50 = vadd.f32 %v2010_v49, %v7762_v22 }
 0xba6   : > { %v2012_v51 = vsel %vm1439_vm3, %v2011_v50, -inf }
 0xba7   : > { %2013 = vmax.xlane.f32.xlu1 %v2012_v51 }
 0xbc0   : > { %2023 = vrot.lane.b32.xlu1 %v7833_v46, %s8571_s23 }
 0xbc8   : > { %2255 = vrot.lane.b32.xlu1 %v7833_v46, %s8573_s2 }
 0xc1a   : > { %v2014_v53 = vpop.xlane.xlu1 %2013 }
 0xc1b   : > { %v2015_v54 = vsub.f32 %v2011_v50, %v2014_v53 }
 0xc1d   : > { %v2016_v55 = vmul.f32 1.442695, %v2015_v54 }
 0xc1f   : > { %6875 = vpow2.f32 %v2016_v55 }
 0xc25   : > { %v6876_v56 = vpop.eup %6875 }
 0xc26   : > { %v2018_v57 = vsel %vm1439_vm3, %v6876_v56, 0.0 }
 0xc27   : > { %2019 = vadd.xlane.f32.xlu2 %v2018_v57 }
 0xc32   : > { %v2024_v58 = vpop.permute.xlu1 %2023 }
 0xc33   : > { %2044 = vmatpush.msra.mxu2 %v2024_v58 }
 0xc35   : > { %2134 = vmatpush.msrb.mxu2 %v1952_v45 }
 0xc3a   : > { %v2256_v59 = vpop.permute.xlu1 %2255 }
 0xc3b   : > { %6388 = vmatpush.xpose.msk.msra.mxu1 %vm1439_vm3, %v2256_v59  ;;  %v6794_v59 = vld [vmem:[%s8650_s25 + $0x1] ss:$0 sm:$0xff] }
 0xc3f   : > { %2051 = vrot.lane.b32.xlu2 %v7833_v46, %s8577_s15 }
 0xc47   : > { %2253 = vrot.lane.b32.xlu2 %v7833_v46, %s8585_s7 }
 0xc9a   : > { %v2020_v61 = vpop.xlane.xlu2 %2019 }
 0xc9b   : > { %6877 = vrcp.f32 %v2020_v61 }
 0xca1   : > { %v6878_v62 = vpop.eup %6877 }
 0xca2   : > { %v2022_v63 = vmul.f32 %v6878_v62, %v6876_v56  ;;  %v2052_v0 = vpop.permute.xlu2 %2051 }
 0xca3   : > { %6379 = vmatpush.xpose.msk.msrb.mxu0 %vm1439_vm3, %v2052_v0 }
 0xca4   : > { %6378 = vmatmul.msk.f32.vlgmr.msra.gmra.mxu2 %vm1439_vm3, %v2022_v63 }
 0xca5   : > { %2247 = vmatpush.msra.mxu2 %v1953_v47 }
 0xca6   : > { %6380 = vmatmul.msk.f32.vlgmr.msrb.gmra.mxu0 %vm1439_vm3, %v2050_v60 }
 0xca7   : > { %6384 = vmatpush.xpose.msk.msra.mxu0 %vm1439_vm3, %v2165_v1 }
 0xcaa   : > { %v2254_v13 = vpop.permute.xlu2 %2253 }
 0xcae   : > { %6385 = vmatmul.msk.f32.vlgmr.msra.gmra.mxu0 %vm1439_vm3, %v2163_v2 }
 0xd23   : > { %v2074_v3 = vpop.f32.mrf.mxu0 }
 0xd24   : > { %v2077_v4 = vmul.f32 0.35355338, %v2074_v3 }
 0xd26   : > { %v2078_v5 = vadd.f32 %v2077_v4, %v7762_v22 }
 0xd27   : > { %v2046_v6 = vpop.f32.mrf.mxu2 }
 0xd28   : > { %6383 = vmatmul.msk.f32.vlgmr.msrb.gmra.mxu1 %vm1439_vm3, %v2046_v6  ;;  %v2079_v7 = vsel %vm1439_vm3, %v2078_v5, -inf  ;;  %v2387_v6 = vld [vmem:[#allocation10 + $0x38] sm:$0xff] }
 0xd29   : > { %2080 = vmax.xlane.f32.xlu0 %v2079_v7  ;;  %v2386_v7 = vld [vmem:[#allocation10 + $0x30] sm:$0xff] }
 0xd2b   : > { %v2187_v9 = vpop.f32.mrf.mxu0 }
 0xd2c   : > { %v2190_v10 = vmul.f32 0.35355338, %v2187_v9  ;;  %v2384_v9 = vld [vmem:[#allocation10 + $0x20] sm:$0xff] }
 0xd2e   : > { %v2191_v12 = vadd.f32 %v2190_v10, %v7762_v22  ;;  %v6402_v10 = vld [vmem:[%s8658_s6 + $0x78] sm:$0xff] }
 0xd2f   : > { %2442 = vmatpush.msrb.mxu1 %v6402_v10 }
 0xd30   : > { %6389 = vmatmul.msk.f32.vlgmr.msra.gmra.mxu1 %vm1439_vm3, %v2254_v13  ;;  %v2192_v14 = vsel %vm1439_vm3, %v2191_v12, -inf  ;;  %v6400_v13 = vld [vmem:[%s8658_s6 + $0x68] sm:$0xff] }
 0xd31   : > { %2193 = vmax.xlane.f32.xlu1 %v2192_v14 }
 0xd9c   : > { %v2081_v15 = vpop.xlane.xlu0 %2080 }
 0xd9d   : > { %v2082_v16 = vsub.f32 %v2078_v5, %v2081_v15 }
 0xd9f   : > { %v2083_v17 = vmul.f32 1.442695, %v2082_v16  ;;  %v6399_v16 = vld [vmem:[%s8658_s6 + $0x60] sm:$0xff] }
 0xda1   : > { %6879 = vpow2.f32 %v2083_v17 }
 0xda4   : > { %v2194_v18 = vpop.xlane.xlu1 %2193 }
 0xda5   : > { %v2195_v19 = vsub.f32 %v2191_v12, %v2194_v18  ;;  %v2159_v20 = vpop.f32.mrf.mxu1  ;;  %v6401_v12 = vld [vmem:[%s8658_s6 + $0x70] sm:$0xff]  ;;  %v6398_v18 = vld [vmem:[%s8658_s6 + $0x58] sm:$0xff] }
 0xda6   : > { %2443 = vmatpush.msrb.mxu1 %v6401_v12 }
 0xda7   : > { %v6880_v11 = vpop.eup %6879  ;;  %v2196_v21 = vmul.f32 1.442695, %v2195_v19 }
 0xda8   : > { %v2085_v23 = vsel %vm1439_vm3, %v6880_v11, 0.0  ;;  %2444 = vmatpush.msrb.mxu1 %v6400_v13 }
 0xda9   : > { %6881 = vpow2.f32 %v2196_v21  ;;  %2086 = vadd.xlane.f32.xlu0 %v2085_v23 }
 0xdaa   : > { %2445 = vmatpush.msrb.mxu1 %v6399_v16 }
 0xdac   : > { %2446 = vmatpush.msrb.mxu1 %v6398_v18 }
 0xdad   : > { %v2278_v24 = vpop.f32.mrf.mxu1 }
 0xdae   : > { %v2281_v25 = vmul.f32 0.35355338, %v2278_v24 }
 0xdaf   : > { %v6882_v26 = vpop.eup %6881 }
 0xdb0   : > { %v2198_v27 = vsel %vm1439_vm3, %v6882_v26, 0.0  ;;  %v2282_v28 = vadd.f32 %v2281_v25, %v7762_v22  ;;  %v6795_v25 = vld [vmem:[%s8647_s30 + $0x1] ss:$0 sm:$0xff] }
 0xdb1   : > { %2199 = vadd.xlane.f32.xlu1 %v2198_v27 }
 0xdb2   : > { %v2283_v29 = vsel %vm1439_vm3, %v2282_v28, -inf }
 0xdb3   : > { %2284 = vmax.xlane.f32.xlu2 %v2283_v29 }
 0xdca   : > { %2203 = vrot.lane.b32.xlu1 %v7833_v46, %s8575_s28 }
 0xdcb   : > { %2090 = vrot.lane.b32.xlu2 %v7833_v46, %s8569_s1 }
 0xe1c   : > { %v2087_v30 = vpop.xlane.xlu0 %2086 }
 0xe1d   : > { %6883 = vrcp.f32 %v2087_v30 }
 0xe23   : > { %v6884_v34 = vpop.eup %6883 }
 0xe24   : > { %v2089_v35 = vmul.f32 %v6884_v34, %v6880_v11  ;;  %v2200_v37 = vpop.xlane.xlu1 %2199  ;;  %v6797_v34 = vld [vmem:[%s8655_s14 + $0x1] ss:$0 sm:$0xff] }
 0xe26   : > { %v2285_v31 = vpop.xlane.xlu2 %2284 }
 0xe27   : > { %v2286_v32 = vsub.f32 %v2282_v28, %v2285_v31  ;;  %v6796_v28 = vld [vmem:[%s8651_s24 + $0x1] ss:$0 sm:$0xff]  ;;  %v6397_v31 = vld [vmem:[%s8658_s6 + $0x50] sm:$0xff] }
 0xe28   : > { %2447 = vmatpush.msrb.mxu1 %v6397_v31 }
 0xe29   : > { %v2287_v33 = vmul.f32 1.442695, %v2286_v32  ;;  %v6396_v32 = vld [vmem:[%s8658_s6 + $0x48] sm:$0xff] }
 0xe2a   : > { %2448 = vmatpush.msrb.mxu1 %v6396_v32 }
 0xe2b   : > { %6885 = vpow2.f32 %v2287_v33  ;;  %v6395_v33 = vld [vmem:[%s8658_s6 + $0x40] sm:$0xff] }
 0xe2c   : > { %6887 = vrcp.f32 %v2200_v37  ;;  %2449 = vmatpush.msrb.mxu1 %v6395_v33 }
 0xe2e   : > { %v2091_v36 = vpop.permute.xlu2 %2090 }
 0xe2f   : > { %2111 = vmatpush.msra.mxu3 %v2091_v36 }
 0xe30   : > { %6381 = vmatmul.msk.f32.vlgmr.msra.gmra.mxu3 %vm1439_vm3, %v2089_v35 }
 0xe31   : > { %v6886_v38 = vpop.eup %6885 }
 0xe32   : > { %v2289_v40 = vsel %vm1439_vm3, %v6886_v38, 0.0  ;;  %v6888_v41 = vpop.eup %6887 }
 0xe33   : > { %2290 = vadd.xlane.f32.xlu0 %v2289_v40  ;;  %v2202_v42 = vmul.f32 %v6888_v41, %v6882_v26 }
 0xe3c   : > { %v2204_v44 = vpop.permute.xlu1 %2203 }
 0xe3d   : > { %2224 = vmatpush.msrb.mxu3 %v2204_v44 }
 0xe3e   : > { %6386 = vmatmul.msk.f32.vlgmr.msrb.gmra.mxu3 %vm1439_vm3, %v2202_v42 }
 0xe47   : > { %2294 = vrot.lane.b32.xlu0 %v7833_v46, %s8567_s3  ;;  %v1954_v46 = vld [vmem:[#allocation12 + $0x38] sm:$0xff] }
 0xe48   : > { %2338 = vmatpush.msra.mxu3 %v1954_v46  ;;  %v2490_v46 = vld [vmem:[#allocation13 + $0x40] sm:$0xff] }
 0xea6   : > { %v2291_v48 = vpop.xlane.xlu0 %2290 }
 0xea7   : > { %6889 = vrcp.f32 %v2291_v48 }
 0xead   : > { %v6890_v50 = vpop.eup %6889 }
 0xeae   : > { %v2293_v51 = vmul.f32 %v6890_v50, %v6886_v38  ;;  %v6798_v38 = vld [vmem:[%s8668_s13 + $0x1] ss:$0 sm:$0xff] }
 0xeb3   : > { %v2113_v49 = vpop.f32.mrf.mxu3 }
 0xeb4   : > { %6382 = vmatmul.msk.f32.vlgmr.msrb.gmra.mxu2 %vm1439_vm3, %v2113_v49 }
 0xeb5   : > { %2419 = vmatpush.msrb.mxu2 %v2387_v6 }
 0xeb7   : > { %2420 = vmatpush.msrb.mxu2 %v2386_v7 }
 0xeb9   : > { %v2295_v52 = vpop.permute.xlu0 %2294 }
 0xeba   : > { %2315 = vmatpush.msrb.mxu0 %v2295_v52  ;;  %v2492_v52 = vld [vmem:[#allocation13 + $0x50] sm:$0xff] }
 0xebb   : > { %6390 = vmatmul.msk.f32.vlgmr.msrb.gmra.mxu0 %vm1439_vm3, %v2293_v51  ;;  %v2493_v51 = vld [vmem:[#allocation13 + $0x58] sm:$0xff] }
 0xebc   : > { %2521 = vmatpush.msra.mxu0 %v2493_v51 }
 0xebe   : > { %2522 = vmatpush.msra.mxu0 %v2492_v52 }
 0xec1   : > { %v2226_v53 = vpop.f32.mrf.mxu3 }
 0xec2   : > { %6387 = vmatmul.msk.f32.vlgmr.msra.gmra.mxu2 %vm1439_vm3, %v2226_v53  ;;  %v2491_v53 = vld [vmem:[#allocation13 + $0x48] sm:$0xff] }
 0xec3   : > { %2523 = vmatpush.msra.mxu0 %v2491_v53 }
 0xec5   : > { %2524 = vmatpush.msra.mxu0 %v2490_v46 }
 0xf37   : > { %v2136_v55 = vpop.f32.mrf.mxu2 }
 0xf38   : > { %v2317_v54 = vpop.f32.mrf.mxu0  ;;  %v2160_v57 = vadd.f32 %v2159_v20, %v2136_v55 }
 0xf39   : > { %6391 = vmatmul.msk.f32.vlgmr.msra.gmra.mxu3 %vm1439_vm3, %v2317_v54 }
 0xf45   : > { %v2249_v56 = vpop.f32.mrf.mxu2 }
 0xf46   : > { %v2252_v58 = vadd.f32 %v2249_v56, %v2160_v57 }
 0xfbc   : > { %v2340_v60 = vpop.f32.mrf.mxu3 }
 0xfbd   : > { %v2343_v61 = vadd.f32 %v2340_v60, %v2252_v58 }
 0xfbf   : > { %v2347_v62 = vadd.f32 %v6794_v59, %v2343_v61 }
 0xfc1   : > { %v2348_v63 = vadd.f32 %v2347_v62, %v7828_v43  ;;  %v2385_v43 = vld [vmem:[#allocation10 + $0x28] sm:$0xff] }
 0xfc2   : > { %2421 = vmatpush.msrb.mxu2 %v2385_v43 }
 0xfc3   : > { %v2353_v0 = vsel %vm1412_vm2, %v2348_v63, 0.0 }
 0xfc4   : > { %2354 = vadd.xlane.f32.xlu2 %v2353_v0  ;;  %2422 = vmatpush.msrb.mxu2 %v2384_v9 }
0x1037   : > { %v2355_v1 = vpop.xlane.xlu2 %2354 }
0x1038   : > { %v2356_v2 = vmul.f32 %v2355_v1, %v7803_v39 }
0x103a   : > { %v2357_v3 = vsub.f32 %v2348_v63, %v2356_v2  ;;  %v6799_v63 = vld [vmem:[%s8669_s22 + $0x1] ss:$0 sm:$0xff] }
0x103b   : > { %v6800_v2 = vld [vmem:[%s8670_s11 + $0x1] ss:$0 sm:$0xff] }
0x103c   : > { %v2358_v4 = vmul.f32 %v2357_v3, %v2357_v3 }
0x103e   : > { %v2359_v5 = vsel %vm1412_vm2, %v2358_v4, 0.0 }
0x103f   : > { %2360 = vadd.xlane.f32.xlu0 %v2359_v5  ;;  %v6801_v5 = vld [vmem:[%s8648_s29 + $0x2] ss:$0 sm:$0xff]  ;;  %s8702_s29 = sld [smem:[#allocation35_spill]] }
0x10b2   : > { %v2361_v14 = vpop.xlane.xlu0 %2360 }
0x10b3   : > { %v2362_v15 = vmul.f32 %v2361_v14, %v7803_v39 }
0x10b5   : > { %v2363_v17 = vadd.f32 1e-05, %v2362_v15 }
0x10b7   : > { %6891 = vrsqrt.f32 %v2363_v17  ;;  %vm2370_vm14 = vweird.f32 %v2363_v17 }
0x10bd   : > { %v6892_v19 = vpop.eup %6891 }
0x10be   : > { %v2365_v20 = vmul.f32 %v6892_v19, %v2363_v17  ;;  %vm2371_vm13 = vweird.f32 %v6892_v19 }
0x10bf   : > { %vm2372_vm15 = vmor %vm2370_vm14, %vm2371_vm13 }
0x10c0   : > { %v2366_v11 = vmul.f32 %v6892_v19, %v2365_v20 }
0x10c2   : > { %v2367_v21 = vmul.f32 0.5, %v2366_v11 }
0x10c4   : > { %v2368_v23 = vsub.f32 1.5, %v2367_v21 }
0x10c6   : > { %v2369_v24 = vmul.f32 %v6892_v19, %v2368_v23  ;;  %v2497_v23 = vld [vmem:[#allocation12 + $0x40] sm:$0xff] }
0x10c7   : > { %2703 = vmatpush.msra.mxu1 %v2497_v23 }
0x10c8   : > { %v2373_v26 = vsel %vm2372_vm15, %v6892_v19, %v2369_v24 }
0x10c9   : > { %v2374_v27 = vmul.f32 %v2373_v26, %v2357_v3 }
0x10cb   : > { %v2378_v29 = vmul.f32 %v6795_v25, %v2374_v27 }
0x10cd   : > { %v2382_v30 = vadd.f32 %v6796_v28, %v2378_v29 }
0x10cf   : > { %6404 = vmatmul.msk.f32.vlgmr.msrb.gmra.mxu2 %vm1412_vm2, %v2382_v30 }
0x1152   : > { %v2424_v35 = vpop.f32.mrf.mxu2 }
0x1153   : > { %v2425_v36 = vadd.f32 %v6797_v34, %v2424_v35 }
0x1155   : > { %v2427_v37 = vmax.f32 %v2425_v36, 0.0 }
0x1157   : > { %6405 = vmatmul.msk.f32.vlgmr.msrb.gmra.mxu1 %vm1886_vm9, %v2427_v37 }
0x11d4   : > { %v2451_v40 = vpop.f32.mrf.mxu1 }
0x11d5   : > { %v2452_v41 = vadd.f32 %v6798_v38, %v2451_v40 }
0x11d7   : > { %v2454_v42 = vadd.f32 %v2452_v41, %v2382_v30 }
0x11d9   : > { %v2459_v44 = vsel %vm1412_vm2, %v2454_v42, 0.0 }
0x11da   : > { %2460 = vadd.xlane.f32.xlu1 %v2459_v44 }
0x124d   : > { %v2461_v45 = vpop.xlane.xlu1 %2460 }
0x124e   : > { %v2462_v47 = vmul.f32 %v2461_v45, %v7803_v39 }
0x1250   : > { %v2463_v48 = vsub.f32 %v2454_v42, %v2462_v47 }
0x1252   : > { %v2464_v49 = vmul.f32 %v2463_v48, %v2463_v48 }
0x1254   : > { %v2465_v50 = vsel %vm1412_vm2, %v2464_v49, 0.0 }
0x1255   : > { %2466 = vadd.xlane.f32.xlu2 %v2465_v50 }
0x12c8   : > { %v2467_v54 = vpop.xlane.xlu2 %2466 }
0x12c9   : > { %v2468_v55 = vmul.f32 %v2467_v54, %v7803_v39 }
0x12cb   : > { %v2469_v56 = vadd.f32 1e-05, %v2468_v55 }
0x12cd   : > { %6893 = vrsqrt.f32 %v2469_v56  ;;  %vm2476_vm4 = vweird.f32 %v2469_v56 }
0x12d3   : > { %v6894_v57 = vpop.eup %6893 }
0x12d4   : > { %v2471_v58 = vmul.f32 %v6894_v57, %v2469_v56  ;;  %vm2477_vm0 = vweird.f32 %v6894_v57 }
0x12d5   : > { %vm2478_vm5 = vmor %vm2476_vm4, %vm2477_vm0 }
0x12d6   : > { %v2472_v59 = vmul.f32 %v6894_v57, %v2471_v58 }
0x12d8   : > { %v2473_v60 = vmul.f32 0.5, %v2472_v59 }
0x12da   : > { %v2474_v61 = vsub.f32 1.5, %v2473_v60 }
0x12dc   : > { %v2475_v62 = vmul.f32 %v6894_v57, %v2474_v61 }
0x12de   : > { %v2479_v0 = vsel %vm2478_vm5, %v6894_v57, %v2475_v62 }
0x12df   : > { %v2480_v1 = vmul.f32 %v2479_v0, %v2463_v48 }
0x12e1   : > { %v2484_v3 = vmul.f32 %v6799_v63, %v2480_v1 }
0x12e3   : > { %v7912_v4 = vadd.f32 %v6800_v2, %v2484_v3 }
0x12e5   : > { %6410 = vmatmul.msk.f32.vlgmr.msra.gmra.mxu0 %vm1412_vm2, %v7912_v4 }
0x1362   : > { %v2526_v6 = vpop.f32.mrf.mxu0 }
0x1363   : > { %v7917_v7 = vadd.f32 %v6801_v5, %v2526_v6 }
0x1365   : > { %2530 = vrot.lane.b32.xlu0 %v7917_v7, %s8587_s18 }
0x136d   : > { %2799 = vrot.lane.b32.xlu0 %v7917_v7, %s8585_s7 }
0x1375   : > { %2597 = vrot.lane.b32.xlu0 %v7917_v7, %s8577_s15 }
0x137d   : > { %2708 = vrot.lane.b32.xlu0 %v7917_v7, %s8581_s10 }
0x13d7   : > { %v2531_v43 = vpop.permute.xlu0 %2530 }
0x13d8   : > { %6411 = vmatpush.xpose.msk.msrb.mxu3 %vm1439_vm3, %v2531_v43 }
0x13db   : > { %6412 = vmatmul.msk.f32.vlgmr.msrb.gmra.mxu3 %vm1439_vm3, %v7917_v7 }
0x13df   : > { %v2800_v9 = vpop.permute.xlu0 %2799 }
0x13e7   : > { %v2598_v10 = vpop.permute.xlu0 %2597 }
0x13e8   : > { %6414 = vmatpush.xpose.msk.msrb.mxu0 %vm1439_vm3, %v2598_v10 }
0x13ef   : > { %v2709_v29 = vpop.permute.xlu0 %2708 }
0x145e   : > { %v2553_v12 = vpop.f32.mrf.mxu3 }
0x145f   : > { %v2556_v13 = vmul.f32 0.35355338, %v2553_v12 }
0x1461   : > { %v2557_v14 = vadd.f32 %v2556_v13, %v7762_v22 }
0x1463   : > { %v2558_v15 = vsel %vm1439_vm3, %v2557_v14, -inf }
0x1464   : > { %2559 = vmax.xlane.f32.xlu1 %v2558_v15 }
0x147d   : > { %2569 = vrot.lane.b32.xlu1 %v7917_v7, %s8571_s23 }
0x1485   : > { %2710 = vrot.lane.b32.xlu1 %v7917_v7, %s8579_s16 }
0x14d7   : > { %v2560_v16 = vpop.xlane.xlu1 %2559 }
0x14d8   : > { %v2561_v17 = vsub.f32 %v2557_v14, %v2560_v16 }
0x14da   : > { %v2562_v18 = vmul.f32 1.442695, %v2561_v17  ;;  %v2500_v17 = vld [vmem:[#allocation12 + $0x58] sm:$0xff] }
0x14dc   : > { %6895 = vpow2.f32 %v2562_v18  ;;  %v2499_v18 = vld [vmem:[#allocation12 + $0x50] sm:$0xff] }
0x14e2   : > { %v6896_v19 = vpop.eup %6895 }
0x14e3   : > { %v2564_v20 = vsel %vm1439_vm3, %v6896_v19, 0.0 }
0x14e4   : > { %2565 = vadd.xlane.f32.xlu2 %v2564_v20 }
0x14ef   : > { %v2570_v11 = vpop.permute.xlu1 %2569 }
0x14f0   : > { %2590 = vmatpush.msra.mxu2 %v2570_v11 }
0x14f7   : > { %v2711_v21 = vpop.permute.xlu1 %2710 }
0x14f8   : > { %6419 = vmatpush.xpose.msk.msra.mxu0 %vm1439_vm3, %v2711_v21 }
0x14fc   : > { %2801 = vrot.lane.b32.xlu2 %v7917_v7, %s8573_s2 }
0x1504   : > { %2595 = vrot.lane.b32.xlu2 %v7917_v7, %s8583_s26 }
0x1557   : > { %v2566_v24 = vpop.xlane.xlu2 %2565 }
0x1558   : > { %6897 = vrcp.f32 %v2566_v24 }
0x155e   : > { %v6898_v25 = vpop.eup %6897 }
0x155f   : > { %v2568_v26 = vmul.f32 %v6898_v25, %v6896_v19  ;;  %v2802_v27 = vpop.permute.xlu2 %2801 }
0x1560   : > { %6423 = vmatpush.xpose.msk.msrb.mxu1 %vm1439_vm3, %v2802_v27 }
0x1561   : > { %6413 = vmatmul.msk.f32.vlgmr.msra.gmra.mxu2 %vm1439_vm3, %v2568_v26 }
0x1567   : > { %v2596_v28 = vpop.permute.xlu2 %2595 }
0x1568   : > { %6415 = vmatmul.msk.f32.vlgmr.msrb.gmra.mxu0 %vm1439_vm3, %v2596_v28 }
0x1570   : > { %6420 = vmatmul.msk.f32.vlgmr.msra.gmra.mxu0 %vm1439_vm3, %v2709_v29  ;;  %v6803_v29 = vld [vmem:[%s8650_s25 + $0x2] ss:$0 sm:$0xff]  ;;  %s8700_s25 = sld [smem:[#allocation24_spill]] }
0x15e4   : > { %v2592_v30 = vpop.f32.mrf.mxu2 }
0x15e5   : > { %v2620_v31 = vpop.f32.mrf.mxu0  ;;  %6418 = vmatmul.msk.f32.vlgmr.msra.gmra.mxu1 %vm1439_vm3, %v2592_v30 }
0x15e6   : > { %v2623_v32 = vmul.f32 0.35355338, %v2620_v31 }
0x15e8   : > { %v2624_v33 = vadd.f32 %v2623_v32, %v7762_v22 }
0x15ea   : > { %v2625_v34 = vsel %vm1439_vm3, %v2624_v33, -inf }
0x15eb   : > { %2626 = vmax.xlane.f32.xlu1 %v2625_v34 }
0x15ed   : > { %v2733_v35 = vpop.f32.mrf.mxu0  ;;  %6424 = vmatmul.msk.f32.vlgmr.msrb.gmra.mxu1 %vm1439_vm3, %v2800_v9  ;;  %v2498_v9 = vld [vmem:[#allocation12 + $0x48] sm:$0xff] }
0x15ee   : > { %v2736_v36 = vmul.f32 0.35355338, %v2733_v35  ;;  %2680 = vmatpush.msrb.mxu2 %v2498_v9 }
0x15f0   : > { %v2737_v37 = vadd.f32 %v2736_v36, %v7762_v22  ;;  %2793 = vmatpush.msra.mxu2 %v2499_v18 }
0x15f2   : > { %v2738_v38 = vsel %vm1439_vm3, %v2737_v37, -inf }
0x15f3   : > { %2739 = vmax.xlane.f32.xlu0 %v2738_v38 }
0x1607   : > { %2840 = vrot.lane.b32.xlu0 %v7917_v7, %s8567_s3  ;;  %s8671_s3 = sld [smem:[#allocation42_spill]] }
0x160d   : > { %v3070_v2 = vld [vmem:[%s8671_s3 + $0x18] sm:$0xff]  ;;  %v3069_v3 = vld [vmem:[%s8671_s3 + $0x10] sm:$0xff]  ;;  %v3068_v5 = vld [vmem:[%s8671_s3 + $0x8] sm:$0xff] }
0x160e   : > { %v3067_v6 = vld [vmem:[%s8671_s3] sm:$0xff] }
0x165e   : > { %v2627_v40 = vpop.xlane.xlu1 %2626 }
0x165f   : > { %v2628_v41 = vsub.f32 %v2624_v33, %v2627_v40 }
0x1661   : > { %v2629_v42 = vmul.f32 1.442695, %v2628_v41 }
0x1662   : > { %v7955_v44 = vpop.f32.mrf.mxu1 }
0x1663   : > { %6899 = vpow2.f32 %v2629_v42 }
0x1666   : > { %v2740_v45 = vpop.xlane.xlu0 %2739 }
0x1667   : > { %v2741_v47 = vsub.f32 %v2737_v37, %v2740_v45 }
0x1669   : > { %v6900_v48 = vpop.eup %6899  ;;  %v2742_v49 = vmul.f32 1.442695, %v2741_v47  ;;  %v2932_v47 = vld [vmem:[#allocation10 + $0x50] sm:$0xff] }
0x166a   : > { %v2824_v50 = vpop.f32.mrf.mxu1  ;;  %v2631_v51 = vsel %vm1439_vm3, %v6900_v48, 0.0 }
0x166b   : > { %v2827_v52 = vmul.f32 0.35355338, %v2824_v50  ;;  %2632 = vadd.xlane.f32.xlu1 %v2631_v51  ;;  %6901 = vpow2.f32 %v2742_v49  ;;  %v2930_v49 = vld [vmem:[#allocation10 + $0x40] sm:$0xff] }
0x166d   : > { %v2828_v53 = vadd.f32 %v2827_v52, %v7762_v22 }
0x166f   : > { %v2829_v46 = vsel %vm1439_vm3, %v2828_v53, -inf }
0x1670   : > { %2830 = vmax.xlane.f32.xlu2 %v2829_v46 }
0x1671   : > { %v6902_v54 = vpop.eup %6901 }
0x1672   : > { %v2744_v55 = vsel %vm1439_vm3, %v6902_v54, 0.0 }
0x1678   : > { %2745 = vadd.xlane.f32.xlu2 %v2744_v55 }
0x1679   : > { %v2841_v56 = vpop.permute.xlu0 %2840 }
0x167a   : > { %2861 = vmatpush.msrb.mxu0 %v2841_v56 }
0x167c   : > { %3092 = vmatpush.msra.mxu0 %v3070_v2 }
0x167e   : > { %3093 = vmatpush.msra.mxu0 %v3069_v3 }
0x1680   : > { %3094 = vmatpush.msra.mxu0 %v3068_v5  ;;  %v6805_v5 = vld [vmem:[%s8651_s24 + $0x2] ss:$0 sm:$0xff]  ;;  %s8699_s24 = sld [smem:[#allocation23_spill]] }
0x1682   : > { %3095 = vmatpush.msra.mxu0 %v3067_v6 }
0x1684   : > { %2636 = vrot.lane.b32.xlu1 %v7917_v7, %s8569_s1  ;;  %s8672_s1 = sld [smem:[#allocation40_spill]] }
0x168a   : > { %v6802_v20 = vld [vmem:[%s8672_s1] ss:$0 sm:$0xff] }
0x16de   : > { %v2633_v60 = vpop.xlane.xlu1 %2632 }
0x16e3   : > { %v2831_v57 = vpop.xlane.xlu2 %2830 }
0x16e4   : > { %v2832_v58 = vsub.f32 %v2828_v53, %v2831_v57 }
0x16e6   : > { %v2833_v59 = vmul.f32 1.442695, %v2832_v58 }
0x16e8   : > { %6903 = vpow2.f32 %v2833_v59 }
0x16e9   : > { %6905 = vrcp.f32 %v2633_v60 }
0x16eb   : > { %v2746_v43 = vpop.xlane.xlu2 %2745 }
0x16ec   : > { %6907 = vrcp.f32 %v2746_v43 }
0x16ee   : > { %v6904_v61 = vpop.eup %6903 }
0x16ef   : > { %v2835_v62 = vsel %vm1439_vm3, %v6904_v61, 0.0  ;;  %v6906_v63 = vpop.eup %6905 }
0x16f0   : > { %2836 = vadd.xlane.f32.xlu2 %v2835_v62  ;;  %v2635_v0 = vmul.f32 %v6906_v63, %v6900_v48  ;;  %v2931_v48 = vld [vmem:[#allocation10 + $0x48] sm:$0xff] }
0x16f2   : > { %v6908_v12 = vpop.eup %6907 }
0x16f3   : > { %v2748_v14 = vmul.f32 %v6908_v12, %v6902_v54  ;;  %v6436_v12 = vld [vmem:[%s8658_s6 + $0xb0] sm:$0xff] }
0x16f6   : > { %v2637_v1 = vpop.permute.xlu1 %2636 }
0x16f7   : > { %2657 = vmatpush.msra.mxu3 %v2637_v1  ;;  %v6804_v1 = vld [vmem:[%s8647_s30 + $0x2] ss:$0 sm:$0xff]  ;;  %s8703_s30 = smov 64  }
0x16f8   : > { %6416 = vmatmul.msk.f32.vlgmr.msra.gmra.mxu3 %vm1439_vm3, %v2635_v0 }
0x1708   : > { %2749 = vrot.lane.b32.xlu2 %v7917_v7, %s8575_s28 }
0x1763   : > { %v2837_v10 = vpop.xlane.xlu2 %2836 }
0x1764   : > { %6909 = vrcp.f32 %v2837_v10  ;;  %v6437_v10 = vld [vmem:[%s8658_s6 + $0xb8] sm:$0xff] }
0x1765   : > { %2988 = vmatpush.msra.mxu1 %v6437_v10 }
0x1767   : > { %2989 = vmatpush.msra.mxu1 %v6436_v12 }
0x176a   : > { %v6910_v13 = vpop.eup %6909 }
0x176b   : > { %v2839_v15 = vmul.f32 %v6910_v13, %v6904_v61  ;;  %v2750_v7 = vpop.permute.xlu2 %2749  ;;  %v6435_v13 = vld [vmem:[%s8658_s6 + $0xa8] sm:$0xff] }
0x176c   : > { %2770 = vmatpush.msrb.mxu3 %v2750_v7  ;;  %2990 = vmatpush.msra.mxu1 %v6435_v13 }
0x176d   : > { %6421 = vmatmul.msk.f32.vlgmr.msrb.gmra.mxu3 %vm1439_vm3, %v2748_v14  ;;  %6425 = vmatmul.msk.f32.vlgmr.msrb.gmra.mxu0 %vm1439_vm3, %v2839_v15  ;;  %v6434_v14 = vld [vmem:[%s8658_s6 + $0xa0] sm:$0xff]  ;;  %v6433_v15 = vld [vmem:[%s8658_s6 + $0x98] sm:$0xff] }
0x176e   : > { %2884 = vmatpush.msra.mxu3 %v2500_v17  ;;  %2991 = vmatpush.msra.mxu1 %v6434_v14  ;;  %v6431_v17 = vld [vmem:[%s8658_s6 + $0x88] sm:$0xff] }
0x1770   : > { %2992 = vmatpush.msra.mxu1 %v6433_v15 }
0x1775   : > { %6443 = vmatmul.msk.f32.vlgmr.msra.gmra.mxu0 %vm1412_vm2, %v7736_v8 }
0x177b   : > { %v2659_v16 = vpop.f32.mrf.mxu3 }
0x177c   : > { %6417 = vmatmul.msk.f32.vlgmr.msrb.gmra.mxu2 %vm1439_vm3, %v2659_v16  ;;  %v6432_v16 = vld [vmem:[%s8658_s6 + $0x90] sm:$0xff] }
0x177d   : > { %2993 = vmatpush.msra.mxu1 %v6432_v16 }
0x177f   : > { %2994 = vmatpush.msra.mxu1 %v6431_v17 }
0x17ea   : > { %v2863_v19 = vpop.f32.mrf.mxu0 }
0x17eb   : > { %6426 = vmatmul.msk.f32.vlgmr.msra.gmra.mxu3 %vm1439_vm3, %v2863_v19 }
0x17f0   : > { %v2772_v11 = vpop.f32.mrf.mxu3 }
0x17f1   : > { %6422 = vmatmul.msk.f32.vlgmr.msra.gmra.mxu2 %vm1439_vm3, %v2772_v11 }
0x17f2   : > { %v3097_v21 = vpop.f32.mrf.mxu0 }
0x17f3   : > { %v7979_v23 = vadd.f32 %v6802_v20, %v3097_v21  ;;  %v6430_v20 = vld [vmem:[%s8658_s6 + $0x80] sm:$0xff]  ;;  %s8687_s6 = smov 96  }
0x17f4   : > { %2995 = vmatpush.msra.mxu1 %v6430_v20 }
0x17f5   : > { %3101 = vrot.lane.b32.xlu0 %v7979_v23, %s8587_s18 }
0x17ff   : > { %v2682_v25 = vpop.f32.mrf.mxu2 }
0x1800   : > { %v2706_v26 = vadd.f32 %v7955_v44, %v2682_v25  ;;  %v6806_v25 = vld [vmem:[%s8655_s14 + $0x2] ss:$0 sm:$0xff]  ;;  %s8693_s14 = smov 88  }
0x1867   : > { %v3102_v24 = vpop.permute.xlu0 %3101 }
0x1868   : > { %6444 = vmatpush.xpose.msk.msrb.mxu3 %vm1439_vm3, %v3102_v24 }
0x186b   : > { %6445 = vmatmul.msk.f32.vlgmr.msrb.gmra.mxu3 %vm1439_vm3, %v7979_v23 }
0x186e   : > { %v2886_v30 = vpop.f32.mrf.mxu3 }
0x1874   : > { %v2795_v27 = vpop.f32.mrf.mxu2 }
0x1875   : > { %v2798_v28 = vadd.f32 %v2795_v27, %v2706_v26 }
0x1877   : > { %v2889_v31 = vadd.f32 %v2886_v30, %v2798_v28 }
0x1879   : > { %v2893_v32 = vadd.f32 %v6803_v29, %v2889_v31 }
0x187b   : > { %v2894_v33 = vadd.f32 %v2893_v32, %v7912_v4  ;;  %v2933_v4 = vld [vmem:[#allocation10 + $0x58] sm:$0xff] }
0x187c   : > { %2965 = vmatpush.msrb.mxu2 %v2933_v4 }
0x187d   : > { %v2899_v34 = vsel %vm1412_vm2, %v2894_v33, 0.0 }
0x187e   : > { %2900 = vadd.xlane.f32.xlu0 %v2899_v34  ;;  %2966 = vmatpush.msrb.mxu2 %v2932_v47 }
0x1880   : > { %2967 = vmatpush.msrb.mxu2 %v2931_v48 }
0x1882   : > { %2968 = vmatpush.msrb.mxu2 %v2930_v49 }
0x18ee   : > { %v3124_v35 = vpop.f32.mrf.mxu3 }
0x18ef   : > { %v3127_v36 = vmul.f32 0.35355338, %v3124_v35 }
0x18f1   : > { %v2901_v37 = vpop.xlane.xlu0 %2900  ;;  %v3128_v38 = vadd.f32 %v3127_v36, %v7762_v22 }
0x18f2   : > { %v2902_v40 = vmul.f32 %v2901_v37, %v7803_v39 }
0x18f3   : > { %v3129_v41 = vsel %vm1439_vm3, %v3128_v38, -inf }
0x18f4   : > { %v2903_v42 = vsub.f32 %v2894_v33, %v2902_v40  ;;  %3130 = vmax.xlane.f32.xlu1 %v3129_v41 }
0x18f6   : > { %v2904_v44 = vmul.f32 %v2903_v42, %v2903_v42 }
0x18f8   : > { %v2905_v45 = vsel %vm1412_vm2, %v2904_v44, 0.0 }
0x18f9   : > { %2906 = vadd.xlane.f32.xlu2 %v2905_v45 }
0x190d   : > { %3140 = vrot.lane.b32.xlu1 %v7979_v23, %s8571_s23  ;;  %s8673_s23 = sld [smem:[#allocation41_spill]] }
0x1911   : > { %3168 = vrot.lane.b32.xlu2 %v7979_v23, %s8577_s15  ;;  %s8676_s15 = sld [smem:[#allocation39_spill]] }
0x1913   : > { %v3072_v11 = vld [vmem:[%s8673_s23] sm:$0xff]  ;;  %v3073_v17 = vld [vmem:[%s8673_s23 + $0x8] sm:$0xff] }
0x1914   : > { %3274 = vmatpush.msrb.mxu1 %v3072_v11 }
0x1915   : > { %3281 = vrot.lane.b32.xlu1 %v7979_v23, %s8579_s16  ;;  %s8677_s16 = sld [smem:[#allocation28_spill]] }
0x1919   : > { %3372 = vrot.lane.b32.xlu2 %v7979_v23, %s8573_s2  ;;  %s8674_s2 = smov 56  }
0x191d   : > { %3370 = vrot.lane.b32.xlu1 %v7979_v23, %s8585_s7  ;;  %s8680_s7 = sld [smem:[#allocation30_spill]] }
0x1923   : > { %s8681_s18 = smov %s8680_s7 }
0x1967   : > { %v3131_v50 = vpop.xlane.xlu1 %3130 }
0x1968   : > { %v3132_v51 = vsub.f32 %v3128_v38, %v3131_v50 }
0x196a   : > { %v3133_v52 = vmul.f32 1.442695, %v3132_v51 }
0x196c   : > { %6911 = vpow2.f32 %v3133_v52  ;;  %v2907_v53 = vpop.xlane.xlu2 %2906 }
0x196d   : > { %v2908_v46 = vmul.f32 %v2907_v53, %v7803_v39 }
0x196f   : > { %v2909_v54 = vadd.f32 1e-05, %v2908_v46 }
0x1971   : > { %6913 = vrsqrt.f32 %v2909_v54  ;;  %vm2916_vm7 = vweird.f32 %v2909_v54 }
0x1972   : > { %v6912_v55 = vpop.eup %6911 }
0x1973   : > { %v3135_v56 = vsel %vm1439_vm3, %v6912_v55, 0.0 }
0x1974   : > { %3136 = vadd.xlane.f32.xlu0 %v3135_v56  ;;  %v3169_v57 = vpop.permute.xlu2 %3168 }
0x1975   : > { %6447 = vmatpush.xpose.msk.msrb.mxu0 %vm1439_vm3, %v3169_v57  ;;  %v6807_v57 = vld [vmem:[%s8668_s13 + $0x2] ss:$0 sm:$0xff]  ;;  %s8691_s13 = smov 112  }
0x1977   : > { %v6914_v58 = vpop.eup %6913 }
0x1978   : > { %v2911_v59 = vmul.f32 %v6914_v58, %v2909_v54  ;;  %vm2917_vm6 = vweird.f32 %v6914_v58 }
0x1979   : > { %vm2918_vm8 = vmor %vm2916_vm7, %vm2917_vm6 }
0x197a   : > { %v2912_v60 = vmul.f32 %v6914_v58, %v2911_v59 }
0x197c   : > { %v2913_v61 = vmul.f32 0.5, %v2912_v60  ;;  %v3373_v29 = vpop.permute.xlu2 %3372 }
0x197e   : > { %v2914_v62 = vsub.f32 1.5, %v2913_v61 }
0x197f   : > { %v3141_v63 = vpop.permute.xlu1 %3140 }
0x1980   : > { %v2915_v0 = vmul.f32 %v6914_v58, %v2914_v62  ;;  %3161 = vmatpush.msra.mxu2 %v3141_v63 }
0x1982   : > { %v2919_v2 = vsel %vm2918_vm8, %v6914_v58, %v2915_v0 }
0x1983   : > { %v2920_v3 = vmul.f32 %v2919_v2, %v2903_v42 }
0x1985   : > { %v2924_v6 = vmul.f32 %v6804_v1, %v2920_v3 }
0x1987   : > { %v3282_v43 = vpop.permute.xlu1 %3281  ;;  %v8009_v9 = vadd.f32 %v6805_v5, %v2924_v6 }
0x1988   : > { %3166 = vrot.lane.b32.xlu0 %v7979_v23, %s8583_s26  ;;  %6452 = vmatpush.xpose.msk.msra.mxu0 %vm1439_vm3, %v3282_v43  ;;  %s8679_s26 = sld [smem:[#allocation53_spill]] }
0x1989   : > { %6439 = vmatmul.msk.f32.vlgmr.msrb.gmra.mxu2 %vm1412_vm2, %v8009_v9 }
0x198a   : > { %3251 = vmatpush.msrb.mxu2 %v3073_v17 }
0x198e   : > { %v6812_v17 = vld [vmem:[%s8679_s26] ss:$0 sm:$0xff]  ;;  %s8684_s26 = sld [smem:[#allocation25_spill]] }
0x198f   : > { %v3371_v34 = vpop.permute.xlu1 %3370 }
0x1990   : > { %3279 = vrot.lane.b32.xlu0 %v7979_v23, %s8581_s10  ;;  %s8678_s10 = sld [smem:[#allocation54_spill]] }
0x19e7   : > { %v3137_v7 = vpop.xlane.xlu0 %3136 }
0x19e8   : > { %6915 = vrcp.f32 %v3137_v7 }
0x19ee   : > { %v6916_v18 = vpop.eup %6915 }
0x19ef   : > { %v3139_v19 = vmul.f32 %v6916_v18, %v6912_v55  ;;  %v3074_v18 = vld [vmem:[%s8673_s23 + $0x10] sm:$0xff] }
0x19f1   : > { %6446 = vmatmul.msk.f32.vlgmr.msra.gmra.mxu2 %vm1439_vm3, %v3139_v19 }
0x19f2   : > { %3364 = vmatpush.msra.mxu2 %v3074_v18 }
0x19fa   : > { %v3167_v21 = vpop.permute.xlu0 %3166 }
0x19fb   : > { %6448 = vmatmul.msk.f32.vlgmr.msrb.gmra.mxu0 %vm1439_vm3, %v3167_v21 }
0x1a02   : > { %v3280_v24 = vpop.permute.xlu0 %3279 }
0x1a03   : > { %6453 = vmatmul.msk.f32.vlgmr.msra.gmra.mxu0 %vm1439_vm3, %v3280_v24 }
0x1a0c   : > { %v2970_v26 = vpop.f32.mrf.mxu2 }
0x1a0d   : > { %v2971_v27 = vadd.f32 %v6806_v25, %v2970_v26 }
0x1a0f   : > { %v2973_v28 = vmax.f32 %v2971_v27, 0.0 }
0x1a11   : > { %6440 = vmatmul.msk.f32.vlgmr.msra.gmra.mxu1 %vm1886_vm9, %v2973_v28 }
0x1a12   : > { %6456 = vmatpush.xpose.msk.msra.mxu1 %vm1439_vm3, %v3373_v29 }
0x1a74   : > { %v3163_v30 = vpop.f32.mrf.mxu2 }
0x1a75   : > { %6451 = vmatmul.msk.f32.vlgmr.msrb.gmra.mxu1 %vm1439_vm3, %v3163_v30 }
0x1a78   : > { %v3191_v31 = vpop.f32.mrf.mxu0 }
0x1a79   : > { %v3194_v32 = vmul.f32 0.35355338, %v3191_v31 }
0x1a7b   : > { %v3195_v33 = vadd.f32 %v3194_v32, %v7762_v22 }
0x1a7d   : > { %6457 = vmatmul.msk.f32.vlgmr.msra.gmra.mxu1 %vm1439_vm3, %v3371_v34  ;;  %v3196_v35 = vsel %vm1439_vm3, %v3195_v33, -inf  ;;  %v6808_v34 = vld [vmem:[%s8669_s22 + $0x2] ss:$0 sm:$0xff]  ;;  %s8698_s22 = sld [smem:[#allocation33_spill]] }
0x1a7e   : > { %3197 = vmax.xlane.f32.xlu0 %v3196_v35 }
0x1a80   : > { %v3304_v36 = vpop.f32.mrf.mxu0 }
0x1a81   : > { %v3307_v37 = vmul.f32 0.35355338, %v3304_v36 }
0x1a83   : > { %v3308_v38 = vadd.f32 %v3307_v37, %v7762_v22  ;;  %v6809_v37 = vld [vmem:[%s8670_s11 + $0x2] ss:$0 sm:$0xff]  ;;  %s8689_s11 = sld [smem:[#allocation29_spill]] }
0x1a85   : > { %v3309_v40 = vsel %vm1439_vm3, %v3308_v38, -inf }
0x1a86   : > { %3310 = vmax.xlane.f32.xlu2 %v3309_v40 }
0x1a8e   : > { %v2997_v41 = vpop.f32.mrf.mxu1 }
0x1a8f   : > { %v2998_v58 = vadd.f32 %v6807_v57, %v2997_v41 }
0x1a91   : > { %v3000_v59 = vadd.f32 %v2998_v58, %v8009_v9 }
0x1a93   : > { %v3005_v60 = vsel %vm1412_vm2, %v3000_v59, 0.0 }
0x1af1   : > { %v3198_v42 = vpop.xlane.xlu0 %3197 }
0x1af2   : > { %v3199_v44 = vsub.f32 %v3195_v33, %v3198_v42  ;;  %v8039_v45 = vpop.f32.mrf.mxu1  ;;  %v3075_v42 = vld [vmem:[%s8673_s23 + $0x18] sm:$0xff] }
0x1af4   : > { %v3200_v4 = vmul.f32 1.442695, %v3199_v44 }
0x1af6   : > { %6917 = vpow2.f32 %v3200_v4 }
0x1af9   : > { %v3311_v47 = vpop.xlane.xlu2 %3310 }
0x1afa   : > { %v3312_v48 = vsub.f32 %v3308_v38, %v3311_v47  ;;  %v3395_v49 = vpop.f32.mrf.mxu1 }
0x1afb   : > { %v3398_v50 = vmul.f32 0.35355338, %v3395_v49 }
0x1afc   : > { %v6918_v51 = vpop.eup %6917  ;;  %v3313_v52 = vmul.f32 1.442695, %v3312_v48 }
0x1afd   : > { %v3202_v53 = vsel %vm1439_vm3, %v6918_v51, 0.0  ;;  %v3399_v46 = vadd.f32 %v3398_v50, %v7762_v22  ;;  %v6810_v50 = vld [vmem:[%s8676_s15] ss:$0 sm:$0xff] }
0x1afe   : > { %6919 = vpow2.f32 %v3313_v52  ;;  %3203 = vadd.xlane.f32.xlu0 %v3202_v53 }
0x1aff   : > { %v3400_v54 = vsel %vm1439_vm3, %v3399_v46, -inf }
0x1b00   : > { %3401 = vmax.xlane.f32.xlu1 %v3400_v54 }
0x1b04   : > { %v6920_v55 = vpop.eup %6919 }
0x1b05   : > { %v3315_v56 = vsel %vm1439_vm3, %v6920_v55, 0.0 }
0x1b06   : > { %3316 = vadd.xlane.f32.xlu2 %v3315_v56 }
0x1b19   : > { %3207 = vrot.lane.b32.xlu1 %v7979_v23, %s8674_s2 }
0x1b1e   : > { %3320 = vrot.lane.b32.xlu2 %v7979_v23, %s8575_s28  ;;  %s8675_s28 = smov 40  }
0x1b43   : > { %3006 = vadd.xlane.f32.xlu1 %v3005_v60 }
0x1b71   : > { %v3204_v1 = vpop.xlane.xlu0 %3203 }
0x1b73   : > { %v3402_v61 = vpop.xlane.xlu1 %3401 }
0x1b74   : > { %v3403_v62 = vsub.f32 %v3399_v46, %v3402_v61  ;;  %v3505_v61 = vld [vmem:[%s8677_s16 + $0x10] sm:$0xff] }
0x1b76   : > { %v3404_v63 = vmul.f32 1.442695, %v3403_v62 }
0x1b78   : > { %6921 = vpow2.f32 %v3404_v63  ;;  %v3504_v63 = vld [vmem:[%s8677_s16 + $0x8] sm:$0xff] }
0x1b79   : > { %6923 = vrcp.f32 %v3204_v1  ;;  %v3317_v3 = vpop.xlane.xlu2 %3316 }
0x1b7a   : > { %6925 = vrcp.f32 %v3317_v3 }
0x1b7e   : > { %v6922_v0 = vpop.eup %6921 }
0x1b7f   : > { %v3406_v2 = vsel %vm1439_vm3, %v6922_v0, 0.0  ;;  %v6924_v5 = vpop.eup %6923 }
0x1b80   : > { %3407 = vadd.xlane.f32.xlu0 %v3406_v2  ;;  %v3206_v6 = vmul.f32 %v6924_v5, %v6918_v51  ;;  %v6926_v10 = vpop.eup %6925 }
0x1b81   : > { %v3321_v9 = vpop.permute.xlu2 %3320  ;;  %v3319_v12 = vmul.f32 %v6926_v10, %v6920_v55 }
0x1b8b   : > { %v3208_v43 = vpop.permute.xlu1 %3207 }
0x1b8c   : > { %3228 = vmatpush.msra.mxu3 %v3208_v43 }
0x1b8d   : > { %6449 = vmatmul.msk.f32.vlgmr.msra.gmra.mxu3 %vm1439_vm3, %v3206_v6 }
0x1b8e   : > { %3341 = vmatpush.msrb.mxu3 %v3321_v9 }
0x1b90   : > { %3455 = vmatpush.msra.mxu3 %v3075_v42 }
0x1b94   : > { %3411 = vrot.lane.b32.xlu0 %v7979_v23, %s8675_s28 }
0x1b95   : > { %6454 = vmatmul.msk.f32.vlgmr.msrb.gmra.mxu3 %vm1439_vm3, %v3319_v12 }
0x1bb6   : > { %v3007_v13 = vpop.xlane.xlu1 %3006 }
0x1bb7   : > { %v3008_v14 = vmul.f32 %v3007_v13, %v7803_v39 }
0x1bb9   : > { %v3009_v15 = vsub.f32 %v3000_v59, %v3008_v14  ;;  %v3506_v59 = vld [vmem:[%s8677_s16 + $0x18] sm:$0xff] }
0x1bba   : > { %3557 = vmatpush.msrb.mxu1 %v3506_v59 }
0x1bbb   : > { %v3010_v7 = vmul.f32 %v3009_v15, %v3009_v15 }
0x1bbc   : > { %3558 = vmatpush.msrb.mxu1 %v3505_v61 }
0x1bbd   : > { %v3011_v16 = vsel %vm1412_vm2, %v3010_v7, 0.0 }
0x1bbe   : > { %3012 = vadd.xlane.f32.xlu2 %v3011_v16  ;;  %3559 = vmatpush.msrb.mxu1 %v3504_v63 }
0x1bf3   : > { %v3408_v19 = vpop.xlane.xlu0 %3407 }
0x1bf4   : > { %6927 = vrcp.f32 %v3408_v19 }
0x1bfa   : > { %v6928_v20 = vpop.eup %6927 }
0x1bfb   : > { %v3410_v11 = vmul.f32 %v6928_v20, %v6922_v0  ;;  %v3503_v0 = vld [vmem:[%s8677_s16] sm:$0xff]  ;;  %v3501_v20 = vld [vmem:[%s8680_s7 + $0x18] sm:$0xff]  ;;  %s8685_s7 = sld [smem:[#allocation27_spill]] }
0x1bfc   : > { %3560 = vmatpush.msrb.mxu1 %v3503_v0 }
0x1c01   : > { %s8686_s5 = smov %s8685_s7 }
0x1c06   : > { %v3412_v21 = vpop.permute.xlu0 %3411 }
0x1c07   : > { %3432 = vmatpush.msrb.mxu0 %v3412_v21  ;;  %v3499_v21 = vld [vmem:[%s8681_s18 + $0x8] sm:$0xff] }
0x1c08   : > { %6458 = vmatmul.msk.f32.vlgmr.msrb.gmra.mxu0 %vm1439_vm3, %v3410_v11  ;;  %v3500_v11 = vld [vmem:[%s8681_s18 + $0x10] sm:$0xff] }
0x1c10   : > { %v3230_v23 = vpop.f32.mrf.mxu3 }
0x1c11   : > { %6450 = vmatmul.msk.f32.vlgmr.msrb.gmra.mxu2 %vm1439_vm3, %v3230_v23  ;;  %v3498_v23 = vld [vmem:[%s8681_s18] sm:$0xff] }
0x1c12   : > { %3531 = vmatpush.msrb.mxu2 %v3501_v20 }
0x1c14   : > { %3532 = vmatpush.msrb.mxu2 %v3500_v11 }
0x1c16   : > { %3533 = vmatpush.msrb.mxu2 %v3499_v21 }
0x1c18   : > { %v3343_v24 = vpop.f32.mrf.mxu3  ;;  %3534 = vmatpush.msrb.mxu2 %v3498_v23 }
0x1c19   : > { %6455 = vmatmul.msk.f32.vlgmr.msra.gmra.mxu2 %vm1439_vm3, %v3343_v24 }
0x1c31   : > { %v3013_v25 = vpop.xlane.xlu2 %3012 }
0x1c32   : > { %v3014_v26 = vmul.f32 %v3013_v25, %v7803_v39 }
0x1c34   : > { %v3015_v27 = vadd.f32 1e-05, %v3014_v26 }
0x1c36   : > { %6929 = vrsqrt.f32 %v3015_v27  ;;  %vm3022_vm11 = vweird.f32 %v3015_v27 }
0x1c3c   : > { %v6930_v28 = vpop.eup %6929 }
0x1c3d   : > { %v3017_v29 = vmul.f32 %v6930_v28, %v3015_v27  ;;  %vm3023_vm10 = vweird.f32 %v6930_v28 }
0x1c3e   : > { %vm3024_vm12 = vmor %vm3022_vm11, %vm3023_vm10 }
0x1c3f   : > { %v3018_v30 = vmul.f32 %v6930_v28, %v3017_v29 }
0x1c41   : > { %v3019_v31 = vmul.f32 0.5, %v3018_v30 }
0x1c43   : > { %v3020_v32 = vsub.f32 1.5, %v3019_v31 }
0x1c45   : > { %v3021_v33 = vmul.f32 %v6930_v28, %v3020_v32 }
0x1c47   : > { %v3025_v35 = vsel %vm3024_vm12, %v6930_v28, %v3021_v33  ;;  %v6813_v33 = vld [vmem:[%s8682_s4] ss:$0 sm:$0xff] }
0x1c48   : > { %v3026_v36 = vmul.f32 %v3025_v35, %v3009_v15  ;;  %v6811_v15 = vld [vmem:[%s8678_s10] ss:$0 sm:$0xff]  ;;  %s8683_s10 = sld [smem:[#allocation31_spill]] }
0x1c4a   : > { %v3030_v38 = vmul.f32 %v6808_v34, %v3026_v36 }
0x1c4c   : > { %v3034_v40 = vadd.f32 %v6809_v37, %v3030_v38 }
0x1c4e   : > { %v3037_v41 = vsel %vm1412_vm2, %v3034_v40, 0.0  ;;  %v6814_v36 = vld [vmem:[%s8683_s10] ss:$0 sm:$0xff] }
0x1c4f   : > { %3038 = vadd.xlane.f32.xlu1 %v3037_v41 }
0x1c85   : > { %v3434_v44 = vpop.f32.mrf.mxu0 }
0x1c86   : > { %6459 = vmatmul.msk.f32.vlgmr.msra.gmra.mxu3 %vm1439_vm3, %v3434_v44 }
0x1c94   : > { %v3253_v4 = vpop.f32.mrf.mxu2 }
0x1c95   : > { %v3277_v48 = vadd.f32 %v8039_v45, %v3253_v4  ;;  %v6816_v4 = vld [vmem:[%s8685_s7] ss:$0 sm:$0xff]  ;;  %s8692_s7 = smov 80  }
0x1c9c   : > { %v3366_v47 = vpop.f32.mrf.mxu2 }
0x1c9d   : > { %v3369_v49 = vadd.f32 %v3366_v47, %v3277_v48 }
0x1cc2   : > { %v3039_v51 = vpop.xlane.xlu1 %3038 }
0x1cc3   : > { %v3040_v46 = vmul.f32 %v3039_v51, %v7803_v39 }
0x1cc5   : > { %v3041_v56 = vsub.f32 %v3034_v40, %v3040_v46  ;;  %v6815_v40 = vld [vmem:[%s8684_s26] ss:$0 sm:$0xff] }
0x1cc7   : > { %v3042_v58 = vmul.f32 %v3041_v56, %v3041_v56 }
0x1cc9   : > { %v3043_v45 = vsel %vm1412_vm2, %v3042_v58, 0.0  ;;  %v3508_v58 = vld [vmem:[%s8689_s11] sm:$0xff] }
0x1d09   : > { %v3457_v52 = vpop.f32.mrf.mxu3 }
0x1d0a   : > { %v3460_v53 = vadd.f32 %v3457_v52, %v3369_v49 }
0x1d0c   : > { %v3464_v54 = vadd.f32 %v6810_v50, %v3460_v53 }
0x1d0e   : > { %v3465_v55 = vadd.f32 %v3464_v54, %v7736_v8 }
0x1d10   : > { %v3468_v57 = vsel %vm1412_vm2, %v3465_v55, 0.0 }
0x1d11   : > { %3469 = vadd.xlane.f32.xlu0 %v3468_v57 }
0x1d19   : > { %3044 = vadd.xlane.f32.xlu0 %v3043_v45 }
0x1d84   : > { %v3470_v60 = vpop.xlane.xlu0 %3469 }
0x1d85   : > { %v3471_v62 = vmul.f32 %v3470_v60, %v7803_v39 }
0x1d87   : > { %v3472_v1 = vsub.f32 %v3465_v55, %v3471_v62 }
0x1d89   : > { %v3473_v8 = vmul.f32 %v3472_v1, %v3472_v1 }
0x1d8b   : > { %v3474_v2 = vsel %vm1412_vm2, %v3473_v8, 0.0 }
0x1d8c   : > { %3475 = vadd.xlane.f32.xlu2 %v3474_v2  ;;  %v3045_v3 = vpop.xlane.xlu0 %3044 }
0x1d8d   : > { %v3046_v5 = vmul.f32 %v3045_v3, %v7803_v39 }
0x1d8f   : > { %v3047_v6 = vadd.f32 1e-05, %v3046_v5 }
0x1d91   : > { %6931 = vrsqrt.f32 %v3047_v6  ;;  %vm3054_vm14 = vweird.f32 %v3047_v6 }
0x1d97   : > { %v6932_v43 = vpop.eup %6931 }
0x1d98   : > { %v3049_v9 = vmul.f32 %v6932_v43, %v3047_v6  ;;  %vm3055_vm13 = vweird.f32 %v6932_v43 }
0x1d99   : > { %vm3056_vm15 = vmor %vm3054_vm14, %vm3055_vm13 }
0x1d9a   : > { %v3050_v10 = vmul.f32 %v6932_v43, %v3049_v9 }
0x1d9c   : > { %v3051_v12 = vmul.f32 0.5, %v3050_v10 }
0x1d9e   : > { %v3052_v13 = vsub.f32 1.5, %v3051_v12 }
0x1da0   : > { %v3053_v14 = vmul.f32 %v6932_v43, %v3052_v13 }
0x1da2   : > { %v3057_v7 = vsel %vm3056_vm15, %v6932_v43, %v3053_v14 }
0x1da3   : > { %v3058_v16 = vmul.f32 %v3057_v7, %v3041_v56 }
0x1da5   : > { %v3062_v18 = vmul.f32 %v6811_v15, %v3058_v16 }
0x1da7   : > { %v8085_v19 = vadd.f32 %v6812_v17, %v3062_v18 }
0x1da9   : > { %6461 = vmatmul.msk.f32.vlgmr.msrb.gmra.mxu1 %vm1412_vm2, %v8085_v19 }
0x1dff   : > { %v3476_v24 = vpop.xlane.xlu2 %3475 }
0x1e00   : > { %v3477_v25 = vmul.f32 %v3476_v24, %v7803_v39 }
0x1e02   : > { %v3478_v26 = vadd.f32 1e-05, %v3477_v25 }
0x1e04   : > { %6933 = vrsqrt.f32 %v3478_v26  ;;  %vm3485_vm4 = vweird.f32 %v3478_v26 }
0x1e0a   : > { %v6934_v27 = vpop.eup %6933 }
0x1e0b   : > { %v3480_v28 = vmul.f32 %v6934_v27, %v3478_v26  ;;  %vm3486_vm0 = vweird.f32 %v6934_v27 }
0x1e0c   : > { %vm3487_vm5 = vmor %vm3485_vm4, %vm3486_vm0 }
0x1e0d   : > { %v3481_v29 = vmul.f32 %v6934_v27, %v3480_v28 }
0x1e0f   : > { %v3482_v30 = vmul.f32 0.5, %v3481_v29 }
0x1e11   : > { %v3483_v31 = vsub.f32 1.5, %v3482_v30 }
0x1e13   : > { %v3484_v32 = vmul.f32 %v6934_v27, %v3483_v31 }
0x1e15   : > { %v3488_v34 = vsel %vm3487_vm5, %v6934_v27, %v3484_v32 }
0x1e16   : > { %v3489_v35 = vmul.f32 %v3488_v34, %v3472_v1 }
0x1e18   : > { %v3493_v37 = vmul.f32 %v6813_v33, %v3489_v35 }
0x1e1a   : > { %v8096_v38 = vadd.f32 %v6814_v36, %v3493_v37 }
0x1e1c   : > { %6460 = vmatmul.msk.f32.vlgmr.msrb.gmra.mxu2 %vm1412_vm2, %v8096_v38 }
0x1e26   : > { %v3562_v41 = vpop.f32.mrf.mxu1 }
0x1e27   : > { %v8101_v42 = vadd.f32 %v6815_v40, %v3562_v41 }
0x1e29   : > { %3604 = vrot.lane.b32.xlu0 %v8101_v42, %s8687_s6  ;;  %6462 = vmatpush.xpose.msk.msra.mxu0 %vm1439_vm3, %v8101_v42 }
0x1e31   : > { %3836 = vrot.lane.b32.xlu0 %v8101_v42, %s8688_s9 }
0x1e9b   : > { %v3605_v44 = vpop.permute.xlu0 %3604 }
0x1e9c   : > { %3625 = vmatpush.msrb.mxu3 %v3605_v44 }
0x1e9e   : > { %3738 = vmatpush.msra.mxu3 %v3508_v58  ;;  %v6817_v58 = vld [vmem:[%s8695_s19] ss:$0 sm:$0xff] }
0x1e9f   : > { %v3536_v47 = vpop.f32.mrf.mxu2 }
0x1ea0   : > { %v3537_v48 = vadd.f32 %v6816_v4, %v3536_v47  ;;  %v3509_v4 = vld [vmem:[%s8689_s11 + $0x8] sm:$0xff]  ;;  %v3510_v47 = vld [vmem:[%s8689_s11 + $0x10] sm:$0xff] }
0x1ea1   : > { %3715 = vmatpush.msrb.mxu0 %v3509_v4 }
0x1ea2   : > { %3834 = vrot.lane.b32.xlu0 %v3537_v48, %s8688_s9  ;;  %6463 = vmatmul.msk.f32.vlgmr.msra.gmra.mxu0 %vm1439_vm3, %v3537_v48 }
0x1ea3   : > { %v3837_v62 = vpop.permute.xlu0 %3836  ;;  %3828 = vmatpush.msra.mxu0 %v3510_v47 }
0x1f14   : > { %v3835_v6 = vpop.permute.xlu0 %3834 }
0x1f1f   : > { %v3588_v49 = vpop.f32.mrf.mxu0 }
0x1f20   : > { %v3591_v50 = vmul.f32 0.35355338, %v3588_v49 }
0x1f22   : > { %v3592_v51 = vadd.f32 %v3591_v50, %v7762_v22 }
0x1f24   : > { %v3593_v52 = vsel %vm1439_vm3, %v3592_v51, -inf }
0x1f25   : > { %3594 = vmax.xlane.f32.xlu1 %v3593_v52 }
0x1f3e   : > { %3632 = vrot.lane.b32.xlu1 %v8101_v42, %s8690_s12 }
0x1f46   : > { %3743 = vrot.lane.b32.xlu1 %v3537_v48, %s8691_s13 }
0x1f98   : > { %v3595_v53 = vpop.xlane.xlu1 %3594 }
0x1f99   : > { %v3596_v46 = vsub.f32 %v3592_v51, %v3595_v53 }
0x1f9b   : > { %v3597_v54 = vmul.f32 1.442695, %v3596_v46 }
0x1f9d   : > { %6935 = vpow2.f32 %v3597_v54 }
0x1fa3   : > { %v6936_v55 = vpop.eup %6935 }
0x1fa4   : > { %v3599_v56 = vsel %vm1439_vm3, %v6936_v55, 0.0 }
0x1fa5   : > { %3600 = vadd.xlane.f32.xlu2 %v3599_v56 }
0x1fb0   : > { %v3633_v57 = vpop.permute.xlu1 %3632 }
0x1fb1   : > { %6465 = vmatpush.xpose.msk.msra.mxu2 %vm1439_vm3, %v3633_v57 }
0x1fb8   : > { %v3744_v0 = vpop.permute.xlu1 %3743 }
0x1fbd   : > { %3630 = vrot.lane.b32.xlu2 %v3537_v48, %s8690_s12 }
0x1fc5   : > { %3745 = vrot.lane.b32.xlu2 %v8101_v42, %s8691_s13 }
0x2018   : > { %v3601_v45 = vpop.xlane.xlu2 %3600 }
0x2019   : > { %6937 = vrcp.f32 %v3601_v45 }
0x201f   : > { %v6938_v59 = vpop.eup %6937 }
0x2020   : > { %v3603_v60 = vmul.f32 %v6938_v59, %v6936_v55  ;;  %v3631_v61 = vpop.permute.xlu2 %3630 }
0x2021   : > { %6466 = vmatmul.msk.f32.vlgmr.msra.gmra.mxu2 %vm1439_vm3, %v3631_v61 }
0x2022   : > { %6464 = vmatmul.msk.f32.vlgmr.msrb.gmra.mxu3 %vm1439_vm3, %v3603_v60 }
0x2023   : > { %6474 = vmatpush.xpose.msk.msrb.mxu3 %vm1439_vm3, %v3837_v62 }
0x2028   : > { %v3746_v63 = vpop.permute.xlu2 %3745 }
0x2029   : > { %6470 = vmatpush.xpose.msk.msrb.mxu2 %vm1439_vm3, %v3746_v63 }
0x202c   : > { %6471 = vmatmul.msk.f32.vlgmr.msrb.gmra.mxu2 %vm1439_vm3, %v3744_v0 }
0x20a4   : > { %v3655_v1 = vpop.f32.mrf.mxu2 }
0x20a5   : > { %v3658_v8 = vmul.f32 0.35355338, %v3655_v1  ;;  %v3627_v2 = vpop.f32.mrf.mxu3 }
0x20a6   : > { %6469 = vmatmul.msk.f32.vlgmr.msra.gmra.mxu3 %vm1439_vm3, %v3627_v2 }
0x20a7   : > { %v3659_v3 = vadd.f32 %v3658_v8, %v7762_v22 }
0x20a9   : > { %v3660_v5 = vsel %vm1439_vm3, %v3659_v3, -inf }
0x20aa   : > { %3661 = vmax.xlane.f32.xlu0 %v3660_v5  ;;  %v3964_v5 = vld [vmem:[#allocation9 + $0x10] sm:$0xff] }
0x20ae   : > { %6475 = vmatmul.msk.f32.vlgmr.msrb.gmra.mxu3 %vm1439_vm3, %v3835_v6  ;;  %v3962_v6 = vld [vmem:[#allocation9] sm:$0xff] }
0x20af   : > { %v3768_v43 = vpop.f32.mrf.mxu2 }
0x20b0   : > { %v3771_v9 = vmul.f32 0.35355338, %v3768_v43  ;;  %v3974_v43 = vld [vmem:[%s8696_s20 + $0x38] sm:$0xff] }
0x20b1   : > { %4017 = vmatpush.msra.mxu3 %v3974_v43 }
0x20b2   : > { %v3772_v10 = vadd.f32 %v3771_v9, %v7762_v22  ;;  %v3973_v9 = vld [vmem:[%s8696_s20 + $0x30] sm:$0xff] }
0x20b3   : > { %4018 = vmatpush.msra.mxu3 %v3973_v9 }
0x20b4   : > { %v3773_v12 = vsel %vm1439_vm3, %v3772_v10, -inf }
0x20b5   : > { %3774 = vmax.xlane.f32.xlu1 %v3773_v12 }
0x211d   : > { %v3662_v7 = vpop.xlane.xlu0 %3661 }
0x211e   : > { %v3663_v17 = vsub.f32 %v3659_v3, %v3662_v7  ;;  %v3965_v3 = vld [vmem:[#allocation9 + $0x18] sm:$0xff]  ;;  %v3970_v7 = vld [vmem:[%s8696_s20 + $0x18] sm:$0xff] }
0x2120   : > { %v3664_v18 = vmul.f32 1.442695, %v3663_v17 }
0x2128   : > { %v3775_v13 = vpop.xlane.xlu1 %3774 }
0x2129   : > { %v3776_v14 = vsub.f32 %v3772_v10, %v3775_v13  ;;  %v8134_v15 = vpop.f32.mrf.mxu3  ;;  %v3972_v10 = vld [vmem:[%s8696_s20 + $0x28] sm:$0xff] }
0x212a   : > { %4019 = vmatpush.msra.mxu3 %v3972_v10 }
0x212b   : > { %v3777_v16 = vmul.f32 1.442695, %v3776_v14  ;;  %v3971_v14 = vld [vmem:[%s8696_s20 + $0x20] sm:$0xff] }
0x212c   : > { %4020 = vmatpush.msra.mxu3 %v3971_v14 }
0x212d   : > { %6939 = vpow2.f32 %v3777_v16 }
0x212e   : > { %6941 = vpow2.f32 %v3664_v18  ;;  %4021 = vmatpush.msra.mxu3 %v3970_v7 }
0x2131   : > { %v3859_v20 = vpop.f32.mrf.mxu3 }
0x2132   : > { %v3862_v11 = vmul.f32 0.35355338, %v3859_v20 }
0x2133   : > { %v6940_v21 = vpop.eup %6939 }
0x2134   : > { %v3779_v23 = vsel %vm1439_vm3, %v6940_v21, 0.0  ;;  %v3863_v24 = vadd.f32 %v3862_v11, %v7762_v22  ;;  %v6942_v26 = vpop.eup %6941 }
0x2135   : > { %3780 = vadd.xlane.f32.xlu1 %v3779_v23  ;;  %v3666_v27 = vsel %vm1439_vm3, %v6942_v26, 0.0  ;;  %v6818_v23 = vld [vmem:[%s8697_s21] ss:$0 sm:$0xff] }
0x2136   : > { %v3864_v25 = vsel %vm1439_vm3, %v3863_v24, -inf }
0x2137   : > { %3865 = vmax.xlane.f32.xlu2 %v3864_v25 }
0x213f   : > { %3667 = vadd.xlane.f32.xlu2 %v3666_v27 }
0x214e   : > { %3784 = vrot.lane.b32.xlu1 %v8101_v42, %s8692_s7 }
0x2157   : > { %3671 = vrot.lane.b32.xlu2 %v8101_v42, %s8693_s14 }
0x21a8   : > { %v3781_v33 = vpop.xlane.xlu1 %3780 }
0x21aa   : > { %v3866_v28 = vpop.xlane.xlu2 %3865 }
0x21ab   : > { %v3867_v29 = vsub.f32 %v3863_v24, %v3866_v28 }
0x21ad   : > { %v3868_v30 = vmul.f32 1.442695, %v3867_v29  ;;  %v3969_v29 = vld [vmem:[%s8696_s20 + $0x10] sm:$0xff] }
0x21ae   : > { %4022 = vmatpush.msra.mxu3 %v3969_v29  ;;  %v6516_v29 = vld [vmem:[%s8677_s16 + $0x30] sm:$0xff] }
0x21af   : > { %6943 = vpow2.f32 %v3868_v30  ;;  %v3968_v30 = vld [vmem:[%s8696_s20 + $0x8] sm:$0xff] }
0x21b0   : > { %4023 = vmatpush.msra.mxu3 %v3968_v30  ;;  %v6515_v30 = vld [vmem:[%s8677_s16 + $0x28] sm:$0xff] }
0x21b2   : > { %v3668_v31 = vpop.xlane.xlu2 %3667 }
0x21b3   : > { %6945 = vrcp.f32 %v3668_v31  ;;  %v3967_v31 = vld [vmem:[%s8696_s20] sm:$0xff] }
0x21b4   : > { %6947 = vrcp.f32 %v3781_v33  ;;  %4024 = vmatpush.msra.mxu3 %v3967_v31  ;;  %v6514_v31 = vld [vmem:[%s8677_s16 + $0x20] sm:$0xff] }
0x21b5   : > { %v6944_v32 = vpop.eup %6943 }
0x21b6   : > { %v3870_v34 = vsel %vm1439_vm3, %v6944_v32, 0.0 }
0x21b7   : > { %3871 = vadd.xlane.f32.xlu0 %v3870_v34 }
0x21b9   : > { %v6946_v35 = vpop.eup %6945 }
0x21ba   : > { %v3670_v36 = vmul.f32 %v6946_v35, %v6942_v26  ;;  %v3672_v37 = vpop.permute.xlu2 %3671  ;;  %v6948_v40 = vpop.eup %6947  ;;  %v6819_v26 = vld [vmem:[%s8698_s22] ss:$0 sm:$0xff] }
0x21bb   : > { %3692 = vmatpush.msra.mxu1 %v3672_v37  ;;  %v3783_v44 = vmul.f32 %v6948_v40, %v6940_v21 }
0x21bc   : > { %6467 = vmatmul.msk.f32.vlgmr.msra.gmra.mxu1 %vm1439_vm3, %v3670_v36  ;;  %v6821_v36 = vld [vmem:[%s8700_s25] ss:$0 sm:$0xff] }
0x21c0   : > { %v3785_v41 = vpop.permute.xlu1 %3784 }
0x21c1   : > { %3805 = vmatpush.msrb.mxu1 %v3785_v41 }
0x21c4   : > { %6472 = vmatmul.msk.f32.vlgmr.msrb.gmra.mxu1 %vm1439_vm3, %v3783_v44 }
0x21cb   : > { %3875 = vrot.lane.b32.xlu0 %v8101_v42, %s8694_s17  ;;  %v3511_v42 = vld [vmem:[%s8689_s11 + $0x18] sm:$0xff] }
0x21cc   : > { %3919 = vmatpush.msra.mxu1 %v3511_v42  ;;  %v6480_v42 = vld [vmem:[%s8671_s3 + $0x20] sm:$0xff] }
0x222a   : > { %v3872_v48 = vpop.xlane.xlu0 %3871 }
0x222b   : > { %6949 = vrcp.f32 %v3872_v48 }
0x2231   : > { %v6950_v50 = vpop.eup %6949 }
0x2232   : > { %v3874_v51 = vmul.f32 %v6950_v50, %v6944_v32  ;;  %v6820_v32 = vld [vmem:[%s8699_s24] ss:$0 sm:$0xff] }
0x2239   : > { %v3694_v49 = vpop.f32.mrf.mxu1 }
0x223a   : > { %6468 = vmatmul.msk.f32.vlgmr.msrb.gmra.mxu0 %vm1439_vm3, %v3694_v49 }
0x223b   : > { %3994 = vmatpush.msrb.mxu0 %v3965_v3 }
0x223d   : > { %v3876_v52 = vpop.permute.xlu0 %3875  ;;  %3995 = vmatpush.msrb.mxu0 %v3964_v5 }
0x223e   : > { %3896 = vmatpush.msra.mxu2 %v3876_v52  ;;  %v6482_v52 = vld [vmem:[%s8671_s3 + $0x30] sm:$0xff] }
0x223f   : > { %6476 = vmatmul.msk.f32.vlgmr.msra.gmra.mxu2 %vm1439_vm3, %v3874_v51  ;;  %v6483_v51 = vld [vmem:[%s8671_s3 + $0x38] sm:$0xff] }
0x2240   : > { %4094 = vmatpush.msrb.mxu2 %v6483_v51 }
0x2241   : > { %v3807_v53 = vpop.f32.mrf.mxu1 }
0x2242   : > { %6473 = vmatmul.msk.f32.vlgmr.msra.gmra.mxu0 %vm1439_vm3, %v3807_v53  ;;  %4095 = vmatpush.msrb.mxu2 %v6482_v52  ;;  %v6481_v53 = vld [vmem:[%s8671_s3 + $0x28] sm:$0xff] }
0x2244   : > { %4096 = vmatpush.msrb.mxu2 %v6481_v53 }
0x2246   : > { %4097 = vmatpush.msrb.mxu2 %v6480_v42 }
0x22b7   : > { %v3717_v54 = vpop.f32.mrf.mxu0 }
0x22b8   : > { %v3741_v56 = vadd.f32 %v8134_v15, %v3717_v54 }
0x22bf   : > { %v3830_v55 = vpop.f32.mrf.mxu0 }
0x22c0   : > { %v3833_v57 = vadd.f32 %v3830_v55, %v3741_v56 }
0x22c2   : > { %v3898_v46 = vpop.f32.mrf.mxu2 }
0x22c3   : > { %6477 = vmatmul.msk.f32.vlgmr.msra.gmra.mxu1 %vm1439_vm3, %v3898_v46 }
0x2340   : > { %v3921_v45 = vpop.f32.mrf.mxu1 }
0x2341   : > { %v3924_v59 = vadd.f32 %v3921_v45, %v3833_v57 }
0x2343   : > { %v3928_v60 = vadd.f32 %v6817_v58, %v3924_v59 }
0x2345   : > { %v3929_v61 = vadd.f32 %v3928_v60, %v8096_v38  ;;  %v3963_v38 = vld [vmem:[#allocation9 + $0x8] sm:$0xff] }
0x2346   : > { %3996 = vmatpush.msrb.mxu0 %v3963_v38  ;;  %v6485_v38 = vld [vmem:[%s8673_s23 + $0x20] sm:$0xff] }
0x2347   : > { %v3932_v62 = vsel %vm1412_vm2, %v3929_v61, 0.0  ;;  %4276 = vmatpush.msrb.mxu3 %v6485_v38 }
0x2348   : > { %3933 = vadd.xlane.f32.xlu0 %v3932_v62  ;;  %3997 = vmatpush.msrb.mxu0 %v3962_v6 }
0x23bb   : > { %v3934_v63 = vpop.xlane.xlu0 %3933 }
0x23bc   : > { %v3935_v0 = vmul.f32 %v3934_v63, %v7803_v39 }
0x23be   : > { %v3936_v1 = vsub.f32 %v3929_v61, %v3935_v0  ;;  %v6822_v61 = vld [vmem:[%s8701_s27] ss:$0 sm:$0xff] }
0x23bf   : > { %v6823_v0 = vld [vmem:[%s8702_s29] ss:$0 sm:$0xff] }
0x23c0   : > { %v3937_v8 = vmul.f32 %v3936_v1, %v3936_v1 }
0x23c2   : > { %v3938_v2 = vsel %vm1412_vm2, %v3937_v8, 0.0 }
0x23c3   : > { %3939 = vadd.xlane.f32.xlu2 %v3938_v2  ;;  %v6824_v2 = vld [vmem:[%s8672_s1 + $0x1] ss:$0 sm:$0xff] }
0x2436   : > { %v3940_v12 = vpop.xlane.xlu2 %3939 }
0x2437   : > { %v3941_v13 = vmul.f32 %v3940_v12, %v7803_v39 }
0x2439   : > { %v3942_v15 = vadd.f32 1e-05, %v3941_v13 }
0x243b   : > { %6951 = vrsqrt.f32 %v3942_v15  ;;  %vm3949_vm7 = vweird.f32 %v3942_v15 }
0x2441   : > { %v6952_v16 = vpop.eup %6951 }
0x2442   : > { %v3944_v17 = vmul.f32 %v6952_v16, %v3942_v15  ;;  %vm3950_vm6 = vweird.f32 %v6952_v16 }
0x2443   : > { %vm3951_vm8 = vmor %vm3949_vm7, %vm3950_vm6 }
0x2444   : > { %v3945_v18 = vmul.f32 %v6952_v16, %v3944_v17 }
0x2446   : > { %v3946_v20 = vmul.f32 0.5, %v3945_v18 }
0x2448   : > { %v3947_v11 = vsub.f32 1.5, %v3946_v20 }
0x244a   : > { %v3948_v21 = vmul.f32 %v6952_v16, %v3947_v11 }
0x244c   : > { %v3952_v24 = vsel %vm3951_vm8, %v6952_v16, %v3948_v21 }
0x244d   : > { %v3953_v25 = vmul.f32 %v3952_v24, %v3936_v1 }
0x244f   : > { %v3957_v27 = vmul.f32 %v6818_v23, %v3953_v25 }
0x2451   : > { %v3961_v28 = vadd.f32 %v6819_v26, %v3957_v27  ;;  %v6517_v27 = vld [vmem:[%s8677_s16 + $0x38] sm:$0xff] }
0x2453   : > { %6478 = vmatmul.msk.f32.vlgmr.msrb.gmra.mxu0 %vm1412_vm2, %v3961_v28 }
0x24d0   : > { %v3999_v33 = vpop.f32.mrf.mxu0 }
0x24d1   : > { %v4000_v34 = vadd.f32 %v6820_v32, %v3999_v33 }
0x24d3   : > { %v4002_v35 = vmax.f32 %v4000_v34, 0.0 }
0x24d5   : > { %6479 = vmatmul.msk.f32.vlgmr.msra.gmra.mxu3 %vm1886_vm9, %v4002_v35 }
0x2558   : > { %v4026_v37 = vpop.f32.mrf.mxu3 }
0x2559   : > { %v4027_v40 = vadd.f32 %v6821_v36, %v4026_v37 }
0x255b   : > { %v4029_v41 = vadd.f32 %v4027_v40, %v3961_v28 }
0x255d   : > { %v4032_v44 = vsel %vm1412_vm2, %v4029_v41, 0.0 }
0x255e   : > { %4033 = vadd.xlane.f32.xlu1 %v4032_v44 }
0x25d1   : > { %v4034_v4 = vpop.xlane.xlu1 %4033 }
0x25d2   : > { %v4035_v47 = vmul.f32 %v4034_v4, %v7803_v39 }
0x25d4   : > { %v4036_v48 = vsub.f32 %v4029_v41, %v4035_v47 }
0x25d6   : > { %v4037_v49 = vmul.f32 %v4036_v48, %v4036_v48 }
0x25d8   : > { %v4038_v50 = vsel %vm1412_vm2, %v4037_v49, 0.0 }
0x25d9   : > { %4039 = vadd.xlane.f32.xlu0 %v4038_v50 }
0x264c   : > { %v4040_v46 = vpop.xlane.xlu0 %4039 }
0x264d   : > { %v4041_v54 = vmul.f32 %v4040_v46, %v7803_v39 }
0x264f   : > { %v4042_v55 = vadd.f32 1e-05, %v4041_v54 }
0x2651   : > { %6953 = vrsqrt.f32 %v4042_v55  ;;  %vm4049_vm11 = vweird.f32 %v4042_v55 }
0x2657   : > { %v6954_v56 = vpop.eup %6953 }
0x2658   : > { %v4044_v57 = vmul.f32 %v6954_v56, %v4042_v55  ;;  %vm4050_vm10 = vweird.f32 %v6954_v56 }
0x2659   : > { %vm4051_vm12 = vmor %vm4049_vm11, %vm4050_vm10 }
0x265a   : > { %v4045_v58 = vmul.f32 %v6954_v56, %v4044_v57 }
0x265c   : > { %v4046_v45 = vmul.f32 0.5, %v4045_v58 }
0x265e   : > { %v4047_v59 = vsub.f32 1.5, %v4046_v45 }
0x2660   : > { %v4048_v60 = vmul.f32 %v6954_v56, %v4047_v59 }
0x2662   : > { %v4052_v62 = vsel %vm4051_vm12, %v6954_v56, %v4048_v60 }
0x2663   : > { %v4053_v63 = vmul.f32 %v4052_v62, %v4036_v48 }
0x2665   : > { %v4057_v1 = vmul.f32 %v6822_v61, %v4053_v63 }
0x2667   : > { %v8187_v8 = vadd.f32 %v6823_v0, %v4057_v1 }
0x2669   : > { %6490 = vmatmul.msk.f32.vlgmr.msrb.gmra.mxu2 %vm1412_vm2, %v8187_v8 }
0x26ec   : > { %v4099_v3 = vpop.f32.mrf.mxu2 }
0x26ed   : > { %v8192_v5 = vadd.f32 %v6824_v2, %v4099_v3 }
0x26ef   : > { %4103 = vrot.lane.b32.xlu2 %v8192_v5, %s8687_s6 }
0x26f7   : > { %4168 = vrot.lane.b32.xlu2 %v8192_v5, %s8690_s12 }
0x26ff   : > { %4374 = vrot.lane.b32.xlu2 %v8192_v5, %s8694_s17 }
0x2707   : > { %4281 = vrot.lane.b32.xlu2 %v8192_v5, %s8691_s13 }
0x2749   : > { %v4104_v6 = vpop.permute.xlu2 %4103 }
0x274a   : > { %6491 = vmatpush.xpose.msk.msrb.mxu1 %vm1439_vm3, %v4104_v6 }
0x274d   : > { %6492 = vmatmul.msk.f32.vlgmr.msrb.gmra.mxu1 %vm1439_vm3, %v8192_v5 }
0x2751   : > { %v4169_v43 = vpop.permute.xlu2 %4168 }
0x2759   : > { %v4375_v9 = vpop.permute.xlu2 %4374 }
0x275a   : > { %6503 = vmatpush.xpose.msk.msra.mxu3 %vm1439_vm3, %v4375_v9  ;;  %v6486_v9 = vld [vmem:[%s8673_s23 + $0x28] sm:$0xff] }
0x2761   : > { %v4282_v26 = vpop.permute.xlu2 %4281 }
0x27ca   : > { %v4126_v10 = vpop.f32.mrf.mxu1 }
0x27cb   : > { %v4129_v12 = vmul.f32 0.35355338, %v4126_v10  ;;  %v6487_v10 = vld [vmem:[%s8673_s23 + $0x30] sm:$0xff] }
0x27cd   : > { %v4130_v13 = vadd.f32 %v4129_v12, %v7762_v22 }
0x27cf   : > { %v4131_v14 = vsel %vm1439_vm3, %v4130_v13, -inf }
0x27d0   : > { %4132 = vmax.xlane.f32.xlu1 %v4131_v14  ;;  %v6825_v14 = vld [vmem:[%s8684_s26 + $0x1] ss:$0 sm:$0xff] }
0x27e9   : > { %4142 = vrot.lane.b32.xlu1 %v8192_v5, %s8703_s30 }
0x27f1   : > { %4283 = vrot.lane.b32.xlu1 %v8192_v5, %s8692_s7 }
0x2843   : > { %v4133_v15 = vpop.xlane.xlu1 %4132 }
0x2844   : > { %v4134_v7 = vsub.f32 %v4130_v13, %v4133_v15 }
0x2846   : > { %v4135_v16 = vmul.f32 1.442695, %v4134_v7 }
0x2848   : > { %6955 = vpow2.f32 %v4135_v16 }
0x284e   : > { %v6956_v17 = vpop.eup %6955 }
0x284f   : > { %v4137_v18 = vsel %vm1439_vm3, %v6956_v17, 0.0 }
0x2850   : > { %4138 = vadd.xlane.f32.xlu0 %v4137_v18 }
0x285b   : > { %v4143_v20 = vpop.permute.xlu1 %4142 }
0x285c   : > { %4163 = vmatpush.msra.mxu0 %v4143_v20  ;;  %v6488_v20 = vld [vmem:[%s8673_s23 + $0x38] sm:$0xff] }
0x285e   : > { %4253 = vmatpush.msrb.mxu0 %v6486_v9 }
0x2863   : > { %v4284_v25 = vpop.permute.xlu1 %4283 }
0x2864   : > { %4170 = vrot.lane.b32.xlu0 %v8192_v5, %s8693_s14 }
0x286c   : > { %4372 = vrot.lane.b32.xlu0 %v8192_v5, %s8688_s9 }
0x28c3   : > { %v4139_v11 = vpop.xlane.xlu0 %4138 }
0x28c4   : > { %6957 = vrcp.f32 %v4139_v11 }
0x28ca   : > { %v6958_v21 = vpop.eup %6957 }
0x28cb   : > { %v4141_v23 = vmul.f32 %v6958_v21, %v6956_v17 }
0x28cd   : > { %6493 = vmatmul.msk.f32.vlgmr.msra.gmra.mxu0 %vm1439_vm3, %v4141_v23 }
0x28ce   : > { %4366 = vmatpush.msra.mxu0 %v6487_v10 }
0x28d6   : > { %v4171_v24 = vpop.permute.xlu0 %4170 }
0x28d7   : > { %6494 = vmatpush.xpose.msk.msra.mxu2 %vm1439_vm3, %v4171_v24 }
0x28da   : > { %6495 = vmatmul.msk.f32.vlgmr.msra.gmra.mxu2 %vm1439_vm3, %v4169_v43 }
0x28db   : > { %6499 = vmatpush.xpose.msk.msrb.mxu2 %vm1439_vm3, %v4284_v25 }
0x28de   : > { %v4373_v32 = vpop.permute.xlu0 %4372 }
0x28e2   : > { %6500 = vmatmul.msk.f32.vlgmr.msrb.gmra.mxu2 %vm1439_vm3, %v4282_v26  ;;  %v6826_v26 = vld [vmem:[%s8676_s15 + $0x1] ss:$0 sm:$0xff] }
0x294a   : > { %v4165_v28 = vpop.f32.mrf.mxu0 }
0x294b   : > { %6498 = vmatmul.msk.f32.vlgmr.msrb.gmra.mxu3 %vm1439_vm3, %v4165_v28 }
0x294c   : > { %4564 = vmatpush.msrb.mxu3 %v6517_v27 }
0x294e   : > { %4565 = vmatpush.msrb.mxu3 %v6516_v29 }
0x2950   : > { %4566 = vmatpush.msrb.mxu3 %v6515_v30 }
0x2952   : > { %4567 = vmatpush.msrb.mxu3 %v6514_v31 }
0x2953   : > { %6504 = vmatmul.msk.f32.vlgmr.msra.gmra.mxu3 %vm1439_vm3, %v4373_v32 }
0x295b   : > { %6525 = vmatmul.msk.f32.vlgmr.msrb.gmra.mxu3 %vm1412_vm2, %v8085_v19 }
0x295d   : > { %v4193_v33 = vpop.f32.mrf.mxu2 }
0x295e   : > { %v4196_v34 = vmul.f32 0.35355338, %v4193_v33 }
0x2960   : > { %v4197_v35 = vadd.f32 %v4196_v34, %v7762_v22 }
0x2962   : > { %v4198_v36 = vsel %vm1439_vm3, %v4197_v35, -inf }
0x2963   : > { %4199 = vmax.xlane.f32.xlu0 %v4198_v36 }
0x2965   : > { %v4306_v37 = vpop.f32.mrf.mxu2 }
0x2966   : > { %v4309_v40 = vmul.f32 0.35355338, %v4306_v37  ;;  %v6512_v37 = vld [vmem:[%s8681_s18 + $0x38] sm:$0xff] }
0x2968   : > { %v4310_v41 = vadd.f32 %v4309_v40, %v7762_v22  ;;  %v6510_v40 = vld [vmem:[%s8681_s18 + $0x28] sm:$0xff] }
0x296a   : > { %v4311_v44 = vsel %vm1439_vm3, %v4310_v41, -inf }
0x296b   : > { %4312 = vmax.xlane.f32.xlu2 %v4311_v44 }
0x29ce   : > { %v8235_v4 = vpop.f32.mrf.mxu3 }
0x29d6   : > { %v4200_v47 = vpop.xlane.xlu0 %4199  ;;  %v4397_v48 = vpop.f32.mrf.mxu3 }
0x29d7   : > { %v4201_v49 = vsub.f32 %v4197_v35, %v4200_v47  ;;  %v4400_v50 = vmul.f32 0.35355338, %v4397_v48 }
0x29d9   : > { %v4202_v51 = vmul.f32 1.442695, %v4201_v49  ;;  %v4401_v52 = vadd.f32 %v4400_v50, %v7762_v22 }
0x29db   : > { %6959 = vpow2.f32 %v4202_v51  ;;  %v4402_v53 = vsel %vm1439_vm3, %v4401_v52, -inf }
0x29dc   : > { %4403 = vmax.xlane.f32.xlu1 %v4402_v53 }
0x29de   : > { %v4313_v42 = vpop.xlane.xlu2 %4312  ;;  %v4569_v15 = vpop.f32.mrf.mxu3 }
0x29df   : > { %v4314_v46 = vsub.f32 %v4310_v41, %v4313_v42  ;;  %v8253_v17 = vadd.f32 %v6825_v14, %v4569_v15  ;;  %v6509_v41 = vld [vmem:[%s8681_s18 + $0x20] sm:$0xff] }
0x29e0   : > { %v6827_v42 = vld [vmem:[%s8682_s4 + $0x1] ss:$0 sm:$0xff] }
0x29e1   : > { %v6960_v54 = vpop.eup %6959  ;;  %v4315_v55 = vmul.f32 1.442695, %v4314_v46 }
0x29e2   : > { %v4204_v56 = vsel %vm1439_vm3, %v6960_v54, 0.0 }
0x29e3   : > { %6961 = vpow2.f32 %v4315_v55  ;;  %4205 = vadd.xlane.f32.xlu0 %v4204_v56  ;;  %v6828_v55 = vld [vmem:[%s8683_s10 + $0x1] ss:$0 sm:$0xff] }
0x29e9   : > { %v6962_v57 = vpop.eup %6961 }
0x29ea   : > { %v4317_v58 = vsel %vm1439_vm3, %v6962_v57, 0.0 }
0x29eb   : > { %4318 = vadd.xlane.f32.xlu2 %v4317_v58 }
0x29f7   : > { %4209 = vrot.lane.b32.xlu0 %v8192_v5, %s8674_s2 }
0x2a03   : > { %4322 = vrot.lane.b32.xlu2 %v8192_v5, %s8704_s0 }
0x2a4f   : > { %v4404_v45 = vpop.xlane.xlu1 %4403 }
0x2a50   : > { %v4405_v59 = vsub.f32 %v4401_v52, %v4404_v45  ;;  %v6829_v45 = vld [vmem:[%s8686_s5 + $0x1] ss:$0 sm:$0xff] }
0x2a52   : > { %v4406_v60 = vmul.f32 1.442695, %v4405_v59 }
0x2a54   : > { %6963 = vpow2.f32 %v4406_v60 }
0x2a56   : > { %v4206_v63 = vpop.xlane.xlu0 %4205 }
0x2a57   : > { %6965 = vrcp.f32 %v4206_v63 }
0x2a5a   : > { %v6964_v61 = vpop.eup %6963 }
0x2a5b   : > { %v4408_v62 = vsel %vm1439_vm3, %v6964_v61, 0.0 }
0x2a5c   : > { %4409 = vadd.xlane.f32.xlu1 %v4408_v62 }
0x2a5d   : > { %v6966_v1 = vpop.eup %6965 }
0x2a5e   : > { %v4319_v0 = vpop.xlane.xlu2 %4318  ;;  %v4208_v2 = vmul.f32 %v6966_v1, %v6960_v54 }
0x2a5f   : > { %6967 = vrcp.f32 %v4319_v0 }
0x2a65   : > { %v6968_v6 = vpop.eup %6967 }
0x2a66   : > { %v4323_v38 = vpop.permute.xlu2 %4322  ;;  %v4321_v43 = vmul.f32 %v6968_v6, %v6962_v57 }
0x2a69   : > { %v4210_v3 = vpop.permute.xlu0 %4209 }
0x2a6a   : > { %4230 = vmatpush.msra.mxu1 %v4210_v3 }
0x2a6b   : > { %6496 = vmatmul.msk.f32.vlgmr.msra.gmra.mxu1 %vm1439_vm3, %v4208_v2 }
0x2a6c   : > { %4343 = vmatpush.msrb.mxu1 %v4323_v38 }
0x2a6e   : > { %4457 = vmatpush.msra.mxu1 %v6488_v20 }
0x2a73   : > { %6501 = vmatmul.msk.f32.vlgmr.msrb.gmra.mxu1 %vm1439_vm3, %v4321_v43 }
0x2a75   : > { %4413 = vrot.lane.b32.xlu1 %v8192_v5, %s8675_s28 }
0x2acf   : > { %v4410_v12 = vpop.xlane.xlu1 %4409 }
0x2ad0   : > { %6969 = vrcp.f32 %v4410_v12 }
0x2ad6   : > { %v6970_v13 = vpop.eup %6969 }
0x2ad7   : > { %v4412_v7 = vmul.f32 %v6970_v13, %v6964_v61 }
0x2ae7   : > { %v4414_v16 = vpop.permute.xlu1 %4413 }
0x2ae8   : > { %v4232_v18 = vpop.f32.mrf.mxu1  ;;  %4434 = vmatpush.msra.mxu2 %v4414_v16 }
0x2ae9   : > { %6497 = vmatmul.msk.f32.vlgmr.msrb.gmra.mxu0 %vm1439_vm3, %v4232_v18  ;;  %6505 = vmatmul.msk.f32.vlgmr.msra.gmra.mxu2 %vm1439_vm3, %v4412_v7  ;;  %v6519_v18 = vld [vmem:[%s8689_s11 + $0x20] sm:$0xff] }
0x2aea   : > { %6526 = vmatpush.xpose.msk.msrb.mxu2 %vm1439_vm3, %v8253_v17  ;;  %4541 = vmatpush.msrb.mxu0 %v6512_v37 }
0x2af0   : > { %v4345_v5 = vpop.f32.mrf.mxu1 }
0x2af1   : > { %6502 = vmatmul.msk.f32.vlgmr.msra.gmra.mxu0 %vm1439_vm3, %v4345_v5 }
0x2b66   : > { %v4255_v21 = vpop.f32.mrf.mxu0 }
0x2b67   : > { %v4279_v24 = vadd.f32 %v8235_v4, %v4255_v21 }
0x2b6c   : > { %v4436_v11 = vpop.f32.mrf.mxu2 }
0x2b6d   : > { %6506 = vmatmul.msk.f32.vlgmr.msra.gmra.mxu1 %vm1439_vm3, %v4436_v11 }
0x2b6e   : > { %v4368_v23 = vpop.f32.mrf.mxu0 }
0x2b6f   : > { %v4371_v25 = vadd.f32 %v4368_v23, %v4279_v24 }
0x2bea   : > { %v4459_v27 = vpop.f32.mrf.mxu1 }
0x2beb   : > { %v4462_v28 = vadd.f32 %v4459_v27, %v4371_v25 }
0x2bed   : > { %v4466_v29 = vadd.f32 %v6826_v26, %v4462_v28 }
0x2bef   : > { %v4467_v30 = vadd.f32 %v4466_v29, %v8187_v8  ;;  %v6511_v8 = vld [vmem:[%s8681_s18 + $0x30] sm:$0xff] }
0x2bf0   : > { %4542 = vmatpush.msrb.mxu0 %v6511_v8 }
0x2bf1   : > { %v4472_v31 = vsel %vm1412_vm2, %v4467_v30, 0.0 }
0x2bf2   : > { %4473 = vadd.xlane.f32.xlu0 %v4472_v31  ;;  %4543 = vmatpush.msrb.mxu0 %v6510_v40 }
0x2bf4   : > { %4544 = vmatpush.msrb.mxu0 %v6509_v41 }
0x2c65   : > { %v4474_v32 = vpop.xlane.xlu0 %4473 }
0x2c66   : > { %v4475_v33 = vmul.f32 %v4474_v32, %v7803_v39 }
0x2c68   : > { %v4476_v34 = vsub.f32 %v4467_v30, %v4475_v33 }
0x2c6a   : > { %v4477_v35 = vmul.f32 %v4476_v34, %v4476_v34 }
0x2c6c   : > { %v4478_v36 = vsel %vm1412_vm2, %v4477_v35, 0.0 }
0x2c6d   : > { %4479 = vadd.xlane.f32.xlu1 %v4478_v36 }
0x2c86   : > { %4639 = vrot.lane.b32.xlu1 %v8253_v17, %s8690_s12 }
0x2c8e   : > { %4843 = vrot.lane.b32.xlu1 %v8253_v17, %s8688_s9 }
0x2ce0   : > { %v4480_v44 = vpop.xlane.xlu1 %4479 }
0x2ce1   : > { %v4481_v4 = vmul.f32 %v4480_v44, %v7803_v39 }
0x2ce3   : > { %v4482_v47 = vadd.f32 1e-05, %v4481_v4 }
0x2ce5   : > { %6971 = vrsqrt.f32 %v4482_v47  ;;  %vm4489_vm14 = vweird.f32 %v4482_v47 }
0x2ceb   : > { %v6972_v48 = vpop.eup %6971 }
0x2cec   : > { %v4484_v49 = vmul.f32 %v6972_v48, %v4482_v47  ;;  %vm4490_vm13 = vweird.f32 %v6972_v48 }
0x2ced   : > { %vm4491_vm15 = vmor %vm4489_vm14, %vm4490_vm13 }
0x2cee   : > { %v4485_v50 = vmul.f32 %v6972_v48, %v4484_v49 }
0x2cf0   : > { %v4486_v51 = vmul.f32 0.5, %v4485_v50 }
0x2cf2   : > { %v4487_v52 = vsub.f32 1.5, %v4486_v51 }
0x2cf4   : > { %v4488_v53 = vmul.f32 %v6972_v48, %v4487_v52 }
0x2cf6   : > { %v4492_v46 = vsel %vm4491_vm15, %v6972_v48, %v4488_v53 }
0x2cf7   : > { %v4493_v54 = vmul.f32 %v4492_v46, %v4476_v34 }
0x2cf8   : > { %v4640_v56 = vpop.permute.xlu1 %4639 }
0x2cf9   : > { %v4497_v57 = vmul.f32 %v6827_v42, %v4493_v54  ;;  %6529 = vmatpush.xpose.msk.msra.mxu0 %vm1439_vm3, %v4640_v56 }
0x2cfb   : > { %v8280_v58 = vadd.f32 %v6828_v55, %v4497_v57 }
0x2cfd   : > { %6524 = vmatmul.msk.f32.vlgmr.msrb.gmra.mxu0 %vm1412_vm2, %v8280_v58 }
0x2d00   : > { %v4844_v5 = vpop.permute.xlu1 %4843 }
0x2d7a   : > { %v4546_v59 = vpop.f32.mrf.mxu0 }
0x2d7b   : > { %v4547_v60 = vadd.f32 %v6829_v45, %v4546_v59  ;;  %v6520_v45 = vld [vmem:[%s8689_s11 + $0x28] sm:$0xff] }
0x2d7c   : > { %4722 = vmatpush.msra.mxu2 %v6520_v45 }
0x2d7d   : > { %6527 = vmatmul.msk.f32.vlgmr.msrb.gmra.mxu2 %vm1439_vm3, %v4547_v60 }
0x2e00   : > { %v4595_v61 = vpop.f32.mrf.mxu2 }
0x2e01   : > { %v4598_v62 = vmul.f32 0.35355338, %v4595_v61 }
0x2e03   : > { %v4599_v63 = vadd.f32 %v4598_v62, %v7762_v22 }
0x2e05   : > { %v4600_v0 = vsel %vm1439_vm3, %v4599_v63, -inf }
0x2e06   : > { %4601 = vmax.xlane.f32.xlu2 %v4600_v0 }
0x2e1e   : > { %4637 = vrot.lane.b32.xlu2 %v4547_v60, %s8690_s12 }
0x2e26   : > { %4750 = vrot.lane.b32.xlu2 %v4547_v60, %s8691_s13 }
0x2e79   : > { %v4602_v1 = vpop.xlane.xlu2 %4601 }
0x2e7a   : > { %v4603_v2 = vsub.f32 %v4599_v63, %v4602_v1 }
0x2e7c   : > { %v4604_v3 = vmul.f32 1.442695, %v4603_v2 }
0x2e7e   : > { %6973 = vpow2.f32 %v4604_v3 }
0x2e81   : > { %v4638_v38 = vpop.permute.xlu2 %4637 }
0x2e82   : > { %6530 = vmatmul.msk.f32.vlgmr.msra.gmra.mxu0 %vm1439_vm3, %v4638_v38 }
0x2e84   : > { %v6974_v6 = vpop.eup %6973 }
0x2e85   : > { %v4606_v43 = vsel %vm1439_vm3, %v6974_v6, 0.0 }
0x2e86   : > { %4607 = vadd.xlane.f32.xlu0 %v4606_v43 }
0x2e89   : > { %v4751_v11 = vpop.permute.xlu2 %4750 }
0x2e9a   : > { %4611 = vrot.lane.b32.xlu0 %v8253_v17, %s8687_s6 }
0x2ea2   : > { %4752 = vrot.lane.b32.xlu0 %v8253_v17, %s8691_s13 }
0x2eaa   : > { %4841 = vrot.lane.b32.xlu0 %v4547_v60, %s8688_s9  ;;  %v6521_v60 = vld [vmem:[%s8689_s11 + $0x30] sm:$0xff] }
0x2eab   : > { %4835 = vmatpush.msrb.mxu2 %v6521_v60 }
0x2ef9   : > { %v4608_v10 = vpop.xlane.xlu0 %4607 }
0x2efa   : > { %6975 = vrcp.f32 %v4608_v10 }
0x2eff   : > { %v4662_v9 = vpop.f32.mrf.mxu0 }
0x2f00   : > { %v4665_v12 = vmul.f32 0.35355338, %v4662_v9  ;;  %v6976_v15 = vpop.eup %6975  ;;  %v6830_v9 = vld [vmem:[%s8695_s19 + $0x1] ss:$0 sm:$0xff] }
0x2f01   : > { %v4610_v7 = vmul.f32 %v6976_v15, %v6974_v6 }
0x2f02   : > { %v4666_v13 = vadd.f32 %v4665_v12, %v7762_v22 }
0x2f04   : > { %v4667_v14 = vsel %vm1439_vm3, %v4666_v13, -inf }
0x2f05   : > { %4668 = vmax.xlane.f32.xlu2 %v4667_v14 }
0x2f0c   : > { %v4612_v16 = vpop.permute.xlu0 %4611 }
0x2f0d   : > { %4632 = vmatpush.msrb.mxu1 %v4612_v16 }
0x2f0e   : > { %6528 = vmatmul.msk.f32.vlgmr.msrb.gmra.mxu1 %vm1439_vm3, %v4610_v7 }
0x2f0f   : > { %4745 = vmatpush.msra.mxu1 %v6519_v18 }
0x2f11   : > { %6538 = vmatpush.xpose.msk.msrb.mxu1 %vm1439_vm3, %v4844_v5 }
0x2f14   : > { %v4753_v20 = vpop.permute.xlu0 %4752 }
0x2f15   : > { %6534 = vmatpush.xpose.msk.msrb.mxu0 %vm1439_vm3, %v4753_v20 }
0x2f18   : > { %6535 = vmatmul.msk.f32.vlgmr.msrb.gmra.mxu0 %vm1439_vm3, %v4751_v11  ;;  %v4975_v11 = vld [vmem:[#allocation9 + $0x38] sm:$0xff] }
0x2f1c   : > { %v4842_v28 = vpop.permute.xlu0 %4841 }
0x2f78   : > { %v4669_v21 = vpop.xlane.xlu2 %4668 }
0x2f79   : > { %v4670_v23 = vsub.f32 %v4666_v13, %v4669_v21  ;;  %v4974_v21 = vld [vmem:[#allocation9 + $0x30] sm:$0xff] }
0x2f7b   : > { %v4671_v24 = vmul.f32 1.442695, %v4670_v23  ;;  %v4972_v23 = vld [vmem:[#allocation9 + $0x20] sm:$0xff] }
0x2f7d   : > { %6977 = vpow2.f32 %v4671_v24  ;;  %v6552_v24 = vld [vmem:[%s8696_s20 + $0x78] sm:$0xff] }
0x2f83   : > { %v6978_v25 = vpop.eup %6977 }
0x2f84   : > { %v4673_v26 = vsel %vm1439_vm3, %v6978_v25, 0.0 }
0x2f85   : > { %4674 = vadd.xlane.f32.xlu2 %v4673_v26  ;;  %v6550_v26 = vld [vmem:[%s8696_s20 + $0x68] sm:$0xff] }
0x2f8b   : > { %v4634_v27 = vpop.f32.mrf.mxu1 }
0x2f8c   : > { %6533 = vmatmul.msk.f32.vlgmr.msra.gmra.mxu1 %vm1439_vm3, %v4634_v27 }
0x2f8d   : > { %5030 = vmatpush.msra.mxu1 %v6552_v24 }
0x2f94   : > { %6539 = vmatmul.msk.f32.vlgmr.msrb.gmra.mxu1 %vm1439_vm3, %v4842_v28 }
0x2f95   : > { %v4775_v29 = vpop.f32.mrf.mxu0 }
0x2f96   : > { %v4778_v30 = vmul.f32 0.35355338, %v4775_v29  ;;  %v6549_v29 = vld [vmem:[%s8696_s20 + $0x60] sm:$0xff] }
0x2f98   : > { %v4779_v31 = vadd.f32 %v4778_v30, %v7762_v22 }
0x2f9a   : > { %v4780_v32 = vsel %vm1439_vm3, %v4779_v31, -inf }
0x2f9b   : > { %4781 = vmax.xlane.f32.xlu1 %v4780_v32 }
0x2ff8   : > { %v4675_v50 = vpop.xlane.xlu2 %4674 }
0x3009   : > { %v4747_v33 = vpop.f32.mrf.mxu1 }
0x300e   : > { %v4782_v34 = vpop.xlane.xlu1 %4781 }
0x300f   : > { %v4783_v35 = vsub.f32 %v4779_v31, %v4782_v34  ;;  %v6548_v31 = vld [vmem:[%s8696_s20 + $0x58] sm:$0xff] }
0x3011   : > { %v4784_v36 = vmul.f32 1.442695, %v4783_v35  ;;  %v4866_v37 = vpop.f32.mrf.mxu1 }
0x3012   : > { %v4869_v8 = vmul.f32 0.35355338, %v4866_v37 }
0x3013   : > { %6979 = vpow2.f32 %v4784_v36 }
0x3014   : > { %v4870_v40 = vadd.f32 %v4869_v8, %v7762_v22  ;;  %v6831_v8 = vld [vmem:[%s8697_s21 + $0x1] ss:$0 sm:$0xff] }
0x3016   : > { %v4871_v41 = vsel %vm1439_vm3, %v4870_v40, -inf }
0x3017   : > { %4872 = vmax.xlane.f32.xlu0 %v4871_v41  ;;  %v6832_v41 = vld [vmem:[%s8698_s22 + $0x1] ss:$0 sm:$0xff] }
0x3019   : > { %v6980_v44 = vpop.eup %6979 }
0x301a   : > { %v4786_v4 = vsel %vm1439_vm3, %v6980_v44, 0.0 }
0x301b   : > { %4787 = vadd.xlane.f32.xlu1 %v4786_v4 }
0x302b   : > { %4678 = vrot.lane.b32.xlu0 %v8253_v17, %s8693_s14 }
0x3034   : > { %4791 = vrot.lane.b32.xlu1 %v8253_v17, %s8692_s7 }
0x308a   : > { %v4873_v47 = vpop.xlane.xlu0 %4872 }
0x308b   : > { %v4874_v48 = vsub.f32 %v4870_v40, %v4873_v47 }
0x308d   : > { %v4875_v49 = vmul.f32 1.442695, %v4874_v48  ;;  %v6547_v48 = vld [vmem:[%s8696_s20 + $0x50] sm:$0xff] }
0x308e   : > { %v4788_v42 = vpop.xlane.xlu1 %4787 }
0x308f   : > { %6981 = vpow2.f32 %v4875_v49  ;;  %v6546_v49 = vld [vmem:[%s8696_s20 + $0x48] sm:$0xff] }
0x3090   : > { %6983 = vrcp.f32 %v4675_v50  ;;  %v6545_v50 = vld [vmem:[%s8696_s20 + $0x40] sm:$0xff] }
0x3091   : > { %6985 = vrcp.f32 %v4788_v42 }
0x3095   : > { %v6982_v51 = vpop.eup %6981 }
0x3096   : > { %v4877_v52 = vsel %vm1439_vm3, %v6982_v51, 0.0  ;;  %v6984_v53 = vpop.eup %6983 }
0x3097   : > { %4878 = vadd.xlane.f32.xlu2 %v4877_v52  ;;  %v4677_v46 = vmul.f32 %v6984_v53, %v6978_v25  ;;  %v6986_v55 = vpop.eup %6985  ;;  %v6551_v25 = vld [vmem:[%s8696_s20 + $0x70] sm:$0xff] }
0x3098   : > { %v4790_v56 = vmul.f32 %v6986_v55, %v6980_v44  ;;  %5031 = vmatpush.msra.mxu1 %v6551_v25 }
0x309a   : > { %5032 = vmatpush.msra.mxu1 %v6550_v26 }
0x309c   : > { %5033 = vmatpush.msra.mxu1 %v6549_v29 }
0x309d   : > { %v4679_v54 = vpop.permute.xlu0 %4678 }
0x309e   : > { %4699 = vmatpush.msra.mxu3 %v4679_v54  ;;  %5034 = vmatpush.msra.mxu1 %v6548_v31 }
0x309f   : > { %6531 = vmatmul.msk.f32.vlgmr.msra.gmra.mxu3 %vm1439_vm3, %v4677_v46  ;;  %v6834_v46 = vld [vmem:[%s8700_s25 + $0x1] ss:$0 sm:$0xff] }
0x30a0   : > { %5035 = vmatpush.msra.mxu1 %v6547_v48 }
0x30a2   : > { %5036 = vmatpush.msra.mxu1 %v6546_v49  ;;  %v6595_v49 = vld [vmem:[%s8677_s16 + $0x58] sm:$0xff] }
0x30a4   : > { %5037 = vmatpush.msra.mxu1 %v6545_v50 }
0x30a6   : > { %v4792_v57 = vpop.permute.xlu1 %4791 }
0x30a7   : > { %4812 = vmatpush.msrb.mxu3 %v4792_v57 }
0x30a8   : > { %6536 = vmatmul.msk.f32.vlgmr.msrb.gmra.mxu3 %vm1439_vm3, %v4790_v56 }
0x30af   : > { %4882 = vrot.lane.b32.xlu2 %v8253_v17, %s8694_s17  ;;  %v6522_v17 = vld [vmem:[%s8689_s11 + $0x38] sm:$0xff] }
0x30b0   : > { %4926 = vmatpush.msra.mxu3 %v6522_v17  ;;  %v6558_v17 = vld [vmem:[%s8671_s3 + $0x40] sm:$0xff] }
0x310a   : > { %v4879_v59 = vpop.xlane.xlu2 %4878 }
0x310b   : > { %6987 = vrcp.f32 %v4879_v59 }
0x3111   : > { %v6988_v61 = vpop.eup %6987 }
0x3112   : > { %v4881_v62 = vmul.f32 %v6988_v61, %v6982_v51  ;;  %v4883_v63 = vpop.permute.xlu2 %4882  ;;  %v6833_v51 = vld [vmem:[%s8699_s24 + $0x1] ss:$0 sm:$0xff] }
0x3113   : > { %4903 = vmatpush.msra.mxu0 %v4883_v63  ;;  %v6561_v63 = vld [vmem:[%s8671_s3 + $0x58] sm:$0xff] }
0x3114   : > { %6540 = vmatmul.msk.f32.vlgmr.msra.gmra.mxu0 %vm1439_vm3, %v4881_v62 }
0x3115   : > { %5109 = vmatpush.msrb.mxu0 %v6561_v63 }
0x3122   : > { %v4701_v0 = vpop.f32.mrf.mxu3 }
0x3123   : > { %6532 = vmatmul.msk.f32.vlgmr.msra.gmra.mxu2 %vm1439_vm3, %v4701_v0  ;;  %v6560_v0 = vld [vmem:[%s8671_s3 + $0x50] sm:$0xff] }
0x3124   : > { %5007 = vmatpush.msra.mxu2 %v4975_v11  ;;  %5110 = vmatpush.msrb.mxu0 %v6560_v0 }
0x3126   : > { %5008 = vmatpush.msra.mxu2 %v4974_v21 }
0x312b   : > { %v4814_v1 = vpop.f32.mrf.mxu3 }
0x312c   : > { %6537 = vmatmul.msk.f32.vlgmr.msrb.gmra.mxu2 %vm1439_vm3, %v4814_v1  ;;  %v6559_v1 = vld [vmem:[%s8671_s3 + $0x48] sm:$0xff] }
0x312d   : > { %5111 = vmatpush.msrb.mxu0 %v6559_v1 }
0x312f   : > { %5112 = vmatpush.msrb.mxu0 %v6558_v17 }
0x3191   : > { %v4905_v2 = vpop.f32.mrf.mxu0 }
0x3192   : > { %6541 = vmatmul.msk.f32.vlgmr.msra.gmra.mxu3 %vm1439_vm3, %v4905_v2 }
0x31a6   : > { %v4724_v3 = vpop.f32.mrf.mxu2 }
0x31a7   : > { %v4748_v6 = vadd.f32 %v4747_v33, %v4724_v3 }
0x31af   : > { %v4837_v38 = vpop.f32.mrf.mxu2 }
0x31b0   : > { %v4840_v43 = vadd.f32 %v4837_v38, %v4748_v6 }
0x3215   : > { %v4928_v10 = vpop.f32.mrf.mxu3 }
0x3216   : > { %v4931_v12 = vadd.f32 %v4928_v10, %v4840_v43 }
0x3218   : > { %v4935_v13 = vadd.f32 %v6830_v9, %v4931_v12 }
0x321a   : > { %v4936_v14 = vadd.f32 %v4935_v13, %v8280_v58  ;;  %v4973_v58 = vld [vmem:[#allocation9 + $0x28] sm:$0xff] }
0x321b   : > { %5009 = vmatpush.msra.mxu2 %v4973_v58  ;;  %v6563_v58 = vld [vmem:[%s8673_s23 + $0x40] sm:$0xff] }
0x321c   : > { %v4941_v15 = vsel %vm1412_vm2, %v4936_v14, 0.0  ;;  %5291 = vmatpush.msrb.mxu1 %v6563_v58 }
0x321d   : > { %4942 = vadd.xlane.f32.xlu0 %v4941_v15  ;;  %5010 = vmatpush.msra.mxu2 %v4972_v23 }
0x3290   : > { %v4943_v7 = vpop.xlane.xlu0 %4942 }
0x3291   : > { %v4944_v16 = vmul.f32 %v4943_v7, %v7803_v39  ;;  %v6836_v7 = vld [vmem:[%s8702_s29 + $0x1] ss:$0 sm:$0xff] }
0x3293   : > { %v4945_v18 = vsub.f32 %v4936_v14, %v4944_v16  ;;  %v6835_v14 = vld [vmem:[%s8701_s27 + $0x1] ss:$0 sm:$0xff] }
0x3295   : > { %v4946_v5 = vmul.f32 %v4945_v18, %v4945_v18 }
0x3297   : > { %v4947_v20 = vsel %vm1412_vm2, %v4946_v5, 0.0 }
0x3298   : > { %4948 = vadd.xlane.f32.xlu1 %v4947_v20  ;;  %v6837_v20 = vld [vmem:[%s8672_s1 + $0x2] ss:$0 sm:$0xff] }
0x330b   : > { %v4949_v27 = vpop.xlane.xlu1 %4948 }
0x330c   : > { %v4950_v28 = vmul.f32 %v4949_v27, %v7803_v39 }
0x330e   : > { %v4951_v30 = vadd.f32 1e-05, %v4950_v28 }
0x3310   : > { %6989 = vrsqrt.f32 %v4951_v30  ;;  %vm4958_vm4 = vweird.f32 %v4951_v30 }
0x3316   : > { %v6990_v32 = vpop.eup %6989 }
0x3317   : > { %v4953_v33 = vmul.f32 %v6990_v32, %v4951_v30  ;;  %vm4959_vm0 = vweird.f32 %v6990_v32 }
0x3318   : > { %vm4960_vm5 = vmor %vm4958_vm4, %vm4959_vm0 }
0x3319   : > { %v4954_v34 = vmul.f32 %v6990_v32, %v4953_v33 }
0x331b   : > { %v4955_v35 = vmul.f32 0.5, %v4954_v34 }
0x331d   : > { %v4956_v36 = vsub.f32 1.5, %v4955_v35 }
0x331f   : > { %v4957_v37 = vmul.f32 %v6990_v32, %v4956_v36 }
0x3321   : > { %v4961_v40 = vsel %vm4960_vm5, %v6990_v32, %v4957_v37 }
0x3322   : > { %v4962_v44 = vmul.f32 %v4961_v40, %v4945_v18 }
0x3324   : > { %v4966_v4 = vmul.f32 %v6831_v8, %v4962_v44 }
0x3326   : > { %v4970_v47 = vadd.f32 %v6832_v41, %v4966_v4 }
0x3328   : > { %6554 = vmatmul.msk.f32.vlgmr.msra.gmra.mxu2 %vm1412_vm2, %v4970_v47 }
0x33ab   : > { %v5012_v52 = vpop.f32.mrf.mxu2 }
0x33ac   : > { %v5013_v53 = vadd.f32 %v6833_v51, %v5012_v52  ;;  %v6594_v52 = vld [vmem:[%s8677_s16 + $0x50] sm:$0xff] }
0x33ae   : > { %v5015_v42 = vmax.f32 %v5013_v53, 0.0  ;;  %v6593_v53 = vld [vmem:[%s8677_s16 + $0x48] sm:$0xff] }
0x33b0   : > { %6555 = vmatmul.msk.f32.vlgmr.msra.gmra.mxu1 %vm1886_vm9, %v5015_v42 }
0x342d   : > { %v5039_v54 = vpop.f32.mrf.mxu1 }
0x342e   : > { %v5040_v55 = vadd.f32 %v6834_v46, %v5039_v54  ;;  %v6592_v54 = vld [vmem:[%s8677_s16 + $0x40] sm:$0xff] }
0x3430   : > { %v5042_v56 = vadd.f32 %v5040_v55, %v4970_v47 }
0x3432   : > { %v5047_v57 = vsel %vm1412_vm2, %v5042_v56, 0.0 }
0x3433   : > { %5048 = vadd.xlane.f32.xlu2 %v5047_v57 }
0x34a6   : > { %v5049_v45 = vpop.xlane.xlu2 %5048 }
0x34a7   : > { %v5050_v59 = vmul.f32 %v5049_v45, %v7803_v39 }
0x34a9   : > { %v5051_v60 = vsub.f32 %v5042_v56, %v5050_v59 }
0x34ab   : > { %v5052_v61 = vmul.f32 %v5051_v60, %v5051_v60 }
0x34ad   : > { %v5053_v62 = vsel %vm1412_vm2, %v5052_v61, 0.0 }
0x34ae   : > { %5054 = vadd.xlane.f32.xlu0 %v5053_v62 }
0x3521   : > { %v5055_v2 = vpop.xlane.xlu0 %5054 }
0x3522   : > { %v5056_v3 = vmul.f32 %v5055_v2, %v7803_v39 }
0x3524   : > { %v5057_v38 = vadd.f32 1e-05, %v5056_v3 }
0x3526   : > { %6991 = vrsqrt.f32 %v5057_v38  ;;  %vm5064_vm7 = vweird.f32 %v5057_v38 }
0x352c   : > { %v6992_v6 = vpop.eup %6991 }
0x352d   : > { %v5059_v43 = vmul.f32 %v6992_v6, %v5057_v38  ;;  %vm5065_vm6 = vweird.f32 %v6992_v6 }
0x352e   : > { %vm5066_vm8 = vmor %vm5064_vm7, %vm5065_vm6 }
0x352f   : > { %v5060_v9 = vmul.f32 %v6992_v6, %v5059_v43 }
0x3531   : > { %v5061_v10 = vmul.f32 0.5, %v5060_v9 }
0x3533   : > { %v5062_v12 = vsub.f32 1.5, %v5061_v10 }
0x3535   : > { %v5063_v13 = vmul.f32 %v6992_v6, %v5062_v12 }
0x3537   : > { %v5067_v15 = vsel %vm5066_vm8, %v6992_v6, %v5063_v13 }
0x3538   : > { %v5068_v16 = vmul.f32 %v5067_v15, %v5051_v60 }
0x353a   : > { %v5072_v18 = vmul.f32 %v6835_v14, %v5068_v16 }
0x353c   : > { %v8358_v5 = vadd.f32 %v6836_v7, %v5072_v18 }
0x353e   : > { %6568 = vmatmul.msk.f32.vlgmr.msrb.gmra.mxu0 %vm1412_vm2, %v8358_v5 }
0x35bb   : > { %v5114_v11 = vpop.f32.mrf.mxu0 }
0x35bc   : > { %v8363_v21 = vadd.f32 %v6837_v20, %v5114_v11 }
0x35be   : > { %5118 = vrot.lane.b32.xlu0 %v8363_v21, %s8687_s6 }
0x35c6   : > { %5183 = vrot.lane.b32.xlu0 %v8363_v21, %s8690_s12 }
0x35ce   : > { %5298 = vrot.lane.b32.xlu0 %v8363_v21, %s8692_s7 }
0x35d6   : > { %5389 = vrot.lane.b32.xlu0 %v8363_v21, %s8694_s17 }
0x3630   : > { %v5119_v23 = vpop.permute.xlu0 %5118 }
0x3631   : > { %6569 = vmatpush.xpose.msk.msrb.mxu3 %vm1439_vm3, %v5119_v23 }
0x3634   : > { %6570 = vmatmul.msk.f32.vlgmr.msrb.gmra.mxu3 %vm1439_vm3, %v8363_v21 }
0x3638   : > { %v5184_v24 = vpop.permute.xlu0 %5183 }
0x3640   : > { %v5299_v25 = vpop.permute.xlu0 %5298 }
0x3648   : > { %v5390_v26 = vpop.permute.xlu0 %5389 }
0x3649   : > { %6581 = vmatpush.xpose.msk.msra.mxu1 %vm1439_vm3, %v5390_v26 }
0x36b7   : > { %v5141_v27 = vpop.f32.mrf.mxu3 }
0x36b8   : > { %v5144_v28 = vmul.f32 0.35355338, %v5141_v27 }
0x36ba   : > { %v5145_v29 = vadd.f32 %v5144_v28, %v7762_v22 }
0x36bc   : > { %v5146_v30 = vsel %vm1439_vm3, %v5145_v29, -inf }
0x36bd   : > { %5147 = vmax.xlane.f32.xlu1 %v5146_v30 }
0x36d6   : > { %5157 = vrot.lane.b32.xlu1 %v8363_v21, %s8703_s30 }
0x36de   : > { %5296 = vrot.lane.b32.xlu1 %v8363_v21, %s8691_s13 }
0x3730   : > { %v5148_v31 = vpop.xlane.xlu1 %5147 }
0x3731   : > { %v5149_v32 = vsub.f32 %v5145_v29, %v5148_v31  ;;  %v6838_v29 = vld [vmem:[%s8684_s26 + $0x2] ss:$0 sm:$0xff] }
0x3733   : > { %v5150_v33 = vmul.f32 1.442695, %v5149_v32 }
0x3735   : > { %6993 = vpow2.f32 %v5150_v33 }
0x373b   : > { %v6994_v34 = vpop.eup %6993 }
0x373c   : > { %v5152_v35 = vsel %vm1439_vm3, %v6994_v34, 0.0 }
0x373d   : > { %5153 = vadd.xlane.f32.xlu2 %v5152_v35 }
0x3748   : > { %v5158_v36 = vpop.permute.xlu1 %5157 }
0x3749   : > { %5178 = vmatpush.msrb.mxu2 %v5158_v36 }
0x3750   : > { %v5297_v44 = vpop.permute.xlu1 %5296 }
0x3755   : > { %5185 = vrot.lane.b32.xlu2 %v8363_v21, %s8693_s14 }
0x375d   : > { %5387 = vrot.lane.b32.xlu2 %v8363_v21, %s8688_s9 }
0x37b0   : > { %v5154_v37 = vpop.xlane.xlu2 %5153 }
0x37b1   : > { %6995 = vrcp.f32 %v5154_v37 }
0x37b7   : > { %v6996_v8 = vpop.eup %6995 }
0x37b8   : > { %v5156_v40 = vmul.f32 %v6996_v8, %v6994_v34  ;;  %v5186_v41 = vpop.permute.xlu2 %5185  ;;  %v6566_v34 = vld [vmem:[%s8673_s23 + $0x58] sm:$0xff] }
0x37b9   : > { %6572 = vmatpush.xpose.msk.msra.mxu0 %vm1439_vm3, %v5186_v41  ;;  %v6839_v41 = vld [vmem:[%s8676_s15 + $0x2] ss:$0 sm:$0xff] }
0x37ba   : > { %6571 = vmatmul.msk.f32.vlgmr.msrb.gmra.mxu2 %vm1439_vm3, %v5156_v40 }
0x37bc   : > { %6573 = vmatmul.msk.f32.vlgmr.msra.gmra.mxu0 %vm1439_vm3, %v5184_v24  ;;  %v6564_v24 = vld [vmem:[%s8673_s23 + $0x48] sm:$0xff] }
0x37bd   : > { %6577 = vmatpush.xpose.msk.msrb.mxu0 %vm1439_vm3, %v5299_v25  ;;  %5268 = vmatpush.msra.mxu2 %v6564_v24  ;;  %v6565_v25 = vld [vmem:[%s8673_s23 + $0x50] sm:$0xff] }
0x37bf   : > { %5381 = vmatpush.msrb.mxu2 %v6565_v25 }
0x37c0   : > { %v5388_v56 = vpop.permute.xlu2 %5387 }
0x37c4   : > { %6578 = vmatmul.msk.f32.vlgmr.msrb.gmra.mxu0 %vm1439_vm3, %v5297_v44 }
0x3839   : > { %v5208_v4 = vpop.f32.mrf.mxu0 }
0x383a   : > { %v5211_v47 = vmul.f32 0.35355338, %v5208_v4 }
0x383c   : > { %v5212_v48 = vadd.f32 %v5211_v47, %v7762_v22 }
0x383d   : > { %v5180_v50 = vpop.f32.mrf.mxu2 }
0x383e   : > { %6576 = vmatmul.msk.f32.vlgmr.msrb.gmra.mxu1 %vm1439_vm3, %v5180_v50  ;;  %v5213_v51 = vsel %vm1439_vm3, %v5212_v48, -inf }
0x383f   : > { %5214 = vmax.xlane.f32.xlu1 %v5213_v51  ;;  %5579 = vmatpush.msrb.mxu1 %v6595_v49 }
0x3841   : > { %v5321_v42 = vpop.f32.mrf.mxu0  ;;  %5580 = vmatpush.msrb.mxu1 %v6594_v52 }
0x3842   : > { %v5324_v46 = vmul.f32 0.35355338, %v5321_v42 }
0x3843   : > { %5581 = vmatpush.msrb.mxu1 %v6593_v53 }
0x3844   : > { %v5325_v55 = vadd.f32 %v5324_v46, %v7762_v22  ;;  %v6590_v46 = vld [vmem:[%s8681_s18 + $0x58] sm:$0xff] }
0x3845   : > { %5582 = vmatpush.msrb.mxu1 %v6592_v54  ;;  %v6588_v54 = vld [vmem:[%s8681_s18 + $0x48] sm:$0xff] }
0x3846   : > { %6582 = vmatmul.msk.f32.vlgmr.msra.gmra.mxu1 %vm1439_vm3, %v5388_v56  ;;  %v5326_v57 = vsel %vm1439_vm3, %v5325_v55, -inf }
0x3847   : > { %5327 = vmax.xlane.f32.xlu0 %v5326_v57 }
0x384e   : > { %6603 = vmatmul.msk.f32.vlgmr.msrb.gmra.mxu1 %vm1412_vm2, %v8085_v19 }
0x38b2   : > { %v5215_v45 = vpop.xlane.xlu1 %5214 }
0x38b3   : > { %v5216_v59 = vsub.f32 %v5212_v48, %v5215_v45 }
0x38b5   : > { %v5217_v60 = vmul.f32 1.442695, %v5216_v59 }
0x38b7   : > { %6997 = vpow2.f32 %v5217_v60 }
0x38ba   : > { %v5328_v61 = vpop.xlane.xlu0 %5327 }
0x38bb   : > { %v5329_v62 = vsub.f32 %v5325_v55, %v5328_v61  ;;  %v8406_v63 = vpop.f32.mrf.mxu1  ;;  %v6587_v55 = vld [vmem:[%s8681_s18 + $0x40] sm:$0xff] }
0x38bd   : > { %v6998_v0 = vpop.eup %6997  ;;  %v5330_v1 = vmul.f32 1.442695, %v5329_v62 }
0x38be   : > { %v5219_v17 = vsel %vm1439_vm3, %v6998_v0, 0.0 }
0x38bf   : > { %6999 = vpow2.f32 %v5330_v1  ;;  %5220 = vadd.xlane.f32.xlu1 %v5219_v17  ;;  %v6840_v17 = vld [vmem:[%s8682_s4 + $0x2] ss:$0 sm:$0xff] }
0x38c3   : > { %v5412_v2 = vpop.f32.mrf.mxu1 }
0x38c4   : > { %v5415_v3 = vmul.f32 0.35355338, %v5412_v2 }
0x38c5   : > { %v7000_v38 = vpop.eup %6999 }
0x38c6   : > { %v5416_v6 = vadd.f32 %v5415_v3, %v7762_v22  ;;  %v5332_v19 = vsel %vm1439_vm3, %v7000_v38, 0.0  ;;  %v6841_v3 = vld [vmem:[%s8683_s10 + $0x2] ss:$0 sm:$0xff] }
0x38c7   : > { %5333 = vadd.xlane.f32.xlu0 %v5332_v19 }
0x38c8   : > { %v5417_v43 = vsel %vm1439_vm3, %v5416_v6, -inf }
0x38c9   : > { %5418 = vmax.xlane.f32.xlu2 %v5417_v43  ;;  %v6842_v43 = vld [vmem:[%s8686_s5 + $0x2] ss:$0 sm:$0xff] }
0x38cb   : > { %v5584_v30 = vpop.f32.mrf.mxu1 }
0x38db   : > { %5337 = vrot.lane.b32.xlu0 %v8363_v21, %s8704_s0 }
0x38e1   : > { %5224 = vrot.lane.b32.xlu2 %v8363_v21, %s8674_s2 }
0x3932   : > { %v5221_v9 = vpop.xlane.xlu1 %5220 }
0x3933   : > { %7001 = vrcp.f32 %v5221_v9 }
0x3939   : > { %v7002_v14 = vpop.eup %7001 }
0x393a   : > { %v5334_v15 = vpop.xlane.xlu0 %5333  ;;  %v5223_v7 = vmul.f32 %v7002_v14, %v6998_v0 }
0x393c   : > { %v5419_v10 = vpop.xlane.xlu2 %5418 }
0x393d   : > { %v5420_v12 = vsub.f32 %v5416_v6, %v5419_v10 }
0x393f   : > { %v5421_v13 = vmul.f32 1.442695, %v5420_v12 }
0x3941   : > { %7003 = vpow2.f32 %v5421_v13 }
0x3942   : > { %7005 = vrcp.f32 %v5334_v15 }
0x3944   : > { %v5225_v16 = vpop.permute.xlu2 %5224 }
0x3945   : > { %5245 = vmatpush.msra.mxu3 %v5225_v16 }
0x3946   : > { %6574 = vmatmul.msk.f32.vlgmr.msra.gmra.mxu3 %vm1439_vm3, %v5223_v7 }
0x3947   : > { %v7004_v18 = vpop.eup %7003 }
0x3948   : > { %v5423_v20 = vsel %vm1439_vm3, %v7004_v18, 0.0  ;;  %v7006_v11 = vpop.eup %7005 }
0x3949   : > { %5424 = vadd.xlane.f32.xlu1 %v5423_v20  ;;  %v5336_v58 = vmul.f32 %v7006_v11, %v7000_v38 }
0x394d   : > { %v5338_v23 = vpop.permute.xlu0 %5337 }
0x394e   : > { %5358 = vmatpush.msrb.mxu3 %v5338_v23 }
0x394f   : > { %6579 = vmatmul.msk.f32.vlgmr.msrb.gmra.mxu3 %vm1439_vm3, %v5336_v58  ;;  %v6597_v58 = vld [vmem:[%s8689_s11 + $0x40] sm:$0xff] }
0x3950   : > { %5472 = vmatpush.msra.mxu3 %v6566_v34 }
0x3962   : > { %5428 = vrot.lane.b32.xlu1 %v8363_v21, %s8675_s28  ;;  %v8426_v21 = vadd.f32 %v6838_v29, %v5584_v30 }
0x39bc   : > { %v5425_v26 = vpop.xlane.xlu1 %5424 }
0x39bd   : > { %7007 = vrcp.f32 %v5425_v26 }
0x39c3   : > { %v7008_v28 = vpop.eup %7007 }
0x39c4   : > { %v5427_v32 = vmul.f32 %v7008_v28, %v7004_v18 }
0x39c9   : > { %v5247_v27 = vpop.f32.mrf.mxu3 }
0x39ca   : > { %6575 = vmatmul.msk.f32.vlgmr.msra.gmra.mxu2 %vm1439_vm3, %v5247_v27 }
0x39cb   : > { %5556 = vmatpush.msra.mxu2 %v6590_v46 }
0x39d2   : > { %v5360_v31 = vpop.f32.mrf.mxu3 }
0x39d3   : > { %6580 = vmatmul.msk.f32.vlgmr.msrb.gmra.mxu2 %vm1439_vm3, %v5360_v31 }
0x39d4   : > { %v5429_v33 = vpop.permute.xlu1 %5428 }
0x39d5   : > { %5449 = vmatpush.msra.mxu0 %v5429_v33 }
0x39d6   : > { %6583 = vmatmul.msk.f32.vlgmr.msra.gmra.mxu0 %vm1439_vm3, %v5427_v32 }
0x39d7   : > { %6604 = vmatpush.xpose.msk.msrb.mxu0 %vm1439_vm3, %v8426_v21 }
0x3a4d   : > { %v5270_v36 = vpop.f32.mrf.mxu2 }
0x3a4e   : > { %v5294_v8 = vadd.f32 %v8406_v63, %v5270_v36 }
0x3a53   : > { %v5451_v35 = vpop.f32.mrf.mxu0 }
0x3a54   : > { %6584 = vmatmul.msk.f32.vlgmr.msra.gmra.mxu3 %vm1439_vm3, %v5451_v35 }
0x3a56   : > { %v5383_v37 = vpop.f32.mrf.mxu2 }
0x3a57   : > { %v5386_v40 = vadd.f32 %v5383_v37, %v5294_v8 }
0x3ad7   : > { %v5474_v44 = vpop.f32.mrf.mxu3 }
0x3ad8   : > { %v5477_v4 = vadd.f32 %v5474_v44, %v5386_v40 }
0x3ada   : > { %v5481_v47 = vadd.f32 %v6839_v41, %v5477_v4 }
0x3adc   : > { %v5482_v48 = vadd.f32 %v5481_v47, %v8358_v5  ;;  %v6589_v5 = vld [vmem:[%s8681_s18 + $0x50] sm:$0xff] }
0x3add   : > { %5557 = vmatpush.msra.mxu2 %v6589_v5 }
0x3ade   : > { %v5487_v49 = vsel %vm1412_vm2, %v5482_v48, 0.0 }
0x3adf   : > { %5488 = vadd.xlane.f32.xlu2 %v5487_v49  ;;  %5558 = vmatpush.msra.mxu2 %v6588_v54 }
0x3ae1   : > { %5559 = vmatpush.msra.mxu2 %v6587_v55 }
0x3b52   : > { %v5489_v50 = vpop.xlane.xlu2 %5488 }
0x3b53   : > { %v5490_v51 = vmul.f32 %v5489_v50, %v7803_v39 }
0x3b55   : > { %v5491_v52 = vsub.f32 %v5482_v48, %v5490_v51 }
0x3b57   : > { %v5492_v53 = vmul.f32 %v5491_v52, %v5491_v52 }
0x3b59   : > { %v5493_v42 = vsel %vm1412_vm2, %v5492_v53, 0.0 }
0x3b5a   : > { %5494 = vadd.xlane.f32.xlu0 %v5493_v42 }
0x3b6e   : > { %5626 = vrot.lane.b32.xlu0 %v8426_v21, %s8687_s6 }
0x3b76   : > { %5858 = vrot.lane.b32.xlu0 %v8426_v21, %s8688_s9 }
0x3bcd   : > { %v5495_v56 = vpop.xlane.xlu0 %5494 }
0x3bce   : > { %v5496_v57 = vmul.f32 %v5495_v56, %v7803_v39 }
0x3bd0   : > { %v5497_v45 = vadd.f32 1e-05, %v5496_v57 }
0x3bd2   : > { %7009 = vrsqrt.f32 %v5497_v45  ;;  %vm5504_vm11 = vweird.f32 %v5497_v45 }
0x3bd8   : > { %v7010_v59 = vpop.eup %7009 }
0x3bd9   : > { %v5499_v60 = vmul.f32 %v7010_v59, %v5497_v45  ;;  %vm5505_vm10 = vweird.f32 %v7010_v59 }
0x3bda   : > { %vm5506_vm12 = vmor %vm5504_vm11, %vm5505_vm10 }
0x3bdb   : > { %v5500_v61 = vmul.f32 %v7010_v59, %v5499_v60 }
0x3bdd   : > { %v5501_v62 = vmul.f32 0.5, %v5500_v61 }
0x3bdf   : > { %v5502_v63 = vsub.f32 1.5, %v5501_v62 }
0x3be0   : > { %v5627_v0 = vpop.permute.xlu0 %5626 }
0x3be1   : > { %v5503_v1 = vmul.f32 %v7010_v59, %v5502_v63  ;;  %5647 = vmatpush.msrb.mxu3 %v5627_v0 }
0x3be3   : > { %v5507_v2 = vsel %vm5506_vm12, %v7010_v59, %v5503_v1  ;;  %5760 = vmatpush.msra.mxu3 %v6597_v58 }
0x3be4   : > { %v5508_v38 = vmul.f32 %v5507_v2, %v5491_v52 }
0x3be6   : > { %v5512_v6 = vmul.f32 %v6840_v17, %v5508_v38  ;;  %v6598_v38 = vld [vmem:[%s8689_s11 + $0x48] sm:$0xff] }
0x3be7   : > { %5737 = vmatpush.msra.mxu0 %v6598_v38 }
0x3be8   : > { %v8450_v19 = vadd.f32 %v6841_v3, %v5512_v6  ;;  %v5859_v24 = vpop.permute.xlu0 %5858  ;;  %v6599_v6 = vld [vmem:[%s8689_s11 + $0x50] sm:$0xff] }
0x3bea   : > { %6602 = vmatmul.msk.f32.vlgmr.msra.gmra.mxu2 %vm1412_vm2, %v8450_v19 }
0x3c6d   : > { %v5561_v9 = vpop.f32.mrf.mxu2 }
0x3c6e   : > { %v5562_v10 = vadd.f32 %v6842_v43, %v5561_v9 }
0x3c70   : > { %5856 = vrot.lane.b32.xlu0 %v5562_v10, %s8688_s9  ;;  %6605 = vmatmul.msk.f32.vlgmr.msrb.gmra.mxu0 %vm1439_vm3, %v5562_v10  ;;  %s8705_s9 = sld [smem:[#allocation62_spill]] }
0x3c71   : > { %5850 = vmatpush.msrb.mxu0 %v6599_v6 }
0x3c78   : > { %5765 = vrot.lane.b32.xlu0 %v5562_v10, %s8691_s13 }
0x3ce2   : > { %v5857_v28 = vpop.permute.xlu0 %5856 }
0x3cea   : > { %v5766_v31 = vpop.permute.xlu0 %5765 }
0x3ced   : > { %v5610_v12 = vpop.f32.mrf.mxu0 }
0x3cee   : > { %v5613_v13 = vmul.f32 0.35355338, %v5610_v12 }
0x3cf0   : > { %v5614_v14 = vadd.f32 %v5613_v13, %v7762_v22 }
0x3cf2   : > { %v5615_v15 = vsel %vm1439_vm3, %v5614_v14, -inf }
0x3cf3   : > { %5616 = vmax.xlane.f32.xlu1 %v5615_v15 }
0x3d0c   : > { %5652 = vrot.lane.b32.xlu1 %v5562_v10, %s8690_s12 }
0x3d66   : > { %v5617_v7 = vpop.xlane.xlu1 %5616 }
0x3d67   : > { %v5618_v16 = vsub.f32 %v5614_v14, %v5617_v7 }
0x3d69   : > { %v5619_v18 = vmul.f32 1.442695, %v5618_v16 }
0x3d6b   : > { %7011 = vpow2.f32 %v5619_v18 }
0x3d71   : > { %v7012_v20 = vpop.eup %7011 }
0x3d72   : > { %v5621_v11 = vsel %vm1439_vm3, %v7012_v20, 0.0 }
0x3d73   : > { %5622 = vadd.xlane.f32.xlu2 %v5621_v11  ;;  %v6843_v11 = vld [vmem:[%s8695_s19 + $0x2] ss:$0 sm:$0xff] }
0x3d7e   : > { %v5653_v29 = vpop.permute.xlu1 %5652 }
0x3d8b   : > { %5654 = vrot.lane.b32.xlu2 %v8426_v21, %s8690_s12 }
0x3d93   : > { %5767 = vrot.lane.b32.xlu2 %v8426_v21, %s8691_s13 }
0x3de6   : > { %v5623_v23 = vpop.xlane.xlu2 %5622 }
0x3de7   : > { %7013 = vrcp.f32 %v5623_v23 }
0x3ded   : > { %v7014_v25 = vpop.eup %7013 }
0x3dee   : > { %v5625_v26 = vmul.f32 %v7014_v25, %v7012_v20  ;;  %v5655_v27 = vpop.permute.xlu2 %5654 }
0x3def   : > { %6607 = vmatpush.xpose.msk.msrb.mxu2 %vm1439_vm3, %v5655_v27 }
0x3df0   : > { %6606 = vmatmul.msk.f32.vlgmr.msrb.gmra.mxu3 %vm1439_vm3, %v5625_v26 }
0x3df1   : > { %6616 = vmatpush.xpose.msk.msrb.mxu3 %vm1439_vm3, %v5859_v24 }
0x3df2   : > { %6608 = vmatmul.msk.f32.vlgmr.msrb.gmra.mxu2 %vm1439_vm3, %v5653_v29 }
0x3df6   : > { %v5768_v30 = vpop.permute.xlu2 %5767 }
0x3df7   : > { %6612 = vmatpush.xpose.msk.msra.mxu2 %vm1439_vm3, %v5768_v30 }
0x3dfa   : > { %6613 = vmatmul.msk.f32.vlgmr.msra.gmra.mxu2 %vm1439_vm3, %v5766_v31 }
0x3e73   : > { %v5649_v32 = vpop.f32.mrf.mxu3 }
0x3e74   : > { %6611 = vmatmul.msk.f32.vlgmr.msra.gmra.mxu3 %vm1439_vm3, %v5649_v32  ;;  %v5990_v32 = vld [vmem:[#allocation9 + $0x58] sm:$0xff] }
0x3e75   : > { %v5677_v33 = vpop.f32.mrf.mxu2 }
0x3e76   : > { %v5680_v34 = vmul.f32 0.35355338, %v5677_v33  ;;  %v5989_v33 = vld [vmem:[#allocation9 + $0x50] sm:$0xff] }
0x3e78   : > { %v5681_v35 = vadd.f32 %v5680_v34, %v7762_v22  ;;  %v5987_v34 = vld [vmem:[#allocation9 + $0x40] sm:$0xff] }
0x3e7a   : > { %v5682_v36 = vsel %vm1439_vm3, %v5681_v35, -inf }
0x3e7b   : > { %5683 = vmax.xlane.f32.xlu2 %v5682_v36  ;;  %v6629_v36 = vld [vmem:[%s8696_s20 + $0xb0] sm:$0xff] }
0x3e7c   : > { %6617 = vmatmul.msk.f32.vlgmr.msrb.gmra.mxu3 %vm1439_vm3, %v5857_v28 }
0x3e7d   : > { %v5790_v37 = vpop.f32.mrf.mxu2 }
0x3e7e   : > { %v5793_v8 = vmul.f32 0.35355338, %v5790_v37  ;;  %v6628_v37 = vld [vmem:[%s8696_s20 + $0xa8] sm:$0xff] }
0x3e80   : > { %v5794_v40 = vadd.f32 %v5793_v8, %v7762_v22 }
0x3e82   : > { %v5795_v41 = vsel %vm1439_vm3, %v5794_v40, -inf }
0x3e83   : > { %5796 = vmax.xlane.f32.xlu0 %v5795_v41  ;;  %v6627_v41 = vld [vmem:[%s8696_s20 + $0xa0] sm:$0xff] }
0x3e97   : > { %5693 = vrot.lane.b32.xlu0 %v8426_v21, %s8693_s14  ;;  %s8707_s14 = sshll.u32 %s8705_s9, 3 }
0x3eee   : > { %v5684_v44 = vpop.xlane.xlu2 %5683 }
0x3eef   : > { %v5685_v4 = vsub.f32 %v5681_v35, %v5684_v44  ;;  %v6630_v35 = vld [vmem:[%s8696_s20 + $0xb8] sm:$0xff] }
0x3ef0   : > { %6045 = vmatpush.msra.mxu3 %v6630_v35 }
0x3ef1   : > { %v5686_v47 = vmul.f32 1.442695, %v5685_v4  ;;  %v6626_v4 = vld [vmem:[%s8696_s20 + $0x98] sm:$0xff] }
0x3ef2   : > { %6046 = vmatpush.msra.mxu3 %v6629_v36 }
0x3ef3   : > { %7015 = vpow2.f32 %v5686_v47 }
0x3ef4   : > { %6047 = vmatpush.msra.mxu3 %v6628_v37 }
0x3ef6   : > { %v5797_v48 = vpop.xlane.xlu0 %5796  ;;  %6048 = vmatpush.msra.mxu3 %v6627_v41 }
0x3ef7   : > { %v5798_v49 = vsub.f32 %v5794_v40, %v5797_v48  ;;  %v5762_v50 = vpop.f32.mrf.mxu3 }
0x3ef8   : > { %6049 = vmatpush.msra.mxu3 %v6626_v4 }
0x3ef9   : > { %v7016_v51 = vpop.eup %7015  ;;  %v5799_v52 = vmul.f32 1.442695, %v5798_v49 }
0x3efa   : > { %v5688_v53 = vsel %vm1439_vm3, %v7016_v51, 0.0 }
0x3efb   : > { %7017 = vpow2.f32 %v5799_v52  ;;  %5689 = vadd.xlane.f32.xlu2 %v5688_v53  ;;  %v6844_v53 = vld [vmem:[%s8697_s21 + $0x2] ss:$0 sm:$0xff] }
0x3eff   : > { %v5881_v42 = vpop.f32.mrf.mxu3 }
0x3f00   : > { %v5884_v46 = vmul.f32 0.35355338, %v5881_v42 }
0x3f01   : > { %v7018_v5 = vpop.eup %7017 }
0x3f02   : > { %v5885_v54 = vadd.f32 %v5884_v46, %v7762_v22  ;;  %v5801_v55 = vsel %vm1439_vm3, %v7018_v5, 0.0  ;;  %v6845_v46 = vld [vmem:[%s8698_s22 + $0x2] ss:$0 sm:$0xff] }
0x3f03   : > { %5802 = vadd.xlane.f32.xlu2 %v5801_v55 }
0x3f04   : > { %v5886_v56 = vsel %vm1439_vm3, %v5885_v54, -inf }
0x3f05   : > { %5887 = vmax.xlane.f32.xlu1 %v5886_v56  ;;  %v6625_v56 = vld [vmem:[%s8696_s20 + $0x90] sm:$0xff] }
0x3f06   : > { %6050 = vmatpush.msra.mxu3 %v6625_v56 }
0x3f09   : > { %v5694_v57 = vpop.permute.xlu0 %5693 }
0x3f0a   : > { %5714 = vmatpush.msra.mxu1 %v5694_v57  ;;  %v6624_v57 = vld [vmem:[%s8696_s20 + $0x88] sm:$0xff] }
0x3f0b   : > { %6051 = vmatpush.msra.mxu3 %v6624_v57 }
0x3f1b   : > { %5806 = vrot.lane.b32.xlu2 %v8426_v21, %s8692_s7 }
0x3f6e   : > { %v5690_v45 = vpop.xlane.xlu2 %5689 }
0x3f6f   : > { %7019 = vrcp.f32 %v5690_v45  ;;  %v6623_v45 = vld [vmem:[%s8696_s20 + $0x80] sm:$0xff] }
0x3f70   : > { %6052 = vmatpush.msra.mxu3 %v6623_v45 }
0x3f75   : > { %v7020_v59 = vpop.eup %7019 }
0x3f76   : > { %v5692_v60 = vmul.f32 %v7020_v59, %v7016_v51  ;;  %v5803_v61 = vpop.xlane.xlu2 %5802  ;;  %v6846_v59 = vld [vmem:[%s8699_s24 + $0x2] ss:$0 sm:$0xff] }
0x3f77   : > { %7021 = vrcp.f32 %v5803_v61 }
0x3f78   : > { %v5888_v62 = vpop.xlane.xlu1 %5887  ;;  %6609 = vmatmul.msk.f32.vlgmr.msra.gmra.mxu1 %vm1439_vm3, %v5692_v60 }
0x3f79   : > { %v5889_v22 = vsub.f32 %v5885_v54, %v5888_v62 }
0x3f7b   : > { %v5890_v63 = vmul.f32 1.442695, %v5889_v22  ;;  %v6847_v22 = vld [vmem:[%s8700_s25 + $0x2] ss:$0 sm:$0xff] }
0x3f7d   : > { %v7022_v0 = vpop.eup %7021  ;;  %7023 = vpow2.f32 %v5890_v63 }
0x3f7e   : > { %v5805_v1 = vmul.f32 %v7022_v0, %v7018_v5  ;;  %v5807_v17 = vpop.permute.xlu2 %5806 }
0x3f7f   : > { %5827 = vmatpush.msrb.mxu1 %v5807_v17 }
0x3f80   : > { %6614 = vmatmul.msk.f32.vlgmr.msrb.gmra.mxu1 %vm1439_vm3, %v5805_v1 }
0x3f83   : > { %v7024_v2 = vpop.eup %7023 }
0x3f84   : > { %v5892_v3 = vsel %vm1439_vm3, %v7024_v2, 0.0 }
0x3f85   : > { %5893 = vadd.xlane.f32.xlu1 %v5892_v3 }
0x3f9e   : > { %5897 = vrot.lane.b32.xlu1 %v8426_v21, %s8694_s17  ;;  %v6600_v21 = vld [vmem:[%s8689_s11 + $0x58] sm:$0xff]  ;;  %s8706_s17 = sld [smem:[#allocation60_spill]] }
0x3f9f   : > { %5941 = vmatpush.msra.mxu1 %v6600_v21 }
0x3fa4   : > { %s1358_s30 = scalar_lea.vmem %s8706_s17, %s8707_s14 }
0x3ff5   : > { %v5716_v43 = vpop.f32.mrf.mxu1 }
0x3ff6   : > { %6610 = vmatmul.msk.f32.vlgmr.msra.gmra.mxu0 %vm1439_vm3, %v5716_v43 }
0x3ff7   : > { %6022 = vmatpush.msra.mxu0 %v5990_v32  ;;  %v6126_v32 = vld [vmem:[%s7573_s8 + $0x10] sm:$0xff] }
0x3ff8   : > { %v5894_v10 = vpop.xlane.xlu1 %5893 }
0x3ff9   : > { %7025 = vrcp.f32 %v5894_v10  ;;  %6023 = vmatpush.msra.mxu0 %v5989_v33  ;;  %v6125_v33 = vld [vmem:[%s7573_s8 + $0x8] sm:$0xff] }
0x3ffd   : > { %v5829_v9 = vpop.f32.mrf.mxu1 }
0x3ffe   : > { %6615 = vmatmul.msk.f32.vlgmr.msrb.gmra.mxu0 %vm1439_vm3, %v5829_v9 }
0x3fff   : > { %v7026_v12 = vpop.eup %7025 }
0x4000   : > { %v5896_v13 = vmul.f32 %v7026_v12, %v7024_v2 }
0x4010   : > { %v5898_v14 = vpop.permute.xlu1 %5897 }
0x4011   : > { %5918 = vmatpush.msrb.mxu2 %v5898_v14 }
0x4012   : > { %6618 = vmatmul.msk.f32.vlgmr.msrb.gmra.mxu2 %vm1439_vm3, %v5896_v13 }
0x4073   : > { %v5739_v7 = vpop.f32.mrf.mxu0 }
0x4074   : > { %v5763_v18 = vadd.f32 %v5762_v50, %v5739_v7 }
0x407b   : > { %v5852_v16 = vpop.f32.mrf.mxu0 }
0x407c   : > { %v5855_v20 = vadd.f32 %v5852_v16, %v5763_v18  ;;  %v6848_v18 = vld [vmem:[%s8701_s27 + $0x2] ss:$0 sm:$0xff] }
0x4095   : > { %v5920_v15 = vpop.f32.mrf.mxu2 }
0x4096   : > { %6619 = vmatmul.msk.f32.vlgmr.msra.gmra.mxu1 %vm1439_vm3, %v5920_v15 }
0x4113   : > { %v5943_v58 = vpop.f32.mrf.mxu1 }
0x4114   : > { %v5946_v23 = vadd.f32 %v5943_v58, %v5855_v20  ;;  %v6849_v58 = vld [vmem:[%s8702_s29 + $0x2] ss:$0 sm:$0xff] }
0x4116   : > { %v5950_v24 = vadd.f32 %v6843_v11, %v5946_v23 }
0x4118   : > { %v5951_v25 = vadd.f32 %v5950_v24, %v8450_v19  ;;  %v5988_v19 = vld [vmem:[#allocation9 + $0x48] sm:$0xff] }
0x4119   : > { %6024 = vmatpush.msra.mxu0 %v5988_v19  ;;  %v6124_v19 = vld [vmem:[%s7573_s8] sm:$0xff] }
0x411a   : > { %v5956_v26 = vsel %vm1412_vm2, %v5951_v25, 0.0 }
0x411b   : > { %5957 = vadd.xlane.f32.xlu0 %v5956_v26  ;;  %6025 = vmatpush.msra.mxu0 %v5987_v34 }
0x418e   : > { %v5958_v27 = vpop.xlane.xlu0 %5957 }
0x418f   : > { %v5959_v28 = vmul.f32 %v5958_v27, %v7803_v39 }
0x4191   : > { %v5960_v29 = vsub.f32 %v5951_v25, %v5959_v28 }
0x4193   : > { %v5961_v30 = vmul.f32 %v5960_v29, %v5960_v29 }
0x4195   : > { %v5962_v31 = vsel %vm1412_vm2, %v5961_v30, 0.0 }
0x4196   : > { %5963 = vadd.xlane.f32.xlu1 %v5962_v31  ;;  %v6127_v31 = vld [vmem:[%s7573_s8 + $0x18] sm:$0xff] }
0x4197   : > { %6147 = vmatpush.msra.mxu2 %v6127_v31 }
0x4199   : > { %6148 = vmatpush.msra.mxu2 %v6126_v32 }
0x419b   : > { %6149 = vmatpush.msra.mxu2 %v6125_v33 }
0x419d   : > { %6150 = vmatpush.msra.mxu2 %v6124_v19 }
0x4209   : > { %v5964_v8 = vpop.xlane.xlu1 %5963 }
0x420a   : > { %v5965_v40 = vmul.f32 %v5964_v8, %v7803_v39 }
0x420c   : > { %v5966_v44 = vadd.f32 1e-05, %v5965_v40 }
0x420e   : > { %7027 = vrsqrt.f32 %v5966_v44  ;;  %vm5973_vm13 = vweird.f32 %v5966_v44 }
0x4214   : > { %v7028_v47 = vpop.eup %7027 }
0x4215   : > { %v5968_v48 = vmul.f32 %v7028_v47, %v5966_v44  ;;  %vm5974_vm3 = vweird.f32 %v7028_v47 }
0x4216   : > { %vm5975_vm14 = vmor %vm5973_vm13, %vm5974_vm3 }
0x4217   : > { %v5969_v49 = vmul.f32 %v7028_v47, %v5968_v48 }
0x4219   : > { %v5970_v50 = vmul.f32 0.5, %v5969_v49  ;;  %v6851_v49 = vld [vmem:[#allocation6] ss:$0 sm:$0xff] }
0x421b   : > { %v5971_v51 = vsub.f32 1.5, %v5970_v50 }
0x421d   : > { %v5972_v52 = vmul.f32 %v7028_v47, %v5971_v51 }
0x421f   : > { %v5976_v42 = vsel %vm5975_vm14, %v7028_v47, %v5972_v52  ;;  %v6850_v47 = vld [vmem:[#allocation7] ss:$0 sm:$0xff] }
0x4220   : > { %v5977_v5 = vmul.f32 %v5976_v42, %v5960_v29 }
0x4222   : > { %v5981_v54 = vmul.f32 %v6844_v53, %v5977_v5 }
0x4224   : > { %v5985_v55 = vadd.f32 %v6845_v46, %v5981_v54 }
0x4226   : > { %6632 = vmatmul.msk.f32.vlgmr.msra.gmra.mxu0 %vm1412_vm2, %v5985_v55 }
0x42a3   : > { %v6027_v60 = vpop.f32.mrf.mxu0 }
0x42a4   : > { %v6028_v61 = vadd.f32 %v6846_v59, %v6027_v60 }
0x42a6   : > { %v6030_v62 = vmax.f32 %v6028_v61, 0.0 }
0x42a8   : > { %6633 = vmatmul.msk.f32.vlgmr.msra.gmra.mxu3 %vm1886_vm9, %v6030_v62 }
0x432b   : > { %v6054_v63 = vpop.f32.mrf.mxu3 }
0x432c   : > { %v6055_v0 = vadd.f32 %v6847_v22, %v6054_v63 }
0x432e   : > { %v6057_v1 = vadd.f32 %v6055_v0, %v5985_v55 }
0x4330   : > { %v6062_v17 = vsel %vm1412_vm2, %v6057_v1, 0.0 }
0x4331   : > { %6063 = vadd.xlane.f32.xlu2 %v6062_v17 }
0x43a4   : > { %v6064_v2 = vpop.xlane.xlu2 %6063 }
0x43a5   : > { %v6065_v3 = vmul.f32 %v6064_v2, %v7803_v39 }
0x43a7   : > { %v6066_v38 = vsub.f32 %v6057_v1, %v6065_v3 }
0x43a9   : > { %v6067_v6 = vmul.f32 %v6066_v38, %v6066_v38 }
0x43ab   : > { %v6068_v43 = vsel %vm1412_vm2, %v6067_v6, 0.0 }
0x43ac   : > { %6069 = vadd.xlane.f32.xlu0 %v6068_v43 }
0x441f   : > { %v6070_v9 = vpop.xlane.xlu0 %6069 }
0x4420   : > { %v6071_v10 = vmul.f32 %v6070_v9, %v7803_v39 }
0x4422   : > { %v6072_v12 = vadd.f32 1e-05, %v6071_v10 }
0x4424   : > { %7029 = vrsqrt.f32 %v6072_v12  ;;  %vm6079_vm15 = vweird.f32 %v6072_v12 }
0x442a   : > { %v7030_v13 = vpop.eup %7029 }
0x442b   : > { %v6074_v14 = vmul.f32 %v7030_v13, %v6072_v12  ;;  %vm6080_vm9 = vweird.f32 %v7030_v13 }
0x442c   : > { %vm6081_vm0 = vmor %vm6079_vm15, %vm6080_vm9 }
0x442d   : > { %v6075_v21 = vmul.f32 %v7030_v13, %v6074_v14 }
0x442f   : > { %v6076_v15 = vmul.f32 0.5, %v6075_v21 }
0x4431   : > { %v6077_v7 = vsub.f32 1.5, %v6076_v15 }
0x4433   : > { %v6078_v16 = vmul.f32 %v7030_v13, %v6077_v7 }
0x4435   : > { %v6082_v20 = vsel %vm6081_vm0, %v7030_v13, %v6078_v16 }
0x4436   : > { %v6083_v11 = vmul.f32 %v6082_v20, %v6066_v38 }
0x4438   : > { %v6087_v23 = vmul.f32 %v6848_v18, %v6083_v11 }
0x443a   : > { %v6091_v24 = vadd.f32 %v6849_v58, %v6087_v23 }
0x443c   : > { %v6094_v25 = vsel %vm1412_vm2, %v6091_v24, 0.0 }
0x443d   : > { %6095 = vadd.xlane.f32.xlu1 %v6094_v25 }
0x44b0   : > { %v6096_v26 = vpop.xlane.xlu1 %6095 }
0x44b1   : > { %v6097_v27 = vmul.f32 %v6096_v26, %v7803_v39 }
0x44b3   : > { %v6098_v28 = vsub.f32 %v6091_v24, %v6097_v27 }
0x44b5   : > { %v6099_v29 = vmul.f32 %v6098_v28, %v6098_v28 }
0x44b7   : > { %v6100_v30 = vsel %vm1412_vm2, %v6099_v29, 0.0 }
0x44b8   : > { %6101 = vadd.xlane.f32.xlu0 %v6100_v30 }
0x452b   : > { %v6102_v34 = vpop.xlane.xlu0 %6101 }
0x452c   : > { %v6103_v35 = vmul.f32 %v6102_v34, %v7803_v39  ;;  %v6852_v39 = vld [vmem:[#allocation4] ss:$0 sm:$0xff] }
0x452e   : > { %v6104_v36 = vadd.f32 1e-05, %v6103_v35 }
0x4530   : > { %7031 = vrsqrt.f32 %v6104_v36  ;;  %vm6111_vm5 = vweird.f32 %v6104_v36 }
0x4536   : > { %v7032_v37 = vpop.eup %7031 }
0x4537   : > { %v6106_v8 = vmul.f32 %v7032_v37, %v6104_v36  ;;  %vm6112_vm4 = vweird.f32 %v7032_v37 }
0x4538   : > { %vm6113_vm6 = vmor %vm6111_vm5, %vm6112_vm4 }
0x4539   : > { %v6107_v40 = vmul.f32 %v7032_v37, %v6106_v8 }
0x453b   : > { %v6108_v41 = vmul.f32 0.5, %v6107_v40 }
0x453d   : > { %v6109_v44 = vsub.f32 1.5, %v6108_v41 }
0x453f   : > { %v6110_v4 = vmul.f32 %v7032_v37, %v6109_v44 }
0x4541   : > { %v6114_v48 = vsel %vm6113_vm6, %v7032_v37, %v6110_v4 }
0x4542   : > { %v6115_v50 = vmul.f32 %v6114_v48, %v6098_v28 }
0x4544   : > { %v6119_v51 = vmul.f32 %v6850_v47, %v6115_v50 }
0x4546   : > { %v6123_v52 = vadd.f32 %v6851_v49, %v6119_v51 }
0x4548   : > { %6636 = vmatmul.msk.f32.vlgmr.msra.gmra.mxu2 %vm1412_vm2, %v6123_v52 }
0x45cb   : > { %v6152_v53 = vpop.f32.mrf.mxu2 }
0x45cc   : > { %v6153_v42 = vadd.f32 %v6852_v39, %v6152_v53 }
0x45ce   : > { %6155 = vst.msk [vmem:[%s1358_s30] sm:$0xff] %vm1371_vm1, %v6153_v42 }
0x45cf PF: > { %s8708_s6 = sld [smem:[#allocation61_spill]] }
0x45d5   : > { %s98_s7 = sadd.s32 1, %s8708_s6  }
0x45d6   : > { %p95_p2 = scmp.ge.s32.totalorder %s98_s7, 4  }
0x45d8   :  { %97 = sbr.rel (!%p95_p2) target bundleno = 91 (0x5b), region = 352 }
0x45dd   :  { %6175 = vsyncpa [#allocation3], 1 }
0x45de   :  { %6177 = vsyncpa [#allocation3 + $0x1], 1 }
0x45df   :  { %6178 = vsyncpa [#allocation5], 1 }
0x45e0   :  { %6179 = vsyncpa [#allocation8], 1 }
0x45e1   :  { %6180 = vsyncpa [#allocation11], 1 }
0x45e2   :  { %6181 = vsyncpa [#allocation14], 1 }

</bundles_post_ra>
